<compile_context>
chip_gen: v5e
topology: v5e:2x2
jax: 0.10.0
libtpu: 0.0.40
codegen_flags: <defaults>
</compile_context>

<pallas_src>
import math
import numpy as np

import jax
import jax.numpy as jnp
from jax import lax
from jax.experimental import pallas as pl
from jax.experimental.pallas import tpu as pltpu

# ---------------- synthetic "opt" configuration ----------------
MODEL_SIZE = 128          # opt.model_size
N_HEADS    = 4
HEAD_DIM   = MODEL_SIZE // N_HEADS
INNER_SIZE = 256          # feed-forward inner size
N_LAYERS   = 2            # opt.layers
VOCAB      = 100
SRC_PAD    = 0            # onmt.constants.SRC_PAD
LN_EPS     = 1e-5
NEG_INF    = -1e9
SUBLANE    = 8

# v5e/v6e (1 TensorCore): 1 -> single grid step, batch folded into matmul M.
# v7x (2 TensorCores): set to 2 (requires B % 2 == 0) so both cores are fed.
NUM_BATCH_CHUNKS = 1


# =====================================================================
# In-kernel helpers (traced inside the Pallas kernel body)
# =====================================================================
def _layer_norm(x, g, b):
    mu = jnp.mean(x, axis=-1, keepdims=True)
    var = jnp.mean((x - mu) ** 2, axis=-1, keepdims=True)
    return (x - mu) * lax.rsqrt(var + LN_EPS) * g + b


def _softmax(s, approx=True):
    m = jnp.max(s, axis=-1, keepdims=True)
    e = jnp.exp(s - m)
    d = jnp.sum(e, axis=-1, keepdims=True)
    if approx:
        # EUP approximate reciprocal frees VALU slots for internal softmaxes.
        return e * pl.reciprocal(d, approx=True)
    return e / d                                   # exact (exported coverage)


def _bf16(x):
    return x.astype(jnp.bfloat16)


def _split_heads(x2d, bsz, seq):
    # [bsz*seq, H*Dh] -> [bsz*H, seq, Dh]   (head-major feature layout)
    x4 = x2d.reshape(bsz, seq, N_HEADS, HEAD_DIM)
    x4 = jnp.transpose(x4, (0, 2, 1, 3))
    return x4.reshape(bsz * N_HEADS, seq, HEAD_DIM)


def _merge_heads(x3d, bsz, seq):
    # [bsz*H, seq, Dh] -> [bsz*seq, H*Dh]
    x4 = x3d.reshape(bsz, N_HEADS, seq, HEAD_DIM)
    x4 = jnp.transpose(x4, (0, 2, 1, 3))
    return x4.reshape(bsz * seq, N_HEADS * HEAD_DIM)


# =====================================================================
# Fused decoder-stack kernel: all layers + final LayerNorm + coverage
# =====================================================================
def decoder_stack_kernel(x_ref, ctx_ref, ms_ref,
                         ln1g, ln1b, wqkv1, bqkv1, wo1, bo1,
                         ln2g, ln2b, wq2, bq2, wkv2, bkv2, wo2, bo2,
                         ln3g, ln3b, w1, b1, w2, b2,
                         fing, finb, out_ref, cov_ref):
    Bc, T, D = x_ref.shape
    S = ctx_ref.shape[1]
    H, Dh = N_HEADS, HEAD_DIM
    M = Bc * T
    n_layers = wqkv1.shape[0]

    x = x_ref[...].reshape(M, D).astype(jnp.float32)           # [M, D] fp32
    ctx = ctx_ref[...].reshape(Bc * S, D)                      # [Bc*S, D] bf16

    # Causal mask built in-kernel (no DMA), additive fp32, hoisted out of the layer loop.
    row = lax.broadcasted_iota(jnp.int32, (T, T), 0)
    col = lax.broadcasted_iota(jnp.int32, (T, T), 1)
    mask_t = jnp.where(col > row, NEG_INF, 0.0).astype(jnp.float32)        # [T, T]
    # Source padding mask, broadcast to (batch*head) once (hoisted).
    mask_s = jnp.broadcast_to(ms_ref[...].reshape(Bc, 1, 1, S),
                              (Bc, H, 1, S)).reshape(Bc * H, 1, S)

    cov = None
    for l in range(n_layers):                                  # static unrolled loop
        last = (l == n_layers - 1)

        # ---------------- self attention (pre-norm) ----------------
        xn = _layer_norm(x, ln1g[l], ln1b[l])                              # [M, D]
        qkv = jnp.dot(_bf16(xn), wqkv1[l],
                      preferred_element_type=jnp.float32) + bqkv1[l]       # [M, 3D]
        q = _split_heads(qkv[:, :D], Bc, T)          # scale pre-folded into weights
        k = _split_heads(qkv[:, D:2 * D], Bc, T)
        v = _split_heads(qkv[:, 2 * D:], Bc, T)                            # [Bc*H, T, Dh]
        s = jnp.einsum('gtd,gsd->gts', _bf16(q), _bf16(k),
                       preferred_element_type=jnp.float32) + mask_t        # [Bc*H, T, T]
        p = _softmax(s)
        attn = jnp.einsum('gts,gsd->gtd', _bf16(p), _bf16(v),
                          preferred_element_type=jnp.float32)              # [Bc*H, T, Dh]
        attn = _merge_heads(attn, Bc, T)                                   # [M, D]
        x = x + jnp.dot(_bf16(attn), wo1[l],
                        preferred_element_type=jnp.float32) + bo1[l]

        # ---------------- cross attention (pre-norm on query only) ----------------
        xn = _layer_norm(x, ln2g[l], ln2b[l])
        q = jnp.dot(_bf16(xn), wq2[l],
                    preferred_element_type=jnp.float32) + bq2[l]           # [M, D]
        q = _split_heads(q, Bc, T)
        kv = jnp.dot(ctx, wkv2[l],
                     preferred_element_type=jnp.float32) + bkv2[l]         # [Bc*S, 2D]
        k = _split_heads(kv[:, :D], Bc, S)
        v = _split_heads(kv[:, D:], Bc, S)
        s = jnp.einsum('gtd,gsd->gts', _bf16(q), _bf16(k),
                       preferred_element_type=jnp.float32) + mask_s        # [Bc*H, T, S]
        p = _softmax(s, approx=not last)      # exact reciprocal when coverage is exported
        attn = jnp.einsum('gts,gsd->gtd', _bf16(p), _bf16(v),
                          preferred_element_type=jnp.float32)
        attn = _merge_heads(attn, Bc, T)
        x = x + jnp.dot(_bf16(attn), wo2[l],
                        preferred_element_type=jnp.float32) + bo2[l]
        if last:
            cov = jnp.mean(p.reshape(Bc, H, T, S), axis=1)                 # [Bc, T, S]

        # ---------------- feed forward (pre-norm) ----------------
        xn = _layer_norm(x, ln3g[l], ln3b[l])
        h1 = jnp.maximum(
            jnp.dot(_bf16(xn), w1[l], preferred_element_type=jnp.float32) + b1[l], 0.0)
        x = x + jnp.dot(_bf16(h1), w2[l],
                        preferred_element_type=jnp.float32) + b2[l]

    # final LayerNorm (postprocess_layer) fused into the epilogue
    x = _layer_norm(x, fing[...], finb[...])
    out_ref[...] = x.reshape(Bc, T, D).astype(out_ref.dtype)
    cov_ref[...] = cov.astype(cov_ref.dtype)


def _invariant_spec(a):
    zeros = (0,) * a.ndim
    return pl.BlockSpec(a.shape, lambda c: zeros)


def _chunk_spec(shape, bc):
    trailing = (0,) * (len(shape) - 1)
    return pl.BlockSpec((bc,) + tuple(shape[1:]), lambda c: (c,) + trailing)


def run_decoder_stack(x, ctx_bf16, mask_s, stacked_params, fin_g, fin_b,
                      num_chunks=NUM_BATCH_CHUNKS):
    """x: [B,T,D] fp32, ctx_bf16: [B,S8,D] bf16, mask_s: [B,1,S8] fp32 additive."""
    B, T, D = x.shape
    S = ctx_bf16.shape[1]
    assert B % num_chunks == 0
    bc = B // num_chunks

    in_arrays = [x, ctx_bf16, mask_s] + list(stacked_params) + [fin_g, fin_b]
    in_specs = ([_chunk_spec(x.shape, bc),
                 _chunk_spec(ctx_bf16.shape, bc),
                 _chunk_spec(mask_s.shape, bc)]
                + [_invariant_spec(w) for w in stacked_params]
                + [_invariant_spec(fin_g), _invariant_spec(fin_b)])

    out_shape = (jax.ShapeDtypeStruct((B, T, D), jnp.float32),
                 jax.ShapeDtypeStruct((B, T, S), jnp.float32))
    out_specs = (_chunk_spec((B, T, D), bc), _chunk_spec((B, T, S), bc))

    return pl.pallas_call(
        decoder_stack_kernel,
        grid=(num_chunks,),
        out_shape=out_shape,
        in_specs=in_specs,
        out_specs=out_specs,
        compiler_params=pltpu.CompilerParams(
            dimension_semantics=("parallel",)),
    )(*in_arrays)


# =====================================================================
# Parameter initialization (deterministic, synthetic) + fusion (done once, outside jit)
# =====================================================================
def _linear(key, din, dout):
    w = jax.random.normal(key, (din, dout), jnp.float32) * (1.0 / math.sqrt(din))
    b = jnp.zeros((1, dout), jnp.float32)
    return w, b


def init_layer_params(key):
    D, F = MODEL_SIZE, INNER_SIZE
    ks = list(jax.random.split(key, 10))
    p = []
    # ln1 (preprocess_attn)
    p += [jnp.ones((1, D), jnp.float32), jnp.zeros((1, D), jnp.float32)]
    # self-attn q, k, v, o
    for i in range(4):
        w, b = _linear(ks[i], D, D)
        p += [w, b]
    # ln2 (preprocess_src_attn)
    p += [jnp.ones((1, D), jnp.float32), jnp.zeros((1, D), jnp.float32)]
    # cross-attn q, k, v, o
    for i in range(4):
        w, b = _linear(ks[4 + i], D, D)
        p += [w, b]
    # ln3 (preprocess_ffn)
    p += [jnp.ones((1, D), jnp.float32), jnp.zeros((1, D), jnp.float32)]
    # feed-forward
    w1, b1 = _linear(ks[8], D, F)
    w2, b2 = _linear(ks[9], F, D)
    p += [w1, b1, w2, b2]
    return p


def fuse_layer_params(p):
    """2-D lane-dense fused weights (QKV / KV concat along output columns),
    1/sqrt(Dh) folded into the Q weights/bias, MXU weights cast to bf16."""
    (ln1g, ln1b, wq1, bq1, wk1, bk1, wv1, bv1, wo1, bo1,
     ln2g, ln2b, wq2, bq2, wk2, bk2, wv2, bv2, wo2, bo2,
     ln3g, ln3b, w1, b1, w2, b2) = p
    scale = 1.0 / math.sqrt(HEAD_DIM)

    wqkv1 = _bf16(jnp.concatenate([wq1 * scale, wk1, wv1], axis=1))   # [D, 3D]
    bqkv1 = jnp.concatenate([bq1 * scale, bk1, bv1], axis=1)          # [1, 3D]
    wkv2 = _bf16(jnp.concatenate([wk2, wv2], axis=1))                 # [D, 2D]
    bkv2 = jnp.concatenate([bk2, bv2], axis=1)                        # [1, 2D]

    return [ln1g, ln1b, wqkv1, bqkv1, _bf16(wo1), bo1,
            ln2g, ln2b, _bf16(wq2 * scale), bq2 * scale, wkv2, bkv2, _bf16(wo2), bo2,
            ln3g, ln3b, _bf16(w1), b1, _bf16(w2), b2]


def fuse_and_stack_params(layer_params):
    """Fuse each layer then stack per-parameter across layers -> [L, ...] arrays."""
    fused = [fuse_layer_params(p) for p in layer_params]
    return [jnp.stack(ws, axis=0) for ws in zip(*fused)]


def sinusoid_pe(length, d_model):
    pos = np.arange(length, dtype=np.float32)[:, None]
    div = np.exp(np.arange(0, d_model, 2, dtype=np.float32)
                 * (-math.log(10000.0) / d_model))
    pe = np.zeros((length, d_model), np.float32)
    pe[:, 0::2] = np.sin(pos * div)
    pe[:, 1::2] = np.cos(pos * div)
    return jnp.asarray(pe)


# =====================================================================
# Full forward (matches TransformerDecoder.forward, eval mode)
# =====================================================================
def transformer_decoder_forward(inp, context_tbd, src, word_lut,
                                stacked_params, fin_g, fin_b):
    B, T = inp.shape
    S = context_tbd.shape[0]
    D = MODEL_SIZE
    S8 = ((S + SUBLANE - 1) // SUBLANE) * SUBLANE   # sublane-dense context only

    # --- process_embedding: lookup * sqrt(d) + positional encoding (glue) ---
    emb = jnp.take(word_lut, inp, axis=0) * math.sqrt(D)          # [B, T, D]
    emb = emb + sinusoid_pe(T, D)[None, :, :]
    # preprocess_layer is dropout-only ('d') -> identity in eval mode.
    x = emb.astype(jnp.float32)                                   # [B, T, D]

    # --- source padding mask (additive) ---
    pad_mask = jnp.where(src == SRC_PAD, NEG_INF, 0.0).astype(jnp.float32)   # [B, S]
    mask_s = jnp.full((B, 1, S8), NEG_INF, jnp.float32).at[:, 0, :S].set(pad_mask)

    # --- encoder context: time-major -> batch-major, bf16, sublane-padded only ---
    ctx_bsd = jnp.transpose(context_tbd, (1, 0, 2)).astype(jnp.bfloat16)     # [B, S, D]
    ctx = jnp.zeros((B, S8, D), jnp.bfloat16).at[:, :S, :].set(ctx_bsd)

    out, cov = run_decoder_stack(x, ctx, mask_s, stacked_params, fin_g, fin_b)

    hidden = jnp.transpose(out, (1, 0, 2))                        # [T, B, D] time-major
    coverage = cov[:, :, :S]                                      # [B, T, S]
    return {"hidden": hidden, "coverage": coverage, "context": context_tbd}


# =====================================================================
if __name__ == "__main__":
    key = jax.random.PRNGKey(0)
    B, T, S = 2, 8, 16

    k_inp, k_src, k_emb, k_ctx, k_layers = jax.random.split(key, 5)

    # target token ids: batch_size x len_tgt
    inp = jax.random.randint(k_inp, (B, T), 2, VOCAB, dtype=jnp.int32)
    # source token ids: batch_size x len_src, pad the tail
    src = jax.random.randint(k_src, (B, S), 2, VOCAB, dtype=jnp.int32)
    src = src.at[:, S - 3:].set(SRC_PAD)
    # encoder context: len_src x batch x d_model (time-major)
    context = jax.random.normal(k_ctx, (S, B, MODEL_SIZE), jnp.float32)

    # parameters (deterministic, synthetic)
    word_lut = jax.random.normal(k_emb, (VOCAB, MODEL_SIZE), jnp.float32) * 0.02
    layer_keys = jax.random.split(k_layers, N_LAYERS)
    layer_params = [init_layer_params(k) for k in layer_keys]
    fin_g = jnp.ones((1, MODEL_SIZE), jnp.float32)
    fin_b = jnp.zeros((1, MODEL_SIZE), jnp.float32)

    # Weight fusion (concat / bf16 cast / scale folding) hoisted out of the jitted fwd.
    stacked_params = fuse_and_stack_params(layer_params)

    fwd = jax.jit(transformer_decoder_forward)
    out = fwd(inp, context, src, word_lut, stacked_params, fin_g, fin_b)
    hidden = jax.block_until_ready(out["hidden"])
    coverage = jax.block_until_ready(out["coverage"])

    assert hidden.shape == (T, B, MODEL_SIZE)
    assert coverage.shape == (B, T, S)
    assert bool(jnp.all(jnp.isfinite(hidden)))
    assert bool(jnp.all(jnp.isfinite(coverage)))
    # coverage rows are softmax distributions (exact reciprocal on the last layer)
    assert bool(jnp.allclose(jnp.sum(coverage, axis=-1), 1.0, atol=2e-3))

    print("KERNEL_OK")
</pallas_src>

<mosaic_0001>
module attributes {stable_mosaic.version = 11 : i64} {
  func.func @decoder_stack_kernel(%arg0: i32, %arg1: memref<2x8x128xf32, #tpu.memory_space<vmem>>, %arg2: memref<2x16x128xbf16, #tpu.memory_space<vmem>>, %arg3: memref<2x1x16xf32, #tpu.memory_space<vmem>>, %arg4: memref<2x1x128xf32, #tpu.memory_space<vmem>>, %arg5: memref<2x1x128xf32, #tpu.memory_space<vmem>>, %arg6: memref<2x128x384xbf16, #tpu.memory_space<vmem>>, %arg7: memref<2x1x384xf32, #tpu.memory_space<vmem>>, %arg8: memref<2x128x128xbf16, #tpu.memory_space<vmem>>, %arg9: memref<2x1x128xf32, #tpu.memory_space<vmem>>, %arg10: memref<2x1x128xf32, #tpu.memory_space<vmem>>, %arg11: memref<2x1x128xf32, #tpu.memory_space<vmem>>, %arg12: memref<2x128x128xbf16, #tpu.memory_space<vmem>>, %arg13: memref<2x1x128xf32, #tpu.memory_space<vmem>>, %arg14: memref<2x128x256xbf16, #tpu.memory_space<vmem>>, %arg15: memref<2x1x256xf32, #tpu.memory_space<vmem>>, %arg16: memref<2x128x128xbf16, #tpu.memory_space<vmem>>, %arg17: memref<2x1x128xf32, #tpu.memory_space<vmem>>, %arg18: memref<2x1x128xf32, #tpu.memory_space<vmem>>, %arg19: memref<2x1x128xf32, #tpu.memory_space<vmem>>, %arg20: memref<2x128x256xbf16, #tpu.memory_space<vmem>>, %arg21: memref<2x1x256xf32, #tpu.memory_space<vmem>>, %arg22: memref<2x256x128xbf16, #tpu.memory_space<vmem>>, %arg23: memref<2x1x128xf32, #tpu.memory_space<vmem>>, %arg24: memref<1x128xf32, #tpu.memory_space<vmem>>, %arg25: memref<1x128xf32, #tpu.memory_space<vmem>>, %arg26: memref<2x8x128xf32, #tpu.memory_space<vmem>>, %arg27: memref<2x8x16xf32, #tpu.memory_space<vmem>>) attributes {dimension_semantics = [#tpu.dimension_semantics<parallel>], iteration_bounds = array<i64: 1>, scalar_prefetch = 0 : i64, scratch_operands = 0 : i64, tpu.core_type = #tpu.core_type<tc>, window_params = [{transform_indices = @transform_0, window_bounds = array<i64: 2, 8, 128>}, {transform_indices = @transform_1, window_bounds = array<i64: 2, 16, 128>}, {transform_indices = @transform_2, window_bounds = array<i64: 2, 1, 16>}, {pipeline_mode = #tpu.pipeline_mode<synchronous>, transform_indices = @transform_3, window_bounds = array<i64: 2, 1, 128>}, {pipeline_mode = #tpu.pipeline_mode<synchronous>, transform_indices = @transform_4, window_bounds = array<i64: 2, 1, 128>}, {pipeline_mode = #tpu.pipeline_mode<synchronous>, transform_indices = @transform_5, window_bounds = array<i64: 2, 128, 384>}, {pipeline_mode = #tpu.pipeline_mode<synchronous>, transform_indices = @transform_6, window_bounds = array<i64: 2, 1, 384>}, {pipeline_mode = #tpu.pipeline_mode<synchronous>, transform_indices = @transform_7, window_bounds = array<i64: 2, 128, 128>}, {pipeline_mode = #tpu.pipeline_mode<synchronous>, transform_indices = @transform_8, window_bounds = array<i64: 2, 1, 128>}, {pipeline_mode = #tpu.pipeline_mode<synchronous>, transform_indices = @transform_9, window_bounds = array<i64: 2, 1, 128>}, {pipeline_mode = #tpu.pipeline_mode<synchronous>, transform_indices = @transform_10, window_bounds = array<i64: 2, 1, 128>}, {pipeline_mode = #tpu.pipeline_mode<synchronous>, transform_indices = @transform_11, window_bounds = array<i64: 2, 128, 128>}, {pipeline_mode = #tpu.pipeline_mode<synchronous>, transform_indices = @transform_12, window_bounds = array<i64: 2, 1, 128>}, {pipeline_mode = #tpu.pipeline_mode<synchronous>, transform_indices = @transform_13, window_bounds = array<i64: 2, 128, 256>}, {pipeline_mode = #tpu.pipeline_mode<synchronous>, transform_indices = @transform_14, window_bounds = array<i64: 2, 1, 256>}, {pipeline_mode = #tpu.pipeline_mode<synchronous>, transform_indices = @transform_15, window_bounds = array<i64: 2, 128, 128>}, {pipeline_mode = #tpu.pipeline_mode<synchronous>, transform_indices = @transform_16, window_bounds = array<i64: 2, 1, 128>}, {pipeline_mode = #tpu.pipeline_mode<synchronous>, transform_indices = @transform_17, window_bounds = array<i64: 2, 1, 128>}, {pipeline_mode = #tpu.pipeline_mode<synchronous>, transform_indices = @transform_18, window_bounds = array<i64: 2, 1, 128>}, {pipeline_mode = #tpu.pipeline_mode<synchronous>, transform_indices = @transform_19, window_bounds = array<i64: 2, 128, 256>}, {pipeline_mode = #tpu.pipeline_mode<synchronous>, transform_indices = @transform_20, window_bounds = array<i64: 2, 1, 256>}, {pipeline_mode = #tpu.pipeline_mode<synchronous>, transform_indices = @transform_21, window_bounds = array<i64: 2, 256, 128>}, {pipeline_mode = #tpu.pipeline_mode<synchronous>, transform_indices = @transform_22, window_bounds = array<i64: 2, 1, 128>}, {pipeline_mode = #tpu.pipeline_mode<synchronous>, transform_indices = @transform_23, window_bounds = array<i64: 1, 128>}, {pipeline_mode = #tpu.pipeline_mode<synchronous>, transform_indices = @transform_24, window_bounds = array<i64: 1, 128>}, {transform_indices = @transform_25, window_bounds = array<i64: 2, 8, 128>}, {transform_indices = @transform_26, window_bounds = array<i64: 2, 8, 16>}]} {
    %c0 = arith.constant 0 : index
    %c0_0 = arith.constant 0 : index
    %c0_1 = arith.constant 0 : index
    %0 = vector.load %arg1[%c0, %c0_0, %c0_1] : memref<2x8x128xf32, #tpu.memory_space<vmem>>, vector<2x8x128xf32>
    %1 = vector.shape_cast %0 : vector<2x8x128xf32> to vector<16x128xf32>
    %c0_2 = arith.constant 0 : index
    %c0_3 = arith.constant 0 : index
    %c0_4 = arith.constant 0 : index
    %2 = vector.load %arg2[%c0_2, %c0_3, %c0_4] : memref<2x16x128xbf16, #tpu.memory_space<vmem>>, vector<2x16x128xbf16>
    %3 = vector.shape_cast %2 : vector<2x16x128xbf16> to vector<32x128xbf16>
    %4 = tpu.iota {dimensions = array<i32: 0>} : vector<8x8xi32>
    %5 = tpu.iota {dimensions = array<i32: 1>} : vector<8x8xi32>
    %6 = arith.cmpi sgt, %5, %4 : vector<8x8xi32>
    %cst = arith.constant -1.000000e+09 : f32
    %cst_5 = arith.constant 0.000000e+00 : f32
    %7 = vector.broadcast %cst : f32 to vector<8x8xf32>
    %8 = vector.broadcast %cst_5 : f32 to vector<8x8xf32>
    %9 = arith.select %6, %7, %8 : vector<8x8xi1>, vector<8x8xf32>
    %c0_6 = arith.constant 0 : index
    %c0_7 = arith.constant 0 : index
    %c0_8 = arith.constant 0 : index
    %10 = vector.load %arg3[%c0_6, %c0_7, %c0_8] : memref<2x1x16xf32, #tpu.memory_space<vmem>>, vector<2x1x16xf32>
    %11 = vector.shape_cast %10 : vector<2x1x16xf32> to vector<2x1x1x16xf32>
    %12 = vector.shape_cast %11 : vector<2x1x1x16xf32> to vector<2x1x1x16xf32>
    %13 = vector.broadcast %12 : vector<2x1x1x16xf32> to vector<2x4x1x16xf32>
    %14 = vector.shape_cast %13 : vector<2x4x1x16xf32> to vector<8x1x16xf32>
    %c0_9 = arith.constant 0 : index
    %c0_10 = arith.constant 0 : index
    %c0_11 = arith.constant 0 : index
    %15 = vector.load %arg4[%c0_9, %c0_10, %c0_11] : memref<2x1x128xf32, #tpu.memory_space<vmem>>, vector<1x1x128xf32>
    %16 = vector.shape_cast %15 : vector<1x1x128xf32> to vector<1x128xf32>
    %c0_12 = arith.constant 0 : index
    %c0_13 = arith.constant 0 : index
    %c0_14 = arith.constant 0 : index
    %17 = vector.load %arg5[%c0_12, %c0_13, %c0_14] : memref<2x1x128xf32, #tpu.memory_space<vmem>>, vector<1x1x128xf32>
    %18 = vector.shape_cast %17 : vector<1x1x128xf32> to vector<1x128xf32>
    %cst_15 = arith.constant dense<0.000000e+00> : vector<16xf32>
    %19 = vector.multi_reduction <add>, %1, %cst_15 [1] : vector<16x128xf32> to vector<16xf32>
    %20 = vector.shape_cast %19 : vector<16xf32> to vector<16x1xf32>
    %cst_16 = arith.constant 1.280000e+02 : f32
    %21 = vector.broadcast %cst_16 : f32 to vector<16x1xf32>
    %22 = arith.divf %20, %21 : vector<16x1xf32>
    %23 = vector.broadcast %22 : vector<16x1xf32> to vector<16x128xf32>
    %24 = arith.subf %1, %23 : vector<16x128xf32>
    %25 = arith.mulf %24, %24 : vector<16x128xf32>
    %cst_17 = arith.constant dense<0.000000e+00> : vector<16xf32>
    %26 = vector.multi_reduction <add>, %25, %cst_17 [1] : vector<16x128xf32> to vector<16xf32>
    %27 = vector.shape_cast %26 : vector<16xf32> to vector<16x1xf32>
    %cst_18 = arith.constant 1.280000e+02 : f32
    %28 = vector.broadcast %cst_18 : f32 to vector<16x1xf32>
    %29 = arith.divf %27, %28 : vector<16x1xf32>
    %30 = vector.broadcast %22 : vector<16x1xf32> to vector<16x128xf32>
    %31 = arith.subf %1, %30 : vector<16x128xf32>
    %cst_19 = arith.constant 9.99999974E-6 : f32
    %32 = vector.broadcast %cst_19 : f32 to vector<16x1xf32>
    %33 = arith.addf %29, %32 : vector<16x1xf32>
    %34 = math.rsqrt %33 : vector<16x1xf32>
    %35 = vector.broadcast %34 : vector<16x1xf32> to vector<16x128xf32>
    %36 = arith.mulf %31, %35 : vector<16x128xf32>
    %37 = vector.broadcast %16 : vector<1x128xf32> to vector<16x128xf32>
    %38 = arith.mulf %36, %37 : vector<16x128xf32>
    %39 = vector.broadcast %18 : vector<1x128xf32> to vector<16x128xf32>
    %40 = arith.addf %38, %39 : vector<16x128xf32>
    %41 = arith.truncf %40 : vector<16x128xf32> to vector<16x128xbf16>
    %c0_20 = arith.constant 0 : index
    %c0_21 = arith.constant 0 : index
    %c0_22 = arith.constant 0 : index
    %42 = vector.load %arg6[%c0_20, %c0_21, %c0_22] : memref<2x128x384xbf16, #tpu.memory_space<vmem>>, vector<1x128x384xbf16>
    %43 = vector.shape_cast %42 : vector<1x128x384xbf16> to vector<128x384xbf16>
    %cst_23 = arith.constant dense<0.000000e+00> : vector<16x384xf32>
    %44 = tpu.matmul %41, %43, %cst_23 {dimension_numbers = #tpu.dot_dimension_numbers<[1], [0], [0], [1], [0, 0, 1, 1], [], []>} : vector<16x128xbf16>, vector<128x384xbf16>, vector<16x384xf32> -> vector<16x384xf32>
    %c0_24 = arith.constant 0 : index
    %c0_25 = arith.constant 0 : index
    %c0_26 = arith.constant 0 : index
    %45 = vector.load %arg7[%c0_24, %c0_25, %c0_26] : memref<2x1x384xf32, #tpu.memory_space<vmem>>, vector<1x1x384xf32>
    %46 = vector.shape_cast %45 : vector<1x1x384xf32> to vector<1x384xf32>
    %47 = vector.broadcast %46 : vector<1x384xf32> to vector<16x384xf32>
    %48 = arith.addf %44, %47 : vector<16x384xf32>
    %49 = vector.extract_strided_slice %48 {offsets = [0, 0], sizes = [16, 128], strides = [1, 1]} : vector<16x384xf32> to vector<16x128xf32>
    %50 = vector.shape_cast %49 : vector<16x128xf32> to vector<2x8x4x32xf32>
    %51 = tpu.transpose %50, [0, 2, 1, 3] : vector<2x8x4x32xf32> -> vector<2x4x8x32xf32>
    %52 = vector.shape_cast %51 : vector<2x4x8x32xf32> to vector<8x8x32xf32>
    %53 = vector.extract_strided_slice %48 {offsets = [0, 128], sizes = [16, 128], strides = [1, 1]} : vector<16x384xf32> to vector<16x128xf32>
    %54 = vector.shape_cast %53 : vector<16x128xf32> to vector<2x8x4x32xf32>
    %55 = tpu.transpose %54, [0, 2, 1, 3] : vector<2x8x4x32xf32> -> vector<2x4x8x32xf32>
    %56 = vector.shape_cast %55 : vector<2x4x8x32xf32> to vector<8x8x32xf32>
    %57 = vector.extract_strided_slice %48 {offsets = [0, 256], sizes = [16, 128], strides = [1, 1]} : vector<16x384xf32> to vector<16x128xf32>
    %58 = vector.shape_cast %57 : vector<16x128xf32> to vector<2x8x4x32xf32>
    %59 = tpu.transpose %58, [0, 2, 1, 3] : vector<2x8x4x32xf32> -> vector<2x4x8x32xf32>
    %60 = vector.shape_cast %59 : vector<2x4x8x32xf32> to vector<8x8x32xf32>
    %61 = arith.truncf %52 : vector<8x8x32xf32> to vector<8x8x32xbf16>
    %62 = arith.truncf %56 : vector<8x8x32xf32> to vector<8x8x32xbf16>
    "tpu.trace_start"() <{level = 10 : i32, message = "gtd,gsd->gts"}> : () -> ()
    %cst_27 = arith.constant dense<0.000000e+00> : vector<8x8x8xf32>
    %63 = tpu.matmul %61, %62, %cst_27 {dimension_numbers = #tpu.dot_dimension_numbers<[2], [2], [1], [1], [0, 0, 0, 1, 1, 1], [0], [0]>} : vector<8x8x32xbf16>, vector<8x8x32xbf16>, vector<8x8x8xf32> -> vector<8x8x8xf32>
    "tpu.trace_stop"() : () -> ()
    %64 = vector.shape_cast %9 : vector<8x8xf32> to vector<1x8x8xf32>
    %65 = vector.broadcast %64 : vector<1x8x8xf32> to vector<8x8x8xf32>
    %66 = arith.addf %63, %65 : vector<8x8x8xf32>
    %cst_28 = arith.constant dense<0xFF800000> : vector<8x8xf32>
    %67 = vector.multi_reduction <maximumf>, %66, %cst_28 [2] : vector<8x8x8xf32> to vector<8x8xf32>
    %68 = vector.shape_cast %67 : vector<8x8xf32> to vector<8x8x1xf32>
    %69 = vector.broadcast %68 : vector<8x8x1xf32> to vector<8x8x8xf32>
    %70 = arith.subf %66, %69 : vector<8x8x8xf32>
    %71 = math.exp %70 : vector<8x8x8xf32>
    %cst_29 = arith.constant dense<0.000000e+00> : vector<8x8xf32>
    %72 = vector.multi_reduction <add>, %71, %cst_29 [2] : vector<8x8x8xf32> to vector<8x8xf32>
    %73 = vector.shape_cast %72 : vector<8x8xf32> to vector<8x8x1xf32>
    %74 = tpu.reciprocal %73 {approx = true} : vector<8x8x1xf32> -> vector<8x8x1xf32>
    %75 = vector.broadcast %74 : vector<8x8x1xf32> to vector<8x8x8xf32>
    %76 = arith.mulf %71, %75 : vector<8x8x8xf32>
    %77 = arith.truncf %76 : vector<8x8x8xf32> to vector<8x8x8xbf16>
    %78 = arith.truncf %60 : vector<8x8x32xf32> to vector<8x8x32xbf16>
    "tpu.trace_start"() <{level = 10 : i32, message = "gts,gsd->gtd"}> : () -> ()
    %cst_30 = arith.constant dense<0.000000e+00> : vector<8x8x32xf32>
    %79 = tpu.matmul %77, %78, %cst_30 {dimension_numbers = #tpu.dot_dimension_numbers<[2], [1], [1], [2], [0, 0, 0, 1, 1, 2], [0], [0]>} : vector<8x8x8xbf16>, vector<8x8x32xbf16>, vector<8x8x32xf32> -> vector<8x8x32xf32>
    "tpu.trace_stop"() : () -> ()
    %80 = vector.shape_cast %79 : vector<8x8x32xf32> to vector<2x4x8x32xf32>
    %81 = tpu.transpose %80, [0, 2, 1, 3] : vector<2x4x8x32xf32> -> vector<2x8x4x32xf32>
    %82 = vector.shape_cast %81 : vector<2x8x4x32xf32> to vector<16x128xf32>
    %83 = arith.truncf %82 : vector<16x128xf32> to vector<16x128xbf16>
    %c0_31 = arith.constant 0 : index
    %c0_32 = arith.constant 0 : index
    %c0_33 = arith.constant 0 : index
    %84 = vector.load %arg8[%c0_31, %c0_32, %c0_33] : memref<2x128x128xbf16, #tpu.memory_space<vmem>>, vector<1x128x128xbf16>
    %85 = vector.shape_cast %84 : vector<1x128x128xbf16> to vector<128x128xbf16>
    %cst_34 = arith.constant dense<0.000000e+00> : vector<16x128xf32>
    %86 = tpu.matmul %83, %85, %cst_34 {dimension_numbers = #tpu.dot_dimension_numbers<[1], [0], [0], [1], [0, 0, 1, 1], [], []>} : vector<16x128xbf16>, vector<128x128xbf16>, vector<16x128xf32> -> vector<16x128xf32>
    %87 = arith.addf %1, %86 : vector<16x128xf32>
    %c0_35 = arith.constant 0 : index
    %c0_36 = arith.constant 0 : index
    %c0_37 = arith.constant 0 : index
    %88 = vector.load %arg9[%c0_35, %c0_36, %c0_37] : memref<2x1x128xf32, #tpu.memory_space<vmem>>, vector<1x1x128xf32>
    %89 = vector.shape_cast %88 : vector<1x1x128xf32> to vector<1x128xf32>
    %90 = vector.broadcast %89 : vector<1x128xf32> to vector<16x128xf32>
    %91 = arith.addf %87, %90 : vector<16x128xf32>
    %c0_38 = arith.constant 0 : index
    %c0_39 = arith.constant 0 : index
    %c0_40 = arith.constant 0 : index
    %92 = vector.load %arg10[%c0_38, %c0_39, %c0_40] : memref<2x1x128xf32, #tpu.memory_space<vmem>>, vector<1x1x128xf32>
    %93 = vector.shape_cast %92 : vector<1x1x128xf32> to vector<1x128xf32>
    %c0_41 = arith.constant 0 : index
    %c0_42 = arith.constant 0 : index
    %c0_43 = arith.constant 0 : index
    %94 = vector.load %arg11[%c0_41, %c0_42, %c0_43] : memref<2x1x128xf32, #tpu.memory_space<vmem>>, vector<1x1x128xf32>
    %95 = vector.shape_cast %94 : vector<1x1x128xf32> to vector<1x128xf32>
    %cst_44 = arith.constant dense<0.000000e+00> : vector<16xf32>
    %96 = vector.multi_reduction <add>, %91, %cst_44 [1] : vector<16x128xf32> to vector<16xf32>
    %97 = vector.shape_cast %96 : vector<16xf32> to vector<16x1xf32>
    %cst_45 = arith.constant 1.280000e+02 : f32
    %98 = vector.broadcast %cst_45 : f32 to vector<16x1xf32>
    %99 = arith.divf %97, %98 : vector<16x1xf32>
    %100 = vector.broadcast %99 : vector<16x1xf32> to vector<16x128xf32>
    %101 = arith.subf %91, %100 : vector<16x128xf32>
    %102 = arith.mulf %101, %101 : vector<16x128xf32>
    %cst_46 = arith.constant dense<0.000000e+00> : vector<16xf32>
    %103 = vector.multi_reduction <add>, %102, %cst_46 [1] : vector<16x128xf32> to vector<16xf32>
    %104 = vector.shape_cast %103 : vector<16xf32> to vector<16x1xf32>
    %cst_47 = arith.constant 1.280000e+02 : f32
    %105 = vector.broadcast %cst_47 : f32 to vector<16x1xf32>
    %106 = arith.divf %104, %105 : vector<16x1xf32>
    %107 = vector.broadcast %99 : vector<16x1xf32> to vector<16x128xf32>
    %108 = arith.subf %91, %107 : vector<16x128xf32>
    %cst_48 = arith.constant 9.99999974E-6 : f32
    %109 = vector.broadcast %cst_48 : f32 to vector<16x1xf32>
    %110 = arith.addf %106, %109 : vector<16x1xf32>
    %111 = math.rsqrt %110 : vector<16x1xf32>
    %112 = vector.broadcast %111 : vector<16x1xf32> to vector<16x128xf32>
    %113 = arith.mulf %108, %112 : vector<16x128xf32>
    %114 = vector.broadcast %93 : vector<1x128xf32> to vector<16x128xf32>
    %115 = arith.mulf %113, %114 : vector<16x128xf32>
    %116 = vector.broadcast %95 : vector<1x128xf32> to vector<16x128xf32>
    %117 = arith.addf %115, %116 : vector<16x128xf32>
    %118 = arith.truncf %117 : vector<16x128xf32> to vector<16x128xbf16>
    %c0_49 = arith.constant 0 : index
    %c0_50 = arith.constant 0 : index
    %c0_51 = arith.constant 0 : index
    %119 = vector.load %arg12[%c0_49, %c0_50, %c0_51] : memref<2x128x128xbf16, #tpu.memory_space<vmem>>, vector<1x128x128xbf16>
    %120 = vector.shape_cast %119 : vector<1x128x128xbf16> to vector<128x128xbf16>
    %cst_52 = arith.constant dense<0.000000e+00> : vector<16x128xf32>
    %121 = tpu.matmul %118, %120, %cst_52 {dimension_numbers = #tpu.dot_dimension_numbers<[1], [0], [0], [1], [0, 0, 1, 1], [], []>} : vector<16x128xbf16>, vector<128x128xbf16>, vector<16x128xf32> -> vector<16x128xf32>
    %c0_53 = arith.constant 0 : index
    %c0_54 = arith.constant 0 : index
    %c0_55 = arith.constant 0 : index
    %122 = vector.load %arg13[%c0_53, %c0_54, %c0_55] : memref<2x1x128xf32, #tpu.memory_space<vmem>>, vector<1x1x128xf32>
    %123 = vector.shape_cast %122 : vector<1x1x128xf32> to vector<1x128xf32>
    %124 = vector.broadcast %123 : vector<1x128xf32> to vector<16x128xf32>
    %125 = arith.addf %121, %124 : vector<16x128xf32>
    %126 = vector.shape_cast %125 : vector<16x128xf32> to vector<2x8x4x32xf32>
    %127 = tpu.transpose %126, [0, 2, 1, 3] : vector<2x8x4x32xf32> -> vector<2x4x8x32xf32>
    %128 = vector.shape_cast %127 : vector<2x4x8x32xf32> to vector<8x8x32xf32>
    %c0_56 = arith.constant 0 : index
    %c0_57 = arith.constant 0 : index
    %c0_58 = arith.constant 0 : index
    %129 = vector.load %arg14[%c0_56, %c0_57, %c0_58] : memref<2x128x256xbf16, #tpu.memory_space<vmem>>, vector<1x128x256xbf16>
    %130 = vector.shape_cast %129 : vector<1x128x256xbf16> to vector<128x256xbf16>
    %cst_59 = arith.constant dense<0.000000e+00> : vector<32x256xf32>
    %131 = tpu.matmul %3, %130, %cst_59 {dimension_numbers = #tpu.dot_dimension_numbers<[1], [0], [0], [1], [0, 0, 1, 1], [], []>} : vector<32x128xbf16>, vector<128x256xbf16>, vector<32x256xf32> -> vector<32x256xf32>
    %c0_60 = arith.constant 0 : index
    %c0_61 = arith.constant 0 : index
    %c0_62 = arith.constant 0 : index
    %132 = vector.load %arg15[%c0_60, %c0_61, %c0_62] : memref<2x1x256xf32, #tpu.memory_space<vmem>>, vector<1x1x256xf32>
    %133 = vector.shape_cast %132 : vector<1x1x256xf32> to vector<1x256xf32>
    %134 = vector.broadcast %133 : vector<1x256xf32> to vector<32x256xf32>
    %135 = arith.addf %131, %134 : vector<32x256xf32>
    %136 = vector.extract_strided_slice %135 {offsets = [0, 0], sizes = [32, 128], strides = [1, 1]} : vector<32x256xf32> to vector<32x128xf32>
    %137 = vector.shape_cast %136 : vector<32x128xf32> to vector<2x16x4x32xf32>
    %138 = tpu.transpose %137, [0, 2, 1, 3] : vector<2x16x4x32xf32> -> vector<2x4x16x32xf32>
    %139 = vector.shape_cast %138 : vector<2x4x16x32xf32> to vector<8x16x32xf32>
    %140 = vector.extract_strided_slice %135 {offsets = [0, 128], sizes = [32, 128], strides = [1, 1]} : vector<32x256xf32> to vector<32x128xf32>
    %141 = vector.shape_cast %140 : vector<32x128xf32> to vector<2x16x4x32xf32>
    %142 = tpu.transpose %141, [0, 2, 1, 3] : vector<2x16x4x32xf32> -> vector<2x4x16x32xf32>
    %143 = vector.shape_cast %142 : vector<2x4x16x32xf32> to vector<8x16x32xf32>
    %144 = arith.truncf %128 : vector<8x8x32xf32> to vector<8x8x32xbf16>
    %145 = arith.truncf %139 : vector<8x16x32xf32> to vector<8x16x32xbf16>
    "tpu.trace_start"() <{level = 10 : i32, message = "gtd,gsd->gts"}> : () -> ()
    %cst_63 = arith.constant dense<0.000000e+00> : vector<8x8x16xf32>
    %146 = tpu.matmul %144, %145, %cst_63 {dimension_numbers = #tpu.dot_dimension_numbers<[2], [2], [1], [1], [0, 0, 0, 1, 1, 1], [0], [0]>} : vector<8x8x32xbf16>, vector<8x16x32xbf16>, vector<8x8x16xf32> -> vector<8x8x16xf32>
    "tpu.trace_stop"() : () -> ()
    %147 = vector.broadcast %14 : vector<8x1x16xf32> to vector<8x8x16xf32>
    %148 = arith.addf %146, %147 : vector<8x8x16xf32>
    %cst_64 = arith.constant dense<0xFF800000> : vector<8x8xf32>
    %149 = vector.multi_reduction <maximumf>, %148, %cst_64 [2] : vector<8x8x16xf32> to vector<8x8xf32>
    %150 = vector.shape_cast %149 : vector<8x8xf32> to vector<8x8x1xf32>
    %151 = vector.broadcast %150 : vector<8x8x1xf32> to vector<8x8x16xf32>
    %152 = arith.subf %148, %151 : vector<8x8x16xf32>
    %153 = math.exp %152 : vector<8x8x16xf32>
    %cst_65 = arith.constant dense<0.000000e+00> : vector<8x8xf32>
    %154 = vector.multi_reduction <add>, %153, %cst_65 [2] : vector<8x8x16xf32> to vector<8x8xf32>
    %155 = vector.shape_cast %154 : vector<8x8xf32> to vector<8x8x1xf32>
    %156 = tpu.reciprocal %155 {approx = true} : vector<8x8x1xf32> -> vector<8x8x1xf32>
    %157 = vector.broadcast %156 : vector<8x8x1xf32> to vector<8x8x16xf32>
    %158 = arith.mulf %153, %157 : vector<8x8x16xf32>
    %159 = arith.truncf %158 : vector<8x8x16xf32> to vector<8x8x16xbf16>
    %160 = arith.truncf %143 : vector<8x16x32xf32> to vector<8x16x32xbf16>
    "tpu.trace_start"() <{level = 10 : i32, message = "gts,gsd->gtd"}> : () -> ()
    %cst_66 = arith.constant dense<0.000000e+00> : vector<8x8x32xf32>
    %161 = tpu.matmul %159, %160, %cst_66 {dimension_numbers = #tpu.dot_dimension_numbers<[2], [1], [1], [2], [0, 0, 0, 1, 1, 2], [0], [0]>} : vector<8x8x16xbf16>, vector<8x16x32xbf16>, vector<8x8x32xf32> -> vector<8x8x32xf32>
    "tpu.trace_stop"() : () -> ()
    %162 = vector.shape_cast %161 : vector<8x8x32xf32> to vector<2x4x8x32xf32>
    %163 = tpu.transpose %162, [0, 2, 1, 3] : vector<2x4x8x32xf32> -> vector<2x8x4x32xf32>
    %164 = vector.shape_cast %163 : vector<2x8x4x32xf32> to vector<16x128xf32>
    %165 = arith.truncf %164 : vector<16x128xf32> to vector<16x128xbf16>
    %c0_67 = arith.constant 0 : index
    %c0_68 = arith.constant 0 : index
    %c0_69 = arith.constant 0 : index
    %166 = vector.load %arg16[%c0_67, %c0_68, %c0_69] : memref<2x128x128xbf16, #tpu.memory_space<vmem>>, vector<1x128x128xbf16>
    %167 = vector.shape_cast %166 : vector<1x128x128xbf16> to vector<128x128xbf16>
    %cst_70 = arith.constant dense<0.000000e+00> : vector<16x128xf32>
    %168 = tpu.matmul %165, %167, %cst_70 {dimension_numbers = #tpu.dot_dimension_numbers<[1], [0], [0], [1], [0, 0, 1, 1], [], []>} : vector<16x128xbf16>, vector<128x128xbf16>, vector<16x128xf32> -> vector<16x128xf32>
    %169 = arith.addf %91, %168 : vector<16x128xf32>
    %c0_71 = arith.constant 0 : index
    %c0_72 = arith.constant 0 : index
    %c0_73 = arith.constant 0 : index
    %170 = vector.load %arg17[%c0_71, %c0_72, %c0_73] : memref<2x1x128xf32, #tpu.memory_space<vmem>>, vector<1x1x128xf32>
    %171 = vector.shape_cast %170 : vector<1x1x128xf32> to vector<1x128xf32>
    %172 = vector.broadcast %171 : vector<1x128xf32> to vector<16x128xf32>
    %173 = arith.addf %169, %172 : vector<16x128xf32>
    %c0_74 = arith.constant 0 : index
    %c0_75 = arith.constant 0 : index
    %c0_76 = arith.constant 0 : index
    %174 = vector.load %arg18[%c0_74, %c0_75, %c0_76] : memref<2x1x128xf32, #tpu.memory_space<vmem>>, vector<1x1x128xf32>
    %175 = vector.shape_cast %174 : vector<1x1x128xf32> to vector<1x128xf32>
    %c0_77 = arith.constant 0 : index
    %c0_78 = arith.constant 0 : index
    %c0_79 = arith.constant 0 : index
    %176 = vector.load %arg19[%c0_77, %c0_78, %c0_79] : memref<2x1x128xf32, #tpu.memory_space<vmem>>, vector<1x1x128xf32>
    %177 = vector.shape_cast %176 : vector<1x1x128xf32> to vector<1x128xf32>
    %cst_80 = arith.constant dense<0.000000e+00> : vector<16xf32>
    %178 = vector.multi_reduction <add>, %173, %cst_80 [1] : vector<16x128xf32> to vector<16xf32>
    %179 = vector.shape_cast %178 : vector<16xf32> to vector<16x1xf32>
    %cst_81 = arith.constant 1.280000e+02 : f32
    %180 = vector.broadcast %cst_81 : f32 to vector<16x1xf32>
    %181 = arith.divf %179, %180 : vector<16x1xf32>
    %182 = vector.broadcast %181 : vector<16x1xf32> to vector<16x128xf32>
    %183 = arith.subf %173, %182 : vector<16x128xf32>
    %184 = arith.mulf %183, %183 : vector<16x128xf32>
    %cst_82 = arith.constant dense<0.000000e+00> : vector<16xf32>
    %185 = vector.multi_reduction <add>, %184, %cst_82 [1] : vector<16x128xf32> to vector<16xf32>
    %186 = vector.shape_cast %185 : vector<16xf32> to vector<16x1xf32>
    %cst_83 = arith.constant 1.280000e+02 : f32
    %187 = vector.broadcast %cst_83 : f32 to vector<16x1xf32>
    %188 = arith.divf %186, %187 : vector<16x1xf32>
    %189 = vector.broadcast %181 : vector<16x1xf32> to vector<16x128xf32>
    %190 = arith.subf %173, %189 : vector<16x128xf32>
    %cst_84 = arith.constant 9.99999974E-6 : f32
    %191 = vector.broadcast %cst_84 : f32 to vector<16x1xf32>
    %192 = arith.addf %188, %191 : vector<16x1xf32>
    %193 = math.rsqrt %192 : vector<16x1xf32>
    %194 = vector.broadcast %193 : vector<16x1xf32> to vector<16x128xf32>
    %195 = arith.mulf %190, %194 : vector<16x128xf32>
    %196 = vector.broadcast %175 : vector<1x128xf32> to vector<16x128xf32>
    %197 = arith.mulf %195, %196 : vector<16x128xf32>
    %198 = vector.broadcast %177 : vector<1x128xf32> to vector<16x128xf32>
    %199 = arith.addf %197, %198 : vector<16x128xf32>
    %200 = arith.truncf %199 : vector<16x128xf32> to vector<16x128xbf16>
    %c0_85 = arith.constant 0 : index
    %c0_86 = arith.constant 0 : index
    %c0_87 = arith.constant 0 : index
    %201 = vector.load %arg20[%c0_85, %c0_86, %c0_87] : memref<2x128x256xbf16, #tpu.memory_space<vmem>>, vector<1x128x256xbf16>
    %202 = vector.shape_cast %201 : vector<1x128x256xbf16> to vector<128x256xbf16>
    %cst_88 = arith.constant dense<0.000000e+00> : vector<16x256xf32>
    %203 = tpu.matmul %200, %202, %cst_88 {dimension_numbers = #tpu.dot_dimension_numbers<[1], [0], [0], [1], [0, 0, 1, 1], [], []>} : vector<16x128xbf16>, vector<128x256xbf16>, vector<16x256xf32> -> vector<16x256xf32>
    %c0_89 = arith.constant 0 : index
    %c0_90 = arith.constant 0 : index
    %c0_91 = arith.constant 0 : index
    %204 = vector.load %arg21[%c0_89, %c0_90, %c0_91] : memref<2x1x256xf32, #tpu.memory_space<vmem>>, vector<1x1x256xf32>
    %205 = vector.shape_cast %204 : vector<1x1x256xf32> to vector<1x256xf32>
    %206 = vector.broadcast %205 : vector<1x256xf32> to vector<16x256xf32>
    %207 = arith.addf %203, %206 : vector<16x256xf32>
    %cst_92 = arith.constant 0.000000e+00 : f32
    %208 = vector.broadcast %cst_92 : f32 to vector<16x256xf32>
    %209 = arith.maximumf %207, %208 : vector<16x256xf32>
    %210 = arith.truncf %209 : vector<16x256xf32> to vector<16x256xbf16>
    %c0_93 = arith.constant 0 : index
    %c0_94 = arith.constant 0 : index
    %c0_95 = arith.constant 0 : index
    %211 = vector.load %arg22[%c0_93, %c0_94, %c0_95] : memref<2x256x128xbf16, #tpu.memory_space<vmem>>, vector<1x256x128xbf16>
    %212 = vector.shape_cast %211 : vector<1x256x128xbf16> to vector<256x128xbf16>
    %cst_96 = arith.constant dense<0.000000e+00> : vector<16x128xf32>
    %213 = tpu.matmul %210, %212, %cst_96 {dimension_numbers = #tpu.dot_dimension_numbers<[1], [0], [0], [1], [0, 0, 1, 1], [], []>} : vector<16x256xbf16>, vector<256x128xbf16>, vector<16x128xf32> -> vector<16x128xf32>
    %214 = arith.addf %173, %213 : vector<16x128xf32>
    %c0_97 = arith.constant 0 : index
    %c0_98 = arith.constant 0 : index
    %c0_99 = arith.constant 0 : index
    %215 = vector.load %arg23[%c0_97, %c0_98, %c0_99] : memref<2x1x128xf32, #tpu.memory_space<vmem>>, vector<1x1x128xf32>
    %216 = vector.shape_cast %215 : vector<1x1x128xf32> to vector<1x128xf32>
    %217 = vector.broadcast %216 : vector<1x128xf32> to vector<16x128xf32>
    %218 = arith.addf %214, %217 : vector<16x128xf32>
    %c1 = arith.constant 1 : index
    %c0_100 = arith.constant 0 : index
    %c0_101 = arith.constant 0 : index
    %219 = vector.load %arg4[%c1, %c0_100, %c0_101] : memref<2x1x128xf32, #tpu.memory_space<vmem>>, vector<1x1x128xf32>
    %220 = vector.shape_cast %219 : vector<1x1x128xf32> to vector<1x128xf32>
    %c1_102 = arith.constant 1 : index
    %c0_103 = arith.constant 0 : index
    %c0_104 = arith.constant 0 : index
    %221 = vector.load %arg5[%c1_102, %c0_103, %c0_104] : memref<2x1x128xf32, #tpu.memory_space<vmem>>, vector<1x1x128xf32>
    %222 = vector.shape_cast %221 : vector<1x1x128xf32> to vector<1x128xf32>
    %cst_105 = arith.constant dense<0.000000e+00> : vector<16xf32>
    %223 = vector.multi_reduction <add>, %218, %cst_105 [1] : vector<16x128xf32> to vector<16xf32>
    %224 = vector.shape_cast %223 : vector<16xf32> to vector<16x1xf32>
    %cst_106 = arith.constant 1.280000e+02 : f32
    %225 = vector.broadcast %cst_106 : f32 to vector<16x1xf32>
    %226 = arith.divf %224, %225 : vector<16x1xf32>
    %227 = vector.broadcast %226 : vector<16x1xf32> to vector<16x128xf32>
    %228 = arith.subf %218, %227 : vector<16x128xf32>
    %229 = arith.mulf %228, %228 : vector<16x128xf32>
    %cst_107 = arith.constant dense<0.000000e+00> : vector<16xf32>
    %230 = vector.multi_reduction <add>, %229, %cst_107 [1] : vector<16x128xf32> to vector<16xf32>
    %231 = vector.shape_cast %230 : vector<16xf32> to vector<16x1xf32>
    %cst_108 = arith.constant 1.280000e+02 : f32
    %232 = vector.broadcast %cst_108 : f32 to vector<16x1xf32>
    %233 = arith.divf %231, %232 : vector<16x1xf32>
    %234 = vector.broadcast %226 : vector<16x1xf32> to vector<16x128xf32>
    %235 = arith.subf %218, %234 : vector<16x128xf32>
    %cst_109 = arith.constant 9.99999974E-6 : f32
    %236 = vector.broadcast %cst_109 : f32 to vector<16x1xf32>
    %237 = arith.addf %233, %236 : vector<16x1xf32>
    %238 = math.rsqrt %237 : vector<16x1xf32>
    %239 = vector.broadcast %238 : vector<16x1xf32> to vector<16x128xf32>
    %240 = arith.mulf %235, %239 : vector<16x128xf32>
    %241 = vector.broadcast %220 : vector<1x128xf32> to vector<16x128xf32>
    %242 = arith.mulf %240, %241 : vector<16x128xf32>
    %243 = vector.broadcast %222 : vector<1x128xf32> to vector<16x128xf32>
    %244 = arith.addf %242, %243 : vector<16x128xf32>
    %245 = arith.truncf %244 : vector<16x128xf32> to vector<16x128xbf16>
    %c1_110 = arith.constant 1 : index
    %c0_111 = arith.constant 0 : index
    %c0_112 = arith.constant 0 : index
    %246 = vector.load %arg6[%c1_110, %c0_111, %c0_112] : memref<2x128x384xbf16, #tpu.memory_space<vmem>>, vector<1x128x384xbf16>
    %247 = vector.shape_cast %246 : vector<1x128x384xbf16> to vector<128x384xbf16>
    %cst_113 = arith.constant dense<0.000000e+00> : vector<16x384xf32>
    %248 = tpu.matmul %245, %247, %cst_113 {dimension_numbers = #tpu.dot_dimension_numbers<[1], [0], [0], [1], [0, 0, 1, 1], [], []>} : vector<16x128xbf16>, vector<128x384xbf16>, vector<16x384xf32> -> vector<16x384xf32>
    %c1_114 = arith.constant 1 : index
    %c0_115 = arith.constant 0 : index
    %c0_116 = arith.constant 0 : index
    %249 = vector.load %arg7[%c1_114, %c0_115, %c0_116] : memref<2x1x384xf32, #tpu.memory_space<vmem>>, vector<1x1x384xf32>
    %250 = vector.shape_cast %249 : vector<1x1x384xf32> to vector<1x384xf32>
    %251 = vector.broadcast %250 : vector<1x384xf32> to vector<16x384xf32>
    %252 = arith.addf %248, %251 : vector<16x384xf32>
    %253 = vector.extract_strided_slice %252 {offsets = [0, 0], sizes = [16, 128], strides = [1, 1]} : vector<16x384xf32> to vector<16x128xf32>
    %254 = vector.shape_cast %253 : vector<16x128xf32> to vector<2x8x4x32xf32>
    %255 = tpu.transpose %254, [0, 2, 1, 3] : vector<2x8x4x32xf32> -> vector<2x4x8x32xf32>
    %256 = vector.shape_cast %255 : vector<2x4x8x32xf32> to vector<8x8x32xf32>
    %257 = vector.extract_strided_slice %252 {offsets = [0, 128], sizes = [16, 128], strides = [1, 1]} : vector<16x384xf32> to vector<16x128xf32>
    %258 = vector.shape_cast %257 : vector<16x128xf32> to vector<2x8x4x32xf32>
    %259 = tpu.transpose %258, [0, 2, 1, 3] : vector<2x8x4x32xf32> -> vector<2x4x8x32xf32>
    %260 = vector.shape_cast %259 : vector<2x4x8x32xf32> to vector<8x8x32xf32>
    %261 = vector.extract_strided_slice %252 {offsets = [0, 256], sizes = [16, 128], strides = [1, 1]} : vector<16x384xf32> to vector<16x128xf32>
    %262 = vector.shape_cast %261 : vector<16x128xf32> to vector<2x8x4x32xf32>
    %263 = tpu.transpose %262, [0, 2, 1, 3] : vector<2x8x4x32xf32> -> vector<2x4x8x32xf32>
    %264 = vector.shape_cast %263 : vector<2x4x8x32xf32> to vector<8x8x32xf32>
    %265 = arith.truncf %256 : vector<8x8x32xf32> to vector<8x8x32xbf16>
    %266 = arith.truncf %260 : vector<8x8x32xf32> to vector<8x8x32xbf16>
    "tpu.trace_start"() <{level = 10 : i32, message = "gtd,gsd->gts"}> : () -> ()
    %cst_117 = arith.constant dense<0.000000e+00> : vector<8x8x8xf32>
    %267 = tpu.matmul %265, %266, %cst_117 {dimension_numbers = #tpu.dot_dimension_numbers<[2], [2], [1], [1], [0, 0, 0, 1, 1, 1], [0], [0]>} : vector<8x8x32xbf16>, vector<8x8x32xbf16>, vector<8x8x8xf32> -> vector<8x8x8xf32>
    "tpu.trace_stop"() : () -> ()
    %268 = vector.shape_cast %9 : vector<8x8xf32> to vector<1x8x8xf32>
    %269 = vector.broadcast %268 : vector<1x8x8xf32> to vector<8x8x8xf32>
    %270 = arith.addf %267, %269 : vector<8x8x8xf32>
    %cst_118 = arith.constant dense<0xFF800000> : vector<8x8xf32>
    %271 = vector.multi_reduction <maximumf>, %270, %cst_118 [2] : vector<8x8x8xf32> to vector<8x8xf32>
    %272 = vector.shape_cast %271 : vector<8x8xf32> to vector<8x8x1xf32>
    %273 = vector.broadcast %272 : vector<8x8x1xf32> to vector<8x8x8xf32>
    %274 = arith.subf %270, %273 : vector<8x8x8xf32>
    %275 = math.exp %274 : vector<8x8x8xf32>
    %cst_119 = arith.constant dense<0.000000e+00> : vector<8x8xf32>
    %276 = vector.multi_reduction <add>, %275, %cst_119 [2] : vector<8x8x8xf32> to vector<8x8xf32>
    %277 = vector.shape_cast %276 : vector<8x8xf32> to vector<8x8x1xf32>
    %278 = tpu.reciprocal %277 {approx = true} : vector<8x8x1xf32> -> vector<8x8x1xf32>
    %279 = vector.broadcast %278 : vector<8x8x1xf32> to vector<8x8x8xf32>
    %280 = arith.mulf %275, %279 : vector<8x8x8xf32>
    %281 = arith.truncf %280 : vector<8x8x8xf32> to vector<8x8x8xbf16>
    %282 = arith.truncf %264 : vector<8x8x32xf32> to vector<8x8x32xbf16>
    "tpu.trace_start"() <{level = 10 : i32, message = "gts,gsd->gtd"}> : () -> ()
    %cst_120 = arith.constant dense<0.000000e+00> : vector<8x8x32xf32>
    %283 = tpu.matmul %281, %282, %cst_120 {dimension_numbers = #tpu.dot_dimension_numbers<[2], [1], [1], [2], [0, 0, 0, 1, 1, 2], [0], [0]>} : vector<8x8x8xbf16>, vector<8x8x32xbf16>, vector<8x8x32xf32> -> vector<8x8x32xf32>
    "tpu.trace_stop"() : () -> ()
    %284 = vector.shape_cast %283 : vector<8x8x32xf32> to vector<2x4x8x32xf32>
    %285 = tpu.transpose %284, [0, 2, 1, 3] : vector<2x4x8x32xf32> -> vector<2x8x4x32xf32>
    %286 = vector.shape_cast %285 : vector<2x8x4x32xf32> to vector<16x128xf32>
    %287 = arith.truncf %286 : vector<16x128xf32> to vector<16x128xbf16>
    %c1_121 = arith.constant 1 : index
    %c0_122 = arith.constant 0 : index
    %c0_123 = arith.constant 0 : index
    %288 = vector.load %arg8[%c1_121, %c0_122, %c0_123] : memref<2x128x128xbf16, #tpu.memory_space<vmem>>, vector<1x128x128xbf16>
    %289 = vector.shape_cast %288 : vector<1x128x128xbf16> to vector<128x128xbf16>
    %cst_124 = arith.constant dense<0.000000e+00> : vector<16x128xf32>
    %290 = tpu.matmul %287, %289, %cst_124 {dimension_numbers = #tpu.dot_dimension_numbers<[1], [0], [0], [1], [0, 0, 1, 1], [], []>} : vector<16x128xbf16>, vector<128x128xbf16>, vector<16x128xf32> -> vector<16x128xf32>
    %291 = arith.addf %218, %290 : vector<16x128xf32>
    %c1_125 = arith.constant 1 : index
    %c0_126 = arith.constant 0 : index
    %c0_127 = arith.constant 0 : index
    %292 = vector.load %arg9[%c1_125, %c0_126, %c0_127] : memref<2x1x128xf32, #tpu.memory_space<vmem>>, vector<1x1x128xf32>
    %293 = vector.shape_cast %292 : vector<1x1x128xf32> to vector<1x128xf32>
    %294 = vector.broadcast %293 : vector<1x128xf32> to vector<16x128xf32>
    %295 = arith.addf %291, %294 : vector<16x128xf32>
    %c1_128 = arith.constant 1 : index
    %c0_129 = arith.constant 0 : index
    %c0_130 = arith.constant 0 : index
    %296 = vector.load %arg10[%c1_128, %c0_129, %c0_130] : memref<2x1x128xf32, #tpu.memory_space<vmem>>, vector<1x1x128xf32>
    %297 = vector.shape_cast %296 : vector<1x1x128xf32> to vector<1x128xf32>
    %c1_131 = arith.constant 1 : index
    %c0_132 = arith.constant 0 : index
    %c0_133 = arith.constant 0 : index
    %298 = vector.load %arg11[%c1_131, %c0_132, %c0_133] : memref<2x1x128xf32, #tpu.memory_space<vmem>>, vector<1x1x128xf32>
    %299 = vector.shape_cast %298 : vector<1x1x128xf32> to vector<1x128xf32>
    %cst_134 = arith.constant dense<0.000000e+00> : vector<16xf32>
    %300 = vector.multi_reduction <add>, %295, %cst_134 [1] : vector<16x128xf32> to vector<16xf32>
    %301 = vector.shape_cast %300 : vector<16xf32> to vector<16x1xf32>
    %cst_135 = arith.constant 1.280000e+02 : f32
    %302 = vector.broadcast %cst_135 : f32 to vector<16x1xf32>
    %303 = arith.divf %301, %302 : vector<16x1xf32>
    %304 = vector.broadcast %303 : vector<16x1xf32> to vector<16x128xf32>
    %305 = arith.subf %295, %304 : vector<16x128xf32>
    %306 = arith.mulf %305, %305 : vector<16x128xf32>
    %cst_136 = arith.constant dense<0.000000e+00> : vector<16xf32>
    %307 = vector.multi_reduction <add>, %306, %cst_136 [1] : vector<16x128xf32> to vector<16xf32>
    %308 = vector.shape_cast %307 : vector<16xf32> to vector<16x1xf32>
    %cst_137 = arith.constant 1.280000e+02 : f32
    %309 = vector.broadcast %cst_137 : f32 to vector<16x1xf32>
    %310 = arith.divf %308, %309 : vector<16x1xf32>
    %311 = vector.broadcast %303 : vector<16x1xf32> to vector<16x128xf32>
    %312 = arith.subf %295, %311 : vector<16x128xf32>
    %cst_138 = arith.constant 9.99999974E-6 : f32
    %313 = vector.broadcast %cst_138 : f32 to vector<16x1xf32>
    %314 = arith.addf %310, %313 : vector<16x1xf32>
    %315 = math.rsqrt %314 : vector<16x1xf32>
    %316 = vector.broadcast %315 : vector<16x1xf32> to vector<16x128xf32>
    %317 = arith.mulf %312, %316 : vector<16x128xf32>
    %318 = vector.broadcast %297 : vector<1x128xf32> to vector<16x128xf32>
    %319 = arith.mulf %317, %318 : vector<16x128xf32>
    %320 = vector.broadcast %299 : vector<1x128xf32> to vector<16x128xf32>
    %321 = arith.addf %319, %320 : vector<16x128xf32>
    %322 = arith.truncf %321 : vector<16x128xf32> to vector<16x128xbf16>
    %c1_139 = arith.constant 1 : index
    %c0_140 = arith.constant 0 : index
    %c0_141 = arith.constant 0 : index
    %323 = vector.load %arg12[%c1_139, %c0_140, %c0_141] : memref<2x128x128xbf16, #tpu.memory_space<vmem>>, vector<1x128x128xbf16>
    %324 = vector.shape_cast %323 : vector<1x128x128xbf16> to vector<128x128xbf16>
    %cst_142 = arith.constant dense<0.000000e+00> : vector<16x128xf32>
    %325 = tpu.matmul %322, %324, %cst_142 {dimension_numbers = #tpu.dot_dimension_numbers<[1], [0], [0], [1], [0, 0, 1, 1], [], []>} : vector<16x128xbf16>, vector<128x128xbf16>, vector<16x128xf32> -> vector<16x128xf32>
    %c1_143 = arith.constant 1 : index
    %c0_144 = arith.constant 0 : index
    %c0_145 = arith.constant 0 : index
    %326 = vector.load %arg13[%c1_143, %c0_144, %c0_145] : memref<2x1x128xf32, #tpu.memory_space<vmem>>, vector<1x1x128xf32>
    %327 = vector.shape_cast %326 : vector<1x1x128xf32> to vector<1x128xf32>
    %328 = vector.broadcast %327 : vector<1x128xf32> to vector<16x128xf32>
    %329 = arith.addf %325, %328 : vector<16x128xf32>
    %330 = vector.shape_cast %329 : vector<16x128xf32> to vector<2x8x4x32xf32>
    %331 = tpu.transpose %330, [0, 2, 1, 3] : vector<2x8x4x32xf32> -> vector<2x4x8x32xf32>
    %332 = vector.shape_cast %331 : vector<2x4x8x32xf32> to vector<8x8x32xf32>
    %c1_146 = arith.constant 1 : index
    %c0_147 = arith.constant 0 : index
    %c0_148 = arith.constant 0 : index
    %333 = vector.load %arg14[%c1_146, %c0_147, %c0_148] : memref<2x128x256xbf16, #tpu.memory_space<vmem>>, vector<1x128x256xbf16>
    %334 = vector.shape_cast %333 : vector<1x128x256xbf16> to vector<128x256xbf16>
    %cst_149 = arith.constant dense<0.000000e+00> : vector<32x256xf32>
    %335 = tpu.matmul %3, %334, %cst_149 {dimension_numbers = #tpu.dot_dimension_numbers<[1], [0], [0], [1], [0, 0, 1, 1], [], []>} : vector<32x128xbf16>, vector<128x256xbf16>, vector<32x256xf32> -> vector<32x256xf32>
    %c1_150 = arith.constant 1 : index
    %c0_151 = arith.constant 0 : index
    %c0_152 = arith.constant 0 : index
    %336 = vector.load %arg15[%c1_150, %c0_151, %c0_152] : memref<2x1x256xf32, #tpu.memory_space<vmem>>, vector<1x1x256xf32>
    %337 = vector.shape_cast %336 : vector<1x1x256xf32> to vector<1x256xf32>
    %338 = vector.broadcast %337 : vector<1x256xf32> to vector<32x256xf32>
    %339 = arith.addf %335, %338 : vector<32x256xf32>
    %340 = vector.extract_strided_slice %339 {offsets = [0, 0], sizes = [32, 128], strides = [1, 1]} : vector<32x256xf32> to vector<32x128xf32>
    %341 = vector.shape_cast %340 : vector<32x128xf32> to vector<2x16x4x32xf32>
    %342 = tpu.transpose %341, [0, 2, 1, 3] : vector<2x16x4x32xf32> -> vector<2x4x16x32xf32>
    %343 = vector.shape_cast %342 : vector<2x4x16x32xf32> to vector<8x16x32xf32>
    %344 = vector.extract_strided_slice %339 {offsets = [0, 128], sizes = [32, 128], strides = [1, 1]} : vector<32x256xf32> to vector<32x128xf32>
    %345 = vector.shape_cast %344 : vector<32x128xf32> to vector<2x16x4x32xf32>
    %346 = tpu.transpose %345, [0, 2, 1, 3] : vector<2x16x4x32xf32> -> vector<2x4x16x32xf32>
    %347 = vector.shape_cast %346 : vector<2x4x16x32xf32> to vector<8x16x32xf32>
    %348 = arith.truncf %332 : vector<8x8x32xf32> to vector<8x8x32xbf16>
    %349 = arith.truncf %343 : vector<8x16x32xf32> to vector<8x16x32xbf16>
    "tpu.trace_start"() <{level = 10 : i32, message = "gtd,gsd->gts"}> : () -> ()
    %cst_153 = arith.constant dense<0.000000e+00> : vector<8x8x16xf32>
    %350 = tpu.matmul %348, %349, %cst_153 {dimension_numbers = #tpu.dot_dimension_numbers<[2], [2], [1], [1], [0, 0, 0, 1, 1, 1], [0], [0]>} : vector<8x8x32xbf16>, vector<8x16x32xbf16>, vector<8x8x16xf32> -> vector<8x8x16xf32>
    "tpu.trace_stop"() : () -> ()
    %351 = vector.broadcast %14 : vector<8x1x16xf32> to vector<8x8x16xf32>
    %352 = arith.addf %350, %351 : vector<8x8x16xf32>
    %cst_154 = arith.constant dense<0xFF800000> : vector<8x8xf32>
    %353 = vector.multi_reduction <maximumf>, %352, %cst_154 [2] : vector<8x8x16xf32> to vector<8x8xf32>
    %354 = vector.shape_cast %353 : vector<8x8xf32> to vector<8x8x1xf32>
    %355 = vector.broadcast %354 : vector<8x8x1xf32> to vector<8x8x16xf32>
    %356 = arith.subf %352, %355 : vector<8x8x16xf32>
    %357 = math.exp %356 : vector<8x8x16xf32>
    %cst_155 = arith.constant dense<0.000000e+00> : vector<8x8xf32>
    %358 = vector.multi_reduction <add>, %357, %cst_155 [2] : vector<8x8x16xf32> to vector<8x8xf32>
    %359 = vector.shape_cast %358 : vector<8x8xf32> to vector<8x8x1xf32>
    %360 = vector.broadcast %359 : vector<8x8x1xf32> to vector<8x8x16xf32>
    %361 = arith.divf %357, %360 : vector<8x8x16xf32>
    %362 = arith.truncf %361 : vector<8x8x16xf32> to vector<8x8x16xbf16>
    %363 = arith.truncf %347 : vector<8x16x32xf32> to vector<8x16x32xbf16>
    "tpu.trace_start"() <{level = 10 : i32, message = "gts,gsd->gtd"}> : () -> ()
    %cst_156 = arith.constant dense<0.000000e+00> : vector<8x8x32xf32>
    %364 = tpu.matmul %362, %363, %cst_156 {dimension_numbers = #tpu.dot_dimension_numbers<[2], [1], [1], [2], [0, 0, 0, 1, 1, 2], [0], [0]>} : vector<8x8x16xbf16>, vector<8x16x32xbf16>, vector<8x8x32xf32> -> vector<8x8x32xf32>
    "tpu.trace_stop"() : () -> ()
    %365 = vector.shape_cast %364 : vector<8x8x32xf32> to vector<2x4x8x32xf32>
    %366 = tpu.transpose %365, [0, 2, 1, 3] : vector<2x4x8x32xf32> -> vector<2x8x4x32xf32>
    %367 = vector.shape_cast %366 : vector<2x8x4x32xf32> to vector<16x128xf32>
    %368 = arith.truncf %367 : vector<16x128xf32> to vector<16x128xbf16>
    %c1_157 = arith.constant 1 : index
    %c0_158 = arith.constant 0 : index
    %c0_159 = arith.constant 0 : index
    %369 = vector.load %arg16[%c1_157, %c0_158, %c0_159] : memref<2x128x128xbf16, #tpu.memory_space<vmem>>, vector<1x128x128xbf16>
    %370 = vector.shape_cast %369 : vector<1x128x128xbf16> to vector<128x128xbf16>
    %cst_160 = arith.constant dense<0.000000e+00> : vector<16x128xf32>
    %371 = tpu.matmul %368, %370, %cst_160 {dimension_numbers = #tpu.dot_dimension_numbers<[1], [0], [0], [1], [0, 0, 1, 1], [], []>} : vector<16x128xbf16>, vector<128x128xbf16>, vector<16x128xf32> -> vector<16x128xf32>
    %372 = arith.addf %295, %371 : vector<16x128xf32>
    %c1_161 = arith.constant 1 : index
    %c0_162 = arith.constant 0 : index
    %c0_163 = arith.constant 0 : index
    %373 = vector.load %arg17[%c1_161, %c0_162, %c0_163] : memref<2x1x128xf32, #tpu.memory_space<vmem>>, vector<1x1x128xf32>
    %374 = vector.shape_cast %373 : vector<1x1x128xf32> to vector<1x128xf32>
    %375 = vector.broadcast %374 : vector<1x128xf32> to vector<16x128xf32>
    %376 = arith.addf %372, %375 : vector<16x128xf32>
    %377 = vector.shape_cast %361 : vector<8x8x16xf32> to vector<2x4x8x16xf32>
    %cst_164 = arith.constant dense<0.000000e+00> : vector<2x8x16xf32>
    %378 = vector.multi_reduction <add>, %377, %cst_164 [1] : vector<2x4x8x16xf32> to vector<2x8x16xf32>
    %cst_165 = arith.constant 4.000000e+00 : f32
    %379 = vector.broadcast %cst_165 : f32 to vector<2x8x16xf32>
    %380 = arith.divf %378, %379 : vector<2x8x16xf32>
    %c1_166 = arith.constant 1 : index
    %c0_167 = arith.constant 0 : index
    %c0_168 = arith.constant 0 : index
    %381 = vector.load %arg18[%c1_166, %c0_167, %c0_168] : memref<2x1x128xf32, #tpu.memory_space<vmem>>, vector<1x1x128xf32>
    %382 = vector.shape_cast %381 : vector<1x1x128xf32> to vector<1x128xf32>
    %c1_169 = arith.constant 1 : index
    %c0_170 = arith.constant 0 : index
    %c0_171 = arith.constant 0 : index
    %383 = vector.load %arg19[%c1_169, %c0_170, %c0_171] : memref<2x1x128xf32, #tpu.memory_space<vmem>>, vector<1x1x128xf32>
    %384 = vector.shape_cast %383 : vector<1x1x128xf32> to vector<1x128xf32>
    %cst_172 = arith.constant dense<0.000000e+00> : vector<16xf32>
    %385 = vector.multi_reduction <add>, %376, %cst_172 [1] : vector<16x128xf32> to vector<16xf32>
    %386 = vector.shape_cast %385 : vector<16xf32> to vector<16x1xf32>
    %cst_173 = arith.constant 1.280000e+02 : f32
    %387 = vector.broadcast %cst_173 : f32 to vector<16x1xf32>
    %388 = arith.divf %386, %387 : vector<16x1xf32>
    %389 = vector.broadcast %388 : vector<16x1xf32> to vector<16x128xf32>
    %390 = arith.subf %376, %389 : vector<16x128xf32>
    %391 = arith.mulf %390, %390 : vector<16x128xf32>
    %cst_174 = arith.constant dense<0.000000e+00> : vector<16xf32>
    %392 = vector.multi_reduction <add>, %391, %cst_174 [1] : vector<16x128xf32> to vector<16xf32>
    %393 = vector.shape_cast %392 : vector<16xf32> to vector<16x1xf32>
    %cst_175 = arith.constant 1.280000e+02 : f32
    %394 = vector.broadcast %cst_175 : f32 to vector<16x1xf32>
    %395 = arith.divf %393, %394 : vector<16x1xf32>
    %396 = vector.broadcast %388 : vector<16x1xf32> to vector<16x128xf32>
    %397 = arith.subf %376, %396 : vector<16x128xf32>
    %cst_176 = arith.constant 9.99999974E-6 : f32
    %398 = vector.broadcast %cst_176 : f32 to vector<16x1xf32>
    %399 = arith.addf %395, %398 : vector<16x1xf32>
    %400 = math.rsqrt %399 : vector<16x1xf32>
    %401 = vector.broadcast %400 : vector<16x1xf32> to vector<16x128xf32>
    %402 = arith.mulf %397, %401 : vector<16x128xf32>
    %403 = vector.broadcast %382 : vector<1x128xf32> to vector<16x128xf32>
    %404 = arith.mulf %402, %403 : vector<16x128xf32>
    %405 = vector.broadcast %384 : vector<1x128xf32> to vector<16x128xf32>
    %406 = arith.addf %404, %405 : vector<16x128xf32>
    %407 = arith.truncf %406 : vector<16x128xf32> to vector<16x128xbf16>
    %c1_177 = arith.constant 1 : index
    %c0_178 = arith.constant 0 : index
    %c0_179 = arith.constant 0 : index
    %408 = vector.load %arg20[%c1_177, %c0_178, %c0_179] : memref<2x128x256xbf16, #tpu.memory_space<vmem>>, vector<1x128x256xbf16>
    %409 = vector.shape_cast %408 : vector<1x128x256xbf16> to vector<128x256xbf16>
    %cst_180 = arith.constant dense<0.000000e+00> : vector<16x256xf32>
    %410 = tpu.matmul %407, %409, %cst_180 {dimension_numbers = #tpu.dot_dimension_numbers<[1], [0], [0], [1], [0, 0, 1, 1], [], []>} : vector<16x128xbf16>, vector<128x256xbf16>, vector<16x256xf32> -> vector<16x256xf32>
    %c1_181 = arith.constant 1 : index
    %c0_182 = arith.constant 0 : index
    %c0_183 = arith.constant 0 : index
    %411 = vector.load %arg21[%c1_181, %c0_182, %c0_183] : memref<2x1x256xf32, #tpu.memory_space<vmem>>, vector<1x1x256xf32>
    %412 = vector.shape_cast %411 : vector<1x1x256xf32> to vector<1x256xf32>
    %413 = vector.broadcast %412 : vector<1x256xf32> to vector<16x256xf32>
    %414 = arith.addf %410, %413 : vector<16x256xf32>
    %cst_184 = arith.constant 0.000000e+00 : f32
    %415 = vector.broadcast %cst_184 : f32 to vector<16x256xf32>
    %416 = arith.maximumf %414, %415 : vector<16x256xf32>
    %417 = arith.truncf %416 : vector<16x256xf32> to vector<16x256xbf16>
    %c1_185 = arith.constant 1 : index
    %c0_186 = arith.constant 0 : index
    %c0_187 = arith.constant 0 : index
    %418 = vector.load %arg22[%c1_185, %c0_186, %c0_187] : memref<2x256x128xbf16, #tpu.memory_space<vmem>>, vector<1x256x128xbf16>
    %419 = vector.shape_cast %418 : vector<1x256x128xbf16> to vector<256x128xbf16>
    %cst_188 = arith.constant dense<0.000000e+00> : vector<16x128xf32>
    %420 = tpu.matmul %417, %419, %cst_188 {dimension_numbers = #tpu.dot_dimension_numbers<[1], [0], [0], [1], [0, 0, 1, 1], [], []>} : vector<16x256xbf16>, vector<256x128xbf16>, vector<16x128xf32> -> vector<16x128xf32>
    %421 = arith.addf %376, %420 : vector<16x128xf32>
    %c1_189 = arith.constant 1 : index
    %c0_190 = arith.constant 0 : index
    %c0_191 = arith.constant 0 : index
    %422 = vector.load %arg23[%c1_189, %c0_190, %c0_191] : memref<2x1x128xf32, #tpu.memory_space<vmem>>, vector<1x1x128xf32>
    %423 = vector.shape_cast %422 : vector<1x1x128xf32> to vector<1x128xf32>
    %424 = vector.broadcast %423 : vector<1x128xf32> to vector<16x128xf32>
    %425 = arith.addf %421, %424 : vector<16x128xf32>
    %c0_192 = arith.constant 0 : index
    %c0_193 = arith.constant 0 : index
    %426 = vector.load %arg24[%c0_192, %c0_193] : memref<1x128xf32, #tpu.memory_space<vmem>>, vector<1x128xf32>
    %c0_194 = arith.constant 0 : index
    %c0_195 = arith.constant 0 : index
    %427 = vector.load %arg25[%c0_194, %c0_195] : memref<1x128xf32, #tpu.memory_space<vmem>>, vector<1x128xf32>
    %cst_196 = arith.constant dense<0.000000e+00> : vector<16xf32>
    %428 = vector.multi_reduction <add>, %425, %cst_196 [1] : vector<16x128xf32> to vector<16xf32>
    %429 = vector.shape_cast %428 : vector<16xf32> to vector<16x1xf32>
    %cst_197 = arith.constant 1.280000e+02 : f32
    %430 = vector.broadcast %cst_197 : f32 to vector<16x1xf32>
    %431 = arith.divf %429, %430 : vector<16x1xf32>
    %432 = vector.broadcast %431 : vector<16x1xf32> to vector<16x128xf32>
    %433 = arith.subf %425, %432 : vector<16x128xf32>
    %434 = arith.mulf %433, %433 : vector<16x128xf32>
    %cst_198 = arith.constant dense<0.000000e+00> : vector<16xf32>
    %435 = vector.multi_reduction <add>, %434, %cst_198 [1] : vector<16x128xf32> to vector<16xf32>
    %436 = vector.shape_cast %435 : vector<16xf32> to vector<16x1xf32>
    %cst_199 = arith.constant 1.280000e+02 : f32
    %437 = vector.broadcast %cst_199 : f32 to vector<16x1xf32>
    %438 = arith.divf %436, %437 : vector<16x1xf32>
    %439 = vector.broadcast %431 : vector<16x1xf32> to vector<16x128xf32>
    %440 = arith.subf %425, %439 : vector<16x128xf32>
    %cst_200 = arith.constant 9.99999974E-6 : f32
    %441 = vector.broadcast %cst_200 : f32 to vector<16x1xf32>
    %442 = arith.addf %438, %441 : vector<16x1xf32>
    %443 = math.rsqrt %442 : vector<16x1xf32>
    %444 = vector.broadcast %443 : vector<16x1xf32> to vector<16x128xf32>
    %445 = arith.mulf %440, %444 : vector<16x128xf32>
    %446 = vector.broadcast %426 : vector<1x128xf32> to vector<16x128xf32>
    %447 = arith.mulf %445, %446 : vector<16x128xf32>
    %448 = vector.broadcast %427 : vector<1x128xf32> to vector<16x128xf32>
    %449 = arith.addf %447, %448 : vector<16x128xf32>
    %450 = vector.shape_cast %449 : vector<16x128xf32> to vector<2x8x128xf32>
    %c0_201 = arith.constant 0 : index
    %c0_202 = arith.constant 0 : index
    %c0_203 = arith.constant 0 : index
    %451 = vector.load %arg26[%c0_201, %c0_202, %c0_203] : memref<2x8x128xf32, #tpu.memory_space<vmem>>, vector<2x8x128xf32>
    tpu.vector_store %arg26[%c0_201, %c0_202, %c0_203], %450 {strides = array<i32>} : memref<2x8x128xf32, #tpu.memory_space<vmem>>, vector<2x8x128xf32>,
    %c0_204 = arith.constant 0 : index
    %c0_205 = arith.constant 0 : index
    %c0_206 = arith.constant 0 : index
    %452 = vector.load %arg27[%c0_204, %c0_205, %c0_206] : memref<2x8x16xf32, #tpu.memory_space<vmem>>, vector<2x8x16xf32>
    tpu.vector_store %arg27[%c0_204, %c0_205, %c0_206], %380 {strides = array<i32>} : memref<2x8x16xf32, #tpu.memory_space<vmem>>, vector<2x8x16xf32>,
    return
  }
  func.func @transform_0(%arg0: i32) -> (i32, i32, i32) {
    %c0_i32 = arith.constant 0 : i32
    %c0_i32_0 = arith.constant 0 : i32
    %c0_i32_1 = arith.constant 0 : i32
    return %arg0, %c0_i32, %c0_i32_0 : i32, i32, i32
  }
  func.func @transform_1(%arg0: i32) -> (i32, i32, i32) {
    %c0_i32 = arith.constant 0 : i32
    %c0_i32_0 = arith.constant 0 : i32
    %c0_i32_1 = arith.constant 0 : i32
    return %arg0, %c0_i32, %c0_i32_0 : i32, i32, i32
  }
  func.func @transform_2(%arg0: i32) -> (i32, i32, i32) {
    %c0_i32 = arith.constant 0 : i32
    %c0_i32_0 = arith.constant 0 : i32
    %c0_i32_1 = arith.constant 0 : i32
    return %arg0, %c0_i32, %c0_i32_0 : i32, i32, i32
  }
  func.func @transform_3(%arg0: i32) -> (i32, i32, i32) {
    %c0_i32 = arith.constant 0 : i32
    %c0_i32_0 = arith.constant 0 : i32
    %c0_i32_1 = arith.constant 0 : i32
    %c0_i32_2 = arith.constant 0 : i32
    return %c0_i32, %c0_i32_0, %c0_i32_1 : i32, i32, i32
  }
  func.func @transform_4(%arg0: i32) -> (i32, i32, i32) {
    %c0_i32 = arith.constant 0 : i32
    %c0_i32_0 = arith.constant 0 : i32
    %c0_i32_1 = arith.constant 0 : i32
    %c0_i32_2 = arith.constant 0 : i32
    return %c0_i32, %c0_i32_0, %c0_i32_1 : i32, i32, i32
  }
  func.func @transform_5(%arg0: i32) -> (i32, i32, i32) {
    %c0_i32 = arith.constant 0 : i32
    %c0_i32_0 = arith.constant 0 : i32
    %c0_i32_1 = arith.constant 0 : i32
    %c0_i32_2 = arith.constant 0 : i32
    return %c0_i32, %c0_i32_0, %c0_i32_1 : i32, i32, i32
  }
  func.func @transform_6(%arg0: i32) -> (i32, i32, i32) {
    %c0_i32 = arith.constant 0 : i32
    %c0_i32_0 = arith.constant 0 : i32
    %c0_i32_1 = arith.constant 0 : i32
    %c0_i32_2 = arith.constant 0 : i32
    return %c0_i32, %c0_i32_0, %c0_i32_1 : i32, i32, i32
  }
  func.func @transform_7(%arg0: i32) -> (i32, i32, i32) {
    %c0_i32 = arith.constant 0 : i32
    %c0_i32_0 = arith.constant 0 : i32
    %c0_i32_1 = arith.constant 0 : i32
    %c0_i32_2 = arith.constant 0 : i32
    return %c0_i32, %c0_i32_0, %c0_i32_1 : i32, i32, i32
  }
  func.func @transform_8(%arg0: i32) -> (i32, i32, i32) {
    %c0_i32 = arith.constant 0 : i32
    %c0_i32_0 = arith.constant 0 : i32
    %c0_i32_1 = arith.constant 0 : i32
    %c0_i32_2 = arith.constant 0 : i32
    return %c0_i32, %c0_i32_0, %c0_i32_1 : i32, i32, i32
  }
  func.func @transform_9(%arg0: i32) -> (i32, i32, i32) {
    %c0_i32 = arith.constant 0 : i32
    %c0_i32_0 = arith.constant 0 : i32
    %c0_i32_1 = arith.constant 0 : i32
    %c0_i32_2 = arith.constant 0 : i32
    return %c0_i32, %c0_i32_0, %c0_i32_1 : i32, i32, i32
  }
  func.func @transform_10(%arg0: i32) -> (i32, i32, i32) {
    %c0_i32 = arith.constant 0 : i32
    %c0_i32_0 = arith.constant 0 : i32
    %c0_i32_1 = arith.constant 0 : i32
    %c0_i32_2 = arith.constant 0 : i32
    return %c0_i32, %c0_i32_0, %c0_i32_1 : i32, i32, i32
  }
  func.func @transform_11(%arg0: i32) -> (i32, i32, i32) {
    %c0_i32 = arith.constant 0 : i32
    %c0_i32_0 = arith.constant 0 : i32
    %c0_i32_1 = arith.constant 0 : i32
    %c0_i32_2 = arith.constant 0 : i32
    return %c0_i32, %c0_i32_0, %c0_i32_1 : i32, i32, i32
  }
  func.func @transform_12(%arg0: i32) -> (i32, i32, i32) {
    %c0_i32 = arith.constant 0 : i32
    %c0_i32_0 = arith.constant 0 : i32
    %c0_i32_1 = arith.constant 0 : i32
    %c0_i32_2 = arith.constant 0 : i32
    return %c0_i32, %c0_i32_0, %c0_i32_1 : i32, i32, i32
  }
  func.func @transform_13(%arg0: i32) -> (i32, i32, i32) {
    %c0_i32 = arith.constant 0 : i32
    %c0_i32_0 = arith.constant 0 : i32
    %c0_i32_1 = arith.constant 0 : i32
    %c0_i32_2 = arith.constant 0 : i32
    return %c0_i32, %c0_i32_0, %c0_i32_1 : i32, i32, i32
  }
  func.func @transform_14(%arg0: i32) -> (i32, i32, i32) {
    %c0_i32 = arith.constant 0 : i32
    %c0_i32_0 = arith.constant 0 : i32
    %c0_i32_1 = arith.constant 0 : i32
    %c0_i32_2 = arith.constant 0 : i32
    return %c0_i32, %c0_i32_0, %c0_i32_1 : i32, i32, i32
  }
  func.func @transform_15(%arg0: i32) -> (i32, i32, i32) {
    %c0_i32 = arith.constant 0 : i32
    %c0_i32_0 = arith.constant 0 : i32
    %c0_i32_1 = arith.constant 0 : i32
    %c0_i32_2 = arith.constant 0 : i32
    return %c0_i32, %c0_i32_0, %c0_i32_1 : i32, i32, i32
  }
  func.func @transform_16(%arg0: i32) -> (i32, i32, i32) {
    %c0_i32 = arith.constant 0 : i32
    %c0_i32_0 = arith.constant 0 : i32
    %c0_i32_1 = arith.constant 0 : i32
    %c0_i32_2 = arith.constant 0 : i32
    return %c0_i32, %c0_i32_0, %c0_i32_1 : i32, i32, i32
  }
  func.func @transform_17(%arg0: i32) -> (i32, i32, i32) {
    %c0_i32 = arith.constant 0 : i32
    %c0_i32_0 = arith.constant 0 : i32
    %c0_i32_1 = arith.constant 0 : i32
    %c0_i32_2 = arith.constant 0 : i32
    return %c0_i32, %c0_i32_0, %c0_i32_1 : i32, i32, i32
  }
  func.func @transform_18(%arg0: i32) -> (i32, i32, i32) {
    %c0_i32 = arith.constant 0 : i32
    %c0_i32_0 = arith.constant 0 : i32
    %c0_i32_1 = arith.constant 0 : i32
    %c0_i32_2 = arith.constant 0 : i32
    return %c0_i32, %c0_i32_0, %c0_i32_1 : i32, i32, i32
  }
  func.func @transform_19(%arg0: i32) -> (i32, i32, i32) {
    %c0_i32 = arith.constant 0 : i32
    %c0_i32_0 = arith.constant 0 : i32
    %c0_i32_1 = arith.constant 0 : i32
    %c0_i32_2 = arith.constant 0 : i32
    return %c0_i32, %c0_i32_0, %c0_i32_1 : i32, i32, i32
  }
  func.func @transform_20(%arg0: i32) -> (i32, i32, i32) {
    %c0_i32 = arith.constant 0 : i32
    %c0_i32_0 = arith.constant 0 : i32
    %c0_i32_1 = arith.constant 0 : i32
    %c0_i32_2 = arith.constant 0 : i32
    return %c0_i32, %c0_i32_0, %c0_i32_1 : i32, i32, i32
  }
  func.func @transform_21(%arg0: i32) -> (i32, i32, i32) {
    %c0_i32 = arith.constant 0 : i32
    %c0_i32_0 = arith.constant 0 : i32
    %c0_i32_1 = arith.constant 0 : i32
    %c0_i32_2 = arith.constant 0 : i32
    return %c0_i32, %c0_i32_0, %c0_i32_1 : i32, i32, i32
  }
  func.func @transform_22(%arg0: i32) -> (i32, i32, i32) {
    %c0_i32 = arith.constant 0 : i32
    %c0_i32_0 = arith.constant 0 : i32
    %c0_i32_1 = arith.constant 0 : i32
    %c0_i32_2 = arith.constant 0 : i32
    return %c0_i32, %c0_i32_0, %c0_i32_1 : i32, i32, i32
  }
  func.func @transform_23(%arg0: i32) -> (i32, i32) {
    %c0_i32 = arith.constant 0 : i32
    %c0_i32_0 = arith.constant 0 : i32
    %c0_i32_1 = arith.constant 0 : i32
    return %c0_i32, %c0_i32_0 : i32, i32
  }
  func.func @transform_24(%arg0: i32) -> (i32, i32) {
    %c0_i32 = arith.constant 0 : i32
    %c0_i32_0 = arith.constant 0 : i32
    %c0_i32_1 = arith.constant 0 : i32
    return %c0_i32, %c0_i32_0 : i32, i32
  }
  func.func @transform_25(%arg0: i32) -> (i32, i32, i32) {
    %c0_i32 = arith.constant 0 : i32
    %c0_i32_0 = arith.constant 0 : i32
    %c0_i32_1 = arith.constant 0 : i32
    return %arg0, %c0_i32, %c0_i32_0 : i32, i32, i32
  }
  func.func @transform_26(%arg0: i32) -> (i32, i32, i32) {
    %c0_i32 = arith.constant 0 : i32
    %c0_i32_0 = arith.constant 0 : i32
    %c0_i32_1 = arith.constant 0 : i32
    return %arg0, %c0_i32, %c0_i32_0 : i32, i32, i32
  }
}

</mosaic_0001>

<bundles_post_ra>
// kernel: transformer_decoder_forward.1
= control target key start
LH: loop header
LB: loop body
LE: loop exit
PB: predicated region body
PF: predicated region fallthrough
CT: control target
= control target key end

     0   :  { %s14166_s0 = inlined_call_operand.vmem [shape: f32[2,8,128], index: 0, kind: input, shape index: {}]   ;;  %s14167_s1 = inlined_call_operand.vmem [shape: bf16[2,16,128], index: 1, kind: input, shape index: {}]   ;;  %s14168_s2 = inlined_call_operand.vmem [shape: f32[2,1,16], index: 2, kind: input, shape index: {}]   ;;  %s14169_s3 = inlined_call_operand.vmem [shape: f32[2,1,128], index: 3, kind: input, shape index: {}]   ;;  %s14170_s4 = inlined_call_operand.vmem [shape: f32[2,1,128], index: 4, kind: input, shape index: {}]   ;;  %s14171_s5 = inlined_call_operand.hbm [shape: bf16[2,128,384], index: 5, kind: input, shape index: {}]   ;;  %s14172_s6 = inlined_call_operand.vmem [shape: f32[2,1,384], index: 6, kind: input, shape index: {}]   ;;  %s14173_s7 = inlined_call_operand.vmem [shape: bf16[2,128,128], index: 7, kind: input, shape index: {}]   ;;  %s14174_s8 = inlined_call_operand.vmem [shape: f32[2,1,128], index: 8, kind: input, shape index: {}]   ;;  %s14175_s9 = inlined_call_operand.vmem [shape: f32[2,1,128], index: 9, kind: input, shape index: {}]   ;;  %s14176_s10 = inlined_call_operand.vmem [shape: f32[2,1,128], index: 10, kind: input, shape index: {}]   ;;  %s14177_s11 = inlined_call_operand.hbm [shape: bf16[2,128,128], index: 11, kind: input, shape index: {}]   ;;  %s14178_s12 = inlined_call_operand.vmem [shape: f32[2,1,128], index: 12, kind: input, shape index: {}]   ;;  %s14179_s13 = inlined_call_operand.hbm [shape: bf16[2,128,256], index: 13, kind: input, shape index: {}]   ;;  %s14180_s14 = inlined_call_operand.vmem [shape: f32[2,1,256], index: 14, kind: input, shape index: {}]   ;;  %s14181_s15 = inlined_call_operand.hbm [shape: bf16[2,128,128], index: 15, kind: input, shape index: {}]   ;;  %s14182_s16 = inlined_call_operand.vmem [shape: f32[2,1,128], index: 16, kind: input, shape index: {}]   ;;  %s14183_s17 = inlined_call_operand.vmem [shape: f32[2,1,128], index: 17, kind: input, shape index: {}]   ;;  %s14184_s18 = inlined_call_operand.vmem [shape: f32[2,1,128], index: 18, kind: input, shape index: {}]   ;;  %s14185_s19 = inlined_call_operand.hbm [shape: bf16[2,128,256], index: 19, kind: input, shape index: {}]   ;;  %s14186_s20 = inlined_call_operand.vmem [shape: f32[2,1,256], index: 20, kind: input, shape index: {}]   ;;  %s14187_s21 = inlined_call_operand.hbm [shape: bf16[2,256,128], index: 21, kind: input, shape index: {}]   ;;  %s14188_s22 = inlined_call_operand.vmem [shape: f32[2,1,128], index: 22, kind: input, shape index: {}]   ;;  %s14189_s23 = inlined_call_operand.vmem [shape: f32[1,128], index: 23, kind: input, shape index: {}]   ;;  %s14190_s24 = inlined_call_operand.vmem [shape: f32[1,128], index: 24, kind: input, shape index: {}]   ;;  %s14191_s25 = inlined_call_operand.vmem [shape: f32[2,8,128], index: 25, kind: output, shape index: {0}]   ;;  %s14192_s26 = inlined_call_operand.hbm [shape: f32[2,8,16], index: 26, kind: output, shape index: {1}]  }
   0x1   :  { %14204 = sst [smem:[#allocation19_spill]] %s14166_s0 }
   0x2   :  { %14205 = sst [smem:[#allocation20_spill]] %s14167_s1 }
   0x3   :  { %14206 = sst [smem:[#allocation21_spill]] %s14168_s2 }
   0x4   :  { %14207 = sst [smem:[#allocation22_spill]] %s14169_s3 }
   0x5   :  { %14208 = sst [smem:[#allocation23_spill]] %s14170_s4 }
   0x6   :  { %14209 = sst [smem:[#allocation24_spill]] %s14171_s5 }
   0x7   :  { %14210 = sst [smem:[#allocation25_spill]] %s14172_s6 }
   0x8   :  { %14211 = sst [smem:[#allocation26_spill]] %s14173_s7 }
   0x9   :  { %14212 = sst [smem:[#allocation27_spill]] %s14174_s8 }
   0xa   :  { %14213 = sst [smem:[#allocation28_spill]] %s14175_s9 }
   0xb   :  { %14214 = sst [smem:[#allocation29_spill]] %s14176_s10 }
   0xc   :  { %32 = vsyncpa [#allocation3], 0 }
   0xd   :  { %33 = vsyncpa [#allocation6], 0 }
   0xe   :  { %34 = vsyncpa [#allocation9], 0 }
   0xf   :  { %35 = vsyncpa [#allocation12], 0  ;;  %s74_s7 = sshll.u32 %s14177_s11, 4  ;;  %s75_s7 = int_to_ptr.hbm [resolvable:$true] %s74_s7 }
  0x10   :  { %36 = vsyncpa [#allocation4], 0  ;;  %s10947_s28 = smov [#allocation5]   ;;  %s104_s0 = sshll.u32 %s14181_s15, 4  ;;  %s105_s0 = int_to_ptr.hbm [resolvable:$true] %s104_s0 }
  0x11   :  { %s76_s8 = sshll.u32 %s10947_s28, 4  ;;  %s10948_s9 = smov 64   ;;  %s77_s8 = int_to_ptr.vmem [resolvable:$true] %s76_s8 }
  0x12   :  { %s10949_s30 = smov 4   ;;  %s10950_s2 = smov [#allocation8]  }
  0x13   :  { %82 = dma.hbm_to_vmem [thread:$0]  %s75_s7, 2048, %s77_s8, [#allocation6], %s10948_s9, %s10948_s9, %s10949_s30  }
  0x14   :  { %s106_s5 = sshll.u32 %s10950_s2, 4  ;;  %s14215_s6 = sld [smem:[#allocation24_spill]]  ;;  %s107_s5 = int_to_ptr.vmem [resolvable:$true] %s106_s5 }
  0x15   :  { %112 = dma.hbm_to_vmem [thread:$0]  %s105_s0, 2048, %s107_s5, [#allocation9], %s10948_s9, %s10948_s9, %s10949_s30  }
  0x16   :  { %s10951_s15 = smov [#allocation2]   ;;  %s89_s7 = sshll.u32 %s14179_s13, 4  ;;  %s90_s7 = int_to_ptr.hbm [resolvable:$true] %s89_s7 }
  0x17   :  { %s53_s27 = sshll.u32 %s10951_s15, 4  ;;  %s10952_s8 = smov 192   ;;  %s54_s27 = int_to_ptr.vmem [resolvable:$true] %s53_s27 }
  0x18   :  { %s10953_s4 = smov 12   ;;  %s10954_s29 = smov [#allocation7]  }
  0x19   :  { %s91_s2 = sshll.u32 %s10954_s29, 4  ;;  %s14203_s10 = smov 128   ;;  %s92_s2 = int_to_ptr.vmem [resolvable:$true] %s91_s2 }
  0x1a   :  { %s51_s1 = sshll.u32 %s14215_s6, 4  ;;  %s10956_s11 = smov 8   ;;  %s52_s1 = int_to_ptr.hbm [resolvable:$true] %s51_s1 }
  0x1b   :  { %59 = dma.hbm_to_vmem [thread:$0]  %s52_s1, 6144, %s54_s27, [#allocation3], %s10952_s8, %s10952_s8, %s10953_s4  }
  0x1c   :  { %97 = dma.hbm_to_vmem [thread:$0]  %s90_s7, 4096, %s92_s2, [#allocation6], %s14203_s10, %s14203_s10, %s10956_s11  }
  0x1d   :  { %s123_s6 = sshll.u32 %s14185_s19, 4  ;;  %s10957_s15 = smov [#allocation10]   ;;  %s124_s6 = int_to_ptr.hbm [resolvable:$true] %s123_s6 }
  0x1e   :  { %s125_s13 = sshll.u32 %s10957_s15, 4  ;;  %s138_s27 = sshll.u32 %s14187_s21, 4  ;;  %s126_s13 = int_to_ptr.vmem [resolvable:$true] %s125_s13  ;;  %s139_s27 = int_to_ptr.hbm [resolvable:$true] %s138_s27 }
  0x1f   :  { %131 = dma.hbm_to_vmem [thread:$0]  %s124_s6, 4096, %s126_s13, [#allocation9], %s14203_s10, %s14203_s10, %s10956_s11  }
  0x20   :  { %s10958_s28 = smov [#allocation11]  }
  0x21   :  { %s140_s8 = sshll.u32 %s10958_s28, 4  ;;  %s141_s8 = int_to_ptr.vmem [resolvable:$true] %s140_s8 }
  0x22   :  { %146 = dma.hbm_to_vmem [thread:$0]  %s139_s27, 4096, %s141_s8, [#allocation12], %s10948_s9, %s10948_s9, %s10949_s30  }
  0x23   :  { %10937 = dma.done.wait [#allocation3], 6144  }
  0x24   :  { %10938 = vsyncadd [#allocation3], 4294961152 }
  0x25   :  { %10939 = dma.done.wait [#allocation6], 6144  }
  0x26   :  { %10940 = vsyncadd [#allocation6], 4294961152 }
  0x27   :  { %10941 = dma.done.wait [#allocation9], 6144  }
  0x28   :  { %10942 = vsyncadd [#allocation9], 4294961152 }
  0x29   :  { %10943 = dma.done.wait [#allocation12], 4096  }
  0x2a   :  { %10944 = vsyncadd [#allocation12], 4294963200  ;;  %s14216_s7 = sld [smem:[#allocation19_spill]]  ;;  %v10959_v2 = vmov 128.0   ;;  %v9365_v17 = vld [vmem:[#allocation2 + $0xa8] sm:$0xf] }
  0x2b   :  { %10601 = vrcp.f32 %v10959_v2  ;;  %v10172_v18 = vld [vmem:[#allocation2 + $0xb0] sm:$0xf0]  ;;  %v10171_v19 = vld [vmem:[#allocation2 + $0xac] sm:$0xf]  ;;  %v9367_v21 = vld [vmem:[#allocation2 + $0xb4] sm:$0xf0] }
  0x2c   :  { %v9366_v20 = vor.u32 %v10172_v18, %v9365_v17  ;;  %v9373_v22 = vld [vmem:[#allocation2 + $0xb0] sm:$0xf]  ;;  %v10173_v23 = vld [vmem:[#allocation2 + $0xb8] sm:$0xf0]  ;;  %v9370_v24 = vor.u32 %v10171_v19, %v9367_v21  ;;  %v10168_v28 = vld [vmem:[#allocation2 + $0x94] sm:$0xf] }
  0x2d   :  { %v9374_v25 = vor.u32 %v10173_v23, %v9373_v22  ;;  %v9353_v26 = vld [vmem:[#allocation2 + $0x90] sm:$0xf]  ;;  %v10169_v27 = vld [vmem:[#allocation2 + $0x98] sm:$0xf0]  ;;  %v9355_v30 = vld [vmem:[#allocation2 + $0x9c] sm:$0xf0] }
  0x2e   :  { %420 = vmatpush.bf16.msra.mxu0 %v9366_v20  ;;  %434 = vmatpush.bf16.msra.mxu1 %v9370_v24  ;;  %v9354_v29 = vor.u32 %v10169_v27, %v9353_v26  ;;  %v9361_v31 = vld [vmem:[#allocation2 + $0x98] sm:$0xf]  ;;  %v10170_v32 = vld [vmem:[#allocation2 + $0xa0] sm:$0xf0]  ;;  %v9358_v33 = vor.u32 %v10168_v28, %v9355_v30  ;;  %v10165_v37 = vld [vmem:[#allocation2 + $0x7c] sm:$0xf] }
  0x2f   :  { %448 = vmatpush.bf16.msra.mxu2 %v9374_v25  ;;  %v9362_v34 = vor.u32 %v10170_v32, %v9361_v31  ;;  %v9341_v35 = vld [vmem:[#allocation2 + $0x78] sm:$0xf]  ;;  %v10166_v36 = vld [vmem:[#allocation2 + $0x80] sm:$0xf0]  ;;  %v9343_v39 = vld [vmem:[#allocation2 + $0x84] sm:$0xf0] }
  0x30   :  { %v178_v0 = vld [vmem:[%s14216_s7] sm:$0xff]  ;;  %v179_v1 = vld [vmem:[%s14216_s7 + $0x8] sm:$0xff]  ;;  %v9342_v38 = vor.u32 %v10166_v36, %v9341_v35  ;;  %v9346_v42 = vor.u32 %v10165_v37, %v9343_v39  ;;  %v9331_v48 = vld [vmem:[#allocation2 + $0x6c] sm:$0xf0]  ;;  %s14217_s0 = sld [smem:[#allocation22_spill]]  ;;  %s10960_s27 = smov 32  }
  0x31   :  { %194 = vadd.xlane.f32.xlu0 %v178_v0  ;;  %v10602_v3 = vpop.eup %10601  ;;  %v9349_v40 = vld [vmem:[#allocation2 + $0x80] sm:$0xf]  ;;  %v10167_v41 = vld [vmem:[#allocation2 + $0x88] sm:$0xf0]  ;;  %v10162_v46 = vld [vmem:[#allocation2 + $0x64] sm:$0xf] }
  0x32   :  { %v199_v4 = vmul.f32 128.0, %v10602_v3  ;;  %vm203_vm0 = vweird.f32 %v10602_v3  ;;  %421 = vmatpush.bf16.msra.mxu0 %v9354_v29  ;;  %435 = vmatpush.bf16.msra.mxu1 %v9358_v33  ;;  %v9350_v43 = vor.u32 %v10167_v41, %v9349_v40  ;;  %v9329_v44 = vld [vmem:[#allocation2 + $0x60] sm:$0xf]  ;;  %v10163_v45 = vld [vmem:[#allocation2 + $0x68] sm:$0xf0]  ;;  %v9334_v51 = vor.u32 %v10162_v46, %v9331_v48  ;;  %s14218_s15 = sld [smem:[#allocation23_spill]] }
  0x33   :  { %449 = vmatpush.bf16.msra.mxu2 %v9362_v34  ;;  %v9330_v47 = vor.u32 %v10163_v45, %v9329_v44  ;;  %v9337_v49 = vld [vmem:[#allocation2 + $0x68] sm:$0xf]  ;;  %v10164_v50 = vld [vmem:[#allocation2 + $0x70] sm:$0xf0]  ;;  %v10159_v55 = vld [vmem:[#allocation2 + $0x4c] sm:$0xf] }
  0x34   :  { %v200_v5 = vsub.f32 1.0, %v199_v4  ;;  %v9338_v52 = vor.u32 %v10164_v50, %v9337_v49  ;;  %v9317_v53 = vld [vmem:[#allocation2 + $0x48] sm:$0xf]  ;;  %v10160_v54 = vld [vmem:[#allocation2 + $0x50] sm:$0xf0]  ;;  %s14219_s1 = sld [smem:[#allocation25_spill]] }
  0x35   :  { %v9318_v56 = vor.u32 %v10160_v54, %v9317_v53  ;;  %v9319_v57 = vld [vmem:[#allocation2 + $0x54] sm:$0xf0]  ;;  %v9325_v58 = vld [vmem:[#allocation2 + $0x50] sm:$0xf]  ;;  %v10161_v59 = vld [vmem:[#allocation2 + $0x58] sm:$0xf0] }
  0x36   :  { %v201_v6 = vmul.f32 %v10602_v3, %v200_v5  ;;  %422 = vmatpush.bf16.msra.mxu0 %v9342_v38  ;;  %436 = vmatpush.bf16.msra.mxu1 %v9346_v42  ;;  %v9322_v60 = vor.u32 %v10159_v55, %v9319_v57  ;;  %v9326_v61 = vor.u32 %v10161_v59, %v9325_v58  ;;  %v9305_v62 = vld [vmem:[#allocation2 + $0x30] sm:$0xf]  ;;  %v10157_v63 = vld [vmem:[#allocation2 + $0x38] sm:$0xf0]  ;;  %v9307_v2 = vld [vmem:[#allocation2 + $0x3c] sm:$0xf0] }
  0x37   :  { %450 = vmatpush.bf16.msra.mxu2 %v9350_v43  ;;  %v10158_v4 = vld [vmem:[#allocation2 + $0x40] sm:$0xf0]  ;;  %v9281_v19 = vld [vmem:[#allocation2] sm:$0xf]  ;;  %v10151_v20 = vld [vmem:[#allocation2 + $0x8] sm:$0xf0] }
  0x38   :  { %v202_v7 = vadd.f32 %v10602_v3, %v201_v6  ;;  %v10150_v21 = vld [vmem:[#allocation2 + $0x4] sm:$0xf]  ;;  %v9282_v23 = vor.u32 %v10151_v20, %v9281_v19  ;;  %v9283_v24 = vld [vmem:[#allocation2 + $0xc] sm:$0xf0]  ;;  %v9289_v25 = vld [vmem:[#allocation2 + $0x8] sm:$0xf] }
  0x39   :  { %196 = vadd.xlane.f32.xlu0 %v179_v1  ;;  %v10152_v26 = vld [vmem:[#allocation2 + $0x10] sm:$0xf0]  ;;  %v9286_v28 = vor.u32 %v10150_v21, %v9283_v24  ;;  %s10961_s28 = smov 96   ;;  %vm483_vm7 = vcmask 1047556   ;;  %vm1199_vm8 = vcmask 261120   ;;  %vm1352_vm10 = vcmask 64512  }
  0x3a   :  { %v11141_v8 = vsel %vm203_vm0, %v10602_v3, %v202_v7  ;;  %423 = vmatpush.bf16.msra.mxu0 %v9330_v47  ;;  %437 = vmatpush.bf16.msra.mxu1 %v9334_v51  ;;  %v9313_v3 = vld [vmem:[#allocation2 + $0x38] sm:$0xf]  ;;  %v9290_v29 = vor.u32 %v10152_v26, %v9289_v25  ;;  %v10577_v47 = vld [vmem:[%s14217_s0] ss:$0 sm:$0xff]  ;;  %vm1460_vm11 = vcmask 1043456   ;;  %s14220_s21 = sld [smem:[#allocation26_spill]] }
  0x3b   :  { %451 = vmatpush.bf16.msra.mxu2 %v9338_v52  ;;  %v9314_v6 = vor.u32 %v10158_v4, %v9313_v3  ;;  %v9293_v7 = vld [vmem:[#allocation2 + $0x18] sm:$0xf]  ;;  %v10578_v52 = vld [vmem:[%s14218_s15] ss:$0 sm:$0xff]  ;;  %v10962_v4 = vmov 1983009808  }
  0x3c   :  { %vm1856_vm12 = vcmask 523264   ;;  %vm1859_vm13 = vcmask 785408   ;;  %s14221_s13 = sld [smem:[#allocation27_spill]]  ;;  %s14226_s29 = smov 128  }
  0x3d   :  { %s14222_s2 = sld [smem:[#allocation20_spill]] }
  0x3e   :  { %424 = vmatpush.bf16.msra.mxu0 %v9318_v56  ;;  %438 = vmatpush.bf16.msra.mxu1 %v9322_v60  ;;  %s14223_s4 = sld [smem:[#allocation28_spill]] }
  0x3f   :  { %452 = vmatpush.bf16.msra.mxu2 %v9326_v61  ;;  %s14225_s30 = sld [smem:[#allocation21_spill]] }
  0x43   :  { %453 = vmatpush.bf16.msra.mxu2 %v9314_v6 }
  0xa4   :  { %v195_v9 = vpop.xlane.xlu0 %194 }
  0xa5   :  { %v205_v10 = vmul.f32 %v11141_v8, %v195_v9  ;;  %v10154_v9 = vld [vmem:[#allocation2 + $0x20] sm:$0xf0] }
  0xa7   :  { %v11144_v11 = vsub.f32 %v178_v0, %v205_v10  ;;  %v10156_v0 = vld [vmem:[#allocation2 + $0x34] sm:$0xf]  ;;  %v10153_v10 = vld [vmem:[#allocation2 + $0x1c] sm:$0xf] }
  0xa8   :  { %v9310_v5 = vor.u32 %v10156_v0, %v9307_v2 }
  0xa9   :  { %v209_v12 = vmul.f32 %v11144_v11, %v11144_v11 }
  0xaa   :  { %439 = vmatpush.bf16.msra.mxu1 %v9310_v5  ;;  %v488_v5 = vunpack.c.l.s4 %v10962_v4 }
  0xab   :  { %211 = vadd.xlane.f32.xlu1 %v209_v12  ;;  %v9294_v12 = vor.u32 %v10154_v9, %v9293_v7 }
  0xac   :  { %v197_v13 = vpop.xlane.xlu0 %196 }
  0xad   :  { %v206_v14 = vmul.f32 %v11141_v8, %v197_v13  ;;  %v9295_v13 = vld [vmem:[#allocation2 + $0x24] sm:$0xf0] }
  0xae   :  { %v9298_v17 = vor.u32 %v10153_v10, %v9295_v13  ;;  %v11192_v10 = vunpack.c.0.s8 %v488_v5 }
  0xaf   :  { %v11149_v15 = vsub.f32 %v179_v1, %v206_v14  ;;  %v9306_v1 = vor.u32 %v10157_v63, %v9305_v62  ;;  %v9301_v14 = vld [vmem:[#allocation2 + $0x20] sm:$0xf] }
  0xb0   :  { %440 = vmatpush.bf16.msra.mxu1 %v9298_v17  ;;  %v10963_v17 = vmov 1934713408  }
  0xb1   :  { %v210_v16 = vmul.f32 %v11149_v15, %v11149_v15  ;;  %425 = vmatpush.bf16.msra.mxu0 %v9306_v1 }
  0xb3   :  { %213 = vadd.xlane.f32.xlu1 %v210_v16  ;;  %v10155_v16 = vld [vmem:[#allocation2 + $0x28] sm:$0xf0] }
  0xb4   :  { %v9302_v18 = vor.u32 %v10155_v16, %v9301_v14  ;;  %441 = vmatpush.bf16.msra.mxu1 %v9286_v28 }
  0xb5   :  { %426 = vmatpush.bf16.msra.mxu0 %v9294_v12 }
  0xb6   :  { %454 = vmatpush.bf16.msra.mxu2 %v9302_v18  ;;  %v512_v18 = vunpack.c.l.s4 %v10963_v17 }
  0xb8   :  { %v11200_v24 = vunpack.c.0.s8 %v512_v18 }
  0xb9   :  { %427 = vmatpush.bf16.msra.mxu0 %v9282_v23 }
  0xba   :  { %455 = vmatpush.bf16.msra.mxu2 %v9290_v29 }
 0x11e   :  { %v212_v22 = vpop.xlane.xlu1 %211 }
 0x11f   :  { %v215_v27 = vmul.f32 %v212_v22, %v11141_v8 }
 0x121   :  { %v217_v30 = vadd.f32 1e-05, %v215_v27 }
 0x123   :  { %10603 = vrsqrt.f32 %v217_v30  ;;  %vm225_vm2 = vweird.f32 %v217_v30 }
 0x126   :  { %v214_v31 = vpop.xlane.xlu1 %213 }
 0x127   :  { %v216_v32 = vmul.f32 %v214_v31, %v11141_v8 }
 0x129   :  { %v10604_v33 = vpop.eup %10603  ;;  %v218_v34 = vadd.f32 1e-05, %v216_v32 }
 0x12a   :  { %v220_v35 = vmul.f32 %v10604_v33, %v217_v30  ;;  %vm226_vm1 = vweird.f32 %v10604_v33 }
 0x12b   :  { %10605 = vrsqrt.f32 %v218_v34  ;;  %vm227_vm3 = vmor %vm225_vm2, %vm226_vm1  ;;  %vm235_vm5 = vweird.f32 %v218_v34 }
 0x12c   :  { %v221_v36 = vmul.f32 %v10604_v33, %v220_v35 }
 0x12e   :  { %v222_v37 = vmul.f32 0.5, %v221_v36 }
 0x130   :  { %v223_v38 = vsub.f32 1.5, %v222_v37 }
 0x131   :  { %v10606_v39 = vpop.eup %10605 }
 0x132   :  { %v224_v40 = vmul.f32 %v10604_v33, %v223_v38  ;;  %v230_v41 = vmul.f32 %v10606_v39, %v218_v34  ;;  %vm236_vm4 = vweird.f32 %v10606_v39 }
 0x133   :  { %vm237_vm6 = vmor %vm235_vm5, %vm236_vm4  ;;  %vm3658_vm4 = vcmask 130048  }
 0x134   :  { %v231_v42 = vmul.f32 %v10606_v39, %v230_v41  ;;  %v228_v43 = vsel %vm227_vm3, %v10604_v33, %v224_v40 }
 0x135   :  { %v239_v46 = vmul.f32 %v228_v43, %v11144_v11  ;;  %v11166_v11 = vld [vmem:[%s14219_s1] sm:$0x7] }
 0x136   :  { %v232_v44 = vmul.f32 0.5, %v231_v42  ;;  %v286_v57 = vperm.slane %v11166_v11, 0 }
 0x137   :  { %v244_v51 = vmul.f32 %v10577_v47, %v239_v46 }
 0x138   :  { %v233_v45 = vsub.f32 1.5, %v232_v44 }
 0x139   :  { %v249_v54 = vadd.f32 %v10578_v52, %v244_v51 }
 0x13a   :  { %v234_v48 = vmul.f32 %v10606_v39, %v233_v45 }
 0x13c   :  { %v238_v49 = vsel %vm237_vm6, %v10606_v39, %v234_v48 }
 0x13d   :  { %v240_v50 = vmul.f32 %v238_v49, %v11149_v15  ;;  %v287_v15 = vperm.slane %v11166_v11, 1 }
 0x13f   :  { %v245_v53 = vmul.f32 %v10577_v47, %v240_v50 }
 0x141   :  { %v250_v55 = vadd.f32 %v10578_v52, %v245_v53 }
 0x143   :  { %v251_v56 = vpack.c.bf16 %v250_v55, %v249_v54 }
 0x145   :  { %428 = vmatmul.bf16.vlgmr.msra.gmra.mxu0 %v251_v56  ;;  %442 = vmatmul.bf16.vlgmr.msra.gmra.mxu1 %v251_v56 }
 0x146   :  { %456 = vmatmul.bf16.vlgmr.msra.gmra.mxu2 %v251_v56 }
 0x1c2   :  { %v429_v58 = vpop.f32.mrf.mxu0  ;;  %v443_v59 = vpop.f32.mrf.mxu1 }
 0x1c3   :  { %v430_v60 = vadd.f32 %v429_v58, %v286_v57  ;;  %v444_v61 = vadd.f32 %v443_v59, %v287_v15 }
 0x1c5   :  { %717 = vrot.lane.b32.xlu0 %v444_v61, %s10960_s27  ;;  %705 = vrot.lane.b32.xlu2 %v444_v61, %s10961_s28  ;;  %v725_v9 = vrot.slane %v444_v61, 4  ;;  %v485_v16 = vrot.slane %v430_v60, 4 }
 0x1c6   :  { %464 = vrot.lane.b32.xlu1 %v430_v60, %s10961_s28 }
 0x1ca   :  { %v431_v62 = vpop.f32.mrf.mxu0  ;;  %v445_v63 = vpop.f32.mrf.mxu1 }
 0x1cb   :  { %v11173_v0 = vadd.f32 %v431_v62, %v286_v57  ;;  %v11175_v1 = vadd.f32 %v445_v63, %v287_v15 }
 0x1cd   :  { %713 = vrot.lane.b32.xlu0 %v11175_v1, %s10948_s9  ;;  %711 = vrot.lane.b32.xlu2 %v444_v61, %s10948_s9 }
 0x1ce   :  { %466 = vrot.lane.b32.xlu1 %v11173_v0, %s10961_s28 }
 0x1d5   :  { %472 = vrot.lane.b32.xlu0 %v11173_v0, %s10948_s9  ;;  %470 = vrot.lane.b32.xlu2 %v430_v60, %s10948_s9 }
 0x1dd   :  { %476 = vrot.lane.b32.xlu2 %v430_v60, %s10960_s27 }
 0x1e5   :  { %707 = vrot.lane.b32.xlu2 %v11175_v1, %s10961_s28 }
 0x1ed   :  { %719 = vrot.lane.b32.xlu2 %v11175_v1, %s10960_s27 }
 0x1f5   :  { %478 = vrot.lane.b32.xlu2 %v11173_v0, %s10960_s27 }
 0x21f   :  { %v706_v2 = vpop.permute.xlu2 %705 }
 0x220   :  { %v737_v21 = vrot.slane %v706_v2, 4 }
 0x227   :  { %v712_v3 = vpop.permute.xlu2 %711 }
 0x228   :  { %v723_v6 = vrot.slane %v712_v3, 4  ;;  %v726_v12 = vsel %vm483_vm7, %v712_v3, %v725_v9 }
 0x229   :  { %v734_v19 = vperm.slane %v726_v12, %v11192_v10 }
 0x22a   :  { %v724_v14 = vsel %vm483_vm7, %v723_v6, %v444_v61  ;;  %v781_v6 = vrot.slane %v11175_v1, 4 }
 0x22b   :  { %v730_v22 = vperm.slane %v724_v14, %v11192_v10  ;;  %v761_v32 = vrot.slane %v734_v19, 4 }
 0x22d   :  { %v749_v36 = vrot.slane %v730_v22, 4 }
 0x22f   :  { %v471_v7 = vpop.permute.xlu2 %470 }
 0x230   :  { %v482_v13 = vrot.slane %v471_v7, 4  ;;  %v486_v20 = vsel %vm483_vm7, %v471_v7, %v485_v16  ;;  %v541_v7 = vrot.slane %v11173_v0, 4 }
 0x231   :  { %v494_v27 = vperm.slane %v486_v20, %v11192_v10 }
 0x232   :  { %v484_v23 = vsel %vm483_vm7, %v482_v13, %v430_v60 }
 0x233   :  { %v490_v33 = vperm.slane %v484_v23, %v11192_v10  ;;  %v521_v43 = vrot.slane %v494_v27, 4 }
 0x235   :  { %v509_v47 = vrot.slane %v490_v33, 4 }
 0x237   :  { %v718_v25 = vpop.permute.xlu0 %717  ;;  %v477_v26 = vpop.permute.xlu2 %476 }
 0x238   :  { %v735_v28 = vrot.slane %v718_v25, 4  ;;  %v738_v29 = vsel %vm483_vm7, %v718_v25, %v737_v21  ;;  %v495_v30 = vrot.slane %v477_v26, 4  ;;  %v465_v31 = vpop.permute.xlu1 %464 }
 0x239   :  { %v746_v34 = vperm.slane %v738_v29, %v11192_v10  ;;  %v497_v35 = vrot.slane %v465_v31, 4 }
 0x23a   :  { %v736_v37 = vsel %vm483_vm7, %v735_v28, %v706_v2  ;;  %v496_v38 = vsel %vm483_vm7, %v495_v30, %v465_v31 }
 0x23b   :  { %v742_v39 = vperm.slane %v736_v37, %v11192_v10  ;;  %v759_v40 = vrot.slane %v746_v34, 4  ;;  %v762_v41 = vsel %vm483_vm7, %v746_v34, %v761_v32  ;;  %v498_v42 = vsel %vm483_vm7, %v477_v26, %v497_v35 }
 0x23c   :  { %v770_v44 = vperm.slane %v762_v41, %v11200_v24  ;;  %v502_v45 = vperm.slane %v496_v38, %v11192_v10  ;;  %v506_v46 = vperm.slane %v498_v42, %v11192_v10 }
 0x23d   :  { %v747_v48 = vrot.slane %v742_v39, 4  ;;  %v750_v49 = vsel %vm483_vm7, %v742_v39, %v749_v36  ;;  %v760_v50 = vsel %vm483_vm7, %v759_v40, %v734_v19 }
 0x23e   :  { %v758_v51 = vperm.slane %v750_v49, %v11200_v24  ;;  %v11218_v52 = vperm.slane %v760_v50, %v11200_v24  ;;  %v11220_v53 = vrot.slane %v770_v44, 4  ;;  %v507_v54 = vrot.slane %v502_v45, 4 }
 0x23f   :  { %v748_v55 = vsel %vm483_vm7, %v747_v48, %v730_v22  ;;  %v510_v56 = vsel %vm483_vm7, %v502_v45, %v509_v47  ;;  %v519_v57 = vrot.slane %v506_v46, 4  ;;  %v714_v15 = vpop.permute.xlu0 %713  ;;  %v708_v58 = vpop.permute.xlu2 %707  ;;  %v522_v61 = vsel %vm483_vm7, %v506_v46, %v521_v43 }
 0x240   :  { %v754_v59 = vperm.slane %v748_v55, %v11200_v24  ;;  %v773_v60 = vrot.slane %v758_v51, 4  ;;  %v11228_v62 = vsel %vm483_vm7, 0.0, %v11220_v53  ;;  %v508_v63 = vsel %vm483_vm7, %v507_v54, %v490_v33 }
 0x241   :  { %v518_v2 = vperm.slane %v510_v56, %v11200_v24  ;;  %v520_v3 = vsel %vm483_vm7, %v519_v57, %v494_v27  ;;  %v775_v4 = vrot.slane %v11218_v52, 4  ;;  %v514_v5 = vperm.slane %v508_v63, %v11200_v24 }
 0x242   :  { %v774_v9 = vsel %vm483_vm7, 0.0, %v773_v60  ;;  %v11239_v12 = vperm.slane %v520_v3, %v11200_v24  ;;  %v530_v13 = vperm.slane %v522_v61, %v11200_v24  ;;  %v851_v16 = vrot.slane %v11228_v62, 4 }
 0x243   :  { %v533_v14 = vrot.slane %v518_v2, 4  ;;  %v531_v17 = vrot.slane %v514_v5, 4  ;;  %v779_v18 = vrot.slane %v714_v15, 4  ;;  %v782_v19 = vsel %vm483_vm7, %v714_v15, %v781_v6 }
 0x244   :  { %v771_v20 = vrot.slane %v754_v59, 4  ;;  %v535_v22 = vrot.slane %v11239_v12, 4  ;;  %v11248_v23 = vrot.slane %v530_v13, 4  ;;  %v776_v25 = vsel %vm483_vm7, 0.0, %v775_v4 }
 0x245   :  { %v11245_v21 = vsel %vm483_vm7, 0.0, %v533_v14  ;;  %v840_v26 = vrot.slane %v774_v9, 4  ;;  %v780_v27 = vsel %vm483_vm7, %v779_v18, %v11175_v1  ;;  %v790_v28 = vperm.slane %v782_v19, %v11192_v10  ;;  %v467_v1 = vpop.permute.xlu1 %466 }
 0x246   :  { %v11255_v29 = vsel %vm483_vm7, 0.0, %v531_v17  ;;  %v11258_v30 = vsel %vm483_vm7, %v533_v14, %v514_v5  ;;  %v600_v31 = vrot.slane %v11245_v21, 4  ;;  %v793_v32 = vrot.slane %v708_v58, 4 }
 0x247   :  { %v473_v33 = vpop.permute.xlu0 %472  ;;  %v720_v34 = vpop.permute.xlu2 %719  ;;  %v11263_v35 = vsel %vm483_vm7, 0.0, %v11248_v23  ;;  %v786_v36 = vperm.slane %v780_v27, %v11192_v10  ;;  %v11268_v39 = vsel %vm483_vm7, 0.0, %v535_v22  ;;  %v817_v43 = vrot.slane %v790_v28, 4 }
 0x248   :  { %v539_v37 = vrot.slane %v473_v33, 4  ;;  %v542_v38 = vsel %vm483_vm7, %v473_v33, %v541_v7  ;;  %v791_v41 = vrot.slane %v720_v34, 4  ;;  %v794_v42 = vsel %vm483_vm7, %v720_v34, %v793_v32 }
 0x249   :  { %v550_v40 = vperm.slane %v542_v38, %v11192_v10  ;;  %v802_v45 = vperm.slane %v794_v42, %v11192_v10  ;;  %v835_v46 = vsel %vm483_vm7, %v773_v60, %v754_v59  ;;  %v611_v47 = vrot.slane %v11263_v35, 4 }
 0x24a   :  { %v540_v44 = vsel %vm483_vm7, %v539_v37, %v11173_v0  ;;  %v553_v48 = vrot.slane %v467_v1, 4  ;;  %v792_v49 = vsel %vm483_vm7, %v791_v41, %v708_v58  ;;  %v772_v50 = vsel %vm483_vm7, 0.0, %v771_v20 }
 0x24b   :  { %v805_v51 = vrot.slane %v786_v36, 4  ;;  %v798_v54 = vperm.slane %v792_v49, %v11192_v10  ;;  %v815_v55 = vrot.slane %v802_v45, 4  ;;  %v818_v56 = vsel %vm483_vm7, %v802_v45, %v817_v43 }
 0x24c   :  { %v546_v57 = vperm.slane %v540_v44, %v11192_v10  ;;  %v577_v0 = vrot.slane %v550_v40, 4  ;;  %v826_v15 = vperm.slane %v818_v56, %v11200_v24  ;;  %v11284_v59 = vperm.slane %v835_v46, %v11192_v10 }
 0x24d   :  { %v803_v60 = vrot.slane %v798_v54, 4  ;;  %v806_v61 = vsel %vm483_vm7, %v798_v54, %v805_v51  ;;  %v816_v58 = vsel %vm483_vm7, %v815_v55, %v790_v28  ;;  %v841_v62 = vsel %vm483_vm7, %v840_v26, %v772_v50 }
 0x24e   :  { %v814_v63 = vperm.slane %v806_v61, %v11200_v24  ;;  %v822_v2 = vperm.slane %v816_v58, %v11200_v24  ;;  %v833_v3 = vrot.slane %v826_v15, 4  ;;  %v852_v5 = vsel %vm483_vm7, %v851_v16, %v776_v25 }
 0x24f   :  { %v479_v4 = vpop.permute.xlu2 %478  ;;  %v804_v6 = vsel %vm483_vm7, %v803_v60, %v786_v36  ;;  %v846_v13 = vsel %vm483_vm7, %v11220_v53, %v11218_v52  ;;  %v845_v19 = vperm.slane %v841_v62, %v11192_v10  ;;  %v565_v20 = vrot.slane %v546_v57, 4 }
 0x250   :  { %v551_v7 = vrot.slane %v479_v4, 4  ;;  %v554_v9 = vsel %vm483_vm7, %v479_v4, %v553_v48  ;;  %v11297_v14 = vrot.slane %v814_v63, 4  ;;  %v831_v17 = vrot.slane %v822_v2, 4 }
 0x251   :  { %v834_v18 = vsel %vm483_vm7, 0.0, %v833_v3  ;;  %v562_v16 = vperm.slane %v554_v9, %v11192_v10  ;;  %v856_v25 = vperm.slane %v852_v5, %v11192_v10  ;;  %v11305_v26 = vperm.slane %v804_v6, %v11200_v24 }
 0x252   :  { %v552_v22 = vsel %vm483_vm7, %v551_v7, %v467_v1  ;;  %v905_v27 = vrot.slane %v834_v18, 4  ;;  %v850_v53 = vperm.slane %v846_v13, %v11192_v10  ;;  %v11311_v28 = vsel %vm483_vm7, 0.0, %v11297_v14 }
 0x253   :  { %v558_v52 = vperm.slane %v552_v22, %v11192_v10  ;;  %v832_v32 = vsel %vm483_vm7, 0.0, %v831_v17  ;;  %v575_v33 = vrot.slane %v562_v16, 4  ;;  %v578_v34 = vsel %vm483_vm7, %v562_v16, %v577_v0 }
 0x254   :  { %v586_v37 = vperm.slane %v578_v34, %v11200_v24  ;;  %v857_v38 = vrot.slane %v845_v19, 4  ;;  %v859_v43 = vrot.slane %v11284_v59, 4  ;;  %v869_v44 = vrot.slane %v856_v25, 4 }
 0x255   :  { %v563_v36 = vrot.slane %v558_v52, 4  ;;  %v566_v1 = vsel %vm483_vm7, %v558_v52, %v565_v20  ;;  %v576_v42 = vsel %vm483_vm7, %v575_v33, %v550_v40  ;;  %v827_v15 = vrot.slane %v11305_v26, 4 }
 0x256   :  { %v574_v41 = vperm.slane %v566_v1, %v11200_v24  ;;  %v582_v46 = vperm.slane %v576_v42, %v11200_v24  ;;  %v593_v48 = vrot.slane %v586_v37, 4  ;;  %v858_v49 = vsel %vm483_vm7, %v857_v38, %v11284_v59 }
 0x257   :  { %v564_v45 = vsel %vm483_vm7, %v563_v36, %v546_v57  ;;  %v864_v54 = vperm.slane %v858_v49, %v11200_v24  ;;  %v870_v40 = vsel %vm483_vm7, %v869_v44, %v850_v53  ;;  %v894_v59 = vrot.slane %v11311_v28, 4 }
 0x258   :  { %v11325_v50 = vperm.slane %v564_v45, %v11200_v24  ;;  %v11327_v51 = vrot.slane %v574_v41, 4  ;;  %v591_v55 = vrot.slane %v582_v46, 4  ;;  %v594_v56 = vsel %vm483_vm7, 0.0, %v593_v48 }
 0x259   :  { %v660_v57 = vsel %vm483_vm7, %v593_v48, %v582_v46  ;;  %v876_v0 = vperm.slane %v870_v40, %v11200_v24  ;;  %v11337_v60 = vsel %vm483_vm7, %v833_v3, %v822_v2  ;;  %v906_v58 = vsel %vm483_vm7, %v905_v27, %v832_v32 }
 0x25a   :  { %v11341_v61 = vsel %vm483_vm7, 0.0, %v11327_v51  ;;  %v587_v62 = vrot.slane %v11325_v50, 4  ;;  %v11346_v63 = vperm.slane %v660_v57, %v11192_v10  ;;  %v592_v5 = vsel %vm483_vm7, 0.0, %v591_v55 }
 0x25b   :  { %v881_v4 = vrot.slane %v876_v0, 4  ;;  %v654_v6 = vrot.slane %v11341_v61, 4  ;;  %v665_v7 = vrot.slane %v594_v56, 4  ;;  %v860_v2 = vsel %vm483_vm7, %v845_v19, %v859_v43 }
 0x25c   :  { %v868_v9 = vperm.slane %v860_v2, %v11200_v24  ;;  %v871_v13 = vrot.slane %v850_v53, 4  ;;  %v883_v18 = vrot.slane %v864_v54, 4  ;;  %v599_v20 = vperm.slane %v11258_v30, %v11192_v10 }
 0x25d   :  { %v882_v3 = vsel %vm483_vm7, %v881_v4, %v864_v54  ;;  %v601_v22 = vsel %vm483_vm7, %v600_v31, %v11255_v29  ;;  %v606_v52 = vsel %vm483_vm7, %v11248_v23, %v11239_v12  ;;  %v612_v29 = vsel %vm483_vm7, %v611_v47, %v11268_v39 }
 0x25e   :  { %v1191_v17 = vpack.c.bf16 %v882_v3, %v882_v3  ;;  %v872_v16 = vsel %vm483_vm7, %v856_v25, %v871_v13  ;;  %v887_v27 = vrot.slane %v868_v9, 4  ;;  %v605_v19 = vperm.slane %v601_v22, %v11192_v10 }
 0x25f   :  { %v880_v28 = vperm.slane %v872_v16, %v11200_v24  ;;  %v884_v30 = vsel %vm483_vm7, %v876_v0, %v883_v18  ;;  %v610_v32 = vperm.slane %v606_v52, %v11192_v10  ;;  %v619_v25 = vrot.slane %v599_v20, 4 }
 0x260   :  { %v1204_v53 = vsel %vm1199_vm8, %v1191_v17, 0  ;;  %v1192_v21 = vpack.c.bf16 %v884_v30, %v884_v30  ;;  %v617_v31 = vrot.slane %v605_v19, 4  ;;  %v616_v23 = vperm.slane %v612_v29, %v11192_v10 }
 0x261   :  { %1213 = vmatpush.bf16.xpose.msra.mxu3 %v1204_v53  ;;  %v885_v33 = vrot.slane %v880_v28, 4  ;;  %v888_v12 = vsel %vm483_vm7, %v880_v28, %v887_v27  ;;  %v631_v34 = vrot.slane %v610_v32, 4  ;;  %v588_v36 = vsel %vm483_vm7, 0.0, %v587_v62 }
 0x262   :  { %v1194_v1 = vpack.c.bf16 %v888_v12, %v888_v12  ;;  %v1223_v37 = vsel %vm1199_vm8, %v1192_v21, 0  ;;  %v620_v38 = vsel %vm483_vm7, %v605_v19, %v619_v25  ;;  %v666_v41 = vsel %vm483_vm7, %v665_v7, %v592_v5 }
 0x263   :  { %v629_v35 = vrot.slane %v616_v23, 4  ;;  %v11379_v39 = vperm.slane %v620_v38, %v11200_v24  ;;  %v632_v47 = vsel %vm483_vm7, %v616_v23, %v631_v34  ;;  %v618_v43 = vsel %vm483_vm7, %v617_v31, %v599_v20 }
 0x264   :  { %v1261_v42 = vsel %vm1199_vm8, %v1194_v1, 0  ;;  %v886_v44 = vsel %vm483_vm7, %v885_v33, %v868_v9  ;;  %v828_v45 = vsel %vm483_vm7, 0.0, %v827_v15  ;;  %v11388_v48 = vperm.slane %v632_v47, %v11200_v24 }
 0x265   :  { %1270 = vmatpush.bf16.xpose.msrb.mxu0 %v1261_v42  ;;  %v630_v46 = vsel %vm483_vm7, %v629_v35, %v610_v32  ;;  %v647_v49 = vrot.slane %v11379_v39, 4  ;;  %v1193_v54 = vpack.c.bf16 %v886_v44, %v886_v44  ;;  %v685_v40 = vrot.slane %v11346_v63, 4 }
 0x266   :  { %v11393_v55 = vperm.slane %v630_v46, %v11200_v24  ;;  %v889_v56 = vsel %vm483_vm7, %v11297_v14, %v11305_v26  ;;  %v895_v57 = vsel %vm483_vm7, %v894_v59, %v828_v45  ;;  %v670_v0 = vperm.slane %v666_v41, %v11192_v10 }
 0x267   :  { %v648_v15 = vsel %vm483_vm7, %v11388_v48, %v647_v49  ;;  %v893_v62 = vperm.slane %v889_v56, %v11192_v10  ;;  %v899_v4 = vperm.slane %v895_v57, %v11192_v10  ;;  %v624_v5 = vperm.slane %v618_v43, %v11200_v24 }
 0x268   :  { %v641_v7 = vrot.slane %v11393_v55, 4  ;;  %v904_v2 = vperm.slane %v11337_v60, %v11192_v10  ;;  %v910_v14 = vperm.slane %v906_v58, %v11192_v10  ;;  %v1242_v26 = vsel %vm1199_vm8, %v1193_v54, 0 }
 0x269   :  { %1232 = vmatpush.bf16.xpose.msrb.mxu3 %v1223_v37  ;;  %v911_v59 = vrot.slane %v899_v4, 4  ;;  %v913_v3 = vrot.slane %v893_v62, 4  ;;  %v649_v9 = vsel %vm483_vm7, %v11327_v51, %v11325_v50  ;;  %v1186_v17 = vpack.c.bf16 %v648_v15, %v648_v15 }
 0x26a   :  { %v642_v13 = vsel %vm483_vm7, %v641_v7, %v624_v5  ;;  %v923_v18 = vrot.slane %v910_v14, 4  ;;  %v925_v20 = vrot.slane %v904_v2, 4  ;;  %v653_v58 = vperm.slane %v649_v9, %v11192_v10 }
 0x26b   :  { %v1183_v22 = vpack.c.bf16 %v642_v13, %v642_v13  ;;  %v912_v16 = vsel %vm483_vm7, %v911_v59, %v893_v62  ;;  %v914_v60 = vsel %vm483_vm7, %v899_v4, %v913_v3  ;;  %v655_v28 = vsel %vm483_vm7, %v654_v6, %v588_v36 }
 0x26c   :  { %9378 = vmatmul.msk.bf16.vlgmr.msrb.gmra.mxu0 %vm1199_vm8, %v1186_v17  ;;  %v918_v27 = vperm.slane %v912_v16, %v11200_v24  ;;  %v924_v19 = vsel %vm483_vm7, %v923_v18, %v904_v2  ;;  %v922_v50 = vperm.slane %v914_v60, %v11200_v24  ;;  %v926_v51 = vsel %vm483_vm7, %v910_v14, %v925_v20 }
 0x26d   :  { %9375 = vmatmul.msk.bf16.vlgmr.msra.gmra.mxu3 %vm1199_vm8, %v1183_v22  ;;  %v930_v52 = vperm.slane %v924_v19, %v11200_v24  ;;  %v934_v53 = vperm.slane %v926_v51, %v11200_v24  ;;  %v673_v30 = vrot.slane %v653_v58, 4  ;;  %v659_v29 = vperm.slane %v655_v28, %v11192_v10  ;;  %v457_v19 = vpop.f32.mrf.mxu2 }
 0x26e   :  { %v937_v32 = vrot.slane %v918_v27, 4  ;;  %v941_v21 = vrot.slane %v922_v50, 4  ;;  %v683_v31 = vrot.slane %v670_v0, 4  ;;  %v686_v47 = vsel %vm483_vm7, %v670_v0, %v685_v40 }
 0x26f   :  { %v935_v25 = vrot.slane %v930_v52, 4  ;;  %v939_v33 = vrot.slane %v934_v53, 4  ;;  %v671_v34 = vrot.slane %v659_v29, 4  ;;  %v674_v35 = vsel %vm483_vm7, %v659_v29, %v673_v30 }
 0x270   :  { %v942_v12 = vsel %vm483_vm7, %v934_v53, %v941_v21  ;;  %v938_v23 = vsel %vm483_vm7, %v930_v52, %v937_v32  ;;  %v684_v1 = vsel %vm483_vm7, %v683_v31, %v11346_v63  ;;  %v643_v45 = vrot.slane %v624_v5, 4 }
 0x271   :  { %1251 = vmatpush.bf16.xpose.msra.mxu3 %v1242_v26  ;;  %v936_v61 = vsel %vm483_vm7, %v935_v25, %v918_v27  ;;  %v1198_v6 = vpack.c.bf16 %v942_v12, %v942_v12  ;;  %v1196_v36 = vpack.c.bf16 %v938_v23, %v938_v23  ;;  %v690_v37 = vperm.slane %v684_v1, %v11200_v24 }
 0x272   :  { %v1195_v38 = vpack.c.bf16 %v936_v61, %v936_v61  ;;  %v672_v41 = vsel %vm483_vm7, %v671_v34, %v653_v58  ;;  %v682_v49 = vperm.slane %v674_v35, %v11200_v24  ;;  %v940_v56 = vsel %vm483_vm7, %v939_v33, %v922_v50 }
 0x273   :  { %v1337_v42 = vsel %vm1199_vm8, %v1198_v6, 0  ;;  %v1299_v43 = vsel %vm1199_vm8, %v1196_v36, 0  ;;  %v678_v44 = vperm.slane %v672_v41, %v11200_v24  ;;  %v695_v63 = vrot.slane %v690_v37, 4 }
 0x274   :  { %v1280_v46 = vsel %vm1199_vm8, %v1195_v38, 0  ;;  %1346 = vmatpush.bf16.xpose.msra.mxu0 %v1337_v42  ;;  %v694_v40 = vperm.slane %v686_v47, %v11200_v24  ;;  %v701_v57 = vrot.slane %v682_v49, 4  ;;  %v644_v0 = vsel %vm483_vm7, %v11393_v55, %v643_v45 }
 0x275   :  { %1289 = vmatpush.bf16.xpose.msrb.mxu2 %v1280_v46  ;;  %v696_v54 = vsel %vm483_vm7, %v695_v63, %v678_v44  ;;  %v1197_v4 = vpack.c.bf16 %v940_v56, %v940_v56  ;;  %v1184_v7 = vpack.c.bf16 %v644_v0, %v644_v0  ;;  %v697_v14 = vrot.slane %v678_v44, 4  ;;  %v459_v28 = vpop.f32.mrf.mxu2 }
 0x276   :  { %v1187_v15 = vpack.c.bf16 %v696_v54, %v696_v54  ;;  %v702_v62 = vsel %vm483_vm7, %v694_v40, %v701_v57  ;;  %v645_v26 = vrot.slane %v11388_v48, 4  ;;  %v699_v13 = vrot.slane %v694_v40, 4 }
 0x277   :  { %v1190_v5 = vpack.c.bf16 %v702_v62, %v702_v62  ;;  %v1318_v2 = vsel %vm1199_vm8, %v1197_v4, 0  ;;  %v698_v55 = vsel %vm483_vm7, %v690_v37, %v697_v14  ;;  %v184_v20 = vlaneseq }
 0x278   :  { %v646_v59 = vsel %vm483_vm7, %v645_v26, %v11379_v39  ;;  %v1188_v3 = vpack.c.bf16 %v698_v55, %v698_v55  ;;  %v700_v17 = vsel %vm483_vm7, %v699_v13, %v682_v49  ;;  %v10964_v16 = vmov 0.0  }
 0x279   :  { %v1185_v9 = vpack.c.bf16 %v646_v59, %v646_v59  ;;  %v1189_v18 = vpack.c.bf16 %v700_v17, %v700_v17  ;;  %v185_v22 = vshrl.u32 %v184_v20, 7  ;;  %v187_v48 = vand.u32 127, %v184_v20 }
 0x27a   :  { %v288_v45 = vperm.slane %v11166_v11, 2 }
 0x27b   :  { %vm188_vm9 = vcmp.gt.s32.totalorder %v187_v48, %v185_v22 }
 0x27c   :  { %9379 = vmatmul.msk.bf16.vlgmr.msrb.gmra.mxu2 %vm1199_vm8, %v1187_v15  ;;  %9382 = vmatmul.msk.bf16.vlgmr.msra.gmra.mxu0 %vm1199_vm8, %v1190_v5  ;;  %v11461_v60 = vsel %vm188_vm9, -1e+09, %v10964_v16  ;;  %v11489_v49 = vadd.f32 %v459_v28, %v288_v45  ;;  %v11491_v54 = vadd.f32 %v457_v19, %v288_v45 }
 0x27d   :  { %1308 = vmatpush.bf16.xpose.msra.mxu2 %v1299_v43  ;;  %9376 = vmatmul.msk.bf16.vlgmr.msrb.gmra.mxu3 %vm1199_vm8, %v1184_v7 }
 0x27e   :  { %1327 = vmatpush.bf16.xpose.msrb.mxu3 %v1318_v2  ;;  %v10362_v40 = vpack.i.bf16 %v11489_v49, %v11491_v54 }
 0x28c   :  { %9380 = vmatmul.msk.bf16.vlgmr.msra.gmra.mxu2 %vm1199_vm8, %v1188_v3 }
 0x28d   :  { %9377 = vmatmul.msk.bf16.vlgmr.msra.gmra.mxu3 %vm1199_vm8, %v1185_v9 }
 0x29d   :  { %9381 = vmatmul.msk.bf16.vlgmr.msrb.gmra.mxu3 %vm1199_vm8, %v1189_v18 }
 0x2e9   :  { %v1272_v39 = vpop.f32.mrf.mxu0 }
 0x2ea   :  { %v11464_v58 = vadd.f32 %v1272_v39, %v11461_v60 }
 0x2ec   :  { %v1362_v27 = vsel %vm1352_vm10, %v11464_v58, -inf }
 0x2ed   :  { %1363 = vmax.xlane.f32.xlu1 %v1362_v27 }
 0x2f0   :  { %v1215_v50 = vpop.f32.mrf.mxu3 }
 0x2f1   :  { %v1216_v51 = vadd.f32 %v1215_v50, %v11461_v60  ;;  %v1274_v52 = vpop.f32.mrf.mxu0 }
 0x2f3   :  { %v1353_v53 = vsel %vm1352_vm10, %v1216_v51, -inf }
 0x2f4   :  { %1354 = vmax.xlane.f32.xlu2 %v1353_v53 }
 0x2f8   :  { %v1217_v30 = vpop.f32.mrf.mxu3 }
 0x2f9   :  { %v1348_v32 = vpop.f32.mrf.mxu0 }
 0x2fa   :  { %v11471_v21 = vadd.f32 %v1348_v32, %v11461_v60 }
 0x2fc   :  { %v1374_v29 = vsel %vm1352_vm10, %v11471_v21, -inf }
 0x2fd   :  { %1375 = vmax.xlane.f32.xlu0 %v1374_v29 }
 0x2ff   :  { %v1291_v31 = vpop.f32.mrf.mxu2 }
 0x300   :  { %v1234_v25 = vpop.f32.mrf.mxu3  ;;  %v11476_v33 = vadd.f32 %v1291_v31, %v11461_v60 }
 0x301   :  { %v1235_v12 = vadd.f32 %v1234_v25, %v11461_v60  ;;  %v1350_v23 = vpop.f32.mrf.mxu0 }
 0x302   :  { %v1365_v34 = vsel %vm1352_vm10, %v11476_v33, -inf }
 0x303   :  { %1366 = vmax.xlane.f32.xlu1 %v1365_v34  ;;  %v1356_v1 = vsel %vm1352_vm10, %v1235_v12, -inf }
 0x305   :  { %1357 = vmax.xlane.f32.xlu0 %v1356_v1 }
 0x307   :  { %v1293_v61 = vpop.f32.mrf.mxu2 }
 0x308   :  { %v1236_v6 = vpop.f32.mrf.mxu3 }
 0x309   :  { %v965_v6 = vrot.slane %v11491_v54, 4 }
 0x30f   :  { %v1310_v36 = vpop.f32.mrf.mxu2 }
 0x310   :  { %v1253_v37 = vpop.f32.mrf.mxu3  ;;  %v1311_v38 = vadd.f32 %v1310_v36, %v11461_v60 }
 0x311   :  { %v1254_v41 = vadd.f32 %v1253_v37, %v11461_v60 }
 0x312   :  { %v1368_v35 = vsel %vm1352_vm10, %v1311_v38, -inf }
 0x313   :  { %v1359_v47 = vsel %vm1352_vm10, %v1254_v41, -inf  ;;  %1369 = vmax.xlane.f32.xlu2 %v1368_v35 }
 0x314   :  { %1360 = vmax.xlane.f32.xlu1 %v1359_v47 }
 0x317   :  { %v1312_v42 = vpop.f32.mrf.mxu2 }
 0x318   :  { %v1255_v43 = vpop.f32.mrf.mxu3 }
 0x320   :  { %v1329_v44 = vpop.f32.mrf.mxu3 }
 0x321   :  { %v1330_v63 = vadd.f32 %v1329_v44, %v11461_v60 }
 0x323   :  { %v1371_v46 = vsel %vm1352_vm10, %v1330_v63, -inf }
 0x324   :  { %1372 = vmax.xlane.f32.xlu0 %v1371_v46 }
 0x328   :  { %v1331_v56 = vpop.f32.mrf.mxu3 }
 0x32b   :  { %10363 = vrot.lane.b32.xlu2 %v10362_v40, %s10961_s28 }
 0x32d   :  { %10368 = vrot.lane.b32.xlu1 %v10362_v40, %s10948_s9 }
 0x338   :  { %10373 = vrot.lane.b32.xlu0 %v10362_v40, %s10960_s27 }
 0x360   :  { %v1364_v5 = vpop.xlane.xlu1 %1363 }
 0x361   :  { %v1380_v20 = vsub.f32 %v11464_v58, %v1364_v5 }
 0x363   :  { %v1391_v48 = vmul.f32 1.442695, %v1380_v20 }
 0x367   :  { %v1355_v57 = vpop.xlane.xlu2 %1354 }
 0x368   :  { %v1377_v0 = vsub.f32 %v1216_v51, %v1355_v57 }
 0x36a   :  { %v1385_v11 = vmul.f32 1.442695, %v1377_v0 }
 0x36c   :  { %10607 = vpow2.f32 %v1385_v11 }
 0x370   :  { %v1376_v15 = vpop.xlane.xlu0 %1375 }
 0x371   :  { %v1384_v28 = vsub.f32 %v11471_v21, %v1376_v15 }
 0x372   :  { %v11498_v62 = vpop.eup %10607 }
 0x373   :  { %v1401_v4 = vsel %vm1352_vm10, %v11498_v62, 0.0  ;;  %v1399_v29 = vmul.f32 1.442695, %v1384_v28 }
 0x374   :  { %1402 = vadd.xlane.f32.xlu1 %v1401_v4 }
 0x376   :  { %v1367_v26 = vpop.xlane.xlu1 %1366 }
 0x377   :  { %v1381_v27 = vsub.f32 %v11476_v33, %v1367_v26 }
 0x378   :  { %v1358_v7 = vpop.xlane.xlu0 %1357 }
 0x379   :  { %v1378_v2 = vsub.f32 %v1235_v12, %v1358_v7  ;;  %v1393_v58 = vmul.f32 1.442695, %v1381_v27 }
 0x37b   :  { %v1387_v14 = vmul.f32 1.442695, %v1378_v2 }
 0x37d   :  { %10609 = vpow2.f32 %v1387_v14 }
 0x383   :  { %v11502_v55 = vpop.eup %10609 }
 0x384   :  { %v1404_v59 = vsel %vm1352_vm10, %v11502_v55, 0.0 }
 0x385   :  { %1405 = vadd.xlane.f32.xlu0 %v1404_v59 }
 0x386   :  { %v1370_v3 = vpop.xlane.xlu2 %1369 }
 0x387   :  { %v1361_v9 = vpop.xlane.xlu1 %1360  ;;  %v1382_v13 = vsub.f32 %v1311_v38, %v1370_v3 }
 0x388   :  { %v1379_v17 = vsub.f32 %v1254_v41, %v1361_v9  ;;  %v1021_v41 = vrot.slane %v11489_v49, 4 }
 0x389   :  { %v1395_v18 = vmul.f32 1.442695, %v1382_v13 }
 0x38a   :  { %v1389_v22 = vmul.f32 1.442695, %v1379_v17 }
 0x38b   :  { %10611 = vpow2.f32 %v1395_v18 }
 0x38c   :  { %10613 = vpow2.f32 %v1389_v22 }
 0x38d   :  { %10615 = vpow2.f32 %v1391_v48 }
 0x38e   :  { %10617 = vpow2.f32 %v1393_v58  ;;  %v10364_v34 = vpop.permute.xlu2 %10363 }
 0x38f   :  { %v10366_v37 = vunpack.i.h.bf16 %v10364_v34  ;;  %v10365_v38 = vunpack.i.l.bf16 %v10364_v34 }
 0x391   :  { %v11507_v16 = vpop.eup %10611  ;;  %v977_v45 = vrot.slane %v10365_v38, 4 }
 0x392   :  { %v11509_v39 = vpop.eup %10613  ;;  %v1416_v19 = vsel %vm1352_vm10, %v11507_v16, 0.0 }
 0x393   :  { %v1407_v50 = vsel %vm1352_vm10, %v11509_v39, 0.0  ;;  %1417 = vadd.xlane.f32.xlu1 %v1416_v19  ;;  %v11516_v52 = vpop.eup %10615 }
 0x394   :  { %1408 = vadd.xlane.f32.xlu2 %v1407_v50  ;;  %v1410_v32 = vsel %vm1352_vm10, %v11516_v52, 0.0  ;;  %v11521_v25 = vpop.eup %10617 }
 0x395   :  { %v1413_v1 = vsel %vm1352_vm10, %v11521_v25, 0.0 }
 0x397   :  { %v1373_v51 = vpop.xlane.xlu0 %1372 }
 0x398   :  { %v1383_v53 = vsub.f32 %v1330_v63, %v1373_v51  ;;  %v1033_v63 = vrot.slane %v10366_v37, 4 }
 0x39a   :  { %v1397_v30 = vmul.f32 1.442695, %v1383_v53 }
 0x39c   :  { %10619 = vpow2.f32 %v1397_v30  ;;  %1411 = vadd.xlane.f32.xlu2 %v1410_v32 }
 0x39d   :  { %10621 = vpow2.f32 %v1399_v29 }
 0x39f   :  { %v10369_v31 = vpop.permute.xlu1 %10368 }
 0x3a0   :  { %v10370_v33 = vunpack.i.l.bf16 %v10369_v31  ;;  %v10371_v12 = vunpack.i.h.bf16 %v10369_v31 }
 0x3a2   :  { %v11523_v23 = vpop.eup %10619  ;;  %v963_v61 = vrot.slane %v10370_v33, 4  ;;  %v1019_v36 = vrot.slane %v10371_v12, 4  ;;  %v966_v47 = vsel %vm483_vm7, %v10370_v33, %v965_v6  ;;  %v1022_v42 = vsel %vm483_vm7, %v10371_v12, %v1021_v41 }
 0x3a3   :  { %v1419_v21 = vsel %vm1352_vm10, %v11523_v23, 0.0  ;;  %v11531_v35 = vpop.eup %10621  ;;  %v974_v46 = vperm.slane %v966_v47, %v11192_v10  ;;  %v1030_v57 = vperm.slane %v1022_v42, %v11192_v10 }
 0x3a4   :  { %1420 = vadd.xlane.f32.xlu0 %v1419_v21  ;;  %1414 = vadd.xlane.f32.xlu2 %v1413_v1  ;;  %v964_v43 = vsel %vm483_vm7, %v963_v61, %v11491_v54  ;;  %v1020_v44 = vsel %vm483_vm7, %v1019_v36, %v11489_v49  ;;  %v1422_v40 = vsel %vm1352_vm10, %v11531_v35, 0.0 }
 0x3a5   :  { %v970_v0 = vperm.slane %v964_v43, %v11192_v10  ;;  %v1026_v4 = vperm.slane %v1020_v44, %v11192_v10  ;;  %v1001_v2 = vrot.slane %v974_v46, 4  ;;  %v1057_v59 = vrot.slane %v1030_v57, 4 }
 0x3a7   :  { %v989_v3 = vrot.slane %v970_v0, 4  ;;  %v1045_v48 = vrot.slane %v1026_v4, 4 }
 0x3aa   :  { %v10374_v56 = vpop.permute.xlu0 %10373 }
 0x3ab   :  { %v10376_v11 = vunpack.i.h.bf16 %v10374_v56  ;;  %v10375_v15 = vunpack.i.l.bf16 %v10374_v56 }
 0x3ac   :  { %1423 = vadd.xlane.f32.xlu0 %v1422_v40 }
 0x3ad   :  { %v1031_v54 = vrot.slane %v10376_v11, 4  ;;  %v975_v5 = vrot.slane %v10375_v15, 4  ;;  %v978_v49 = vsel %vm483_vm7, %v10375_v15, %v977_v45  ;;  %v1034_v7 = vsel %vm483_vm7, %v10376_v11, %v1033_v63 }
 0x3ae   :  { %v986_v14 = vperm.slane %v978_v49, %v11192_v10  ;;  %v1042_v26 = vperm.slane %v1034_v7, %v11192_v10 }
 0x3af   :  { %v976_v9 = vsel %vm483_vm7, %v975_v5, %v10365_v38  ;;  %v1032_v13 = vsel %vm483_vm7, %v1031_v54, %v10366_v37 }
 0x3b0   :  { %v982_v17 = vperm.slane %v976_v9, %v11192_v10  ;;  %v999_v18 = vrot.slane %v986_v14, 4  ;;  %v1002_v20 = vsel %vm483_vm7, %v986_v14, %v1001_v2  ;;  %v1038_v22 = vperm.slane %v1032_v13, %v11192_v10 }
 0x3b1   :  { %v1010_v27 = vperm.slane %v1002_v20, %v11200_v24  ;;  %v1055_v19 = vrot.slane %v1042_v26, 4  ;;  %v1058_v50 = vsel %vm483_vm7, %v1042_v26, %v1057_v59 }
 0x3b2   :  { %v987_v58 = vrot.slane %v982_v17, 4  ;;  %v990_v51 = vsel %vm483_vm7, %v982_v17, %v989_v3  ;;  %v1000_v53 = vsel %vm483_vm7, %v999_v18, %v974_v46  ;;  %v1043_v28 = vrot.slane %v1038_v22, 4 }
 0x3b3   :  { %v998_v30 = vperm.slane %v990_v51, %v11200_v24  ;;  %v1006_v32 = vperm.slane %v1000_v53, %v11200_v24  ;;  %v1017_v29 = vrot.slane %v1010_v27, 4  ;;  %v1046_v31 = vsel %vm483_vm7, %v1038_v22, %v1045_v48 }
 0x3b4   :  { %v988_v33 = vsel %vm483_vm7, %v987_v58, %v970_v0  ;;  %v1044_v12 = vsel %vm483_vm7, %v1043_v28, %v1026_v4  ;;  %v1054_v34 = vperm.slane %v1046_v31, %v11200_v24  ;;  %v1056_v21 = vsel %vm483_vm7, %v1055_v19, %v1030_v57 }
 0x3b5   :  { %v994_v1 = vperm.slane %v988_v33, %v11200_v24  ;;  %v1013_v61 = vrot.slane %v998_v30, 4  ;;  %v1015_v6 = vrot.slane %v1006_v32, 4  ;;  %v1018_v36 = vsel %vm483_vm7, 0.0, %v1017_v29 }
 0x3b6   :  { %v1050_v37 = vperm.slane %v1044_v12, %v11200_v24  ;;  %v1062_v38 = vperm.slane %v1056_v21, %v11200_v24  ;;  %v1066_v41 = vperm.slane %v1058_v50, %v11200_v24  ;;  %v1069_v47 = vrot.slane %v1054_v34, 4 }
 0x3b7   :  { %v1011_v42 = vrot.slane %v994_v1, 4  ;;  %v1014_v43 = vsel %vm483_vm7, 0.0, %v1013_v61  ;;  %v1016_v44 = vsel %vm483_vm7, 0.0, %v1015_v6  ;;  %v1086_v63 = vsel %vm483_vm7, %v1017_v29, %v1006_v32 }
 0x3b8   :  { %v1067_v45 = vrot.slane %v1050_v37, 4  ;;  %v1070_v46 = vsel %vm483_vm7, 0.0, %v1069_v47  ;;  %v1071_v56 = vrot.slane %v1062_v38, 4  ;;  %v1073_v40 = vrot.slane %v1066_v41, 4 }
 0x3b9   :  { %v1080_v57 = vrot.slane %v1014_v43, 4  ;;  %v1091_v0 = vrot.slane %v1018_v36, 4  ;;  %v1134_v11 = vrot.slane %v1070_v46, 4  ;;  %v1012_v15 = vsel %vm483_vm7, 0.0, %v1011_v42 }
 0x3ba   :  { %v1072_v4 = vsel %vm483_vm7, 0.0, %v1071_v56  ;;  %v1074_v54 = vsel %vm483_vm7, 0.0, %v1073_v40  ;;  %v1140_v5 = vsel %vm483_vm7, %v1073_v40, %v1062_v38  ;;  %v1075_v49 = vsel %vm483_vm7, %v1013_v61, %v994_v1 }
 0x3bb   :  { %v1145_v7 = vrot.slane %v1074_v54, 4  ;;  %v1079_v2 = vperm.slane %v1075_v49, %v11192_v10  ;;  %v1081_v14 = vsel %vm483_vm7, %v1080_v57, %v1012_v15  ;;  %v1090_v26 = vperm.slane %v1086_v63, %v11192_v10 }
 0x3bc   :  { %v1085_v59 = vperm.slane %v1081_v14, %v11192_v10  ;;  %v1092_v3 = vsel %vm483_vm7, %v1091_v0, %v1016_v44  ;;  %v1068_v9 = vsel %vm483_vm7, 0.0, %v1067_v45  ;;  %v1129_v13 = vsel %vm483_vm7, %v1069_v47, %v1050_v37 }
 0x3bd   :  { %v1096_v17 = vperm.slane %v1092_v3, %v11192_v10  ;;  %v1099_v18 = vrot.slane %v1079_v2, 4  ;;  %v1111_v20 = vrot.slane %v1090_v26, 4  ;;  %v1133_v22 = vperm.slane %v1129_v13, %v11192_v10 }
 0x3be   :  { %v1135_v48 = vsel %vm483_vm7, %v1134_v11, %v1068_v9  ;;  %v1144_v27 = vperm.slane %v1140_v5, %v11192_v10  ;;  %v1146_v19 = vsel %vm483_vm7, %v1145_v7, %v1072_v4  ;;  %v1097_v50 = vrot.slane %v1085_v59, 4 }
 0x3bf   :  { %v1100_v58 = vsel %vm483_vm7, %v1085_v59, %v1099_v18  ;;  %v1112_v51 = vsel %vm483_vm7, %v1096_v17, %v1111_v20  ;;  %v1139_v53 = vperm.slane %v1135_v48, %v11192_v10  ;;  %v1150_v28 = vperm.slane %v1146_v19, %v11192_v10 }
 0x3c0   :  { %v1108_v30 = vperm.slane %v1100_v58, %v11200_v24  ;;  %v1120_v32 = vperm.slane %v1112_v51, %v11200_v24  ;;  %v1153_v29 = vrot.slane %v1133_v22, 4  ;;  %v1165_v31 = vrot.slane %v1144_v27, 4 }
 0x3c1   :  { %v1098_v33 = vsel %vm483_vm7, %v1097_v50, %v1079_v2  ;;  %v1109_v12 = vrot.slane %v1096_v17, 4  ;;  %v1151_v34 = vrot.slane %v1139_v53, 4  ;;  %v1163_v21 = vrot.slane %v1150_v28, 4 }
 0x3c2   :  { %v1125_v1 = vrot.slane %v1120_v32, 4  ;;  %v1154_v61 = vsel %vm483_vm7, %v1139_v53, %v1153_v29  ;;  %v1166_v6 = vsel %vm483_vm7, %v1150_v28, %v1165_v31  ;;  %v1104_v36 = vperm.slane %v1098_v33, %v11200_v24 }
 0x3c3   :  { %v1162_v37 = vperm.slane %v1154_v61, %v11200_v24  ;;  %v1174_v38 = vperm.slane %v1166_v6, %v11200_v24  ;;  %v1110_v41 = vsel %vm483_vm7, %v1109_v12, %v1090_v26  ;;  %v1127_v47 = vrot.slane %v1108_v30, 4 }
 0x3c4   :  { %v1126_v42 = vsel %vm483_vm7, %v1125_v1, %v1108_v30  ;;  %v1116_v43 = vperm.slane %v1110_v41, %v11200_v24  ;;  %v1123_v44 = vrot.slane %v1104_v36, 4  ;;  %v1152_v63 = vsel %vm483_vm7, %v1151_v34, %v1133_v22 }
 0x3c5   :  { %v1451_v45 = vpack.c.bf16 %v1126_v42, %v1126_v42  ;;  %v1179_v46 = vrot.slane %v1174_v38, 4  ;;  %v1128_v56 = vsel %vm483_vm7, %v1120_v32, %v1127_v47  ;;  %v1158_v40 = vperm.slane %v1152_v63, %v11200_v24 }
 0x3c6   :  { %v1121_v57 = vrot.slane %v1116_v43, 4  ;;  %v1452_v0 = vpack.c.bf16 %v1128_v56, %v1128_v56  ;;  %v1164_v11 = vsel %vm483_vm7, %v1163_v21, %v1144_v27  ;;  %v1181_v15 = vrot.slane %v1162_v37, 4 }
 0x3c7   :  { %v1500_v4 = vsel %vm1460_vm11, %v1451_v45, 0  ;;  %v1180_v54 = vsel %vm483_vm7, %v1179_v46, %v1162_v37  ;;  %v1170_v5 = vperm.slane %v1164_v11, %v11200_v24  ;;  %v1124_v49 = vsel %vm483_vm7, %v1116_v43, %v1123_v44 }
 0x3c8   :  { %1509 = vmatpush.bf16.msra.mxu3 %v1500_v4  ;;  %v1455_v7 = vpack.c.bf16 %v1180_v54, %v1180_v54  ;;  %v1122_v2 = vsel %vm483_vm7, %v1121_v57, %v1104_v36  ;;  %v1519_v14 = vsel %vm1460_vm11, %v1452_v0, 0  ;;  %v1182_v26 = vsel %vm483_vm7, %v1174_v38, %v1181_v15 }
 0x3c9   :  { %v1449_v59 = vpack.c.bf16 %v1122_v2, %v1122_v2  ;;  %1528 = vmatpush.bf16.msrb.mxu0 %v1519_v14  ;;  %v1175_v3 = vrot.slane %v1170_v5, 4  ;;  %v1456_v9 = vpack.c.bf16 %v1182_v26, %v1182_v26  ;;  %v1450_v13 = vpack.c.bf16 %v1124_v49, %v1124_v49 }
 0x3ca   :  { %v1576_v17 = vsel %vm1460_vm11, %v1455_v7, 0  ;;  %v1177_v18 = vrot.slane %v1158_v40, 4 }
 0x3cb   :  { %v1462_v20 = vsel %vm1460_vm11, %v1449_v59, 0  ;;  %v1176_v22 = vsel %vm483_vm7, %v1175_v3, %v1158_v40  ;;  %v1595_v48 = vsel %vm1460_vm11, %v1456_v9, 0  ;;  %v1481_v27 = vsel %vm1460_vm11, %v1450_v13, 0 }
 0x3cc   :  { %1585 = vmatpush.bf16.msrb.mxu3 %v1576_v17  ;;  %1471 = vmatpush.bf16.msrb.mxu1 %v1462_v20  ;;  %v1453_v19 = vpack.c.bf16 %v1176_v22, %v1176_v22  ;;  %v1178_v50 = vsel %vm483_vm7, %v1170_v5, %v1177_v18 }
 0x3cd   :  { %1604 = vmatpush.bf16.msra.mxu0 %v1595_v48  ;;  %1490 = vmatpush.bf16.msrb.mxu2 %v1481_v27  ;;  %v1454_v58 = vpack.c.bf16 %v1178_v50, %v1178_v50 }
 0x3ce   :  { %v1538_v51 = vsel %vm1460_vm11, %v1453_v19, 0 }
 0x3cf   :  { %v1557_v53 = vsel %vm1460_vm11, %v1454_v58, 0 }
 0x3d0   :  { %1547 = vmatpush.bf16.msra.mxu1 %v1538_v51 }
 0x3d1   :  { %1566 = vmatpush.bf16.msra.mxu2 %v1557_v53 }
 0x3e7   :  { %v1403_v28 = vpop.xlane.xlu1 %1402 }
 0x3e8   :  { %10623 = vrcp.f32 %v1403_v28 }
 0x3ee   :  { %v10624_v30 = vpop.eup %10623 }
 0x3ef   :  { %v1433_v32 = vmul.f32 %v10624_v30, %v11498_v62 }
 0x3f1   :  { %v1441_v29 = vpack.c.bf16 %v1433_v32, %v1433_v32 }
 0x3f3   :  { %9383 = vmatmul.msk.bf16.vlgmr.msrb.gmra.mxu1 %vm1352_vm10, %v1441_v29 }
 0x3f8   :  { %v1406_v31 = vpop.xlane.xlu0 %1405 }
 0x3f9   :  { %10625 = vrcp.f32 %v1406_v31 }
 0x3ff   :  { %v10626_v33 = vpop.eup %10625 }
 0x400   :  { %v1434_v12 = vmul.f32 %v10626_v33, %v11502_v55 }
 0x402   :  { %v1442_v34 = vpack.c.bf16 %v1434_v12, %v1434_v12 }
 0x404   :  { %9384 = vmatmul.msk.bf16.vlgmr.msrb.gmra.mxu2 %vm1352_vm10, %v1442_v34 }
 0x406   :  { %v1418_v21 = vpop.xlane.xlu1 %1417 }
 0x407   :  { %10627 = vrcp.f32 %v1418_v21  ;;  %v1409_v1 = vpop.xlane.xlu2 %1408 }
 0x408   :  { %10629 = vrcp.f32 %v1409_v1 }
 0x40d   :  { %v10628_v61 = vpop.eup %10627 }
 0x40e   :  { %v10630_v6 = vpop.eup %10629  ;;  %v1438_v36 = vmul.f32 %v10628_v61, %v11507_v16 }
 0x40f   :  { %v1435_v62 = vmul.f32 %v10630_v6, %v11509_v39  ;;  %v1412_v37 = vpop.xlane.xlu2 %1411 }
 0x410   :  { %10631 = vrcp.f32 %v1412_v37  ;;  %v1446_v41 = vpack.c.bf16 %v1438_v36, %v1438_v36 }
 0x411   :  { %v1443_v38 = vpack.c.bf16 %v1435_v62, %v1435_v62 }
 0x413   :  { %9385 = vmatmul.msk.bf16.vlgmr.msra.gmra.mxu3 %vm1352_vm10, %v1443_v38 }
 0x414   :  { %9388 = vmatmul.msk.bf16.vlgmr.msra.gmra.mxu2 %vm1352_vm10, %v1446_v41 }
 0x416   :  { %v10632_v55 = vpop.eup %10631 }
 0x417   :  { %v1436_v47 = vmul.f32 %v10632_v55, %v11516_v52  ;;  %v1421_v42 = vpop.xlane.xlu0 %1420  ;;  %v1415_v43 = vpop.xlane.xlu2 %1414 }
 0x418   :  { %10633 = vrcp.f32 %v1421_v42 }
 0x419   :  { %v1444_v44 = vpack.c.bf16 %v1436_v47, %v1436_v47  ;;  %10635 = vrcp.f32 %v1415_v43 }
 0x41b   :  { %9386 = vmatmul.msk.bf16.vlgmr.msrb.gmra.mxu0 %vm1352_vm10, %v1444_v44 }
 0x41e   :  { %v10634_v16 = vpop.eup %10633 }
 0x41f   :  { %v10636_v39 = vpop.eup %10635  ;;  %v1439_v63 = vmul.f32 %v10634_v16, %v11523_v23  ;;  %v1424_v45 = vpop.xlane.xlu0 %1423 }
 0x420   :  { %v1437_v46 = vmul.f32 %v10636_v39, %v11521_v25  ;;  %10637 = vrcp.f32 %v1424_v45 }
 0x421   :  { %v1447_v56 = vpack.c.bf16 %v1439_v63, %v1439_v63 }
 0x422   :  { %v1445_v40 = vpack.c.bf16 %v1437_v46, %v1437_v46 }
 0x423   :  { %9389 = vmatmul.msk.bf16.vlgmr.msrb.gmra.mxu3 %vm1352_vm10, %v1447_v56 }
 0x424   :  { %9387 = vmatmul.msk.bf16.vlgmr.msra.gmra.mxu1 %vm1352_vm10, %v1445_v40 }
 0x426   :  { %v10638_v52 = vpop.eup %10637 }
 0x427   :  { %v1440_v57 = vmul.f32 %v10638_v52, %v11531_v35 }
 0x429   :  { %v1448_v0 = vpack.c.bf16 %v1440_v57, %v1440_v57 }
 0x42b   :  { %9390 = vmatmul.msk.bf16.vlgmr.msra.gmra.mxu0 %vm1352_vm10, %v1448_v0 }
 0x470   :  { %v1473_v11 = vpop.f32.mrf.mxu1 }
 0x471   :  { %v1612_v54 = vrot.slane %v1473_v11, 4 }
 0x478   :  { %v1475_v15 = vpop.f32.mrf.mxu1 }
 0x487   :  { %v1492_v4 = vpop.f32.mrf.mxu2 }
 0x488   :  { %v1624_v25 = vrot.slane %v1492_v4, 4 }
 0x48f   :  { %v1494_v23 = vpop.f32.mrf.mxu2 }
 0x496   :  { %v1511_v5 = vpop.f32.mrf.mxu3 }
 0x497   :  { %v1610_v49 = vrot.slane %v1511_v5, 4  ;;  %v1613_v7 = vsel %vm483_vm7, %v1511_v5, %v1612_v54  ;;  %v1568_v2 = vpop.f32.mrf.mxu2 }
 0x498   :  { %v1621_v14 = vperm.slane %v1613_v7, %v11192_v10  ;;  %v1530_v26 = vpop.f32.mrf.mxu0  ;;  %v1680_v16 = vrot.slane %v1568_v2, 4 }
 0x499   :  { %v1611_v59 = vsel %vm483_vm7, %v1610_v49, %v1473_v11  ;;  %v1622_v35 = vrot.slane %v1530_v26, 4  ;;  %v1625_v3 = vsel %vm483_vm7, %v1530_v26, %v1624_v25 }
 0x49a   :  { %v1617_v9 = vperm.slane %v1611_v59, %v11192_v10  ;;  %v1648_v13 = vrot.slane %v1621_v14, 4  ;;  %v1633_v17 = vperm.slane %v1625_v3, %v11192_v10 }
 0x49b   :  { %v1623_v18 = vsel %vm483_vm7, %v1622_v35, %v1492_v4 }
 0x49c   :  { %v1636_v20 = vrot.slane %v1617_v9, 4  ;;  %v1629_v22 = vperm.slane %v1623_v18, %v11192_v10  ;;  %v1646_v48 = vrot.slane %v1633_v17, 4  ;;  %v1649_v27 = vsel %vm483_vm7, %v1633_v17, %v1648_v13 }
 0x49d   :  { %v1657_v19 = vperm.slane %v1649_v27, %v11200_v24 }
 0x49e   :  { %v1634_v50 = vrot.slane %v1629_v22, 4  ;;  %v1637_v58 = vsel %vm483_vm7, %v1629_v22, %v1636_v20  ;;  %v1647_v51 = vsel %vm483_vm7, %v1646_v48, %v1621_v14  ;;  %v1513_v53 = vpop.f32.mrf.mxu3 }
 0x49f   :  { %v1645_v28 = vperm.slane %v1637_v58, %v11200_v24  ;;  %v1653_v30 = vperm.slane %v1647_v51, %v11200_v24  ;;  %v1664_v32 = vrot.slane %v1657_v19, 4  ;;  %v1570_v29 = vpop.f32.mrf.mxu2 }
 0x4a0   :  { %v1635_v31 = vsel %vm483_vm7, %v1634_v50, %v1617_v9  ;;  %v1532_v33 = vpop.f32.mrf.mxu0 }
 0x4a1   :  { %v1641_v12 = vperm.slane %v1635_v31, %v11200_v24  ;;  %v1660_v34 = vrot.slane %v1645_v28, 4  ;;  %v1662_v21 = vrot.slane %v1653_v30, 4  ;;  %v1665_v1 = vsel %vm483_vm7, 0.0, %v1664_v32  ;;  %v1549_v61 = vpop.f32.mrf.mxu1 }
 0x4a2   :  { %v1738_v6 = vrot.slane %v1665_v1, 4  ;;  %v1733_v38 = vsel %vm483_vm7, %v1664_v32, %v1653_v30  ;;  %v1668_v42 = vrot.slane %v1549_v61, 4 }
 0x4a3   :  { %v1658_v36 = vrot.slane %v1641_v12, 4  ;;  %v1661_v62 = vsel %vm483_vm7, 0.0, %v1660_v34  ;;  %v1663_v37 = vsel %vm483_vm7, 0.0, %v1662_v21  ;;  %v1722_v55 = vsel %vm483_vm7, %v1660_v34, %v1641_v12 }
 0x4a4   :  { %v1727_v41 = vrot.slane %v1661_v62, 4  ;;  %v1739_v47 = vsel %vm483_vm7, %v1738_v6, %v1663_v37  ;;  %v1737_v44 = vperm.slane %v1733_v38, %v11192_v10  ;;  %v1726_v40 = vperm.slane %v1722_v55, %v11192_v10 }
 0x4a5   :  { %v1659_v43 = vsel %vm483_vm7, 0.0, %v1658_v36  ;;  %v1743_v45 = vperm.slane %v1739_v47, %v11192_v10 }
 0x4a6   :  { %v1587_v39 = vpop.f32.mrf.mxu3  ;;  %v1728_v63 = vsel %vm483_vm7, %v1727_v41, %v1659_v43  ;;  %v1746_v26 = vrot.slane %v1726_v40, 4  ;;  %v1758_v59 = vrot.slane %v1737_v44, 4 }
 0x4a7   :  { %v1666_v46 = vrot.slane %v1587_v39, 4  ;;  %v1669_v56 = vsel %vm483_vm7, %v1587_v39, %v1668_v42  ;;  %v1732_v52 = vperm.slane %v1728_v63, %v11192_v10  ;;  %v1756_v7 = vrot.slane %v1743_v45, 4 }
 0x4a8   :  { %v1677_v57 = vperm.slane %v1669_v56, %v11192_v10  ;;  %v1606_v0 = vpop.f32.mrf.mxu0  ;;  %v1759_v51 = vsel %vm483_vm7, %v1743_v45, %v1758_v59 }
 0x4a9   :  { %v1667_v11 = vsel %vm483_vm7, %v1666_v46, %v1549_v61  ;;  %v1551_v15 = vpop.f32.mrf.mxu1  ;;  %v1678_v4 = vrot.slane %v1606_v0, 4  ;;  %v1681_v23 = vsel %vm483_vm7, %v1606_v0, %v1680_v16  ;;  %v1744_v54 = vrot.slane %v1732_v52, 4 }
 0x4aa   :  { %v1673_v5 = vperm.slane %v1667_v11, %v11192_v10  ;;  %v1704_v25 = vrot.slane %v1677_v57, 4  ;;  %v1689_v49 = vperm.slane %v1681_v23, %v11192_v10  ;;  %v1747_v30 = vsel %vm483_vm7, %v1732_v52, %v1746_v26 }
 0x4ab   :  { %v1679_v14 = vsel %vm483_vm7, %v1678_v4, %v1568_v2  ;;  %v1745_v18 = vsel %vm483_vm7, %v1744_v54, %v1726_v40  ;;  %v1757_v2 = vsel %vm483_vm7, %v1756_v7, %v1737_v44  ;;  %v1767_v61 = vperm.slane %v1759_v51, %v11200_v24  ;;  %v10178_v51 = vld [vmem:[%s14220_s21 + $0x20] sm:$0xff] }
 0x4ac   :  { %v1692_v35 = vrot.slane %v1673_v5, 4  ;;  %v1685_v3 = vperm.slane %v1679_v14, %v11192_v10  ;;  %v1702_v9 = vrot.slane %v1689_v49, 4  ;;  %v1705_v13 = vsel %vm483_vm7, %v1689_v49, %v1704_v25 }
 0x4ad   :  { %v1713_v17 = vperm.slane %v1705_v13, %v11200_v24  ;;  %v1751_v32 = vperm.slane %v1745_v18, %v11200_v24  ;;  %v1763_v29 = vperm.slane %v1757_v2, %v11200_v24  ;;  %v1755_v63 = vperm.slane %v1747_v30, %v11200_v24  ;;  %v10175_v30 = vld [vmem:[%s14220_s21 + $0x8] sm:$0xff] }
 0x4ae   :  { %v1690_v20 = vrot.slane %v1685_v3, 4  ;;  %v1693_v22 = vsel %vm483_vm7, %v1685_v3, %v1692_v35  ;;  %v1703_v48 = vsel %vm483_vm7, %v1702_v9, %v1677_v57  ;;  %v1589_v27 = vpop.f32.mrf.mxu3  ;;  %v1772_v45 = vrot.slane %v1767_v61, 4 }
 0x4af   :  { %v1701_v19 = vperm.slane %v1693_v22, %v11200_v24  ;;  %v1709_v50 = vperm.slane %v1703_v48, %v11200_v24  ;;  %v1720_v58 = vrot.slane %v1713_v17, 4  ;;  %v1768_v6 = vrot.slane %v1763_v29, 4 }
 0x4b0   :  { %v1691_v53 = vsel %vm483_vm7, %v1690_v20, %v1673_v5  ;;  %v1608_v28 = vpop.f32.mrf.mxu0  ;;  %v1774_v23 = vrot.slane %v1755_v63, 4  ;;  %v1773_v49 = vsel %vm483_vm7, %v1772_v45, %v1755_v63  ;;  %v1770_v7 = vrot.slane %v1751_v32, 4  ;;  %v10203_v63 = vld [vmem:[#allocation7 + $0x64] sm:$0xf0] }
 0x4b1   :  { %v1697_v31 = vperm.slane %v1691_v53, %v11200_v24  ;;  %v1716_v33 = vrot.slane %v1701_v19, 4  ;;  %v1718_v12 = vrot.slane %v1709_v50, 4  ;;  %v1721_v34 = vsel %vm483_vm7, 0.0, %v1720_v58  ;;  %v10181_v19 = vld [vmem:[%s14220_s21 + $0x38] sm:$0xff]  ;;  %v10176_v28 = vld [vmem:[%s14220_s21 + $0x10] sm:$0xff] }
 0x4b2   :  { %v1787_v21 = vsel %vm483_vm7, %v1720_v58, %v1709_v50  ;;  %v1792_v1 = vrot.slane %v1721_v34, 4  ;;  %v11700_v42 = vsel %vm483_vm7, %v1768_v6, %v1751_v32  ;;  %v1775_v13 = vsel %vm483_vm7, %v1767_v61, %v1774_v23  ;;  %1927 = vmatpush.bf16.msrb.mxu1 %v10181_v19  ;;  %v10180_v50 = vld [vmem:[%s14220_s21 + $0x30] sm:$0xff]  ;;  %v10179_v58 = vld [vmem:[%s14220_s21 + $0x28] sm:$0xff]  ;;  %v10177_v53 = vld [vmem:[%s14220_s21 + $0x18] sm:$0xff] }
 0x4b3   :  { %v1714_v36 = vrot.slane %v1697_v31, 4  ;;  %v1717_v62 = vsel %vm483_vm7, 0.0, %v1716_v33  ;;  %v1719_v37 = vsel %vm483_vm7, 0.0, %v1718_v12  ;;  %v1791_v38 = vperm.slane %v1787_v21, %v11192_v10  ;;  %v10174_v32 = vld [vmem:[%s14220_s21] sm:$0xff]  ;;  %v10195_v23 = vld [vmem:[#allocation7 + $0x24] sm:$0xf0] }
 0x4b4   :  { %v1781_v41 = vrot.slane %v1717_v62, 4  ;;  %v1776_v55 = vsel %vm483_vm7, %v1716_v33, %v1697_v31  ;;  %v1793_v47 = vsel %vm483_vm7, %v1792_v1, %v1719_v37  ;;  %v1771_v48 = vsel %vm483_vm7, %v1763_v29, %v1770_v7 }
 0x4b5   :  { %v1715_v43 = vsel %vm483_vm7, 0.0, %v1714_v36  ;;  %v1780_v44 = vperm.slane %v1776_v55, %v11192_v10  ;;  %v1797_v16 = vperm.slane %v1793_v47, %v11192_v10  ;;  %v1812_v39 = vrot.slane %v1791_v38, 4 }
 0x4b6   :  { %v1782_v46 = vsel %vm483_vm7, %v1781_v41, %v1715_v43  ;;  %1928 = vmatpush.bf16.msrb.mxu1 %v10180_v50  ;;  %v9521_v43 = vld [vmem:[#allocation7 + $0x70] sm:$0xf] }
 0x4b7   :  { %v1786_v56 = vperm.slane %v1782_v46, %v11192_v10  ;;  %v1800_v40 = vrot.slane %v1780_v44, 4  ;;  %v1813_v52 = vsel %vm483_vm7, %v1797_v16, %v1812_v39  ;;  %v1810_v57 = vrot.slane %v1797_v16, 4  ;;  %v9513_v16 = vld [vmem:[#allocation7 + $0x60] sm:$0xf]  ;;  %v10201_v46 = vld [vmem:[#allocation7 + $0x54] sm:$0xf0] }
 0x4b8   :  { %v1821_v0 = vperm.slane %v1813_v52, %v11200_v24  ;;  %v9514_v45 = vor.u32 %v10203_v63, %v9513_v16  ;;  %v10199_v52 = vld [vmem:[#allocation7 + $0x44] sm:$0xf0] }
 0x4b9   :  { %v1801_v11 = vsel %vm483_vm7, %v1786_v56, %v1800_v40  ;;  %v1798_v15 = vrot.slane %v1786_v56, 4  ;;  %v1811_v4 = vsel %vm483_vm7, %v1810_v57, %v1791_v38  ;;  %v9497_v40 = vld [vmem:[#allocation7 + $0x40] sm:$0xf] }
 0x4ba   :  { %v1809_v54 = vperm.slane %v1801_v11, %v11200_v24  ;;  %v1826_v5 = vrot.slane %v1821_v0, 4  ;;  %v1817_v25 = vperm.slane %v1811_v4, %v11200_v24  ;;  %1929 = vmatpush.bf16.msrb.mxu1 %v10179_v58  ;;  %v9498_v57 = vor.u32 %v10199_v52, %v9497_v40  ;;  %v10197_v11 = vld [vmem:[#allocation7 + $0x34] sm:$0xf0]  ;;  %v9481_v4 = vld [vmem:[#allocation7 + $0x20] sm:$0xf] }
 0x4bb   :  { %v1799_v14 = vsel %vm483_vm7, %v1798_v15, %v1780_v44  ;;  %v10205_v44 = vld [vmem:[#allocation7 + $0x74] sm:$0xf0] }
 0x4bc   :  { %v1827_v26 = vsel %vm483_vm7, %v1826_v5, %v1809_v54  ;;  %v1828_v59 = vrot.slane %v1809_v54, 4  ;;  %v1805_v35 = vperm.slane %v1799_v14, %v11200_v24  ;;  %v1822_v3 = vrot.slane %v1817_v25, 4  ;;  %v10579_v54 = vld [vmem:[%s14221_s13] ss:$0 sm:$0xff]  ;;  %v9473_v14 = vld [vmem:[#allocation7 + $0x10] sm:$0xf] }
 0x4bd   :  { %v10382_v9 = vpack.i.bf16 %v1827_v26, %v1773_v49  ;;  %v9522_v39 = vor.u32 %v10205_v44, %v9521_v43  ;;  %v10761_v49 = vld [vmem:[%s14216_s7] sm:$0xff]  ;;  %v10193_v26 = vld [vmem:[#allocation7 + $0x14] sm:$0xf0]  ;;  %v10184_v43 = vld [vmem:[#allocation5 + $0x10] sm:$0xff] }
 0x4be   :  { %v1829_v17 = vsel %vm483_vm7, %v1821_v0, %v1828_v59  ;;  %v1824_v18 = vrot.slane %v1805_v35, 4  ;;  %v1823_v20 = vsel %vm483_vm7, %v1822_v3, %v1805_v35  ;;  %1930 = vmatpush.bf16.msrb.mxu1 %v10178_v51  ;;  %v9489_v0 = vld [vmem:[#allocation7 + $0x30] sm:$0xf]  ;;  %v9474_v35 = vor.u32 %v10193_v26, %v9473_v14 }
 0x4bf   :  { %10383 = vrot.lane.b32.xlu2 %v10382_v9, %s10948_s9  ;;  %v10387_v22 = vpack.i.bf16 %v1829_v17, %v1775_v13  ;;  %2438 = vmatpush.bf16.msra.mxu3 %v9522_v39  ;;  %v9490_v15 = vor.u32 %v10197_v11, %v9489_v0  ;;  %v10762_v9 = vld [vmem:[%s14216_s7 + $0x8] sm:$0xff]  ;;  %s14224_s7 = sld [smem:[#allocation29_spill]] }
 0x4c0   :  { %v1825_v27 = vsel %vm483_vm7, %v1817_v25, %v1824_v18  ;;  %v9482_v25 = vor.u32 %v10195_v23, %v9481_v4  ;;  %v9465_v18 = vld [vmem:[#allocation7] sm:$0xf] }
 0x4c1   :  { %10388 = vrot.lane.b32.xlu0 %v10387_v22, %s10961_s28  ;;  %v10377_v2 = vpack.i.bf16 %v1825_v27, %v1771_v48  ;;  %v11775_v48 = vld [vmem:[%s14222_s2] sm:$0xff] }
 0x4c2   :  { %1931 = vmatpush.bf16.msrb.mxu1 %v10177_v53 }
 0x4c3   :  { %10378 = vrot.lane.b32.xlu1 %v10377_v2, %s10960_s27  ;;  %2439 = vmatpush.bf16.msra.mxu3 %v9514_v45  ;;  %v10183_v45 = vld [vmem:[#allocation5 + $0x8] sm:$0xff] }
 0x4c5   :  { %v10581_v14 = vld [vmem:[%s14224_s7] ss:$0 sm:$0xff] }
 0x4c6   :  { %1932 = vmatpush.bf16.msrb.mxu1 %v10176_v28 }
 0x4ca   :  { %1933 = vmatpush.bf16.msrb.mxu1 %v10175_v30  ;;  %v10189_v30 = vld [vmem:[#allocation5 + $0x38] sm:$0xff] }
 0x4cb   :  { %2070 = vmatpush.bf16.msrb.mxu2 %v10189_v30 }
 0x4ce   :  { %1934 = vmatpush.bf16.msrb.mxu1 %v10174_v32  ;;  %v10188_v32 = vld [vmem:[#allocation5 + $0x30] sm:$0xff] }
 0x4cf   :  { %2071 = vmatpush.bf16.msrb.mxu2 %v10188_v32 }
 0x519   :  { %v10384_v29 = vpop.permute.xlu2 %10383 }
 0x51a   :  { %v10386_v21 = vunpack.i.h.bf16 %v10384_v29  ;;  %v10385_v1 = vunpack.i.l.bf16 %v10384_v29  ;;  %v2340_v29 = vld [vmem:[%s14180_s14] sm:$0x3] }
 0x533   :  { %v10389_v31 = vpop.permute.xlu0 %10388 }
 0x534   :  { %v10391_v61 = vunpack.i.h.bf16 %v10389_v31  ;;  %v10390_v6 = vunpack.i.l.bf16 %v10389_v31 }
 0x535   :  { %v10379_v33 = vpop.permute.xlu1 %10378 }
 0x536   :  { %v10381_v12 = vunpack.i.h.bf16 %v10379_v33  ;;  %v10380_v34 = vunpack.i.l.bf16 %v10379_v33  ;;  %v10187_v33 = vld [vmem:[#allocation5 + $0x28] sm:$0xff] }
 0x537   :  { %2072 = vmatpush.bf16.msrb.mxu2 %v10187_v33 }
 0x538   :  { %v1854_v36 = vsel %vm1199_vm8, %v11700_v42, %v10380_v34  ;;  %v1855_v62 = vsel %vm1199_vm8, %v1823_v20, %v10381_v12  ;;  %v9505_v42 = vld [vmem:[#allocation7 + $0x50] sm:$0xf]  ;;  %v10191_v20 = vld [vmem:[#allocation7 + $0x4] sm:$0xf0] }
 0x539   :  { %v1857_v37 = vsel %vm1856_vm12, %v1854_v36, %v10385_v1  ;;  %v1858_v38 = vsel %vm1856_vm12, %v1855_v62, %v10386_v21  ;;  %v9506_v56 = vor.u32 %v10201_v46, %v9505_v42  ;;  %v9466_v22 = vor.u32 %v10191_v20, %v9465_v18  ;;  %v11788_v34 = vld [vmem:[%s14222_s2 + $0x8] sm:$0xff]  ;;  %v10185_v62 = vld [vmem:[#allocation5 + $0x18] sm:$0xff] }
 0x53a   :  { %v1860_v41 = vsel %vm1859_vm13, %v1857_v37, %v10390_v6  ;;  %v1861_v55 = vsel %vm1859_vm13, %v1858_v38, %v10391_v61  ;;  %v11791_v1 = vperm.slane %v2340_v29, 0  ;;  %v10186_v61 = vld [vmem:[#allocation5 + $0x20] sm:$0xff] }
 0x53b   :  { %v1862_v47 = vpack.c.bf16 %v1861_v55, %v1860_v41  ;;  %2440 = vmatpush.bf16.msra.mxu3 %v9506_v56  ;;  %2073 = vmatpush.bf16.msrb.mxu2 %v10186_v61  ;;  %v10182_v56 = vld [vmem:[#allocation5] sm:$0xff] }
 0x53d   :  { %1935 = vmatmul.bf16.vlgmr.msrb.gmra.mxu1 %v1862_v47 }
 0x53f   :  { %2441 = vmatpush.bf16.msra.mxu3 %v9498_v57  ;;  %2074 = vmatpush.bf16.msrb.mxu2 %v10185_v62 }
 0x543   :  { %2442 = vmatpush.bf16.msra.mxu3 %v9490_v15  ;;  %2075 = vmatpush.bf16.msrb.mxu2 %v10184_v43 }
 0x547   :  { %2443 = vmatpush.bf16.msra.mxu3 %v9482_v25  ;;  %2076 = vmatpush.bf16.msrb.mxu2 %v10183_v45 }
 0x54b   :  { %2444 = vmatpush.bf16.msra.mxu3 %v9474_v35  ;;  %2077 = vmatpush.bf16.msrb.mxu2 %v10182_v56 }
 0x54f   :  { %2445 = vmatpush.bf16.msra.mxu3 %v9466_v22 }
 0x552   :  { %2446 = vmatmul.bf16.vlgmr.msra.gmra.mxu3 %v11775_v48 }
 0x562   :  { %2451 = vmatmul.bf16.gmra.mxu3 %v11788_v34 }
 0x5ba   :  { %v1936_v5 = vpop.f32.mrf.mxu1 }
 0x5bb   :  { %v1941_v7 = vadd.f32 %v10761_v49, %v1936_v5 }
 0x5bd   :  { %v11763_v59 = vadd.f32 %v10579_v54, %v1941_v7 }
 0x5bf   :  { %1951 = vadd.xlane.f32.xlu1 %v11763_v59 }
 0x5c2   :  { %v1938_v3 = vpop.f32.mrf.mxu1 }
 0x5c3   :  { %v1942_v13 = vadd.f32 %v10762_v9, %v1938_v3 }
 0x5c5   :  { %v11769_v17 = vadd.f32 %v10579_v54, %v1942_v13  ;;  %v10580_v54 = vld [vmem:[%s14223_s4] ss:$0 sm:$0xff] }
 0x5c7   :  { %1953 = vadd.xlane.f32.xlu0 %v11769_v17 }
 0x5d5   :  { %v2447_v31 = vpop.f32.mrf.mxu3 }
 0x5d6   :  { %v11795_v36 = vadd.f32 %v2447_v31, %v11791_v1 }
 0x5dd   :  { %v2449_v37 = vpop.f32.mrf.mxu3 }
 0x5de   :  { %v11798_v41 = vadd.f32 %v2449_v37, %v11791_v1 }
 0x5e0   :  { %v10392_v47 = vpack.i.bf16 %v11798_v41, %v11795_v36  ;;  %v2574_v22 = vrot.slane %v11798_v41, 4 }
 0x5e2   :  { %10393 = vrot.lane.b32.xlu0 %v10392_v47, %s10948_s9 }
 0x632   :  { %v1952_v27 = vpop.xlane.xlu1 %1951 }
 0x633   :  { %v1955_v2 = vmul.f32 %v1952_v27, %v11141_v8 }
 0x635   :  { %v1957_v19 = vsub.f32 %v11763_v59, %v1955_v2  ;;  %v2518_v2 = vrot.slane %v11795_v36, 4 }
 0x637   :  { %v1959_v50 = vmul.f32 %v1957_v19, %v1957_v19 }
 0x639   :  { %1961 = vadd.xlane.f32.xlu2 %v1959_v50 }
 0x63a   :  { %v1954_v58 = vpop.xlane.xlu0 %1953 }
 0x63b   :  { %v1956_v51 = vmul.f32 %v1954_v58, %v11141_v8 }
 0x63d   :  { %v1958_v53 = vsub.f32 %v11769_v17, %v1956_v51 }
 0x63f   :  { %v1960_v28 = vmul.f32 %v1958_v53, %v1958_v53 }
 0x641   :  { %1963 = vadd.xlane.f32.xlu1 %v1960_v28 }
 0x651   :  { %10398 = vrot.lane.b32.xlu2 %v10392_v47, %s10960_s27 }
 0x65a   :  { %10403 = vrot.lane.b32.xlu1 %v10392_v47, %s10961_s28 }
 0x6ac   :  { %v1962_v12 = vpop.xlane.xlu2 %1961 }
 0x6ad   :  { %v1965_v21 = vmul.f32 %v1962_v12, %v11141_v8 }
 0x6af   :  { %v1967_v6 = vadd.f32 1e-05, %v1965_v21 }
 0x6b1   :  { %10639 = vrsqrt.f32 %v1967_v6  ;;  %vm1975_vm15 = vweird.f32 %v1967_v6 }
 0x6b4   :  { %v1964_v38 = vpop.xlane.xlu1 %1963  ;;  %v10399_v13 = vpop.permute.xlu2 %10398 }
 0x6b5   :  { %v1966_v55 = vmul.f32 %v1964_v38, %v11141_v8  ;;  %v10400_v18 = vunpack.i.l.bf16 %v10399_v13  ;;  %v10401_v20 = vunpack.i.h.bf16 %v10399_v13 }
 0x6b7   :  { %v10640_v44 = vpop.eup %10639  ;;  %v1968_v16 = vadd.f32 1e-05, %v1966_v55  ;;  %v2528_v50 = vrot.slane %v10400_v18, 4  ;;  %v2584_v30 = vrot.slane %v10401_v20, 4 }
 0x6b8   :  { %v1970_v39 = vmul.f32 %v10640_v44, %v1967_v6  ;;  %vm1976_vm14 = vweird.f32 %v10640_v44 }
 0x6b9   :  { %10641 = vrsqrt.f32 %v1968_v16  ;;  %vm1977_vm0 = vmor %vm1975_vm15, %vm1976_vm14  ;;  %vm1985_vm2 = vweird.f32 %v1968_v16 }
 0x6ba   :  { %v1971_v63 = vmul.f32 %v10640_v44, %v1970_v39 }
 0x6bc   :  { %v1972_v42 = vmul.f32 0.5, %v1971_v63 }
 0x6be   :  { %v1973_v46 = vsub.f32 1.5, %v1972_v42  ;;  %v2452_v42 = vpop.f32.mrf.mxu3 }
 0x6bf   :  { %v10642_v40 = vpop.eup %10641 }
 0x6c0   :  { %v1974_v52 = vmul.f32 %v10640_v44, %v1973_v46  ;;  %v1980_v57 = vmul.f32 %v10642_v40, %v1968_v16  ;;  %vm1986_vm1 = vweird.f32 %v10642_v40 }
 0x6c1   :  { %vm1987_vm3 = vmor %vm1985_vm2, %vm1986_vm1 }
 0x6c2   :  { %v1981_v0 = vmul.f32 %v10642_v40, %v1980_v57  ;;  %v1978_v11 = vsel %vm1977_vm0, %v10640_v44, %v1974_v52 }
 0x6c3   :  { %v1989_v23 = vmul.f32 %v1978_v11, %v1957_v19  ;;  %v10394_v19 = vpop.permute.xlu0 %10393 }
 0x6c4   :  { %v1982_v15 = vmul.f32 0.5, %v1981_v0  ;;  %v10395_v28 = vunpack.i.l.bf16 %v10394_v19 }
 0x6c5   :  { %v1994_v7 = vmul.f32 %v10580_v54, %v1989_v23 }
 0x6c6   :  { %v1983_v4 = vsub.f32 1.5, %v1982_v15  ;;  %v2516_v21 = vrot.slane %v10395_v28, 4  ;;  %v2519_v61 = vsel %vm483_vm7, %v10395_v28, %v2518_v2 }
 0x6c7   :  { %v1999_v35 = vadd.f32 %v10581_v14, %v1994_v7  ;;  %v2527_v37 = vperm.slane %v2519_v61, %v11192_v10  ;;  %v2454_v61 = vpop.f32.mrf.mxu3 }
 0x6c8   :  { %v1984_v5 = vmul.f32 %v10642_v40, %v1983_v4  ;;  %v2517_v44 = vsel %vm483_vm7, %v2516_v21, %v11795_v36 }
 0x6c9   :  { %v2523_v39 = vperm.slane %v2517_v44, %v11192_v10  ;;  %v2554_v63 = vrot.slane %v2527_v37, 4 }
 0x6ca   :  { %v1988_v25 = vsel %vm1987_vm3, %v10642_v40, %v1984_v5 }
 0x6cb   :  { %v1990_v49 = vmul.f32 %v1988_v25, %v1958_v53  ;;  %v10396_v53 = vunpack.i.h.bf16 %v10394_v19  ;;  %v2542_v57 = vrot.slane %v2523_v39, 4 }
 0x6cc   :  { %v10404_v27 = vpop.permute.xlu1 %10403 }
 0x6cd   :  { %v1995_v26 = vmul.f32 %v10580_v54, %v1990_v49  ;;  %v10406_v58 = vunpack.i.h.bf16 %v10404_v27  ;;  %v10405_v51 = vunpack.i.l.bf16 %v10404_v27  ;;  %v2572_v31 = vrot.slane %v10396_v53, 4 }
 0x6ce   :  { %v2575_v33 = vsel %vm483_vm7, %v10396_v53, %v2574_v22 }
 0x6cf   :  { %v2000_v3 = vadd.f32 %v10581_v14, %v1995_v26  ;;  %v2586_v32 = vrot.slane %v10406_v58, 4  ;;  %v2530_v29 = vrot.slane %v10405_v51, 4  ;;  %v2583_v12 = vperm.slane %v2575_v33, %v11192_v10 }
 0x6d0   :  { %v2529_v6 = vsel %vm483_vm7, %v2528_v50, %v10405_v51  ;;  %v2573_v62 = vsel %vm483_vm7, %v2572_v31, %v11798_v41  ;;  %v2585_v41 = vsel %vm483_vm7, %v2584_v30, %v10406_v58 }
 0x6d1   :  { %v2001_v9 = vpack.c.bf16 %v2000_v3, %v1999_v35  ;;  %v2531_v38 = vsel %vm483_vm7, %v10400_v18, %v2530_v29  ;;  %v2535_v55 = vperm.slane %v2529_v6, %v11192_v10  ;;  %v2579_v47 = vperm.slane %v2573_v62, %v11192_v10 }
 0x6d2   :  { %v2610_v43 = vrot.slane %v2583_v12, 4  ;;  %v2539_v16 = vperm.slane %v2531_v38, %v11192_v10  ;;  %v2587_v40 = vsel %vm483_vm7, %v10401_v20, %v2586_v32  ;;  %v2591_v52 = vperm.slane %v2585_v41, %v11192_v10 }
 0x6d3   :  { %2078 = vmatmul.bf16.vlgmr.msrb.gmra.mxu2 %v2001_v9  ;;  %v2540_v45 = vrot.slane %v2535_v55, 4  ;;  %v2598_v46 = vrot.slane %v2579_v47, 4  ;;  %v2595_v11 = vperm.slane %v2587_v40, %v11192_v10  ;;  %v2543_v5 = vsel %vm483_vm7, %v2535_v55, %v2542_v57 }
 0x6d4   :  { %v2552_v56 = vrot.slane %v2539_v16, 4  ;;  %v2555_v36 = vsel %vm483_vm7, %v2539_v16, %v2554_v63  ;;  %v2596_v54 = vrot.slane %v2591_v52, 4  ;;  %v2551_v14 = vperm.slane %v2543_v5, %v11200_v24 }
 0x6d5   :  { %v2541_v0 = vsel %vm483_vm7, %v2540_v45, %v2523_v39  ;;  %v2563_v23 = vperm.slane %v2555_v36, %v11200_v24  ;;  %v2599_v49 = vsel %vm483_vm7, %v2591_v52, %v2598_v46  ;;  %v2608_v7 = vrot.slane %v2595_v11, 4 }
 0x6d6   :  { %v2547_v15 = vperm.slane %v2541_v0, %v11200_v24  ;;  %v2553_v4 = vsel %vm483_vm7, %v2552_v56, %v2527_v37  ;;  %v2597_v3 = vsel %vm483_vm7, %v2596_v54, %v2579_v47  ;;  %v2607_v18 = vperm.slane %v2599_v49, %v11200_v24 }
 0x6d7   :  { %v2559_v25 = vperm.slane %v2553_v4, %v11200_v24  ;;  %v2570_v35 = vrot.slane %v2563_v23, 4  ;;  %v2603_v13 = vperm.slane %v2597_v3, %v11200_v24  ;;  %v2609_v20 = vsel %vm483_vm7, %v2608_v7, %v2583_v12 }
 0x6d8   :  { %v2564_v26 = vrot.slane %v2547_v15, 4  ;;  %v2566_v27 = vrot.slane %v2551_v14, 4  ;;  %v2611_v19 = vsel %vm483_vm7, %v2595_v11, %v2610_v43  ;;  %v2615_v58 = vperm.slane %v2609_v20, %v11200_v24 }
 0x6d9   :  { %v2568_v9 = vrot.slane %v2559_v25, 4  ;;  %v2571_v2 = vsel %vm483_vm7, 0.0, %v2570_v35  ;;  %v2619_v51 = vperm.slane %v2611_v19, %v11200_v24  ;;  %v2620_v53 = vrot.slane %v2603_v13, 4 }
 0x6da   :  { %v2565_v22 = vsel %vm483_vm7, 0.0, %v2564_v26  ;;  %v2567_v28 = vsel %vm483_vm7, 0.0, %v2566_v27  ;;  %v2622_v30 = vrot.slane %v2607_v18, 4  ;;  %v2751_v32 = vsel %vm483_vm7, %v2570_v35, %v2559_v25 }
 0x6db   :  { %v2569_v50 = vsel %vm483_vm7, 0.0, %v2568_v9  ;;  %v2756_v29 = vrot.slane %v2571_v2, 4  ;;  %v2621_v31 = vsel %vm483_vm7, 0.0, %v2620_v53  ;;  %v2624_v33 = vrot.slane %v2615_v58, 4 }
 0x6dc   :  { %v2626_v12 = vrot.slane %v2619_v51, 4  ;;  %v2745_v21 = vrot.slane %v2567_v28, 4  ;;  %v2623_v6 = vsel %vm483_vm7, 0.0, %v2622_v30  ;;  %v2755_v62 = vperm.slane %v2751_v32, %v11192_v10 }
 0x6dd   :  { %v2757_v37 = vsel %vm483_vm7, %v2756_v29, %v2569_v50  ;;  %v11858_v38 = vadd.f32 %v2452_v42, %v11791_v1  ;;  %v2625_v55 = vsel %vm483_vm7, 0.0, %v2624_v33  ;;  %v2799_v44 = vrot.slane %v2623_v6, 4 }
 0x6de   :  { %v2627_v47 = vsel %vm483_vm7, 0.0, %v2626_v12  ;;  %v2761_v43 = vperm.slane %v2757_v37, %v11192_v10  ;;  %v2805_v16 = vsel %vm483_vm7, %v2626_v12, %v2615_v58  ;;  %v11865_v63 = vadd.f32 %v2454_v61, %v11791_v1 }
 0x6df   :  { %v2810_v39 = vrot.slane %v2627_v47, 4  ;;  %v2740_v45 = vsel %vm483_vm7, %v2566_v27, %v2547_v15  ;;  %v2809_v41 = vperm.slane %v2805_v16, %v11192_v10  ;;  %v2746_v46 = vsel %vm483_vm7, %v2745_v21, %v2565_v22 }
 0x6e0   :  { %v2744_v42 = vperm.slane %v2740_v45, %v11192_v10  ;;  %v2774_v56 = vrot.slane %v2761_v43, 4  ;;  %v11874_v52 = vpack.i.bf16 %v11865_v63, %v11858_v38  ;;  %v2750_v57 = vperm.slane %v2746_v46, %v11192_v10 }
 0x6e1   :  { %v2811_v40 = vsel %vm483_vm7, %v2810_v39, %v2625_v55  ;;  %v2794_v1 = vsel %vm483_vm7, %v2622_v30, %v2603_v13  ;;  %v2800_v15 = vsel %vm483_vm7, %v2799_v44, %v2621_v31  ;;  %v2776_v49 = vrot.slane %v2755_v62, 4 }
 0x6e2   :  { %v2815_v0 = vperm.slane %v2811_v40, %v11192_v10  ;;  %v2775_v36 = vsel %vm483_vm7, %v2774_v56, %v2755_v62  ;;  %v2798_v11 = vperm.slane %v2794_v1, %v11192_v10  ;;  %10408 = vrot.lane.b32.xlu1 %v11874_v52, %s10961_s28  ;;  %v2762_v4 = vrot.slane %v2750_v57, 4 }
 0x6e3   :  { %v2781_v23 = vperm.slane %v2775_v36, %v11200_v24  ;;  %v2804_v54 = vperm.slane %v2800_v15, %v11192_v10  ;;  %v2764_v5 = vrot.slane %v2744_v42, 4  ;;  %v2830_v14 = vrot.slane %v2809_v41, 4 }
 0x6e4   :  { %v2828_v25 = vrot.slane %v2815_v0, 4  ;;  %v2818_v7 = vrot.slane %v2798_v11, 4  ;;  %v2763_v26 = vsel %vm483_vm7, %v2762_v4, %v2744_v42  ;;  %v2777_v22 = vsel %vm483_vm7, %v2761_v43, %v2776_v49 }
 0x6e5   :  { %v2786_v35 = vrot.slane %v2781_v23, 4  ;;  %v2816_v3 = vrot.slane %v2804_v54, 4  ;;  %v2765_v9 = vsel %vm483_vm7, %v2750_v57, %v2764_v5  ;;  %v2769_v13 = vperm.slane %v2763_v26, %v11200_v24  ;;  %v9523_v26 = vld [vmem:[#allocation7 + $0x78] sm:$0xf0] }
 0x6e6   :  { %v2829_v18 = vsel %vm483_vm7, %v2828_v25, %v2809_v41  ;;  %v2773_v20 = vperm.slane %v2765_v9, %v11200_v24  ;;  %v2785_v19 = vperm.slane %v2777_v22, %v11200_v24  ;;  %v2819_v50 = vsel %vm483_vm7, %v2804_v54, %v2818_v7 }
 0x6e7   :  { %v2817_v27 = vsel %vm483_vm7, %v2816_v3, %v2798_v11  ;;  %v2835_v2 = vperm.slane %v2829_v18, %v11200_v24  ;;  %v2787_v58 = vsel %vm483_vm7, %v2786_v35, %v2769_v13  ;;  %v2788_v53 = vrot.slane %v2769_v13, 4  ;;  %v10582_v35 = vld [vmem:[%s14178_s12] ss:$0 sm:$0xff]  ;;  %v10202_v13 = vld [vmem:[#allocation7 + $0x64] sm:$0xf] }
 0x6e8   :  { %v2823_v51 = vperm.slane %v2817_v27, %v11200_v24  ;;  %v2827_v28 = vperm.slane %v2819_v50, %v11200_v24  ;;  %v3444_v32 = vpack.c.bf16 %v2787_v58, %v2787_v58  ;;  %v2790_v29 = vrot.slane %v2785_v19, 4  ;;  %v9515_v18 = vld [vmem:[#allocation7 + $0x68] sm:$0xf0]  ;;  %v10200_v50 = vld [vmem:[#allocation7 + $0x54] sm:$0xf] }
 0x6e9   :  { %v2840_v30 = vrot.slane %v2835_v2, 4  ;;  %v2831_v31 = vsel %vm483_vm7, %v2815_v0, %v2830_v14  ;;  %v2789_v33 = vsel %vm483_vm7, %v2781_v23, %v2788_v53  ;;  %v2792_v61 = vrot.slane %v2773_v20, 4  ;;  %v10204_v14 = vld [vmem:[#allocation7 + $0x74] sm:$0xf]  ;;  %v9507_v58 = vld [vmem:[#allocation7 + $0x58] sm:$0xf0] }
 0x6ea   :  { %v2842_v12 = vrot.slane %v2823_v51, 4  ;;  %v2839_v21 = vperm.slane %v2831_v31, %v11200_v24  ;;  %v3468_v62 = vunpack.c.l.b16 %v3444_v32  ;;  %v3446_v37 = vpack.c.bf16 %v2789_v33, %v2789_v33  ;;  %v10198_v53 = vld [vmem:[#allocation7 + $0x44] sm:$0xf]  ;;  %v10196_v31 = vld [vmem:[#allocation7 + $0x34] sm:$0xf] }
 0x6eb   :  { %v2841_v6 = vsel %vm483_vm7, %v2840_v30, %v2823_v51  ;;  %v2791_v55 = vsel %vm483_vm7, %v2790_v29, %v2773_v20  ;;  %v2793_v41 = vsel %vm483_vm7, %v2785_v19, %v2792_v61  ;;  %v2846_v42 = vrot.slane %v2827_v28, 4  ;;  %v9491_v33 = vld [vmem:[#allocation7 + $0x38] sm:$0xf0]  ;;  %v9483_v61 = vld [vmem:[#allocation7 + $0x28] sm:$0xf0] }
 0x6ec   :  { %v3445_v47 = vpack.c.bf16 %v2841_v6, %v2841_v6  ;;  %v2843_v43 = vsel %vm483_vm7, %v2835_v2, %v2842_v12  ;;  %v2844_v44 = vrot.slane %v2839_v21, 4  ;;  %v3448_v16 = vpack.c.bf16 %v2791_v55, %v2791_v55  ;;  %v10194_v12 = vld [vmem:[#allocation7 + $0x24] sm:$0xf] }
 0x6ed   :  { %v3447_v39 = vpack.c.bf16 %v2843_v43, %v2843_v43  ;;  %v3492_v45 = vunpack.c.l.b16 %v3446_v37  ;;  %v3450_v40 = vpack.c.bf16 %v2793_v41, %v2793_v41  ;;  %v2847_v36 = vsel %vm483_vm7, %v2839_v21, %v2846_v42  ;;  %v9475_v37 = vld [vmem:[#allocation7 + $0x18] sm:$0xf0]  ;;  %v10190_v55 = vld [vmem:[#allocation7 + $0x4] sm:$0xf]  ;;  %v9467_v43 = vld [vmem:[#allocation7 + $0x8] sm:$0xf0] }
 0x6ee   :  { %v3469_v46 = vunpack.c.l.b16 %v3445_v47  ;;  %v2845_v56 = vsel %vm483_vm7, %v2844_v44, %v2827_v28  ;;  %v3516_v0 = vunpack.c.l.b16 %v3448_v16  ;;  %v3451_v15 = vpack.c.bf16 %v2847_v36, %v2847_v36  ;;  %v9499_v28 = vld [vmem:[#allocation7 + $0x48] sm:$0xf0] }
 0x6ef   :  { %v3493_v57 = vunpack.c.l.b16 %v3447_v39  ;;  %v3449_v1 = vpack.c.bf16 %v2845_v56, %v2845_v56  ;;  %v3540_v4 = vunpack.c.l.b16 %v3450_v40  ;;  %v9526_v9 = vor.u32 %v10204_v14, %v9523_v26 }
 0x6f0   :  { %v3470_v11 = vpack.c.b16 %v3469_v46, %v3468_v62  ;;  %v3541_v25 = vunpack.c.l.b16 %v3451_v15  ;;  %v9518_v2 = vor.u32 %v10202_v13, %v9515_v18  ;;  %v9510_v51 = vor.u32 %v10200_v50, %v9507_v58  ;;  %v10192_v62 = vld [vmem:[#allocation7 + $0x14] sm:$0xf] }
 0x6f1   :  { %v3494_v23 = vpack.c.b16 %v3493_v57, %v3492_v45  ;;  %v3517_v54 = vunpack.c.l.b16 %v3449_v1  ;;  %2457 = vmatpush.bf16.msrb.mxu0 %v9526_v9  ;;  %v9502_v32 = vor.u32 %v10198_v53, %v9499_v28  ;;  %v9494_v21 = vor.u32 %v10196_v31, %v9491_v33 }
 0x6f2   :  { %v3475_v5 = vsel %vm1199_vm8, %v3470_v11, 0  ;;  %v3542_v3 = vpack.c.b16 %v3541_v25, %v3540_v4  ;;  %v9486_v6 = vor.u32 %v10194_v12, %v9483_v61  ;;  %v9478_v47 = vor.u32 %v10192_v62, %v9475_v37 }
 0x6f3   :  { %3484 = vmatpush.bf16.xpose.msra.mxu1 %v3475_v5  ;;  %v3499_v49 = vsel %vm1199_vm8, %v3494_v23, 0  ;;  %v3518_v7 = vpack.c.b16 %v3517_v54, %v3516_v0  ;;  %v9470_v44 = vor.u32 %v10190_v55, %v9467_v43  ;;  %v2630_v0 = vrot.slane %v11858_v38, 4 }
 0x6f4   :  { %3508 = vmatpush.bf16.xpose.msra.mxu2 %v3499_v49  ;;  %v3547_v22 = vsel %vm1199_vm8, %v3542_v3, 0  ;;  %v2686_v36 = vrot.slane %v11865_v63, 4 }
 0x6f5   :  { %v3523_v20 = vsel %vm1199_vm8, %v3518_v7, 0  ;;  %2458 = vmatpush.bf16.msrb.mxu0 %v9518_v2 }
 0x6f9   :  { %2459 = vmatpush.bf16.msrb.mxu0 %v9510_v51 }
 0x6fb   :  { %3532 = vmatpush.bf16.xpose.msrb.mxu1 %v3523_v20 }
 0x6fc   :  { %3556 = vmatpush.bf16.xpose.msrb.mxu2 %v3547_v22 }
 0x6fd   :  { %2460 = vmatpush.bf16.msrb.mxu0 %v9502_v32 }
 0x701   :  { %2461 = vmatpush.bf16.msrb.mxu0 %v9494_v21 }
 0x705   :  { %2462 = vmatpush.bf16.msrb.mxu0 %v9486_v6 }
 0x709   :  { %2463 = vmatpush.bf16.msrb.mxu0 %v9478_v47 }
 0x70d   :  { %2464 = vmatpush.bf16.msrb.mxu0 %v9470_v44 }
 0x710   :  { %2465 = vmatmul.bf16.vlgmr.msrb.gmra.mxu0 %v11775_v48 }
 0x720   :  { %2470 = vmatmul.bf16.gmra.mxu0 %v11788_v34 }
 0x754   :  { %v11927_v40 = vpop.permute.xlu1 %10408 }
 0x755   :  { %v10411_v54 = vunpack.i.h.bf16 %v11927_v40  ;;  %v10410_v7 = vunpack.i.l.bf16 %v11927_v40 }
 0x756   :  { %v2079_v27 = vpop.f32.mrf.mxu2 }
 0x757   :  { %v2080_v19 = vadd.f32 %v10582_v35, %v2079_v27  ;;  %v2642_v33 = vrot.slane %v10410_v7, 4 }
 0x759   :  { %2098 = vrot.lane.b32.xlu2 %v2080_v19, %s10960_s27  ;;  %2092 = vrot.lane.b32.xlu0 %v2080_v19, %s10948_s9  ;;  %v2106_v57 = vrot.slane %v2080_v19, 4 }
 0x75e   :  { %v2081_v30 = vpop.f32.mrf.mxu2 }
 0x75f   :  { %v2082_v29 = vadd.f32 %v10582_v35, %v2081_v30 }
 0x761   :  { %2088 = vrot.lane.b32.xlu1 %v2082_v29, %s10961_s28  ;;  %10413 = vrot.lane.b32.xlu2 %v11874_v52, %s10948_s9  ;;  %v2162_v15 = vrot.slane %v2082_v29, 4 }
 0x762   :  { %2086 = vrot.lane.b32.xlu0 %v2080_v19, %s10961_s28 }
 0x769   :  { %2094 = vrot.lane.b32.xlu2 %v2082_v29, %s10948_s9 }
 0x76a   :  { %10418 = vrot.lane.b32.xlu0 %v11874_v52, %s10960_s27 }
 0x772   :  { %2100 = vrot.lane.b32.xlu0 %v2082_v29, %s10960_s27 }
 0x7b3   :  { %v2099_v52 = vpop.permute.xlu2 %2098 }
 0x7b4   :  { %v2116_v25 = vrot.slane %v2099_v52, 4 }
 0x7bb   :  { %v10414_v16 = vpop.permute.xlu2 %10413 }
 0x7bc   :  { %v10416_v39 = vunpack.i.h.bf16 %v10414_v16  ;;  %v10415_v41 = vunpack.i.l.bf16 %v10414_v16 }
 0x7be   :  { %v2684_v56 = vrot.slane %v10416_v39, 4  ;;  %v2628_v48 = vrot.slane %v10415_v41, 4  ;;  %v2687_v4 = vsel %vm483_vm7, %v10416_v39, %v2686_v36  ;;  %v2631_v23 = vsel %vm483_vm7, %v10415_v41, %v2630_v0 }
 0x7bf   :  { %v11946_v13 = vperm.slane %v2687_v4, %v11192_v10  ;;  %v11949_v18 = vperm.slane %v2631_v23, %v11192_v10 }
 0x7c0   :  { %v2685_v49 = vsel %vm483_vm7, %v2684_v56, %v11865_v63  ;;  %v2629_v14 = vsel %vm483_vm7, %v2628_v48, %v11858_v38  ;;  %v2698_v38 = vrot.slane %v10411_v54, 4 }
 0x7c1   :  { %v11953_v22 = vperm.slane %v2685_v49, %v11192_v10  ;;  %v2666_v31 = vrot.slane %v11949_v18, 4 }
 0x7c3   :  { %v2095_v46 = vpop.permute.xlu2 %2094  ;;  %v2710_v61 = vrot.slane %v11953_v22, 4 }
 0x7c4   :  { %v2160_v11 = vrot.slane %v2095_v46, 4  ;;  %v2163_v35 = vsel %vm483_vm7, %v2095_v46, %v2162_v15 }
 0x7c5   :  { %v11965_v58 = vperm.slane %v2163_v35, %v11192_v10 }
 0x7c6   :  { %v2161_v26 = vsel %vm483_vm7, %v2160_v11, %v2082_v29  ;;  %v2722_v29 = vrot.slane %v11946_v13, 4 }
 0x7c7   :  { %v11962_v50 = vperm.slane %v2161_v26, %v11192_v10  ;;  %v2198_v16 = vrot.slane %v11965_v58, 4 }
 0x7cb   :  { %v2093_v45 = vpop.permute.xlu0 %2092 }
 0x7cc   :  { %v2104_v42 = vrot.slane %v2093_v45, 4  ;;  %v2107_v34 = vsel %vm483_vm7, %v2093_v45, %v2106_v57 }
 0x7cd   :  { %v2115_v3 = vperm.slane %v2107_v34, %v11192_v10 }
 0x7ce   :  { %v2105_v1 = vsel %vm483_vm7, %v2104_v42, %v2080_v19  ;;  %v11959_v19 = vperm.slane %v2629_v14, %v11192_v10 }
 0x7cf   :  { %v2111_v5 = vperm.slane %v2105_v1, %v11192_v10  ;;  %v2142_v53 = vrot.slane %v2115_v3, 4 }
 0x7d0   :  { %v2654_v55 = vrot.slane %v11959_v19, 4 }
 0x7d1   :  { %v2130_v27 = vrot.slane %v2111_v5, 4 }
 0x7d3   :  { %v11974_v12 = vpop.permute.xlu1 %2088 }
 0x7d4   :  { %v2087_v9 = vpop.permute.xlu0 %2086  ;;  %v2174_v39 = vrot.slane %v11974_v12, 4 }
 0x7d5   :  { %v2117_v63 = vsel %vm483_vm7, %v2116_v25, %v2087_v9  ;;  %v2118_v20 = vrot.slane %v2087_v9, 4 }
 0x7d6   :  { %v2123_v2 = vperm.slane %v2117_v63, %v11192_v10 }
 0x7d7   :  { %v2119_v51 = vsel %vm483_vm7, %v2099_v52, %v2118_v20  ;;  %v2186_v52 = vrot.slane %v11962_v50, 4 }
 0x7d8   :  { %v2127_v28 = vperm.slane %v2119_v51, %v11192_v10  ;;  %v2128_v30 = vrot.slane %v2123_v2, 4  ;;  %v2131_v32 = vsel %vm483_vm7, %v2123_v2, %v2130_v27 }
 0x7d9   :  { %v2139_v21 = vperm.slane %v2131_v32, %v11200_v24 }
 0x7da   :  { %v2129_v6 = vsel %vm483_vm7, %v2128_v30, %v2111_v5  ;;  %v2140_v62 = vrot.slane %v2127_v28, 4  ;;  %v2143_v37 = vsel %vm483_vm7, %v2127_v28, %v2142_v53 }
 0x7db   :  { %v2135_v47 = vperm.slane %v2129_v6, %v11200_v24  ;;  %v2151_v43 = vperm.slane %v2143_v37, %v11200_v24  ;;  %v2154_v44 = vrot.slane %v2139_v21, 4 }
 0x7dc   :  { %v2141_v45 = vsel %vm483_vm7, %v2140_v62, %v2115_v3  ;;  %v10419_v41 = vpop.permute.xlu0 %10418 }
 0x7dd   :  { %v2147_v42 = vperm.slane %v2141_v45, %v11200_v24  ;;  %v2152_v46 = vrot.slane %v2135_v47, 4  ;;  %v2155_v56 = vsel %vm483_vm7, 0.0, %v2154_v44  ;;  %v2158_v57 = vrot.slane %v2151_v43, 4 }
 0x7de   :  { %v2216_v1 = vsel %vm483_vm7, %v2154_v44, %v2135_v47  ;;  %v2221_v0 = vrot.slane %v2155_v56, 4  ;;  %v10421_v36 = vunpack.i.h.bf16 %v10419_v41  ;;  %v10420_v48 = vunpack.i.l.bf16 %v10419_v41 }
 0x7df   :  { %v2153_v11 = vsel %vm483_vm7, 0.0, %v2152_v46  ;;  %v2156_v15 = vrot.slane %v2147_v42, 4  ;;  %v2159_v34 = vsel %vm483_vm7, 0.0, %v2158_v57  ;;  %v2220_v4 = vperm.slane %v2216_v1, %v11192_v10 }
 0x7e0   :  { %v2222_v23 = vsel %vm483_vm7, %v2221_v0, %v2153_v11  ;;  %v2227_v5 = vsel %vm483_vm7, %v2158_v57, %v2147_v42  ;;  %v2232_v25 = vrot.slane %v2159_v34, 4  ;;  %v2696_v49 = vrot.slane %v10421_v36, 4 }
 0x7e1   :  { %v2157_v14 = vsel %vm483_vm7, 0.0, %v2156_v15  ;;  %v2226_v26 = vperm.slane %v2222_v23, %v11192_v10  ;;  %v11998_v35 = vperm.slane %v2227_v5, %v11192_v10  ;;  %v2240_v3 = vrot.slane %v2220_v4, 4 }
 0x7e2   :  { %v2233_v9 = vsel %vm483_vm7, %v2232_v25, %v2157_v14  ;;  %v2697_v63 = vsel %vm483_vm7, %v2696_v49, %v10411_v54  ;;  %v2699_v20 = vsel %vm483_vm7, %v10421_v36, %v2698_v38  ;;  %v2640_v27 = vrot.slane %v10420_v48, 4 }
 0x7e3   :  { %v12006_v2 = vperm.slane %v2233_v9, %v11192_v10  ;;  %v2238_v51 = vrot.slane %v2226_v26, 4  ;;  %v2252_v53 = vrot.slane %v11998_v35, 4  ;;  %v2703_v28 = vperm.slane %v2697_v63, %v11192_v10 }
 0x7e4   :  { %v2707_v30 = vperm.slane %v2699_v20, %v11192_v10  ;;  %v2641_v32 = vsel %vm483_vm7, %v2640_v27, %v10410_v7  ;;  %v2643_v21 = vsel %vm483_vm7, %v10420_v48, %v2642_v33  ;;  %v12016_v54 = vsel %vm483_vm7, %v2226_v26, %v2240_v3 }
 0x7e5   :  { %v2239_v38 = vsel %vm483_vm7, %v2238_v51, %v2220_v4  ;;  %v2708_v6 = vrot.slane %v2703_v28, 4  ;;  %v2711_v62 = vsel %vm483_vm7, %v2703_v28, %v2710_v61  ;;  %v2647_v37 = vperm.slane %v2641_v32, %v11192_v10  ;;  %v2101_v4 = vpop.permute.xlu0 %2100 }
 0x7e6   :  { %v2719_v47 = vperm.slane %v2711_v62, %v11200_v24  ;;  %v2720_v43 = vrot.slane %v2707_v30, 4  ;;  %v2723_v44 = vsel %vm483_vm7, %v2707_v30, %v2722_v29  ;;  %v2651_v40 = vperm.slane %v2643_v21, %v11192_v10 }
 0x7e7   :  { %v2709_v7 = vsel %vm483_vm7, %v2708_v6, %v11953_v22  ;;  %v2731_v33 = vperm.slane %v2723_v44, %v11200_v24  ;;  %v2652_v45 = vrot.slane %v2647_v37, 4  ;;  %v2655_v41 = vsel %vm483_vm7, %v2647_v37, %v2654_v55 }
 0x7e8   :  { %v2715_v42 = vperm.slane %v2709_v7, %v11200_v24  ;;  %v2721_v61 = vsel %vm483_vm7, %v2720_v43, %v11946_v13  ;;  %v2734_v46 = vrot.slane %v2719_v47, 4  ;;  %v2663_v56 = vperm.slane %v2655_v41, %v11200_v24 }
 0x7e9   :  { %v2727_v29 = vperm.slane %v2721_v61, %v11200_v24  ;;  %v2738_v57 = vrot.slane %v2731_v33, 4  ;;  %v2653_v1 = vsel %vm483_vm7, %v2652_v45, %v11959_v19  ;;  %v2664_v22 = vrot.slane %v2651_v40, 4 }
 0x7ea   :  { %v2732_v0 = vrot.slane %v2715_v42, 4  ;;  %v12036_v36 = vsel %vm483_vm7, 0.0, %v2734_v46  ;;  %v12039_v55 = vsel %vm483_vm7, %v2734_v46, %v2715_v42  ;;  %v2659_v48 = vperm.slane %v2653_v1, %v11200_v24 }
 0x7eb   :  { %v2736_v13 = vrot.slane %v2727_v29, 4  ;;  %v2739_v11 = vsel %vm483_vm7, 0.0, %v2738_v57  ;;  %v2907_v15 = vrot.slane %v12036_v36, 4  ;;  %v2913_v34 = vsel %vm483_vm7, %v2738_v57, %v2727_v29 }
 0x7ec   :  { %v12046_v19 = vsel %vm483_vm7, 0.0, %v2732_v0  ;;  %v12049_v23 = vperm.slane %v2913_v34, %v11192_v10  ;;  %v2918_v5 = vrot.slane %v2739_v11, 4  ;;  %v2665_v25 = vsel %vm483_vm7, %v2664_v22, %v11949_v18 }
 0x7ed   :  { %v2737_v49 = vsel %vm483_vm7, 0.0, %v2736_v13  ;;  %v2667_v14 = vsel %vm483_vm7, %v2651_v40, %v2666_v31  ;;  %v2671_v26 = vperm.slane %v2665_v25, %v11200_v24  ;;  %v2676_v3 = vrot.slane %v2659_v48, 4 }
 0x7ee   :  { %v12059_v9 = vsel %vm483_vm7, %v2918_v5, %v2737_v49  ;;  %v2675_v63 = vperm.slane %v2667_v14, %v11200_v24  ;;  %v2678_v20 = vrot.slane %v2663_v56, 4  ;;  %v2172_v27 = vrot.slane %v2101_v4, 4 }
 0x7ef   :  { %v2677_v51 = vsel %vm483_vm7, 0.0, %v2676_v3  ;;  %v2680_v28 = vrot.slane %v2671_v26, 4  ;;  %v2175_v30 = vsel %vm483_vm7, %v2101_v4, %v2174_v39  ;;  %v2245_v18 = vperm.slane %v2239_v38, %v11200_v24 }
 0x7f0   :  { %v2679_v31 = vsel %vm483_vm7, 0.0, %v2678_v20  ;;  %v2682_v32 = vrot.slane %v2675_v63, 4  ;;  %v2848_v21 = vsel %vm483_vm7, %v2678_v20, %v2659_v48  ;;  %v2173_v6 = vsel %vm483_vm7, %v2172_v27, %v11974_v12 }
 0x7f1   :  { %v2681_v62 = vsel %vm483_vm7, 0.0, %v2680_v28  ;;  %v2853_v37 = vrot.slane %v2679_v31, 4  ;;  %v2179_v47 = vperm.slane %v2173_v6, %v11192_v10  ;;  %v2183_v43 = vperm.slane %v2175_v30, %v11192_v10 }
 0x7f2   :  { %v2683_v44 = vsel %vm483_vm7, 0.0, %v2682_v32  ;;  %v2859_v39 = vsel %vm483_vm7, %v2682_v32, %v2671_v26  ;;  %v2250_v38 = vrot.slane %v12006_v2, 4  ;;  %v2264_v40 = vrot.slane %v2245_v18, 4 }
 0x7f3   :  { %v12078_v7 = vperm.slane %v2859_v39, %v11192_v10  ;;  %v2864_v33 = vrot.slane %v2683_v44, 4  ;;  %v2184_v45 = vrot.slane %v2179_v47, 4  ;;  %v2187_v12 = vsel %vm483_vm7, %v2179_v47, %v2186_v52 }
 0x7f4   :  { %v2195_v41 = vperm.slane %v2187_v12, %v11200_v24  ;;  %v2196_v42 = vrot.slane %v2183_v43, 4  ;;  %v2199_v61 = vsel %vm483_vm7, %v2183_v43, %v2198_v16  ;;  %v2251_v46 = vsel %vm483_vm7, %v2250_v38, %v11998_v35 }
 0x7f5   :  { %v2865_v56 = vsel %vm483_vm7, %v2864_v33, %v2681_v62  ;;  %v2185_v29 = vsel %vm483_vm7, %v2184_v45, %v11962_v50  ;;  %v2207_v57 = vperm.slane %v2199_v61, %v11200_v24  ;;  %v2257_v1 = vperm.slane %v2251_v46, %v11200_v24 }
 0x7f6   :  { %v2191_v52 = vperm.slane %v2185_v29, %v11200_v24  ;;  %v2197_v22 = vsel %vm483_vm7, %v2196_v42, %v11965_v58  ;;  %v2210_v0 = vrot.slane %v2195_v41, 4  ;;  %v2852_v16 = vperm.slane %v2848_v21, %v11192_v10 }
 0x7f7   :  { %v2203_v48 = vperm.slane %v2197_v22, %v11200_v24  ;;  %v2214_v13 = vrot.slane %v2207_v57, 4  ;;  %v2265_v11 = vsel %vm483_vm7, %v2257_v1, %v2264_v40  ;;  %v2262_v34 = vrot.slane %v2257_v1, 4 }
 0x7f8   :  { %v2208_v4 = vrot.slane %v2191_v52, 4  ;;  %v2211_v50 = vsel %vm483_vm7, 0.0, %v2210_v0  ;;  %v2270_v5 = vsel %vm483_vm7, %v2210_v0, %v2191_v52  ;;  %v3437_v25 = vpack.c.bf16 %v2265_v11, %v2265_v11 }
 0x7f9   :  { %v2212_v49 = vrot.slane %v2203_v48, 4  ;;  %v2215_v14 = vsel %vm483_vm7, 0.0, %v2214_v13  ;;  %v12104_v58 = vperm.slane %v2270_v5, %v11192_v10  ;;  %v2275_v26 = vrot.slane %v2211_v50, 4 }
 0x7fa   :  { %v2209_v3 = vsel %vm483_vm7, 0.0, %v2208_v4  ;;  %v2281_v63 = vsel %vm483_vm7, %v2214_v13, %v2203_v48  ;;  %v2286_v20 = vrot.slane %v2215_v14, 4  ;;  %9528 = vmatmul.msk.bf16.vlgmr.msra.gmra.mxu2 %vm1199_vm8, %v3437_v25  ;;  %v2263_v27 = vsel %vm483_vm7, %v2262_v34, %v2245_v18 }
 0x7fb   :  { %v2213_v28 = vsel %vm483_vm7, 0.0, %v2212_v49  ;;  %v2276_v30 = vsel %vm483_vm7, %v2275_v26, %v2209_v3  ;;  %v12113_v31 = vperm.slane %v2281_v63, %v11192_v10  ;;  %v2294_v32 = vrot.slane %v12104_v58, 4 }
 0x7fc   :  { %v12117_v21 = vperm.slane %v2276_v30, %v11192_v10  ;;  %v2287_v6 = vsel %vm483_vm7, %v2286_v20, %v2213_v28  ;;  %v3436_v62 = vpack.c.bf16 %v2263_v27, %v2263_v27  ;;  %v2854_v47 = vsel %vm483_vm7, %v2853_v37, %v2677_v51 }
 0x7fd   :  { %v12122_v43 = vperm.slane %v2287_v6, %v11192_v10  ;;  %v2306_v18 = vrot.slane %v12113_v31, 4  ;;  %v2858_v44 = vperm.slane %v2854_v47, %v11192_v10  ;;  %v2869_v39 = vperm.slane %v2865_v56, %v11192_v10 }
 0x7fe   :  { %9527 = vmatmul.msk.bf16.vlgmr.msra.gmra.mxu1 %vm1199_vm8, %v3436_v62  ;;  %v2872_v38 = vrot.slane %v2852_v16, 4  ;;  %v2884_v40 = vrot.slane %v12078_v7, 4  ;;  %v2906_v33 = vperm.slane %v12039_v55, %v11192_v10  ;;  %v2908_v51 = vsel %vm483_vm7, %v2907_v15, %v12046_v19 }
 0x7ff   :  { %v2304_v37 = vrot.slane %v12122_v43, 4  ;;  %v2912_v45 = vperm.slane %v2908_v51, %v11192_v10  ;;  %v2923_v12 = vperm.slane %v12059_v9, %v11192_v10  ;;  %v2938_v41 = vrot.slane %v12049_v23, 4 }
 0x800   :  { %v2873_v42 = vsel %vm483_vm7, %v2858_v44, %v2872_v38  ;;  %v2885_v61 = vsel %vm483_vm7, %v2869_v39, %v2884_v40  ;;  %v2926_v46 = vrot.slane %v2906_v33, 4  ;;  %v2870_v55 = vrot.slane %v2858_v44, 4 }
 0x801   :  { %v12144_v36 = vsel %vm483_vm7, %v2304_v37, %v12113_v31  ;;  %v2881_v15 = vperm.slane %v2873_v42, %v11200_v24  ;;  %v2893_v19 = vperm.slane %v2885_v61, %v11200_v24  ;;  %v2939_v56 = vsel %vm483_vm7, %v2923_v12, %v2938_v41 }
 0x802   :  { %v2927_v9 = vsel %vm483_vm7, %v2912_v45, %v2926_v46  ;;  %v2947_v29 = vperm.slane %v2939_v56, %v11200_v24  ;;  %v2871_v57 = vsel %vm483_vm7, %v2870_v55, %v2852_v16  ;;  %v2882_v1 = vrot.slane %v2869_v39, 4 }
 0x803   :  { %v2898_v52 = vrot.slane %v2893_v19, 4  ;;  %v2935_v22 = vperm.slane %v2927_v9, %v11200_v24  ;;  %v2877_v0 = vperm.slane %v2871_v57, %v11200_v24  ;;  %v2924_v48 = vrot.slane %v2912_v45, 4 }
 0x804   :  { %v2952_v13 = vrot.slane %v2947_v29, 4  ;;  %v2883_v11 = vsel %vm483_vm7, %v2882_v1, %v12078_v7  ;;  %v2936_v34 = vrot.slane %v2923_v12, 4  ;;  %v2900_v4 = vrot.slane %v2881_v15, 4 }
 0x805   :  { %v2899_v50 = vsel %vm483_vm7, %v2898_v52, %v2881_v15  ;;  %v2889_v5 = vperm.slane %v2883_v11, %v11200_v24  ;;  %v2925_v25 = vsel %vm483_vm7, %v2924_v48, %v2906_v33  ;;  %v2954_v16 = vrot.slane %v2935_v22, 4 }
 0x806   :  { %v2953_v49 = vsel %vm483_vm7, %v2952_v13, %v2935_v22  ;;  %v3456_v14 = vpack.c.bf16 %v2899_v50, %v2899_v50  ;;  %v2931_v26 = vperm.slane %v2925_v25, %v11200_v24  ;;  %v2937_v3 = vsel %vm483_vm7, %v2936_v34, %v12049_v23 }
 0x807   :  { %v3457_v63 = vpack.c.bf16 %v2953_v49, %v2953_v49  ;;  %v2894_v20 = vrot.slane %v2889_v5, 4  ;;  %v2943_v7 = vperm.slane %v2937_v3, %v11200_v24  ;;  %v2901_v27 = vsel %vm483_vm7, %v2893_v19, %v2900_v4 }
 0x808   :  { %v3612_v28 = vunpack.c.l.b16 %v3456_v14  ;;  %v2955_v30 = vsel %vm483_vm7, %v2947_v29, %v2954_v16  ;;  %v3458_v6 = vpack.c.bf16 %v2901_v27, %v2901_v27  ;;  %v2249_v62 = vperm.slane %v12016_v54, %v11200_v24 }
 0x809   :  { %v3613_v47 = vunpack.c.l.b16 %v3457_v63  ;;  %v2895_v44 = vsel %vm483_vm7, %v2894_v20, %v2877_v0  ;;  %v2948_v39 = vrot.slane %v2943_v7, 4  ;;  %v3459_v38 = vpack.c.bf16 %v2955_v30, %v2955_v30  ;;  %v2466_v30 = vpop.f32.mrf.mxu0 }
 0x80a   :  { %v3452_v40 = vpack.c.bf16 %v2895_v44, %v2895_v44  ;;  %v3636_v23 = vunpack.c.l.b16 %v3458_v6  ;;  %v2253_v33 = vsel %vm483_vm7, %v12006_v2, %v2252_v53  ;;  %v2268_v51 = vrot.slane %v2249_v62, 4  ;;  %v10763_v6 = vld [vmem:[%s14180_s14] sm:$0x3] }
 0x80b   :  { %v3614_v37 = vpack.c.b16 %v3613_v47, %v3612_v28  ;;  %v2949_v45 = vsel %vm483_vm7, %v2948_v39, %v2931_v26  ;;  %v3637_v12 = vunpack.c.l.b16 %v3459_v38  ;;  %v2261_v41 = vperm.slane %v2253_v33, %v11200_v24 }
 0x80c   :  { %v3453_v54 = vpack.c.bf16 %v2949_v45, %v2949_v45  ;;  %v3564_v42 = vunpack.c.l.b16 %v3452_v40  ;;  %v2896_v61 = vrot.slane %v2877_v0, 4  ;;  %v2950_v46 = vrot.slane %v2931_v26, 4  ;;  %v10583_v40 = vld [vmem:[%s14225_s30] ss:$0 sm:$0xff] }
 0x80d   :  { %v3619_v55 = vsel %vm1199_vm8, %v3614_v37, 0  ;;  %v3638_v15 = vpack.c.b16 %v3637_v12, %v3636_v23  ;;  %v2269_v19 = vsel %vm483_vm7, %v2261_v41, %v2268_v51  ;;  %v2266_v35 = vrot.slane %v2261_v41, 4 }
 0x80e   :  { %3628 = vmatpush.bf16.xpose.msra.mxu1 %v3619_v55  ;;  %v3565_v56 = vunpack.c.l.b16 %v3453_v54  ;;  %v3439_v2 = vpack.c.bf16 %v2269_v19, %v2269_v19  ;;  %v2897_v53 = vsel %vm483_vm7, %v2889_v5, %v2896_v61  ;;  %v2951_v9 = vsel %vm483_vm7, %v2943_v7, %v2950_v46 }
 0x80f   :  { %v3643_v29 = vsel %vm1199_vm8, %v3638_v15, 0  ;;  %v3454_v57 = vpack.c.bf16 %v2897_v53, %v2897_v53  ;;  %v3455_v1 = vpack.c.bf16 %v2951_v9, %v2951_v9  ;;  %v2267_v52 = vsel %vm483_vm7, %v2266_v35, %v2249_v62  ;;  %v10584_v35 = vld [vmem:[%s14225_s30 + $0x1] ss:$0 sm:$0xff] }
 0x810   :  { %v3566_v22 = vpack.c.b16 %v3565_v56, %v3564_v42  ;;  %3652 = vmatpush.bf16.xpose.msra.mxu2 %v3643_v29  ;;  %v3438_v0 = vpack.c.bf16 %v2267_v52, %v2267_v52  ;;  %v2292_v48 = vrot.slane %v12117_v21, 4  ;;  %v2311_v13 = vperm.slane %v12144_v36, %v11200_v24 }
 0x811   :  { %9530 = vmatmul.msk.bf16.vlgmr.msrb.gmra.mxu2 %vm1199_vm8, %v3439_v2  ;;  %v3588_v11 = vunpack.c.l.b16 %v3454_v57  ;;  %v3589_v34 = vunpack.c.l.b16 %v3455_v1  ;;  %v2295_v4 = vsel %vm483_vm7, %v12117_v21, %v2294_v32  ;;  %v2307_v36 = vsel %vm483_vm7, %v12122_v43, %v2306_v18  ;;  %v2468_v44 = vpop.f32.mrf.mxu0 }
 0x812   :  { %v3571_v50 = vsel %vm1199_vm8, %v3566_v22, 0  ;;  %9529 = vmatmul.msk.bf16.vlgmr.msrb.gmra.mxu1 %vm1199_vm8, %v3438_v0  ;;  %v2293_v5 = vsel %vm483_vm7, %v2292_v48, %v12104_v58  ;;  %v2316_v25 = vrot.slane %v2311_v13, 4  ;;  %v2303_v14 = vperm.slane %v2295_v4, %v11200_v24 }
 0x813   :  { %3580 = vmatpush.bf16.xpose.msrb.mxu3 %v3571_v50  ;;  %v3590_v16 = vpack.c.b16 %v3589_v34, %v3588_v11  ;;  %v2299_v49 = vperm.slane %v2293_v5, %v11200_v24  ;;  %v2315_v3 = vperm.slane %v2307_v36, %v11200_v24  ;;  %v2343_v62 = vperm.slane %v10763_v6, 1 }
 0x814   :  { %v2322_v63 = vrot.slane %v2303_v14, 4 }
 0x815   :  { %v3595_v32 = vsel %vm1199_vm8, %v3590_v16, 0  ;;  %v2317_v21 = vsel %vm483_vm7, %v2316_v25, %v2299_v49  ;;  %v2318_v26 = vrot.slane %v2299_v49, 4  ;;  %v2320_v20 = vrot.slane %v2315_v3, 4 }
 0x816   :  { %3604 = vmatpush.bf16.xpose.msra.mxu0 %v3595_v32  ;;  %v3440_v58 = vpack.c.bf16 %v2317_v21, %v2317_v21  ;;  %v2323_v18 = vsel %vm483_vm7, %v2315_v3, %v2322_v63  ;;  %v12212_v47 = vadd.f32 %v2466_v30, %v2343_v62  ;;  %v12214_v39 = vadd.f32 %v2468_v44, %v2343_v62 }
 0x817   :  { %v2319_v31 = vsel %vm483_vm7, %v2311_v13, %v2318_v26  ;;  %v2321_v7 = vsel %vm483_vm7, %v2320_v20, %v2303_v14  ;;  %v3443_v27 = vpack.c.bf16 %v2323_v18, %v2323_v18 }
 0x818   :  { %v3441_v43 = vpack.c.bf16 %v2319_v31, %v2319_v31  ;;  %v3442_v28 = vpack.c.bf16 %v2321_v7, %v2321_v7  ;;  %v10422_v38 = vpack.i.bf16 %v12214_v39, %v12212_v47 }
 0x819   :  { %v2471_v54 = vpop.f32.mrf.mxu0 }
 0x81a   :  { %9531 = vmatmul.msk.bf16.vlgmr.msrb.gmra.mxu3 %vm1199_vm8, %v3440_v58  ;;  %10423 = vrot.lane.b32.xlu0 %v10422_v38, %s10961_s28  ;;  %v12232_v22 = vadd.f32 %v2471_v54, %v2343_v62 }
 0x81d   :  { %9532 = vmatmul.msk.bf16.vlgmr.msra.gmra.mxu0 %vm1199_vm8, %v3441_v43 }
 0x821   :  { %9534 = vmatmul.msk.bf16.vlgmr.msra.gmra.mxu2 %vm1199_vm8, %v3443_v27  ;;  %v2473_v46 = vpop.f32.mrf.mxu0 }
 0x822   :  { %9533 = vmatmul.msk.bf16.vlgmr.msra.gmra.mxu1 %vm1199_vm8, %v3442_v28  ;;  %v12234_v0 = vadd.f32 %v2473_v46, %v2343_v62 }
 0x824   :  { %v10437_v5 = vpack.i.bf16 %v12234_v0, %v12232_v22 }
 0x87b   :  { %v3486_v23 = vpop.f32.mrf.mxu1 }
 0x87c   :  { %v3487_v33 = vadd.f32 %v10583_v40, %v3486_v23 }
 0x87d   :  { %v3510_v51 = vpop.f32.mrf.mxu2 }
 0x87e   :  { %v3659_v37 = vsel %vm3658_vm4, %v3487_v33, -inf  ;;  %v3511_v45 = vadd.f32 %v10583_v40, %v3510_v51 }
 0x87f   :  { %3660 = vmax.xlane.f32.xlu1 %v3659_v37 }
 0x880   :  { %v3662_v42 = vsel %vm3658_vm4, %v3511_v45, -inf }
 0x883   :  { %v3488_v12 = vpop.f32.mrf.mxu1 }
 0x885   :  { %v3512_v41 = vpop.f32.mrf.mxu2 }
 0x887   :  { %3663 = vmax.xlane.f32.xlu1 %v3662_v42 }
 0x88c   :  { %v10424_v43 = vpop.permute.xlu0 %10423 }
 0x88f   :  { %v3534_v61 = vpop.f32.mrf.mxu1 }
 0x890   :  { %v3535_v55 = vadd.f32 %v10583_v40, %v3534_v61 }
 0x892   :  { %v3665_v15 = vsel %vm3658_vm4, %v3535_v55, -inf }
 0x893   :  { %3666 = vmax.xlane.f32.xlu0 %v3665_v15 }
 0x894   :  { %v3558_v19 = vpop.f32.mrf.mxu2 }
 0x895   :  { %v3559_v36 = vadd.f32 %v10583_v40, %v3558_v19 }
 0x897   :  { %v3536_v56 = vpop.f32.mrf.mxu1  ;;  %v3668_v49 = vsel %vm3658_vm4, %v3559_v36, -inf }
 0x89a   :  { %v3606_v2 = vpop.f32.mrf.mxu0 }
 0x89b   :  { %v12228_v53 = vadd.f32 %v10584_v35, %v3606_v2 }
 0x89c   :  { %v3560_v9 = vpop.f32.mrf.mxu2 }
 0x89d   :  { %v3674_v29 = vsel %vm3658_vm4, %v12228_v53, -inf  ;;  %v3582_v57 = vpop.f32.mrf.mxu3  ;;  %v10425_v9 = vunpack.i.l.bf16 %v10424_v43 }
 0x89e   :  { %3675 = vmax.xlane.f32.xlu2 %v3674_v29  ;;  %v3583_v48 = vadd.f32 %v10584_v35, %v3582_v57 }
 0x89f   :  { %v3630_v1 = vpop.f32.mrf.mxu1 }
 0x8a0   :  { %v3631_v52 = vadd.f32 %v10584_v35, %v3630_v1  ;;  %v3671_v50 = vsel %vm3658_vm4, %v3583_v48, -inf }
 0x8a2   :  { %v3608_v13 = vpop.f32.mrf.mxu0  ;;  %v3677_v11 = vsel %vm3658_vm4, %v3631_v52, -inf }
 0x8a3   :  { %3678 = vmax.xlane.f32.xlu1 %v3677_v11 }
 0x8a4   :  { %v3654_v34 = vpop.f32.mrf.mxu2 }
 0x8a5   :  { %v3584_v4 = vpop.f32.mrf.mxu3  ;;  %v12244_v14 = vadd.f32 %v10584_v35, %v3654_v34  ;;  %v10426_v35 = vunpack.i.h.bf16 %v10424_v43 }
 0x8a6   :  { %3672 = vmax.xlane.f32.xlu2 %v3671_v50  ;;  %v3010_v50 = vrot.slane %v10425_v9, 4 }
 0x8a7   :  { %v3632_v25 = vpop.f32.mrf.mxu1  ;;  %10438 = vrot.lane.b32.xlu0 %v10437_v5, %s10961_s28  ;;  %v3680_v32 = vsel %vm3658_vm4, %v12244_v14, -inf }
 0x8ac   :  { %v3656_v16 = vpop.f32.mrf.mxu2 }
 0x8ad   :  { %v3054_v16 = vrot.slane %v12214_v39, 4 }
 0x8ae   :  { %3669 = vmax.xlane.f32.xlu2 %v3668_v49 }
 0x8bc   :  { %10428 = vrot.lane.b32.xlu1 %v10422_v38, %s10948_s9 }
 0x8c6   :  { %10433 = vrot.lane.b32.xlu2 %v10422_v38, %s10960_s27 }
 0x8ce   :  { %10448 = vrot.lane.b32.xlu2 %v10437_v5, %s10960_s27 }
 0x8d1   :  { %3681 = vmax.xlane.f32.xlu0 %v3680_v32 }
 0x8e5   :  { %10443 = vrot.lane.b32.xlu0 %v10437_v5, %s10948_s9 }
 0x8f2   :  { %v3661_v21 = vpop.xlane.xlu1 %3660 }
 0x8f3   :  { %v3683_v26 = vsub.f32 %v3487_v33, %v3661_v21 }
 0x8f5   :  { %v3691_v3 = vmul.f32 1.442695, %v3683_v26 }
 0x8f7   :  { %10643 = vpow2.f32 %v3691_v3 }
 0x8fa   :  { %v3664_v58 = vpop.xlane.xlu1 %3663 }
 0x8fb   :  { %v3684_v31 = vsub.f32 %v3511_v45, %v3664_v58 }
 0x8fd   :  { %v12250_v63 = vpop.eup %10643  ;;  %v3693_v20 = vmul.f32 1.442695, %v3684_v31 }
 0x8fe   :  { %v3707_v18 = vsel %vm3658_vm4, %v12250_v63, 0.0 }
 0x8ff   :  { %10645 = vpow2.f32 %v3693_v20  ;;  %3708 = vadd.xlane.f32.xlu1 %v3707_v18 }
 0x905   :  { %v12254_v7 = vpop.eup %10645 }
 0x906   :  { %v3667_v27 = vpop.xlane.xlu0 %3666  ;;  %v3710_v28 = vsel %vm3658_vm4, %v12254_v7, 0.0 }
 0x907   :  { %v3685_v30 = vsub.f32 %v3535_v55, %v3667_v27  ;;  %3711 = vadd.xlane.f32.xlu1 %v3710_v28 }
 0x909   :  { %v3695_v6 = vmul.f32 1.442695, %v3685_v30 }
 0x90b   :  { %10647 = vpow2.f32 %v3695_v6 }
 0x911   :  { %v12258_v62 = vpop.eup %10647  ;;  %v3676_v44 = vpop.xlane.xlu2 %3675 }
 0x912   :  { %v3713_v38 = vsel %vm3658_vm4, %v12258_v62, 0.0  ;;  %v3688_v45 = vsub.f32 %v12228_v53, %v3676_v44  ;;  %v3066_v53 = vrot.slane %v10426_v35, 4 }
 0x913   :  { %3714 = vadd.xlane.f32.xlu2 %v3713_v38  ;;  %v2998_v38 = vrot.slane %v12212_v47, 4 }
 0x914   :  { %v3701_v41 = vmul.f32 1.442695, %v3688_v45 }
 0x916   :  { %v3679_v40 = vpop.xlane.xlu1 %3678 }
 0x917   :  { %v3689_v23 = vsub.f32 %v3631_v52, %v3679_v40 }
 0x919   :  { %v3673_v33 = vpop.xlane.xlu2 %3672  ;;  %v3703_v51 = vmul.f32 1.442695, %v3689_v23  ;;  %v12276_v11 = vpop.permute.xlu0 %10438 }
 0x91a   :  { %v3687_v37 = vsub.f32 %v3583_v48, %v3673_v33  ;;  %v10441_v49 = vunpack.i.h.bf16 %v12276_v11  ;;  %v10440_v3 = vunpack.i.l.bf16 %v12276_v11 }
 0x91b   :  { %10649 = vpow2.f32 %v3703_v51 }
 0x91c   :  { %v3699_v12 = vmul.f32 1.442695, %v3687_v37  ;;  %v3178_v44 = vrot.slane %v10441_v49, 4 }
 0x91e   :  { %10651 = vpow2.f32 %v3699_v12 }
 0x91f   :  { %10653 = vpow2.f32 %v3701_v41 }
 0x921   :  { %v12263_v54 = vpop.eup %10649  ;;  %v3670_v42 = vpop.xlane.xlu2 %3669 }
 0x922   :  { %v3686_v61 = vsub.f32 %v3559_v36, %v3670_v42  ;;  %v3725_v46 = vsel %vm3658_vm4, %v12263_v54, 0.0  ;;  %v3122_v42 = vrot.slane %v10440_v3, 4 }
 0x923   :  { %3726 = vadd.xlane.f32.xlu1 %v3725_v46 }
 0x924   :  { %v12267_v55 = vpop.eup %10651  ;;  %v3697_v15 = vmul.f32 1.442695, %v3686_v61 }
 0x925   :  { %v3719_v19 = vsel %vm3658_vm4, %v12267_v55, 0.0  ;;  %v12271_v2 = vpop.eup %10653 }
 0x926   :  { %10655 = vpow2.f32 %v3697_v15  ;;  %3720 = vadd.xlane.f32.xlu2 %v3719_v19  ;;  %v3722_v4 = vsel %vm3658_vm4, %v12271_v2, 0.0 }
 0x929   :  { %v10434_v56 = vpop.permute.xlu2 %10433 }
 0x92a   :  { %v10436_v29 = vunpack.i.h.bf16 %v10434_v56  ;;  %v10435_v57 = vunpack.i.l.bf16 %v10434_v56 }
 0x92c   :  { %v12273_v1 = vpop.eup %10655  ;;  %v3064_v52 = vrot.slane %v10436_v29, 4  ;;  %v3067_v48 = vsel %vm483_vm7, %v10436_v29, %v3066_v53  ;;  %v3008_v13 = vrot.slane %v10435_v57, 4  ;;  %v3011_v21 = vsel %vm483_vm7, %v10435_v57, %v3010_v50 }
 0x92d   :  { %v3716_v34 = vsel %vm3658_vm4, %v12273_v1, 0.0  ;;  %v3075_v36 = vperm.slane %v3067_v48, %v11192_v10  ;;  %v3019_v30 = vperm.slane %v3011_v21, %v11192_v10 }
 0x92e   :  { %3717 = vadd.xlane.f32.xlu0 %v3716_v34  ;;  %3723 = vadd.xlane.f32.xlu2 %v3722_v4  ;;  %v10429_v5 = vpop.permute.xlu1 %10428  ;;  %v3065_v25 = vsel %vm483_vm7, %v3064_v52, %v10426_v35  ;;  %v3009_v32 = vsel %vm483_vm7, %v3008_v13, %v10425_v9 }
 0x92f   :  { %v10431_v26 = vunpack.i.h.bf16 %v10429_v5  ;;  %v3071_v58 = vperm.slane %v3065_v25, %v11192_v10  ;;  %v10430_v18 = vunpack.i.l.bf16 %v10429_v5  ;;  %v3088_v27 = vrot.slane %v3075_v36, 4 }
 0x930   :  { %v3015_v28 = vperm.slane %v3009_v32, %v11192_v10  ;;  %v3032_v46 = vrot.slane %v3019_v30, 4 }
 0x931   :  { %v12290_v31 = vpop.permute.xlu2 %10448  ;;  %v3052_v20 = vrot.slane %v10431_v26, 4  ;;  %v3055_v43 = vsel %vm483_vm7, %v10431_v26, %v3054_v16  ;;  %v3076_v37 = vrot.slane %v3071_v58, 4  ;;  %v2996_v41 = vrot.slane %v10430_v18, 4 }
 0x932   :  { %v3063_v6 = vperm.slane %v3055_v43, %v11192_v10  ;;  %v10451_v40 = vunpack.i.h.bf16 %v12290_v31  ;;  %v10450_v23 = vunpack.i.l.bf16 %v12290_v31  ;;  %v3020_v61 = vrot.slane %v3015_v28, 4 }
 0x933   :  { %v3053_v33 = vsel %vm483_vm7, %v3052_v20, %v12214_v39  ;;  %v2999_v15 = vsel %vm483_vm7, %v10430_v18, %v2998_v38  ;;  %v2997_v13 = vsel %vm483_vm7, %v2996_v41, %v12212_v47 }
 0x934   :  { %v3089_v51 = vsel %vm483_vm7, %v3088_v27, %v3063_v6  ;;  %v3059_v45 = vperm.slane %v3053_v33, %v11192_v10  ;;  %v3090_v12 = vrot.slane %v3063_v6, 4  ;;  %v12311_v53 = vrot.slane %v10451_v40, 4 }
 0x935   :  { %v3095_v39 = vperm.slane %v3089_v51, %v11200_v24  ;;  %v12313_v9 = vrot.slane %v10450_v23, 4  ;;  %v3007_v34 = vperm.slane %v2999_v15, %v11192_v10  ;;  %v3003_v25 = vperm.slane %v2997_v13, %v11192_v10 }
 0x936   :  { %v3077_v19 = vsel %vm483_vm7, %v3076_v37, %v3059_v45  ;;  %v3078_v35 = vrot.slane %v3059_v45, 4  ;;  %v3091_v56 = vsel %vm483_vm7, %v3075_v36, %v3090_v12  ;;  %v12324_v36 = vsel %vm483_vm7, %v10450_v23, %v3122_v42 }
 0x937   :  { %v3083_v29 = vperm.slane %v3077_v19, %v11200_v24  ;;  %v3099_v57 = vperm.slane %v3091_v56, %v11200_v24  ;;  %v3104_v48 = vrot.slane %v3095_v39, 4  ;;  %v3033_v32 = vsel %vm483_vm7, %v3032_v46, %v3007_v34 }
 0x938   :  { %v3079_v52 = vsel %vm483_vm7, %v3071_v58, %v3078_v35  ;;  %v3034_v21 = vrot.slane %v3007_v34, 4  ;;  %v3021_v18 = vsel %vm483_vm7, %v3020_v61, %v3003_v25  ;;  %v3022_v27 = vrot.slane %v3003_v25, 4 }
 0x939   :  { %v3087_v4 = vperm.slane %v3079_v52, %v11200_v24  ;;  %v3100_v50 = vrot.slane %v3083_v29, 4  ;;  %v3106_v5 = vrot.slane %v3099_v57, 4  ;;  %v3105_v16 = vsel %vm483_vm7, 0.0, %v3104_v48 }
 0x93a   :  { %v3027_v23 = vperm.slane %v3021_v18, %v11200_v24  ;;  %v3035_v33 = vsel %vm483_vm7, %v3019_v30, %v3034_v21  ;;  %v3023_v42 = vsel %vm483_vm7, %v3015_v28, %v3022_v27  ;;  %v3039_v61 = vperm.slane %v3033_v32, %v11200_v24 }
 0x93b   :  { %v3101_v26 = vsel %vm483_vm7, 0.0, %v3100_v50  ;;  %v3102_v58 = vrot.slane %v3087_v4, 4  ;;  %v3107_v47 = vsel %vm483_vm7, 0.0, %v3106_v5  ;;  %v3285_v31 = vsel %vm483_vm7, %v3106_v5, %v3095_v39 }
 0x93c   :  { %v3289_v20 = vperm.slane %v3285_v31, %v11192_v10  ;;  %v3290_v43 = vrot.slane %v3107_v47, 4  ;;  %v3043_v46 = vperm.slane %v3035_v33, %v11200_v24  ;;  %v12344_v15 = vsel %vm483_vm7, %v10451_v40, %v3178_v44 }
 0x93d   :  { %v3103_v6 = vsel %vm483_vm7, 0.0, %v3102_v58  ;;  %v3274_v38 = vsel %vm483_vm7, %v3102_v58, %v3083_v29  ;;  %v3031_v30 = vperm.slane %v3023_v42, %v11200_v24  ;;  %v3044_v35 = vrot.slane %v3027_v23, 4 }
 0x93e   :  { %v3278_v51 = vperm.slane %v3274_v38, %v11192_v10  ;;  %v3279_v37 = vrot.slane %v3103_v6, 4  ;;  %v3291_v45 = vsel %vm483_vm7, %v3290_v43, %v3105_v16  ;;  %v3310_v12 = vrot.slane %v3289_v20, 4 }
 0x93f   :  { %v3295_v41 = vperm.slane %v3291_v45, %v11192_v10  ;;  %v3048_v56 = vrot.slane %v3039_v61, 4  ;;  %v3050_v39 = vrot.slane %v3043_v46, 4  ;;  %v3045_v28 = vsel %vm483_vm7, 0.0, %v3044_v35 }
 0x940   :  { %v3280_v19 = vsel %vm483_vm7, %v3279_v37, %v3101_v26  ;;  %v3298_v57 = vrot.slane %v3278_v51, 4  ;;  %v3046_v48 = vrot.slane %v3031_v30, 4 }
 0x941   :  { %v3284_v29 = vperm.slane %v3280_v19, %v11192_v10  ;;  %v3308_v52 = vrot.slane %v3295_v41, 4  ;;  %v3311_v34 = vsel %vm483_vm7, %v3295_v41, %v3310_v12  ;;  %v3049_v44 = vsel %vm483_vm7, 0.0, %v3048_v56 }
 0x942   :  { %v3051_v40 = vsel %vm483_vm7, 0.0, %v3050_v39  ;;  %v3231_v4 = vsel %vm483_vm7, %v3050_v39, %v3039_v61  ;;  %v3047_v5 = vsel %vm483_vm7, 0.0, %v3046_v48  ;;  %v3220_v25 = vsel %vm483_vm7, %v3046_v48, %v3027_v23 }
 0x943   :  { %v3235_v16 = vperm.slane %v3231_v4, %v11192_v10  ;;  %v3236_v32 = vrot.slane %v3051_v40, 4  ;;  %v3224_v21 = vperm.slane %v3220_v25, %v11192_v10  ;;  %v3225_v26 = vrot.slane %v3047_v5, 4 }
 0x944   :  { %v3682_v13 = vpop.xlane.xlu0 %3681  ;;  %v3299_v47 = vsel %vm483_vm7, %v3284_v29, %v3298_v57  ;;  %v3296_v37 = vrot.slane %v3284_v29, 4  ;;  %v3309_v45 = vsel %vm483_vm7, %v3308_v52, %v3289_v20 }
 0x945   :  { %v3690_v50 = vsub.f32 %v12244_v14, %v3682_v13  ;;  %v3237_v31 = vsel %vm483_vm7, %v3236_v32, %v3049_v44  ;;  %v3256_v43 = vrot.slane %v3235_v16, 4  ;;  %v3307_v18 = vperm.slane %v3299_v47, %v11200_v24 }
 0x946   :  { %v3319_v14 = vperm.slane %v3311_v34, %v11200_v24  ;;  %v3226_v27 = vsel %vm483_vm7, %v3225_v26, %v3045_v28  ;;  %v3241_v6 = vperm.slane %v3237_v31, %v11192_v10  ;;  %v3244_v38 = vrot.slane %v3224_v21, 4 }
 0x947   :  { %v3705_v58 = vmul.f32 1.442695, %v3690_v50  ;;  %v3230_v23 = vperm.slane %v3226_v27, %v11192_v10  ;;  %v3315_v42 = vperm.slane %v3309_v45, %v11200_v24  ;;  %v3326_v61 = vrot.slane %v3307_v18, 4 }
 0x948   :  { %v3324_v33 = vrot.slane %v3319_v14, 4  ;;  %v3254_v12 = vrot.slane %v3241_v6, 4  ;;  %v3257_v41 = vsel %vm483_vm7, %v3241_v6, %v3256_v43  ;;  %v3297_v20 = vsel %vm483_vm7, %v3296_v37, %v3278_v51 }
 0x949   :  { %10657 = vpow2.f32 %v3705_v58  ;;  %v3245_v46 = vsel %vm483_vm7, %v3230_v23, %v3244_v38  ;;  %v3265_v19 = vperm.slane %v3257_v41, %v11200_v24  ;;  %v3242_v35 = vrot.slane %v3230_v23, 4 }
 0x94a   :  { %v3325_v30 = vsel %vm483_vm7, %v3324_v33, %v3307_v18  ;;  %v3253_v56 = vperm.slane %v3245_v46, %v11200_v24  ;;  %v3255_v29 = vsel %vm483_vm7, %v3254_v12, %v3235_v16  ;;  %v3303_v48 = vperm.slane %v3297_v20, %v11200_v24 }
 0x94b   :  { %v3760_v39 = vpack.c.bf16 %v3325_v30, %v3325_v30  ;;  %v3270_v57 = vrot.slane %v3265_v19, 4  ;;  %v3243_v52 = vsel %vm483_vm7, %v3242_v35, %v3224_v21  ;;  %v3261_v28 = vperm.slane %v3255_v29, %v11200_v24 }
 0x94c   :  { %v3249_v44 = vperm.slane %v3243_v52, %v11200_v24  ;;  %v3320_v40 = vrot.slane %v3315_v42, 4  ;;  %v3272_v4 = vrot.slane %v3253_v56, 4  ;;  %v3327_v25 = vsel %vm483_vm7, %v3319_v14, %v3326_v61 }
 0x94d   :  { %v3818_v34 = vunpack.c.l.b16 %v3760_v39  ;;  %v3271_v50 = vsel %vm483_vm7, %v3270_v57, %v3253_v56  ;;  %v3266_v5 = vrot.slane %v3261_v28, 4  ;;  %v3762_v26 = vpack.c.bf16 %v3327_v25, %v3327_v25 }
 0x94e   :  { %v3759_v16 = vpack.c.bf16 %v3271_v50, %v3271_v50  ;;  %v3321_v32 = vsel %vm483_vm7, %v3320_v40, %v3303_v48  ;;  %v3273_v21 = vsel %vm483_vm7, %v3265_v19, %v3272_v4  ;;  %v3268_v43 = vrot.slane %v3249_v44, 4 }
 0x94f   :  { %v12378_v13 = vpop.eup %10657  ;;  %v3267_v58 = vsel %vm483_vm7, %v3266_v5, %v3249_v44  ;;  %v3756_v47 = vpack.c.bf16 %v3321_v32, %v3321_v32  ;;  %v3761_v31 = vpack.c.bf16 %v3273_v21, %v3273_v21  ;;  %v3840_v6 = vunpack.c.l.b16 %v3762_v26 }
 0x950   :  { %v3728_v51 = vsel %vm3658_vm4, %v12378_v13, 0.0  ;;  %v3817_v18 = vunpack.c.l.b16 %v3759_v16  ;;  %v3755_v27 = vpack.c.bf16 %v3267_v58, %v3267_v58  ;;  %v3322_v38 = vrot.slane %v3303_v48, 4 }
 0x951   :  { %3729 = vadd.xlane.f32.xlu0 %v3728_v51  ;;  %v3121_v14 = vsel %vm483_vm7, %v12313_v9, %v10440_v3  ;;  %v3774_v23 = vunpack.c.l.b16 %v3756_v47  ;;  %v3839_v33 = vunpack.c.l.b16 %v3761_v31  ;;  %v3269_v37 = vsel %vm483_vm7, %v3261_v28, %v3268_v43 }
 0x952   :  { %v3819_v45 = vpack.c.b16 %v3818_v34, %v3817_v18  ;;  %v3773_v12 = vunpack.c.l.b16 %v3755_v27  ;;  %v3323_v41 = vsel %vm483_vm7, %v3315_v42, %v3322_v38  ;;  %v3757_v61 = vpack.c.bf16 %v3269_v37, %v3269_v37 }
 0x953   :  { %v3177_v46 = vsel %vm483_vm7, %v12311_v53, %v10441_v49  ;;  %v3841_v19 = vpack.c.b16 %v3840_v6, %v3839_v33  ;;  %v3758_v30 = vpack.c.bf16 %v3323_v41, %v3323_v41  ;;  %v3166_v35 = vrot.slane %v12234_v0, 4 }
 0x954   :  { %v3131_v3 = vperm.slane %v12324_v36, %v11192_v10  ;;  %v3187_v9 = vperm.slane %v12344_v15, %v11192_v10  ;;  %3831 = vmatpush.bf16.msrb.mxu1 %v3819_v45  ;;  %v3775_v56 = vpack.c.b16 %v3774_v23, %v3773_v12  ;;  %v3795_v39 = vunpack.c.l.b16 %v3757_v61 }
 0x955   :  { %v3127_v29 = vperm.slane %v3121_v14, %v11192_v10  ;;  %3853 = vmatpush.bf16.msrb.mxu2 %v3841_v19  ;;  %v3796_v11 = vunpack.c.l.b16 %v3758_v30  ;;  %v3183_v53 = vperm.slane %v3177_v46, %v11192_v10  ;;  %v3110_v57 = vrot.slane %v12232_v22, 4 }
 0x956   :  { %3787 = vmatpush.bf16.msra.mxu3 %v3775_v56  ;;  %v3144_v48 = vrot.slane %v3131_v3, 4  ;;  %v3200_v34 = vrot.slane %v3187_v9, 4 }
 0x957   :  { %v10444_v42 = vpop.permute.xlu0 %10443  ;;  %v3797_v52 = vpack.c.b16 %v3796_v11, %v3795_v39  ;;  %v3132_v4 = vrot.slane %v3127_v29, 4  ;;  %v3188_v26 = vrot.slane %v3183_v53, 4 }
 0x958   :  { %v10446_v20 = vunpack.i.h.bf16 %v10444_v42  ;;  %v10445_v49 = vunpack.i.l.bf16 %v10444_v42 }
 0x959   :  { %3809 = vmatpush.bf16.msrb.mxu0 %v3797_v52 }
 0x95a   :  { %v3164_v36 = vrot.slane %v10446_v20, 4  ;;  %v3167_v28 = vsel %vm483_vm7, %v10446_v20, %v3166_v35  ;;  %v3108_v15 = vrot.slane %v10445_v49, 4  ;;  %v3111_v40 = vsel %vm483_vm7, %v10445_v49, %v3110_v57 }
 0x95b   :  { %v3175_v44 = vperm.slane %v3167_v28, %v11192_v10  ;;  %v3119_v25 = vperm.slane %v3111_v40, %v11192_v10 }
 0x95c   :  { %v3165_v50 = vsel %vm483_vm7, %v3164_v36, %v12234_v0  ;;  %v3109_v5 = vsel %vm483_vm7, %v3108_v15, %v12232_v22 }
 0x95d   :  { %v3171_v51 = vperm.slane %v3165_v50, %v11192_v10  ;;  %v3202_v16 = vrot.slane %v3175_v44, 4  ;;  %v3115_v32 = vperm.slane %v3109_v5, %v11192_v10  ;;  %v3201_v21 = vsel %vm483_vm7, %v3200_v34, %v3175_v44 }
 0x95e   :  { %v3145_v58 = vsel %vm483_vm7, %v3144_v48, %v3119_v25  ;;  %v3146_v47 = vrot.slane %v3119_v25, 4  ;;  %v3207_v31 = vperm.slane %v3201_v21, %v11200_v24 }
 0x95f   :  { %v3190_v43 = vrot.slane %v3171_v51, 4  ;;  %v3133_v0 = vsel %vm483_vm7, %v3132_v4, %v3115_v32  ;;  %v3134_v18 = vrot.slane %v3115_v32, 4  ;;  %v3151_v22 = vperm.slane %v3145_v58, %v11200_v24 }
 0x960   :  { %v3139_v27 = vperm.slane %v3133_v0, %v11200_v24  ;;  %v3147_v6 = vsel %vm483_vm7, %v3131_v3, %v3146_v47  ;;  %v3189_v38 = vsel %vm483_vm7, %v3188_v26, %v3171_v51  ;;  %v3203_v14 = vsel %vm483_vm7, %v3187_v9, %v3202_v16 }
 0x961   :  { %v3135_v23 = vsel %vm483_vm7, %v3127_v29, %v3134_v18  ;;  %v3155_v33 = vperm.slane %v3147_v6, %v11200_v24  ;;  %v3160_v37 = vrot.slane %v3151_v22, 4  ;;  %v3191_v45 = vsel %vm483_vm7, %v3183_v53, %v3190_v43 }
 0x962   :  { %v3143_v12 = vperm.slane %v3135_v23, %v11200_v24  ;;  %v3156_v41 = vrot.slane %v3139_v27, 4  ;;  %v3195_v61 = vperm.slane %v3189_v38, %v11200_v24  ;;  %v3199_v46 = vperm.slane %v3191_v45, %v11200_v24 }
 0x963   :  { %v3161_v19 = vsel %vm483_vm7, 0.0, %v3160_v37  ;;  %v3162_v30 = vrot.slane %v3155_v33, 4  ;;  %v3211_v35 = vperm.slane %v3203_v14, %v11200_v24  ;;  %v3216_v3 = vrot.slane %v3207_v31, 4 }
 0x964   :  { %v3157_v9 = vsel %vm483_vm7, 0.0, %v3156_v41  ;;  %v3158_v56 = vrot.slane %v3143_v12, 4  ;;  %v3212_v39 = vrot.slane %v3195_v61, 4  ;;  %v3214_v42 = vrot.slane %v3199_v46, 4 }
 0x965   :  { %v3163_v29 = vsel %vm483_vm7, 0.0, %v3162_v30  ;;  %v3217_v11 = vsel %vm483_vm7, 0.0, %v3216_v3  ;;  %v3218_v20 = vrot.slane %v3211_v35, 4  ;;  %v3339_v49 = vsel %vm483_vm7, %v3162_v30, %v3151_v22 }
 0x966   :  { %v3159_v53 = vsel %vm483_vm7, 0.0, %v3158_v56  ;;  %v3213_v57 = vsel %vm483_vm7, 0.0, %v3212_v39  ;;  %v3215_v52 = vsel %vm483_vm7, 0.0, %v3214_v42  ;;  %v3328_v36 = vsel %vm483_vm7, %v3158_v56, %v3139_v27 }
 0x967   :  { %v3219_v28 = vsel %vm483_vm7, 0.0, %v3218_v20  ;;  %v3332_v15 = vperm.slane %v3328_v36, %v11192_v10  ;;  %v3333_v48 = vrot.slane %v3159_v53, 4  ;;  %v3343_v34 = vperm.slane %v3339_v49, %v11192_v10 }
 0x968   :  { %v3344_v44 = vrot.slane %v3163_v29, 4  ;;  %v3382_v40 = vsel %vm483_vm7, %v3214_v42, %v3195_v61  ;;  %v3387_v4 = vrot.slane %v3215_v52, 4  ;;  %v3393_v50 = vsel %vm483_vm7, %v3218_v20, %v3207_v31 }
 0x969   :  { %v3334_v5 = vsel %vm483_vm7, %v3333_v48, %v3157_v9  ;;  %v3364_v25 = vrot.slane %v3343_v34, 4  ;;  %v3386_v51 = vperm.slane %v3382_v40, %v11192_v10  ;;  %v3397_v16 = vperm.slane %v3393_v50, %v11192_v10 }
 0x96a   :  { %v3345_v32 = vsel %vm483_vm7, %v3344_v44, %v3161_v19  ;;  %v3388_v21 = vsel %vm483_vm7, %v3387_v4, %v3213_v57  ;;  %v3398_v26 = vrot.slane %v3219_v28, 4  ;;  %v3338_v58 = vperm.slane %v3334_v5, %v11192_v10 }
 0x96b   :  { %v3349_v47 = vperm.slane %v3345_v32, %v11192_v10  ;;  %v3418_v43 = vrot.slane %v3397_v16, 4  ;;  %v3352_v0 = vrot.slane %v3332_v15, 4  ;;  %v3392_v31 = vperm.slane %v3388_v21, %v11192_v10 }
 0x96c   :  { %v3399_v18 = vsel %vm483_vm7, %v3398_v26, %v3217_v11  ;;  %v3406_v22 = vrot.slane %v3386_v51, 4  ;;  %v3350_v27 = vrot.slane %v3338_v58, 4 }
 0x96d   :  { %v3362_v6 = vrot.slane %v3349_v47, 4  ;;  %v3403_v38 = vperm.slane %v3399_v18, %v11192_v10  ;;  %v3353_v14 = vsel %vm483_vm7, %v3338_v58, %v3352_v0  ;;  %v3365_v23 = vsel %vm483_vm7, %v3349_v47, %v3364_v25 }
 0x96e   :  { %v3361_v33 = vperm.slane %v3353_v14, %v11200_v24  ;;  %v3373_v37 = vperm.slane %v3365_v23, %v11200_v24  ;;  %v3407_v45 = vsel %vm483_vm7, %v3392_v31, %v3406_v22  ;;  %v3351_v12 = vsel %vm483_vm7, %v3350_v27, %v3332_v15 }
 0x96f   :  { %v3416_v41 = vrot.slane %v3403_v38, 4  ;;  %v3415_v61 = vperm.slane %v3407_v45, %v11200_v24  ;;  %v3419_v46 = vsel %vm483_vm7, %v3403_v38, %v3418_v43  ;;  %v3357_v19 = vperm.slane %v3351_v12, %v11200_v24 }
 0x970   :  { %v3378_v30 = vrot.slane %v3373_v37, 4  ;;  %v3427_v35 = vperm.slane %v3419_v46, %v11200_v24  ;;  %v3363_v3 = vsel %vm483_vm7, %v3362_v6, %v3343_v34  ;;  %v3404_v9 = vrot.slane %v3392_v31, 4 }
 0x971   :  { %v3369_v56 = vperm.slane %v3363_v3, %v11200_v24  ;;  %v3417_v39 = vsel %vm483_vm7, %v3416_v41, %v3397_v16  ;;  %v3380_v42 = vrot.slane %v3361_v33, 4  ;;  %v3434_v29 = vrot.slane %v3415_v61, 4 }
 0x972   :  { %v3709_v11 = vpop.xlane.xlu1 %3708  ;;  %v3379_v20 = vsel %vm483_vm7, %v3378_v30, %v3361_v33  ;;  %v3432_v49 = vrot.slane %v3427_v35, 4  ;;  %v3405_v53 = vsel %vm483_vm7, %v3404_v9, %v3386_v51  ;;  %v3423_v57 = vperm.slane %v3417_v39, %v11200_v24 }
 0x973   :  { %10659 = vrcp.f32 %v3709_v11  ;;  %v3767_v52 = vpack.c.bf16 %v3379_v20, %v3379_v20  ;;  %v3374_v36 = vrot.slane %v3369_v56, 4  ;;  %v3411_v28 = vperm.slane %v3405_v53, %v11200_v24 }
 0x974   :  { %v3433_v15 = vsel %vm483_vm7, %v3432_v49, %v3415_v61  ;;  %v3428_v48 = vrot.slane %v3423_v57, 4  ;;  %v3381_v34 = vsel %vm483_vm7, %v3373_v37, %v3380_v42  ;;  %v3435_v44 = vsel %vm483_vm7, %v3427_v35, %v3434_v29 }
 0x975   :  { %v3768_v40 = vpack.c.bf16 %v3433_v15, %v3433_v15  ;;  %v3905_v4 = vunpack.c.l.b16 %v3767_v52  ;;  %v3375_v50 = vsel %vm483_vm7, %v3374_v36, %v3357_v19  ;;  %v3769_v5 = vpack.c.bf16 %v3381_v34, %v3381_v34 }
 0x976   :  { %v3429_v25 = vsel %vm483_vm7, %v3428_v48, %v3411_v28  ;;  %v3763_v51 = vpack.c.bf16 %v3375_v50, %v3375_v50  ;;  %v3770_v16 = vpack.c.bf16 %v3435_v44, %v3435_v44  ;;  %v3376_v32 = vrot.slane %v3357_v19, 4 }
 0x977   :  { %v3906_v21 = vunpack.c.l.b16 %v3768_v40  ;;  %v3764_v26 = vpack.c.bf16 %v3429_v25, %v3429_v25  ;;  %v3927_v58 = vunpack.c.l.b16 %v3769_v5  ;;  %v3430_v47 = vrot.slane %v3411_v28, 4 }
 0x978   :  { %v3861_v43 = vunpack.c.l.b16 %v3763_v51  ;;  %v3928_v0 = vunpack.c.l.b16 %v3770_v16  ;;  %v3377_v31 = vsel %vm483_vm7, %v3369_v56, %v3376_v32 }
 0x979   :  { %v10660_v18 = vpop.eup %10659  ;;  %v3907_v22 = vpack.c.b16 %v3906_v21, %v3905_v4  ;;  %v3862_v27 = vunpack.c.l.b16 %v3764_v26  ;;  %v3431_v6 = vsel %vm483_vm7, %v3423_v57, %v3430_v47  ;;  %v3765_v38 = vpack.c.bf16 %v3377_v31, %v3377_v31 }
 0x97a   :  { %v3739_v14 = vmul.f32 %v10660_v18, %v12250_v63  ;;  %v3929_v23 = vpack.c.b16 %v3928_v0, %v3927_v58  ;;  %v3766_v33 = vpack.c.bf16 %v3431_v6, %v3431_v6  ;;  %v3712_v37 = vpop.xlane.xlu1 %3711 }
 0x97b   :  { %3919 = vmatpush.bf16.msra.mxu1 %v3907_v22  ;;  %v3863_v45 = vpack.c.b16 %v3862_v27, %v3861_v43  ;;  %v3883_v12 = vunpack.c.l.b16 %v3765_v38  ;;  %10661 = vrcp.f32 %v3712_v37 }
 0x97c   :  { %v3747_v41 = vpack.c.bf16 %v3739_v14, %v3739_v14  ;;  %3941 = vmatpush.bf16.msra.mxu2 %v3929_v23  ;;  %v3884_v61 = vunpack.c.l.b16 %v3766_v33 }
 0x97d   :  { %3875 = vmatpush.bf16.msrb.mxu3 %v3863_v45 }
 0x97e   :  { %v3885_v46 = vpack.c.b16 %v3884_v61, %v3883_v12  ;;  %9535 = vmatmul.msk.bf16.vlgmr.msra.gmra.mxu3 %vm3658_vm4, %v3747_v41 }
 0x980   :  { %3897 = vmatpush.bf16.msra.mxu0 %v3885_v46 }
 0x981   :  { %v10662_v19 = vpop.eup %10661 }
 0x982   :  { %v3740_v30 = vmul.f32 %v10662_v19, %v12254_v7 }
 0x984   :  { %v3748_v35 = vpack.c.bf16 %v3740_v30, %v3740_v30 }
 0x986   :  { %v3715_v63 = vpop.xlane.xlu2 %3714  ;;  %9536 = vmatmul.msk.bf16.vlgmr.msrb.gmra.mxu0 %vm3658_vm4, %v3748_v35 }
 0x987   :  { %10663 = vrcp.f32 %v3715_v63 }
 0x98d   :  { %v10664_v3 = vpop.eup %10663 }
 0x98e   :  { %v3741_v9 = vmul.f32 %v10664_v3, %v12258_v62 }
 0x990   :  { %v3749_v56 = vpack.c.bf16 %v3741_v9, %v3741_v9 }
 0x992   :  { %9537 = vmatmul.msk.bf16.vlgmr.msrb.gmra.mxu1 %vm3658_vm4, %v3749_v56 }
 0x996   :  { %v3727_v39 = vpop.xlane.xlu1 %3726 }
 0x997   :  { %10665 = vrcp.f32 %v3727_v39 }
 0x999   :  { %v3721_v42 = vpop.xlane.xlu2 %3720 }
 0x99a   :  { %10667 = vrcp.f32 %v3721_v42 }
 0x99d   :  { %v10666_v29 = vpop.eup %10665 }
 0x99e   :  { %v3745_v11 = vmul.f32 %v10666_v29, %v12263_v54 }
 0x9a0   :  { %v10668_v20 = vpop.eup %10667  ;;  %v3753_v7 = vpack.c.bf16 %v3745_v11, %v3745_v11 }
 0x9a1   :  { %v3743_v49 = vmul.f32 %v10668_v20, %v12267_v55  ;;  %v3724_v53 = vpop.xlane.xlu2 %3723  ;;  %v3718_v57 = vpop.xlane.xlu0 %3717 }
 0x9a2   :  { %10669 = vrcp.f32 %v3724_v53  ;;  %9541 = vmatmul.msk.bf16.vlgmr.msra.gmra.mxu1 %vm3658_vm4, %v3753_v7 }
 0x9a3   :  { %v3751_v62 = vpack.c.bf16 %v3743_v49, %v3743_v49  ;;  %10671 = vrcp.f32 %v3718_v57 }
 0x9a5   :  { %9539 = vmatmul.msk.bf16.vlgmr.msrb.gmra.mxu3 %vm3658_vm4, %v3751_v62 }
 0x9a8   :  { %v10670_v52 = vpop.eup %10669 }
 0x9a9   :  { %v10672_v36 = vpop.eup %10671  ;;  %v3744_v28 = vmul.f32 %v10670_v52, %v12271_v2 }
 0x9aa   :  { %v3742_v15 = vmul.f32 %v10672_v36, %v12273_v1 }
 0x9ab   :  { %v3752_v54 = vpack.c.bf16 %v3744_v28, %v3744_v28 }
 0x9ac   :  { %v3750_v48 = vpack.c.bf16 %v3742_v15, %v3742_v15 }
 0x9ad   :  { %9540 = vmatmul.msk.bf16.vlgmr.msra.gmra.mxu0 %vm3658_vm4, %v3752_v54 }
 0x9ae   :  { %9538 = vmatmul.msk.bf16.vlgmr.msrb.gmra.mxu2 %vm3658_vm4, %v3750_v48 }
 0x9c4   :  { %v3730_v55 = vpop.xlane.xlu0 %3729 }
 0x9c5   :  { %10673 = vrcp.f32 %v3730_v55 }
 0x9cb   :  { %v10674_v34 = vpop.eup %10673 }
 0x9cc   :  { %v3746_v44 = vmul.f32 %v10674_v34, %v12378_v13 }
 0x9ce   :  { %v3754_v40 = vpack.c.bf16 %v3746_v44, %v3746_v44 }
 0x9d0   :  { %9542 = vmatmul.msk.bf16.vlgmr.msra.gmra.mxu2 %vm3658_vm4, %v3754_v40 }
 0xa01   :  { %v3789_v4 = vpop.f32.mrf.mxu3 }
 0xa02   :  { %v3949_v25 = vrot.slane %v3789_v4, 4 }
 0xa03   :  { %v3811_v50 = vpop.f32.mrf.mxu0 }
 0xa04   :  { %v3961_v0 = vrot.slane %v3811_v50, 4 }
 0xa09   :  { %v3791_v5 = vpop.f32.mrf.mxu3 }
 0xa0b   :  { %v3813_v2 = vpop.f32.mrf.mxu0 }
 0xa0f   :  { %v3833_v1 = vpop.f32.mrf.mxu1 }
 0xa10   :  { %v3947_v51 = vrot.slane %v3833_v1, 4  ;;  %v3950_v16 = vsel %vm483_vm7, %v3833_v1, %v3949_v25 }
 0xa11   :  { %v3958_v43 = vperm.slane %v3950_v16, %v11192_v10 }
 0xa12   :  { %v3948_v32 = vsel %vm483_vm7, %v3947_v51, %v3789_v4 }
 0xa13   :  { %v3954_v18 = vperm.slane %v3948_v32, %v11192_v10  ;;  %v3985_v14 = vrot.slane %v3958_v43, 4 }
 0xa15   :  { %v3973_v37 = vrot.slane %v3954_v18, 4 }
 0xa17   :  { %v3835_v21 = vpop.f32.mrf.mxu1 }
 0xa1f   :  { %v12498_v26 = vpop.f32.mrf.mxu1 }
 0xa27   :  { %v3923_v58 = vpop.f32.mrf.mxu1 }
 0xa28   :  { %v12500_v47 = vpop.f32.mrf.mxu3 }
 0xa2a   :  { %v12502_v13 = vpop.f32.mrf.mxu0 }
 0xa30   :  { %v3879_v31 = vpop.f32.mrf.mxu3 }
 0xa31   :  { %v3855_v22 = vpop.f32.mrf.mxu2 }
 0xa32   :  { %v3959_v27 = vrot.slane %v3855_v22, 4  ;;  %v3962_v6 = vsel %vm483_vm7, %v3855_v22, %v3961_v0  ;;  %v3901_v38 = vpop.f32.mrf.mxu0 }
 0xa33   :  { %v3970_v23 = vperm.slane %v3962_v6, %v11192_v10  ;;  %v4005_v38 = vrot.slane %v12500_v47, 4 }
 0xa34   :  { %v3960_v33 = vsel %vm483_vm7, %v3959_v27, %v3811_v50 }
 0xa35   :  { %v3966_v45 = vperm.slane %v3960_v33, %v11192_v10  ;;  %v3983_v12 = vrot.slane %v3970_v23, 4  ;;  %v3986_v41 = vsel %vm483_vm7, %v3970_v23, %v3985_v14  ;;  %v4003_v14 = vrot.slane %v12498_v26, 4 }
 0xa36   :  { %v3994_v61 = vperm.slane %v3986_v41, %v11200_v24  ;;  %v4006_v23 = vsel %vm483_vm7, %v12498_v26, %v4005_v38 }
 0xa37   :  { %v3971_v46 = vrot.slane %v3966_v45, 4  ;;  %v3974_v19 = vsel %vm483_vm7, %v3966_v45, %v3973_v37  ;;  %v3984_v30 = vsel %vm483_vm7, %v3983_v12, %v3958_v43  ;;  %v4004_v33 = vsel %vm483_vm7, %v4003_v14, %v12500_v47 }
 0xa38   :  { %v3982_v35 = vperm.slane %v3974_v19, %v11200_v24  ;;  %v3990_v63 = vperm.slane %v3984_v30, %v11200_v24  ;;  %v4001_v3 = vrot.slane %v3994_v61, 4  ;;  %v4014_v37 = vperm.slane %v4006_v23, %v11192_v10 }
 0xa39   :  { %v3972_v9 = vsel %vm483_vm7, %v3971_v46, %v3954_v18  ;;  %v3857_v56 = vpop.f32.mrf.mxu2  ;;  %v4017_v45 = vrot.slane %v12502_v13, 4  ;;  %v4010_v12 = vperm.slane %v4004_v33, %v11192_v10 }
 0xa3a   :  { %v3978_v39 = vperm.slane %v3972_v9, %v11200_v24  ;;  %v3997_v42 = vrot.slane %v3982_v35, 4  ;;  %v3999_v29 = vrot.slane %v3990_v63, 4  ;;  %v4002_v11 = vsel %vm483_vm7, 0.0, %v4001_v3 }
 0xa3b   :  { %v4070_v20 = vsel %vm483_vm7, %v4001_v3, %v3990_v63  ;;  %v4075_v7 = vrot.slane %v4002_v11, 4  ;;  %v4041_v19 = vrot.slane %v4014_v37, 4  ;;  %v4029_v26 = vrot.slane %v4010_v12, 4 }
 0xa3c   :  { %v3995_v49 = vrot.slane %v3978_v39, 4  ;;  %v3998_v53 = vsel %vm483_vm7, 0.0, %v3997_v42  ;;  %v4000_v57 = vsel %vm483_vm7, 0.0, %v3999_v29  ;;  %v4074_v62 = vperm.slane %v4070_v20, %v11192_v10 }
 0xa3d   :  { %v4064_v52 = vrot.slane %v3998_v53, 4  ;;  %v4059_v36 = vsel %vm483_vm7, %v3997_v42, %v3978_v39  ;;  %v4076_v28 = vsel %vm483_vm7, %v4075_v7, %v4000_v57 }
 0xa3e   :  { %v3996_v15 = vsel %vm483_vm7, 0.0, %v3995_v49  ;;  %v4063_v54 = vperm.slane %v4059_v36, %v11192_v10  ;;  %v4080_v48 = vperm.slane %v4076_v28, %v11192_v10  ;;  %v4095_v55 = vrot.slane %v4074_v62, 4 }
 0xa3f   :  { %v4065_v34 = vsel %vm483_vm7, %v4064_v52, %v3996_v15 }
 0xa40   :  { %v4069_v44 = vperm.slane %v4065_v34, %v11192_v10  ;;  %v4083_v40 = vrot.slane %v4063_v54, 4  ;;  %v4096_v4 = vsel %vm483_vm7, %v4080_v48, %v4095_v55  ;;  %v4093_v50 = vrot.slane %v4080_v48, 4 }
 0xa41   :  { %v4104_v5 = vperm.slane %v4096_v4, %v11200_v24 }
 0xa42   :  { %v4081_v2 = vrot.slane %v4069_v44, 4  ;;  %v4084_v25 = vsel %vm483_vm7, %v4069_v44, %v4083_v40  ;;  %v4094_v1 = vsel %vm483_vm7, %v4093_v50, %v4074_v62 }
 0xa43   :  { %v4092_v51 = vperm.slane %v4084_v25, %v11200_v24  ;;  %v4109_v16 = vrot.slane %v4104_v5, 4  ;;  %v4100_v32 = vperm.slane %v4094_v1, %v11200_v24 }
 0xa44   :  { %v4082_v21 = vsel %vm483_vm7, %v4081_v2, %v4063_v54 }
 0xa45   :  { %v12538_v58 = vsel %vm483_vm7, %v4109_v16, %v4092_v51  ;;  %v4111_v43 = vrot.slane %v4092_v51, 4  ;;  %v4088_v0 = vperm.slane %v4082_v21, %v11200_v24  ;;  %v4105_v31 = vrot.slane %v4100_v32, 4 }
 0xa47   :  { %v12542_v18 = vsel %vm483_vm7, %v4104_v5, %v4111_v43  ;;  %v4107_v22 = vrot.slane %v4088_v0, 4  ;;  %v12545_v27 = vsel %vm483_vm7, %v4105_v31, %v4088_v0 }
 0xa49   :  { %v12548_v6 = vsel %vm483_vm7, %v4100_v32, %v4107_v22 }
 0xa53   :  { %v3943_v41 = vpop.f32.mrf.mxu2 }
 0xa54   :  { %v4015_v61 = vrot.slane %v3943_v41, 4  ;;  %v4018_v46 = vsel %vm483_vm7, %v3943_v41, %v4017_v45 }
 0xa55   :  { %v4026_v30 = vperm.slane %v4018_v46, %v11192_v10 }
 0xa56   :  { %v4016_v35 = vsel %vm483_vm7, %v4015_v61, %v12502_v13 }
 0xa57   :  { %v4022_v63 = vperm.slane %v4016_v35, %v11192_v10  ;;  %v4039_v47 = vrot.slane %v4026_v30, 4  ;;  %v4042_v3 = vsel %vm483_vm7, %v4026_v30, %v4041_v19 }
 0xa58   :  { %v4050_v9 = vperm.slane %v4042_v3, %v11200_v24  ;;  %v10209_v3 = vld [vmem:[#allocation8 + $0x18] sm:$0xff] }
 0xa59   :  { %v4027_v56 = vrot.slane %v4022_v63, 4  ;;  %v4030_v39 = vsel %vm483_vm7, %v4022_v63, %v4029_v26  ;;  %v4040_v42 = vsel %vm483_vm7, %v4039_v47, %v4014_v37  ;;  %v10213_v26 = vld [vmem:[#allocation8 + $0x38] sm:$0xff]  ;;  %v10211_v63 = vld [vmem:[#allocation8 + $0x28] sm:$0xff]  ;;  %v10210_v47 = vld [vmem:[#allocation8 + $0x20] sm:$0xff] }
 0xa5a   :  { %v4038_v29 = vperm.slane %v4030_v39, %v11200_v24  ;;  %v4046_v11 = vperm.slane %v4040_v42, %v11200_v24  ;;  %v4057_v20 = vrot.slane %v4050_v9, 4  ;;  %4262 = vmatpush.bf16.msra.mxu3 %v10213_v26  ;;  %v10208_v9 = vld [vmem:[#allocation8 + $0x10] sm:$0xff] }
 0xa5b   :  { %v4028_v13 = vsel %vm483_vm7, %v4027_v56, %v4010_v12  ;;  %v3945_v7 = vpop.f32.mrf.mxu2  ;;  %v10206_v56 = vld [vmem:[#allocation8] sm:$0xff] }
 0xa5c   :  { %v4034_v49 = vperm.slane %v4028_v13, %v11200_v24  ;;  %v4053_v53 = vrot.slane %v4038_v29, 4  ;;  %v4055_v57 = vrot.slane %v4046_v11, 4  ;;  %v4058_v62 = vsel %vm483_vm7, 0.0, %v4057_v20 }
 0xa5d   :  { %v4124_v52 = vsel %vm483_vm7, %v4057_v20, %v4046_v11  ;;  %v4129_v36 = vrot.slane %v4058_v62, 4 }
 0xa5e   :  { %v4051_v28 = vrot.slane %v4034_v49, 4  ;;  %v4054_v15 = vsel %vm483_vm7, 0.0, %v4053_v53  ;;  %v4056_v54 = vsel %vm483_vm7, 0.0, %v4055_v57  ;;  %v4128_v48 = vperm.slane %v4124_v52, %v11192_v10 }
 0xa5f   :  { %v4118_v55 = vrot.slane %v4054_v15, 4  ;;  %v4113_v34 = vsel %vm483_vm7, %v4053_v53, %v4034_v49  ;;  %v4130_v44 = vsel %vm483_vm7, %v4129_v36, %v4056_v54  ;;  %v10585_v54 = vld [vmem:[%s14182_s16] ss:$0 sm:$0xff] }
 0xa60   :  { %v4052_v40 = vsel %vm483_vm7, 0.0, %v4051_v28  ;;  %v4117_v4 = vperm.slane %v4113_v34, %v11192_v10  ;;  %v4134_v50 = vperm.slane %v4130_v44, %v11192_v10  ;;  %v4149_v5 = vrot.slane %v4128_v48, 4 }
 0xa61   :  { %v4119_v2 = vsel %vm483_vm7, %v4118_v55, %v4052_v40 }
 0xa62   :  { %v4123_v25 = vperm.slane %v4119_v2, %v11192_v10  ;;  %v4137_v1 = vrot.slane %v4117_v4, 4  ;;  %v4150_v51 = vsel %vm483_vm7, %v4134_v50, %v4149_v5  ;;  %v4147_v16 = vrot.slane %v4134_v50, 4 }
 0xa63   :  { %v4158_v32 = vperm.slane %v4150_v51, %v11200_v24  ;;  %v9633_v51 = vld [vmem:[#allocation10 + $0x70] sm:$0xf] }
 0xa64   :  { %v4138_v21 = vsel %vm483_vm7, %v4123_v25, %v4137_v1  ;;  %v4135_v43 = vrot.slane %v4123_v25, 4  ;;  %v4148_v0 = vsel %vm483_vm7, %v4147_v16, %v4128_v48  ;;  %v10229_v16 = vld [vmem:[#allocation10 + $0x74] sm:$0xf0] }
 0xa65   :  { %v4146_v31 = vperm.slane %v4138_v21, %v11200_v24  ;;  %v4163_v22 = vrot.slane %v4158_v32, 4  ;;  %v4154_v38 = vperm.slane %v4148_v0, %v11200_v24  ;;  %v9634_v21 = vor.u32 %v10229_v16, %v9633_v51  ;;  %v9577_v51 = vld [vmem:[#allocation10] sm:$0xf]  ;;  %v10215_v16 = vld [vmem:[#allocation10 + $0x4] sm:$0xf0] }
 0xa66   :  { %v4136_v14 = vsel %vm483_vm7, %v4135_v43, %v4117_v4  ;;  %v9635_v43 = vld [vmem:[#allocation10 + $0x78] sm:$0xf0] }
 0xa67   :  { %v4164_v23 = vsel %vm483_vm7, %v4163_v22, %v4146_v31  ;;  %v4165_v33 = vrot.slane %v4146_v31, 4  ;;  %v4142_v37 = vperm.slane %v4136_v14, %v11200_v24  ;;  %v4159_v45 = vrot.slane %v4154_v38, 4  ;;  %4439 = vmatpush.bf16.msrb.mxu0 %v9634_v21  ;;  %v9625_v31 = vld [vmem:[#allocation10 + $0x60] sm:$0xf]  ;;  %v10227_v22 = vld [vmem:[#allocation10 + $0x64] sm:$0xf0] }
 0xa68   :  { %v10457_v12 = vpack.i.bf16 %v4164_v23, %v12538_v58  ;;  %v10212_v58 = vld [vmem:[#allocation8 + $0x30] sm:$0xff]  ;;  %v9626_v14 = vor.u32 %v10227_v22, %v9625_v31  ;;  %v9627_v23 = vld [vmem:[#allocation10 + $0x68] sm:$0xf0]  ;;  %v9578_v22 = vor.u32 %v10215_v16, %v9577_v51 }
 0xa69   :  { %v4166_v41 = vsel %vm483_vm7, %v4158_v32, %v4165_v33  ;;  %v4161_v61 = vrot.slane %v4142_v37, 4  ;;  %v4160_v46 = vsel %vm483_vm7, %v4159_v45, %v4142_v37  ;;  %4263 = vmatpush.bf16.msra.mxu3 %v10212_v58  ;;  %v10228_v32 = vld [vmem:[#allocation10 + $0x74] sm:$0xf]  ;;  %v9617_v37 = vld [vmem:[#allocation10 + $0x50] sm:$0xf] }
 0xa6a   :  { %10458 = vrot.lane.b32.xlu1 %v10457_v12, %s10948_s9  ;;  %v10462_v19 = vpack.i.bf16 %v4166_v41, %v12542_v18  ;;  %v10207_v18 = vld [vmem:[#allocation8 + $0x8] sm:$0xff]  ;;  %v9638_v0 = vor.u32 %v10228_v32, %v9635_v43  ;;  %v10225_v45 = vld [vmem:[#allocation10 + $0x54] sm:$0xf0]  ;;  %v10224_v12 = vld [vmem:[#allocation10 + $0x54] sm:$0xf] }
 0xa6b   :  { %v4162_v30 = vsel %vm483_vm7, %v4154_v38, %v4161_v61  ;;  %v10226_v38 = vld [vmem:[#allocation10 + $0x64] sm:$0xf]  ;;  %4440 = vmatpush.bf16.msrb.mxu0 %v9626_v14  ;;  %v9618_v61 = vor.u32 %v10225_v45, %v9617_v37  ;;  %v10243_v32 = vld [vmem:[#allocation11 + $0x68] sm:$0xff] }
 0xa6c   :  { %10463 = vrot.lane.b32.xlu2 %v10462_v19, %s10961_s28  ;;  %v10452_v35 = vpack.i.bf16 %v4162_v30, %v12548_v6  ;;  %4453 = vmatpush.bf16.msrb.mxu1 %v9638_v0  ;;  %v9630_v33 = vor.u32 %v10226_v38, %v9627_v23  ;;  %v9609_v19 = vld [vmem:[#allocation10 + $0x40] sm:$0xf]  ;;  %v10223_v30 = vld [vmem:[#allocation10 + $0x44] sm:$0xf0]  ;;  %v10222_v58 = vld [vmem:[#allocation10 + $0x44] sm:$0xf] }
 0xa6d   :  { %4264 = vmatpush.bf16.msra.mxu3 %v10211_v63  ;;  %v9611_v63 = vld [vmem:[#allocation10 + $0x48] sm:$0xf0]  ;;  %v10214_v43 = vld [vmem:[#allocation10 + $0x4] sm:$0xf] }
 0xa6e   :  { %10453 = vrot.lane.b32.xlu0 %v10452_v35, %s10960_s27  ;;  %v9579_v0 = vld [vmem:[#allocation10 + $0x8] sm:$0xf0]  ;;  %v10234_v38 = vld [vmem:[#allocation11 + $0x20] sm:$0xff] }
 0xa6f   :  { %4441 = vmatpush.bf16.msrb.mxu0 %v9618_v61  ;;  %v9582_v23 = vor.u32 %v10214_v43, %v9579_v0 }
 0xa70   :  { %4454 = vmatpush.bf16.msrb.mxu1 %v9630_v33  ;;  %v10242_v33 = vld [vmem:[#allocation11 + $0x60] sm:$0xff] }
 0xa71   :  { %4265 = vmatpush.bf16.msra.mxu3 %v10210_v47  ;;  %v9610_v47 = vor.u32 %v10223_v30, %v9609_v19  ;;  %v10586_v30 = vld [vmem:[%s14183_s17] ss:$0 sm:$0xff] }
 0xa73   :  { %4442 = vmatpush.bf16.msrb.mxu0 %v9610_v47  ;;  %v10587_v47 = vld [vmem:[%s14184_s18] ss:$0 sm:$0xff] }
 0xa75   :  { %4266 = vmatpush.bf16.msra.mxu3 %v10209_v3 }
 0xa79   :  { %4267 = vmatpush.bf16.msra.mxu3 %v10208_v9  ;;  %v9614_v9 = vor.u32 %v10222_v58, %v9611_v63 }
 0xa7d   :  { %4268 = vmatpush.bf16.msra.mxu3 %v10207_v18  ;;  %v9601_v18 = vld [vmem:[#allocation10 + $0x30] sm:$0xf] }
 0xa81   :  { %4269 = vmatpush.bf16.msra.mxu3 %v10206_v56  ;;  %v10221_v56 = vld [vmem:[#allocation10 + $0x34] sm:$0xf0] }
 0xac6   :  { %v10464_v6 = vpop.permute.xlu2 %10463 }
 0xac7   :  { %v10466_v7 = vunpack.i.h.bf16 %v10464_v6  ;;  %v10465_v49 = vunpack.i.l.bf16 %v10464_v6  ;;  %v9603_v6 = vld [vmem:[#allocation10 + $0x38] sm:$0xf0] }
 0xadc   :  { %v10459_v39 = vpop.permute.xlu1 %10458 }
 0xadd   :  { %v10461_v20 = vunpack.i.h.bf16 %v10459_v39  ;;  %v10460_v13 = vunpack.i.l.bf16 %v10459_v39  ;;  %v10220_v39 = vld [vmem:[#allocation10 + $0x34] sm:$0xf] }
 0xae0   :  { %v10454_v42 = vpop.permute.xlu0 %10453 }
 0xae1   :  { %v10456_v29 = vunpack.i.h.bf16 %v10454_v42  ;;  %v10455_v11 = vunpack.i.l.bf16 %v10454_v42  ;;  %v9602_v42 = vor.u32 %v10221_v56, %v9601_v18 }
 0xae3   :  { %v4191_v53 = vsel %vm1199_vm8, %v12545_v27, %v10455_v11  ;;  %v4192_v57 = vsel %vm1199_vm8, %v4160_v46, %v10456_v29  ;;  %v9619_v46 = vld [vmem:[#allocation10 + $0x58] sm:$0xf0]  ;;  %v9606_v29 = vor.u32 %v10220_v39, %v9603_v6  ;;  %v9593_v11 = vld [vmem:[#allocation10 + $0x20] sm:$0xf]  ;;  %4443 = vmatpush.bf16.msrb.mxu0 %v9602_v42  ;;  %v10232_v6 = vld [vmem:[#allocation11 + $0x10] sm:$0xff] }
 0xae4   :  { %v4193_v62 = vsel %vm1856_vm12, %v4191_v53, %v10460_v13  ;;  %v4194_v52 = vsel %vm1856_vm12, %v4192_v57, %v10461_v20  ;;  %v9622_v26 = vor.u32 %v10224_v12, %v9619_v46  ;;  %v10219_v20 = vld [vmem:[#allocation10 + $0x24] sm:$0xf0]  ;;  %v10218_v13 = vld [vmem:[#allocation10 + $0x24] sm:$0xf]  ;;  %v10237_v53 = vld [vmem:[#allocation11 + $0x38] sm:$0xff] }
 0xae5   :  { %v4195_v36 = vsel %vm1859_vm13, %v4193_v62, %v10465_v49  ;;  %v4196_v28 = vsel %vm1859_vm13, %v4194_v52, %v10466_v7  ;;  %v9595_v49 = vld [vmem:[#allocation10 + $0x28] sm:$0xf0]  ;;  %v10245_v57 = vld [vmem:[#allocation11 + $0x78] sm:$0xff]  ;;  %v9594_v52 = vor.u32 %v10219_v20, %v9593_v11  ;;  %4601 = vmatpush.bf16.msrb.mxu2 %v10237_v53  ;;  %v10240_v42 = vld [vmem:[#allocation11 + $0x50] sm:$0xff] }
 0xae6   :  { %v4197_v15 = vpack.c.bf16 %v4196_v28, %v4195_v36  ;;  %4455 = vmatpush.bf16.msrb.mxu1 %v9622_v26  ;;  %v9585_v36 = vld [vmem:[#allocation10 + $0x10] sm:$0xf]  ;;  %4615 = vmatpush.bf16.msrb.mxu3 %v10245_v57  ;;  %v10241_v39 = vld [vmem:[#allocation11 + $0x58] sm:$0xff]  ;;  %v10230_v11 = vld [vmem:[#allocation11] sm:$0xff] }
 0xae7   :  { %v10236_v28 = vld [vmem:[#allocation11 + $0x30] sm:$0xff]  ;;  %4444 = vmatpush.bf16.msrb.mxu0 %v9594_v52  ;;  %v10238_v20 = vld [vmem:[#allocation11 + $0x40] sm:$0xff] }
 0xae8   :  { %4270 = vmatmul.bf16.vlgmr.msra.gmra.mxu3 %v4197_v15 }
 0xae9   :  { %4602 = vmatpush.bf16.msrb.mxu2 %v10236_v28 }
 0xaea   :  { %4456 = vmatpush.bf16.msrb.mxu1 %v9614_v9 }
 0xaee   :  { %4457 = vmatpush.bf16.msrb.mxu1 %v9606_v29  ;;  %v10239_v29 = vld [vmem:[#allocation11 + $0x48] sm:$0xff] }
 0xb6b   :  { %v4271_v48 = vpop.f32.mrf.mxu3 }
 0xb6c   :  { %v4276_v55 = vadd.f32 %v4271_v48, %v11763_v59  ;;  %v9598_v48 = vor.u32 %v10218_v13, %v9595_v49  ;;  %v4353_v13 = vld [vmem:[%s14186_s20] sm:$0x3] }
 0xb6d   :  { %v4355_v53 = vperm.slane %v4353_v13, 0  ;;  %v4356_v57 = vperm.slane %v4353_v13, 1  ;;  %v9776_v13 = vld [vmem:[#allocation2 + $0x140] sm:$0xf] }
 0xb6e   :  { %v12613_v27 = vadd.f32 %v10585_v54, %v4276_v55  ;;  %v10217_v55 = vld [vmem:[#allocation10 + $0x14] sm:$0xf0]  ;;  %4458 = vmatpush.bf16.msrb.mxu1 %v9598_v48 }
 0xb70   :  { %4286 = vadd.xlane.f32.xlu0 %v12613_v27 }
 0xb73   :  { %v4273_v34 = vpop.f32.mrf.mxu3 }
 0xb74   :  { %v4277_v44 = vadd.f32 %v4273_v34, %v11769_v17  ;;  %v10244_v34 = vld [vmem:[#allocation11 + $0x70] sm:$0xff] }
 0xb75   :  { %4616 = vmatpush.bf16.msrb.mxu3 %v10244_v34 }
 0xb76   :  { %v12617_v40 = vadd.f32 %v10585_v54, %v4277_v44 }
 0xb78   :  { %4288 = vadd.xlane.f32.xlu1 %v12617_v40 }
 0xb79   :  { %4617 = vmatpush.bf16.msrb.mxu3 %v10243_v32 }
 0xb7d   :  { %4618 = vmatpush.bf16.msrb.mxu3 %v10242_v33 }
 0xb81   :  { %4619 = vmatpush.bf16.msrb.mxu3 %v10241_v39 }
 0xb85   :  { %4620 = vmatpush.bf16.msrb.mxu3 %v10240_v42  ;;  %v10262_v42 = vld [vmem:[#allocation2 + $0x140] sm:$0xf0] }
 0xb89   :  { %4621 = vmatpush.bf16.msrb.mxu3 %v10239_v29 }
 0xb8d   :  { %4622 = vmatpush.bf16.msrb.mxu3 %v10238_v20  ;;  %v9770_v20 = vld [vmem:[#allocation2 + $0x144] sm:$0xf0] }
 0xbe3   :  { %v4287_v4 = vpop.xlane.xlu0 %4286 }
 0xbe4   :  { %v4290_v50 = vmul.f32 %v4287_v4, %v11141_v8  ;;  %v10216_v4 = vld [vmem:[#allocation10 + $0x14] sm:$0xf] }
 0xbe6   :  { %v12622_v5 = vsub.f32 %v12613_v27, %v4290_v50  ;;  %v9587_v50 = vld [vmem:[#allocation10 + $0x18] sm:$0xf0] }
 0xbe8   :  { %v4294_v59 = vmul.f32 %v12622_v5, %v12622_v5 }
 0xbea   :  { %4296 = vadd.xlane.f32.xlu2 %v4294_v59 }
 0xbeb   :  { %v4289_v2 = vpop.xlane.xlu1 %4288 }
 0xbec   :  { %v4291_v25 = vmul.f32 %v4289_v2, %v11141_v8  ;;  %v9586_v2 = vor.u32 %v10217_v55, %v9585_v36 }
 0xbee   :  { %v12628_v1 = vsub.f32 %v12617_v40, %v4291_v25  ;;  %v10235_v25 = vld [vmem:[#allocation11 + $0x28] sm:$0xff]  ;;  %4445 = vmatpush.bf16.msrb.mxu0 %v9586_v2 }
 0xbef   :  { %4603 = vmatpush.bf16.msrb.mxu2 %v10235_v25 }
 0xbf0   :  { %v4295_v17 = vmul.f32 %v12628_v1, %v12628_v1 }
 0xbf2   :  { %4298 = vadd.xlane.f32.xlu0 %v4295_v17  ;;  %v9590_v17 = vor.u32 %v10216_v4, %v9587_v50  ;;  %4446 = vmatpush.bf16.msrb.mxu0 %v9578_v22 }
 0xbf3   :  { %4604 = vmatpush.bf16.msrb.mxu2 %v10234_v38 }
 0xbf4   :  { %4459 = vmatpush.bf16.msrb.mxu1 %v9590_v17  ;;  %v10588_v17 = vld [vmem:[%s14188_s22] ss:$0 sm:$0xff] }
 0xbf8   :  { %4460 = vmatpush.bf16.msrb.mxu1 %v9582_v23 }
 0xc5d   :  { %v4297_v41 = vpop.xlane.xlu2 %4296 }
 0xc5e   :  { %v4300_v35 = vmul.f32 %v4297_v41, %v11141_v8 }
 0xc60   :  { %v12633_v3 = vadd.f32 1e-05, %v4300_v35 }
 0xc62   :  { %10675 = vrsqrt.f32 %v12633_v3  ;;  %vm4310_vm6 = vweird.f32 %v12633_v3 }
 0xc65   :  { %v4299_v7 = vpop.xlane.xlu0 %4298 }
 0xc66   :  { %v4301_v62 = vmul.f32 %v4299_v7, %v11141_v8 }
 0xc68   :  { %v10676_v15 = vpop.eup %10675  ;;  %v4303_v54 = vadd.f32 1e-05, %v4301_v62 }
 0xc69   :  { %v4305_v44 = vmul.f32 %v10676_v15, %v12633_v3  ;;  %vm4311_vm5 = vweird.f32 %v10676_v15 }
 0xc6a   :  { %10677 = vrsqrt.f32 %v4303_v54  ;;  %vm4312_vm9 = vmor %vm4310_vm6, %vm4311_vm5  ;;  %vm4320_vm15 = vweird.f32 %v4303_v54 }
 0xc6b   :  { %v4306_v59 = vmul.f32 %v10676_v15, %v4305_v44 }
 0xc6d   :  { %v4307_v21 = vmul.f32 0.5, %v4306_v59 }
 0xc6f   :  { %v4308_v31 = vsub.f32 1.5, %v4307_v21 }
 0xc70   :  { %v10678_v14 = vpop.eup %10677 }
 0xc71   :  { %v4309_v37 = vmul.f32 %v10676_v15, %v4308_v31  ;;  %v4315_v45 = vmul.f32 %v10678_v14, %v4303_v54  ;;  %vm4321_vm14 = vweird.f32 %v10678_v14 }
 0xc72   :  { %vm4322_vm0 = vmor %vm4320_vm15, %vm4321_vm14 }
 0xc73   :  { %v4316_v12 = vmul.f32 %v10678_v14, %v4315_v45  ;;  %v4313_v41 = vsel %vm4312_vm9, %v10676_v15, %v4309_v37  ;;  %v9792_v45 = vld [vmem:[#allocation2 + $0x168] sm:$0xf] }
 0xc74   :  { %v4324_v19 = vmul.f32 %v4313_v41, %v12622_v5  ;;  %v10233_v5 = vld [vmem:[#allocation11 + $0x18] sm:$0xff]  ;;  %v10267_v41 = vld [vmem:[#allocation2 + $0x16c] sm:$0xf] }
 0xc75   :  { %v4317_v61 = vmul.f32 0.5, %v4316_v12  ;;  %4605 = vmatpush.bf16.msrb.mxu2 %v10233_v5  ;;  %v10268_v12 = vld [vmem:[#allocation2 + $0x170] sm:$0xf0] }
 0xc76   :  { %v4329_v63 = vmul.f32 %v10586_v30, %v4324_v19  ;;  %v9800_v19 = vld [vmem:[#allocation2 + $0x170] sm:$0xf] }
 0xc77   :  { %v4318_v46 = vsub.f32 1.5, %v4317_v61  ;;  %v9793_v61 = vor.u32 %v10268_v12, %v9792_v45  ;;  %v9720_v12 = vld [vmem:[#allocation2 + $0xd8] sm:$0xf] }
 0xc78   :  { %v4334_v9 = vadd.f32 %v10587_v47, %v4329_v63  ;;  %v10265_v63 = vld [vmem:[#allocation2 + $0x158] sm:$0xf0] }
 0xc79   :  { %v4319_v35 = vmul.f32 %v10678_v14, %v4318_v46  ;;  %4606 = vmatpush.bf16.msrb.mxu2 %v10232_v6  ;;  %v9794_v46 = vld [vmem:[#allocation2 + $0x174] sm:$0xf0]  ;;  %4862 = vmatpush.bf16.msra.mxu0 %v9793_v61 }
 0xc7a   :  { %v9768_v6 = vld [vmem:[#allocation2 + $0x138] sm:$0xf] }
 0xc7b   :  { %v4323_v26 = vsel %vm4322_vm0, %v10678_v14, %v4319_v35  ;;  %v9797_v35 = vor.u32 %v10267_v41, %v9794_v46 }
 0xc7c   :  { %v4325_v58 = vmul.f32 %v4323_v26, %v12628_v1  ;;  %v10231_v1 = vld [vmem:[#allocation11 + $0x8] sm:$0xff] }
 0xc7d   :  { %4607 = vmatpush.bf16.msrb.mxu2 %v10231_v1  ;;  %4876 = vmatpush.bf16.msra.mxu1 %v9797_v35  ;;  %v10261_v1 = vld [vmem:[#allocation2 + $0x13c] sm:$0xf] }
 0xc7e   :  { %v4330_v3 = vmul.f32 %v10586_v30, %v4325_v58  ;;  %v10269_v30 = vld [vmem:[#allocation2 + $0x178] sm:$0xf0]  ;;  %v9780_v58 = vld [vmem:[#allocation2 + $0x150] sm:$0xf] }
 0xc7f   :  { %v9801_v26 = vor.u32 %v10269_v30, %v9800_v19  ;;  %v10250_v30 = vld [vmem:[#allocation2 + $0xe0] sm:$0xf0]  ;;  %v10249_v35 = vld [vmem:[#allocation2 + $0xdc] sm:$0xf] }
 0xc80   :  { %v4335_v18 = vadd.f32 %v10587_v47, %v4330_v3  ;;  %v10264_v47 = vld [vmem:[#allocation2 + $0x154] sm:$0xf]  ;;  %v9781_v3 = vor.u32 %v10265_v63, %v9780_v58  ;;  %v9722_v58 = vld [vmem:[#allocation2 + $0xe4] sm:$0xf0]  ;;  %v9728_v63 = vld [vmem:[#allocation2 + $0xe0] sm:$0xf] }
 0xc81   :  { %4608 = vmatpush.bf16.msrb.mxu2 %v10230_v11  ;;  %v9769_v11 = vor.u32 %v10262_v42, %v9768_v6  ;;  %v10246_v6 = vld [vmem:[#allocation2 + $0xc4] sm:$0xf]  ;;  %v9710_v42 = vld [vmem:[#allocation2 + $0xcc] sm:$0xf0] }
 0xc82   :  { %v4336_v56 = vpack.c.bf16 %v4335_v18, %v4334_v9  ;;  %v9782_v9 = vld [vmem:[#allocation2 + $0x15c] sm:$0xf0]  ;;  %v9788_v18 = vld [vmem:[#allocation2 + $0x158] sm:$0xf]  ;;  %4863 = vmatpush.bf16.msra.mxu0 %v9781_v3 }
 0xc83   :  { %v9785_v5 = vor.u32 %v10264_v47, %v9782_v9  ;;  %v10251_v47 = vld [vmem:[#allocation2 + $0xe8] sm:$0xf0]  ;;  %v9721_v9 = vor.u32 %v10250_v30, %v9720_v12 }
 0xc84   :  { %4447 = vmatmul.bf16.vlgmr.msrb.gmra.mxu0 %v4336_v56  ;;  %4461 = vmatmul.bf16.vlgmr.msrb.gmra.mxu1 %v4336_v56  ;;  %v10266_v56 = vld [vmem:[#allocation2 + $0x160] sm:$0xf0] }
 0xc85   :  { %4890 = vmatpush.bf16.msra.mxu2 %v9801_v26  ;;  %v9789_v39 = vor.u32 %v10266_v56, %v9788_v18  ;;  %4877 = vmatpush.bf16.msra.mxu1 %v9785_v5  ;;  %v9708_v18 = vld [vmem:[#allocation2 + $0xc0] sm:$0xf]  ;;  %v9725_v56 = vor.u32 %v10249_v35, %v9722_v58  ;;  %v9729_v5 = vor.u32 %v10251_v47, %v9728_v63 }
 0xc86   :  { %4864 = vmatpush.bf16.msra.mxu0 %v9769_v11  ;;  %v10248_v11 = vld [vmem:[#allocation2 + $0xd0] sm:$0xf0] }
 0xc89   :  { %4891 = vmatpush.bf16.msra.mxu2 %v9789_v39  ;;  %v10247_v39 = vld [vmem:[#allocation2 + $0xc8] sm:$0xf0] }
 0xd01   :  { %v4448_v7 = vpop.f32.mrf.mxu0  ;;  %v4462_v49 = vpop.f32.mrf.mxu1 }
 0xd02   :  { %v4449_v62 = vadd.f32 %v4448_v7, %v4355_v53  ;;  %v4463_v52 = vadd.f32 %v4462_v49, %v4356_v57  ;;  %v10263_v7 = vld [vmem:[#allocation2 + $0x148] sm:$0xf0] }
 0xd04   :  { %v4467_v48 = vmax.f32 %v4449_v62, 0.0  ;;  %v4468_v55 = vmax.f32 %v4463_v52, 0.0  ;;  %v9756_v62 = vld [vmem:[#allocation2 + $0x120] sm:$0xf]  ;;  %v10259_v52 = vld [vmem:[#allocation2 + $0x128] sm:$0xf0] }
 0xd09   :  { %v4450_v36 = vpop.f32.mrf.mxu0  ;;  %v4464_v28 = vpop.f32.mrf.mxu1 }
 0xd0a   :  { %v4451_v15 = vadd.f32 %v4450_v36, %v4355_v53  ;;  %v4465_v54 = vadd.f32 %v4464_v28, %v4356_v57  ;;  %v9773_v53 = vor.u32 %v10261_v1, %v9770_v20  ;;  %v9777_v57 = vor.u32 %v10263_v7, %v9776_v13  ;;  %v10258_v36 = vld [vmem:[#allocation2 + $0x124] sm:$0xf] }
 0xd0b   :  { %v9757_v28 = vor.u32 %v10259_v52, %v9756_v62  ;;  %v9709_v13 = vor.u32 %v10247_v39, %v9708_v18 }
 0xd0c   :  { %v4469_v34 = vmax.f32 %v4451_v15, 0.0  ;;  %v4470_v44 = vmax.f32 %v4465_v54, 0.0  ;;  %v9758_v15 = vld [vmem:[#allocation2 + $0x12c] sm:$0xf0]  ;;  %v9764_v54 = vld [vmem:[#allocation2 + $0x128] sm:$0xf]  ;;  %4878 = vmatpush.bf16.msra.mxu1 %v9773_v53  ;;  %4892 = vmatpush.bf16.msra.mxu2 %v9777_v57 }
 0xd0d   :  { %4865 = vmatpush.bf16.msra.mxu0 %v9757_v28 }
 0xd0e   :  { %v4471_v4 = vpack.c.bf16 %v4469_v34, %v4467_v48  ;;  %v4472_v50 = vpack.c.bf16 %v4470_v44, %v4468_v55  ;;  %v10260_v48 = vld [vmem:[#allocation2 + $0x130] sm:$0xf0]  ;;  %v9761_v34 = vor.u32 %v10258_v36, %v9758_v15 }
 0xd0f   :  { %v9765_v44 = vor.u32 %v10260_v48, %v9764_v54  ;;  %v10589_v48 = vld [vmem:[%s14217_s0 + $0x1] ss:$0 sm:$0xff] }
 0xd10   :  { %4609 = vmatmul.bf16.vlgmr.msrb.gmra.mxu2 %v4471_v4  ;;  %4623 = vmatmul.bf16.vlgmr.msrb.gmra.mxu3 %v4472_v50  ;;  %v9744_v4 = vld [vmem:[#allocation2 + $0x108] sm:$0xf]  ;;  %v10256_v50 = vld [vmem:[#allocation2 + $0x110] sm:$0xf0] }
 0xd11   :  { %4879 = vmatpush.bf16.msra.mxu1 %v9761_v34  ;;  %4893 = vmatpush.bf16.msra.mxu2 %v9765_v44 }
 0xd93   :  { %v4610_v59 = vpop.f32.mrf.mxu2  ;;  %v4624_v2 = vpop.f32.mrf.mxu3 }
 0xd94   :  { %v4625_v25 = vadd.f32 %v4624_v2, %v4610_v59  ;;  %v10255_v59 = vld [vmem:[#allocation2 + $0x10c] sm:$0xf]  ;;  %v9746_v2 = vld [vmem:[#allocation2 + $0x114] sm:$0xf0] }
 0xd96   :  { %v4629_v51 = vadd.f32 %v4625_v25, %v12613_v27  ;;  %v9752_v25 = vld [vmem:[#allocation2 + $0x110] sm:$0xf] }
 0xd98   :  { %v12654_v16 = vadd.f32 %v10588_v17, %v4629_v51  ;;  %v9745_v51 = vor.u32 %v10256_v50, %v9744_v4  ;;  %v10590_v50 = vld [vmem:[%s14218_s15 + $0x1] ss:$0 sm:$0xff]  ;;  %s10966_s15 = smov [#allocation13]  }
 0xd9a   :  { %4641 = vadd.xlane.f32.xlu1 %v12654_v16  ;;  %4866 = vmatpush.bf16.msra.mxu0 %v9745_v51 }
 0xd9b   :  { %v4612_v32 = vpop.f32.mrf.mxu2  ;;  %v4626_v21 = vpop.f32.mrf.mxu3 }
 0xd9c   :  { %v4627_v43 = vadd.f32 %v4626_v21, %v4612_v32  ;;  %v9749_v32 = vor.u32 %v10255_v59, %v9746_v2 }
 0xd9e   :  { %v4630_v0 = vadd.f32 %v4627_v43, %v12617_v40  ;;  %v9732_v43 = vld [vmem:[#allocation2 + $0xf0] sm:$0xf]  ;;  %4880 = vmatpush.bf16.msra.mxu1 %v9749_v32 }
 0xda0   :  { %v12658_v31 = vadd.f32 %v10588_v17, %v4630_v0  ;;  %v10257_v17 = vld [vmem:[#allocation2 + $0x118] sm:$0xf0] }
 0xda1   :  { %v9753_v21 = vor.u32 %v10257_v17, %v9752_v25  ;;  %v10253_v0 = vld [vmem:[#allocation2 + $0xf8] sm:$0xf0] }
 0xda2   :  { %4643 = vadd.xlane.f32.xlu0 %v12658_v31  ;;  %v9733_v45 = vor.u32 %v10253_v0, %v9732_v43 }
 0xda3   :  { %4894 = vmatpush.bf16.msra.mxu2 %v9753_v21 }
 0xda4   :  { %4867 = vmatpush.bf16.msra.mxu0 %v9733_v45 }
 0xda8   :  { %4868 = vmatpush.bf16.msra.mxu0 %v9721_v9 }
 0xdac   :  { %4869 = vmatpush.bf16.msra.mxu0 %v9709_v13 }
 0xe0d   :  { %v4642_v22 = vpop.xlane.xlu1 %4641 }
 0xe0e   :  { %v4645_v38 = vmul.f32 %v4642_v22, %v11141_v8  ;;  %v10252_v22 = vld [vmem:[#allocation2 + $0xf4] sm:$0xf] }
 0xe10   :  { %v12663_v14 = vsub.f32 %v12654_v16, %v4645_v38 }
 0xe12   :  { %v4649_v27 = vmul.f32 %v12663_v14, %v12663_v14 }
 0xe14   :  { %4651 = vadd.xlane.f32.xlu2 %v4649_v27  ;;  %v9734_v27 = vld [vmem:[#allocation2 + $0xfc] sm:$0xf0] }
 0xe15   :  { %v4644_v23 = vpop.xlane.xlu0 %4643  ;;  %v9737_v46 = vor.u32 %v10252_v22, %v9734_v27 }
 0xe16   :  { %v4646_v33 = vmul.f32 %v4644_v23, %v11141_v8  ;;  %v9740_v23 = vld [vmem:[#allocation2 + $0xf8] sm:$0xf] }
 0xe17   :  { %4881 = vmatpush.bf16.msra.mxu1 %v9737_v46 }
 0xe18   :  { %v12669_v37 = vsub.f32 %v12658_v31, %v4646_v33  ;;  %v10254_v33 = vld [vmem:[#allocation2 + $0x100] sm:$0xf0] }
 0xe19   :  { %v9741_v19 = vor.u32 %v10254_v33, %v9740_v23 }
 0xe1a   :  { %v4650_v40 = vmul.f32 %v12669_v37, %v12669_v37 }
 0xe1b   :  { %4895 = vmatpush.bf16.msra.mxu2 %v9741_v19  ;;  %4882 = vmatpush.bf16.msra.mxu1 %v9725_v56 }
 0xe1c   :  { %4653 = vadd.xlane.f32.xlu1 %v4650_v40 }
 0xe1f   :  { %4896 = vmatpush.bf16.msra.mxu2 %v9729_v5 }
 0xe87   :  { %v4652_v29 = vpop.xlane.xlu2 %4651 }
 0xe88   :  { %v4655_v49 = vmul.f32 %v4652_v29, %v11141_v8  ;;  %v9716_v29 = vld [vmem:[#allocation2 + $0xc8] sm:$0xf] }
 0xe89   :  { %v9717_v53 = vor.u32 %v10248_v11, %v9716_v29 }
 0xe8a   :  { %v12674_v55 = vadd.f32 1e-05, %v4655_v49  ;;  %v9713_v49 = vor.u32 %v10246_v6, %v9710_v42 }
 0xe8b   :  { %4897 = vmatpush.bf16.msra.mxu2 %v9717_v53 }
 0xe8c   :  { %10679 = vrsqrt.f32 %v12674_v55  ;;  %vm4665_vm2 = vweird.f32 %v12674_v55  ;;  %4883 = vmatpush.bf16.msra.mxu1 %v9713_v49 }
 0xe8f   :  { %v4654_v38 = vpop.xlane.xlu1 %4653 }
 0xe90   :  { %v4656_v40 = vmul.f32 %v4654_v38, %v11141_v8 }
 0xe92   :  { %v10680_v41 = vpop.eup %10679  ;;  %v4658_v61 = vadd.f32 1e-05, %v4656_v40 }
 0xe93   :  { %v4660_v26 = vmul.f32 %v10680_v41, %v12674_v55  ;;  %vm4666_vm1 = vweird.f32 %v10680_v41 }
 0xe94   :  { %10681 = vrsqrt.f32 %v4658_v61  ;;  %vm4667_vm3 = vmor %vm4665_vm2, %vm4666_vm1  ;;  %vm4675_vm6 = vweird.f32 %v4658_v61 }
 0xe95   :  { %v4661_v3 = vmul.f32 %v10680_v41, %v4660_v26 }
 0xe97   :  { %v4662_v1 = vmul.f32 0.5, %v4661_v3 }
 0xe99   :  { %v4663_v20 = vsub.f32 1.5, %v4662_v1 }
 0xe9a   :  { %v10682_v7 = vpop.eup %10681 }
 0xe9b   :  { %v4664_v57 = vmul.f32 %v10680_v41, %v4663_v20  ;;  %v4670_v62 = vmul.f32 %v10682_v7, %v4658_v61  ;;  %vm4676_vm5 = vweird.f32 %v10682_v7 }
 0xe9c   :  { %vm4677_vm9 = vmor %vm4675_vm6, %vm4676_vm5 }
 0xe9d   :  { %v4671_v52 = vmul.f32 %v10682_v7, %v4670_v62  ;;  %v4668_v36 = vsel %vm4667_vm3, %v10680_v41, %v4664_v57 }
 0xe9e   :  { %v4679_v54 = vmul.f32 %v4668_v36, %v12663_v14  ;;  %v12691_v14 = vld [vmem:[%s14219_s1 + $0x3] sm:$0x7]  ;;  %s9259_s1 = sshll.u32 %s10966_s15, 4  ;;  %s9260_s1 = int_to_ptr.vmem [resolvable:$true] %s9259_s1 }
 0xe9f   :  { %v4672_v28 = vmul.f32 0.5, %v4671_v52  ;;  %v4728_v51 = vperm.slane %v12691_v14, 0 }
 0xea0   :  { %v4684_v4 = vmul.f32 %v10589_v48, %v4679_v54 }
 0xea1   :  { %v4673_v15 = vsub.f32 1.5, %v4672_v28 }
 0xea2   :  { %v4689_v2 = vadd.f32 %v10590_v50, %v4684_v4 }
 0xea3   :  { %v4674_v34 = vmul.f32 %v10682_v7, %v4673_v15 }
 0xea5   :  { %v4678_v44 = vsel %vm4677_vm9, %v10682_v7, %v4674_v34 }
 0xea6   :  { %v4680_v55 = vmul.f32 %v4678_v44, %v12669_v37  ;;  %v4729_v37 = vperm.slane %v12691_v14, 1 }
 0xea8   :  { %v4685_v59 = vmul.f32 %v10589_v48, %v4680_v55 }
 0xeaa   :  { %v4690_v25 = vadd.f32 %v10590_v50, %v4685_v59 }
 0xeac   :  { %v4691_v17 = vpack.c.bf16 %v4690_v25, %v4689_v2 }
 0xeae   :  { %4870 = vmatmul.bf16.vlgmr.msra.gmra.mxu0 %v4691_v17  ;;  %4884 = vmatmul.bf16.vlgmr.msra.gmra.mxu1 %v4691_v17 }
 0xeaf   :  { %4898 = vmatmul.bf16.vlgmr.msra.gmra.mxu2 %v4691_v17 }
 0xf2b   :  { %v4871_v32 = vpop.f32.mrf.mxu0  ;;  %v4885_v21 = vpop.f32.mrf.mxu1 }
 0xf2c   :  { %v12695_v43 = vadd.f32 %v4871_v32, %v4728_v51  ;;  %v4886_v0 = vadd.f32 %v4885_v21, %v4729_v37 }
 0xf2e   :  { %5158 = vrot.lane.b32.xlu1 %v4886_v0, %s10960_s27  ;;  %5152 = vrot.lane.b32.xlu2 %v4886_v0, %s10948_s9  ;;  %v10467_v22 = vpack.i.bf16 %v12695_v43, %v4886_v0  ;;  %v5166_v41 = vrot.slane %v4886_v0, 4  ;;  %v4926_v17 = vrot.slane %v12695_v43, 4 }
 0xf30   :  { %10468 = vrot.lane.b32.xlu0 %v10467_v22, %s10961_s28 }
 0xf33   :  { %v4887_v38 = vpop.f32.mrf.mxu1  ;;  %v4873_v23 = vpop.f32.mrf.mxu0 }
 0xf34   :  { %v4888_v27 = vadd.f32 %v4887_v38, %v4729_v37  ;;  %v12706_v33 = vadd.f32 %v4873_v23, %v4728_v51 }
 0xf36   :  { %5154 = vrot.lane.b32.xlu1 %v4888_v27, %s10948_s9  ;;  %4918 = vrot.lane.b32.xlu2 %v12695_v43, %s10960_s27  ;;  %v5222_v20 = vrot.slane %v4888_v27, 4 }
 0xf38   :  { %4912 = vrot.lane.b32.xlu0 %v12695_v43, %s10948_s9 }
 0xf3e   :  { %4914 = vrot.lane.b32.xlu1 %v12706_v33, %s10948_s9  ;;  %5160 = vrot.lane.b32.xlu2 %v4888_v27, %s10960_s27 }
 0xf40   :  { %5148 = vrot.lane.b32.xlu0 %v4888_v27, %s10961_s28 }
 0xf46   :  { %4920 = vrot.lane.b32.xlu2 %v12706_v33, %s10960_s27 }
 0xf48   :  { %4908 = vrot.lane.b32.xlu0 %v12706_v33, %s10961_s28 }
 0xf88   :  { %v5153_v40 = vpop.permute.xlu2 %5152 }
 0xf89   :  { %v5164_v12 = vrot.slane %v5153_v40, 4  ;;  %v5167_v19 = vsel %vm483_vm7, %v5153_v40, %v5166_v41 }
 0xf8a   :  { %v5175_v3 = vperm.slane %v5167_v19, %v11192_v10 }
 0xf8b   :  { %v5165_v61 = vsel %vm483_vm7, %v5164_v12, %v4886_v0 }
 0xf8c   :  { %v5171_v26 = vperm.slane %v5165_v61, %v11192_v10  ;;  %v5202_v7 = vrot.slane %v5175_v3, 4 }
 0xf8e   :  { %v5190_v6 = vrot.slane %v5171_v26, 4 }
 0xf90   :  { %v4919_v45 = vpop.permute.xlu2 %4918 }
 0xf91   :  { %v4936_v9 = vrot.slane %v4919_v45, 4 }
 0xf98   :  { %v12718_v30 = vpop.permute.xlu2 %5160 }
 0xf99   :  { %v5232_v0 = vrot.slane %v12718_v30, 4 }
 0xfa0   :  { %v5159_v46 = vpop.permute.xlu1 %5158  ;;  %v12736_v55 = vpop.permute.xlu2 %4920 }
 0xfa1   :  { %v5176_v58 = vrot.slane %v5159_v46, 4  ;;  %v4992_v22 = vrot.slane %v12736_v55, 4 }
 0xfa2   :  { %v10469_v35 = vpop.permute.xlu0 %10468 }
 0xfa3   :  { %v10471_v63 = vunpack.i.h.bf16 %v10469_v35  ;;  %v10470_v47 = vunpack.i.l.bf16 %v10469_v35 }
 0xfa5   :  { %v4938_v18 = vrot.slane %v10471_v63, 4  ;;  %v5177_v56 = vsel %vm483_vm7, %v5176_v58, %v10470_v47  ;;  %v5178_v5 = vrot.slane %v10470_v47, 4  ;;  %v4937_v42 = vsel %vm483_vm7, %v4936_v9, %v10471_v63 }
 0xfa6   :  { %v5183_v39 = vperm.slane %v5177_v56, %v11192_v10  ;;  %v4943_v62 = vperm.slane %v4937_v42, %v11192_v10 }
 0xfa7   :  { %v5179_v1 = vsel %vm483_vm7, %v5159_v46, %v5178_v5  ;;  %v4939_v49 = vsel %vm483_vm7, %v4919_v45, %v4938_v18 }
 0xfa8   :  { %v5187_v29 = vperm.slane %v5179_v1, %v11192_v10  ;;  %v5188_v11 = vrot.slane %v5183_v39, 4  ;;  %v5155_v13 = vpop.permute.xlu1 %5154  ;;  %v5191_v53 = vsel %vm483_vm7, %v5183_v39, %v5190_v6  ;;  %v4947_v4 = vperm.slane %v4939_v49, %v11192_v10 }
 0xfa9   :  { %v5220_v57 = vrot.slane %v5155_v13, 4  ;;  %v5199_v36 = vperm.slane %v5191_v53, %v11200_v24  ;;  %v5223_v44 = vsel %vm483_vm7, %v5155_v13, %v5222_v20  ;;  %v4948_v38 = vrot.slane %v4943_v62, 4 }
 0xfaa   :  { %v5189_v52 = vsel %vm483_vm7, %v5188_v11, %v5171_v26  ;;  %v5200_v28 = vrot.slane %v5187_v29, 4  ;;  %v4913_v15 = vpop.permute.xlu0 %4912  ;;  %v5203_v48 = vsel %vm483_vm7, %v5187_v29, %v5202_v7  ;;  %v12747_v21 = vperm.slane %v5223_v44, %v11192_v10 }
 0xfab   :  { %v5195_v54 = vperm.slane %v5189_v52, %v11200_v24  ;;  %v5221_v34 = vsel %vm483_vm7, %v5220_v57, %v4888_v27  ;;  %v5214_v59 = vrot.slane %v5199_v36, 4  ;;  %v5211_v2 = vperm.slane %v5203_v48, %v11200_v24 }
 0xfac   :  { %v5201_v50 = vsel %vm483_vm7, %v5200_v28, %v5175_v3  ;;  %v4924_v25 = vrot.slane %v4913_v15, 4  ;;  %v5227_v32 = vperm.slane %v5221_v34, %v11192_v10  ;;  %v4982_v27 = vrot.slane %v12706_v33, 4 }
 0xfad   :  { %v12743_v51 = vperm.slane %v5201_v50, %v11200_v24  ;;  %v5212_v37 = vrot.slane %v5195_v54, 4  ;;  %v4960_v23 = vrot.slane %v4947_v4, 4  ;;  %v5215_v40 = vsel %vm483_vm7, 0.0, %v5214_v59 }
 0xfae   :  { %v4925_v45 = vsel %vm483_vm7, %v4924_v25, %v12695_v43  ;;  %v4927_v12 = vsel %vm483_vm7, %v4913_v15, %v4926_v17  ;;  %v5218_v41 = vrot.slane %v5211_v2, 4  ;;  %v5276_v61 = vsel %vm483_vm7, %v5214_v59, %v5195_v54 }
 0xfaf   :  { %v4931_v46 = vperm.slane %v4925_v45, %v11192_v10  ;;  %v4935_v19 = vperm.slane %v4927_v12, %v11192_v10  ;;  %v5213_v35 = vsel %vm483_vm7, 0.0, %v5212_v37  ;;  %v5216_v26 = vrot.slane %v12743_v51, 4 }
 0xfb0   :  { %v5246_v58 = vrot.slane %v5227_v32, 4  ;;  %v5258_v63 = vrot.slane %v12747_v21, 4  ;;  %v4915_v56 = vpop.permute.xlu1 %4914  ;;  %v12765_v5 = vperm.slane %v5276_v61, %v11192_v10  ;;  %v5281_v39 = vrot.slane %v5215_v40, 4 }
 0xfb1   :  { %v4949_v3 = vsel %vm483_vm7, %v4948_v38, %v4931_v46  ;;  %v4950_v43 = vrot.slane %v4931_v46, 4  ;;  %v4961_v9 = vsel %vm483_vm7, %v4960_v23, %v4935_v19  ;;  %v4962_v18 = vrot.slane %v4935_v19, 4 }
 0xfb2   :  { %v5149_v47 = vpop.permute.xlu0 %5148  ;;  %v4955_v6 = vperm.slane %v4949_v3, %v11200_v24  ;;  %v4967_v42 = vperm.slane %v4961_v9, %v11200_v24  ;;  %v12770_v1 = vsel %vm483_vm7, 0.0, %v5218_v41  ;;  %v4980_v53 = vrot.slane %v4915_v56, 4 }
 0xfb3   :  { %v4951_v29 = vsel %vm483_vm7, %v4943_v62, %v4950_v43  ;;  %v4963_v11 = vsel %vm483_vm7, %v4947_v4, %v4962_v18  ;;  %v5233_v20 = vsel %vm483_vm7, %v5232_v0, %v5149_v47  ;;  %v5234_v52 = vrot.slane %v5149_v47, 4 }
 0xfb4   :  { %v4959_v13 = vperm.slane %v4951_v29, %v11200_v24  ;;  %v4971_v7 = vperm.slane %v4963_v11, %v11200_v24  ;;  %v4972_v49 = vrot.slane %v4955_v6, 4  ;;  %v4976_v57 = vrot.slane %v4967_v42, 4 }
 0xfb5   :  { %v5239_v36 = vperm.slane %v5233_v20, %v11192_v10  ;;  %v5287_v28 = vsel %vm483_vm7, %v5218_v41, %v12743_v51  ;;  %v5292_v15 = vrot.slane %v12770_v1, 4  ;;  %v4983_v48 = vsel %vm483_vm7, %v4915_v56, %v4982_v27 }
 0xfb6   :  { %v4974_v62 = vrot.slane %v4959_v13, 4  ;;  %v4978_v54 = vrot.slane %v4971_v7, 4  ;;  %v5235_v34 = vsel %vm483_vm7, %v12718_v30, %v5234_v52  ;;  %v5282_v50 = vsel %vm483_vm7, %v5281_v39, %v5213_v35 }
 0xfb7   :  { %v5244_v44 = vrot.slane %v5239_v36, 4  ;;  %v5247_v4 = vsel %vm483_vm7, %v5239_v36, %v5246_v58  ;;  %v4973_v59 = vsel %vm483_vm7, 0.0, %v4972_v49  ;;  %v4981_v17 = vsel %vm483_vm7, %v4980_v53, %v12706_v33 }
 0xfb8   :  { %v4975_v2 = vsel %vm483_vm7, 0.0, %v4974_v62  ;;  %v4979_v25 = vsel %vm483_vm7, 0.0, %v4978_v54  ;;  %v4977_v37 = vsel %vm483_vm7, 0.0, %v4976_v57  ;;  %v5036_v0 = vsel %vm483_vm7, %v4974_v62, %v4955_v6 }
 0xfb9   :  { %v5041_v38 = vrot.slane %v4975_v2, 4  ;;  %v5052_v30 = vrot.slane %v4979_v25, 4  ;;  %v5047_v27 = vsel %vm483_vm7, %v4978_v54, %v4967_v42  ;;  %v5243_v23 = vperm.slane %v5235_v34, %v11192_v10 }
 0xfba   :  { %v5245_v40 = vsel %vm483_vm7, %v5244_v44, %v5227_v32  ;;  %v5255_v45 = vperm.slane %v5247_v4, %v11200_v24  ;;  %v4909_v12 = vpop.permute.xlu0 %4908  ;;  %v4987_v33 = vperm.slane %v4981_v17, %v11192_v10  ;;  %v4991_v46 = vperm.slane %v4983_v48, %v11192_v10 }
 0xfbb   :  { %v5042_v41 = vsel %vm483_vm7, %v5041_v38, %v4973_v59  ;;  %v5053_v61 = vsel %vm483_vm7, %v5052_v30, %v4977_v37  ;;  %v12802_v19 = vperm.slane %v5036_v0, %v11192_v10  ;;  %v5251_v58 = vperm.slane %v5245_v40, %v11200_v24 }
 0xfbc   :  { %v12805_v35 = vperm.slane %v5053_v61, %v11192_v10  ;;  %v5256_v32 = vrot.slane %v5243_v23, 4  ;;  %v12809_v47 = vperm.slane %v5047_v27, %v11192_v10  ;;  %v5259_v3 = vsel %vm483_vm7, %v5243_v23, %v5258_v63 }
 0xfbd   :  { %v5270_v43 = vrot.slane %v5255_v45, 4  ;;  %v4993_v9 = vsel %vm483_vm7, %v4992_v22, %v4909_v12  ;;  %v12816_v18 = vperm.slane %v5042_v41, %v11192_v10  ;;  %v4994_v6 = vrot.slane %v4909_v12, 4 }
 0xfbe   :  { %v5070_v56 = vrot.slane %v12805_v35, 4  ;;  %v5257_v39 = vsel %vm483_vm7, %v5256_v32, %v12747_v21  ;;  %v5267_v42 = vperm.slane %v5259_v3, %v11200_v24  ;;  %v5268_v29 = vrot.slane %v5251_v58, 4 }
 0xfbf   :  { %v5217_v63 = vsel %vm483_vm7, 0.0, %v5216_v26  ;;  %v12826_v11 = vperm.slane %v5287_v28, %v11192_v10  ;;  %v5263_v20 = vperm.slane %v5257_v39, %v11200_v24  ;;  %v5330_v13 = vsel %vm483_vm7, %v5270_v43, %v5251_v58 }
 0xfc0   :  { %v5071_v22 = vsel %vm483_vm7, %v5070_v56, %v12809_v47  ;;  %v4999_v21 = vperm.slane %v4993_v9, %v11192_v10  ;;  %v5060_v7 = vrot.slane %v12802_v19, 4  ;;  %v5006_v49 = vrot.slane %v4987_v33, 4 }
 0xfc1   :  { %v5018_v53 = vrot.slane %v4991_v46, 4  ;;  %v5286_v51 = vperm.slane %v5282_v50, %v11192_v10  ;;  %v5058_v26 = vrot.slane %v12816_v18, 4  ;;  %v5072_v57 = vrot.slane %v12809_v47, 4 }
 0xfc2   :  { %v5271_v52 = vsel %vm483_vm7, 0.0, %v5270_v43  ;;  %v4995_v36 = vsel %vm483_vm7, %v12736_v55, %v4994_v6  ;;  %v12841_v28 = vperm.slane %v5071_v22, %v11200_v24  ;;  %v5269_v62 = vsel %vm483_vm7, 0.0, %v5268_v29 }
 0xfc3   :  { %v5274_v54 = vrot.slane %v5267_v42, 4  ;;  %v12845_v48 = vperm.slane %v5330_v13, %v11192_v10  ;;  %v5272_v34 = vrot.slane %v5263_v20, 4  ;;  %v5003_v44 = vperm.slane %v4995_v36, %v11192_v10 }
 0xfc4   :  { %v5004_v4 = vrot.slane %v4999_v21, 4  ;;  %v5007_v50 = vsel %vm483_vm7, %v4999_v21, %v5006_v49  ;;  %v5293_v55 = vsel %vm483_vm7, %v5292_v15, %v5217_v63  ;;  %v5300_v2 = vrot.slane %v12765_v5, 4 }
 0xfc5   :  { %v5015_v59 = vperm.slane %v5007_v50, %v11200_v24  ;;  %v5312_v25 = vrot.slane %v12826_v11, 4  ;;  %v5016_v37 = vrot.slane %v5003_v44, 4  ;;  %v5019_v0 = vsel %vm483_vm7, %v5003_v44, %v5018_v53 }
 0xfc6   :  { %v5005_v17 = vsel %vm483_vm7, %v5004_v4, %v4987_v33  ;;  %v5297_v38 = vperm.slane %v5293_v55, %v11192_v10  ;;  %v5027_v27 = vperm.slane %v5019_v0, %v11200_v24  ;;  %v5301_v1 = vsel %vm483_vm7, %v5286_v51, %v5300_v2 }
 0xfc7   :  { %v5011_v30 = vperm.slane %v5005_v17, %v11200_v24  ;;  %v5030_v23 = vrot.slane %v5015_v59, 4  ;;  %v5335_v40 = vrot.slane %v5271_v52, 4  ;;  %v5017_v15 = vsel %vm483_vm7, %v5016_v37, %v4991_v46 }
 0xfc8   :  { %v5309_v45 = vperm.slane %v5301_v1, %v11200_v24  ;;  %v5313_v12 = vsel %vm483_vm7, %v5297_v38, %v5312_v25  ;;  %v5023_v41 = vperm.slane %v5017_v15, %v11200_v24  ;;  %v5034_v58 = vrot.slane %v5027_v27, 4 }
 0xfc9   :  { %v5028_v61 = vrot.slane %v5011_v30, 4  ;;  %v5031_v33 = vsel %vm483_vm7, 0.0, %v5030_v23  ;;  %v5321_v3 = vperm.slane %v5313_v12, %v11200_v24  ;;  %v5298_v9 = vrot.slane %v5286_v51, 4 }
 0xfca   :  { %v5095_v32 = vrot.slane %v5031_v33, 4  ;;  %v5328_v43 = vrot.slane %v5309_v45, 4  ;;  %v5059_v56 = vsel %vm483_vm7, %v5058_v26, %v12802_v19  ;;  %v12870_v46 = vsel %vm483_vm7, 0.0, %v5274_v54 }
 0xfcb   :  { %v5341_v39 = vsel %vm483_vm7, %v5274_v54, %v5263_v20  ;;  %v5029_v6 = vsel %vm483_vm7, 0.0, %v5028_v61  ;;  %v5336_v42 = vsel %vm483_vm7, %v5335_v40, %v5269_v62  ;;  %v5354_v29 = vrot.slane %v12845_v48, 4 }
 0xfcc   :  { %v5090_v63 = vsel %vm483_vm7, %v5030_v23, %v5011_v30  ;;  %v5329_v22 = vsel %vm483_vm7, %v5321_v3, %v5328_v43  ;;  %v5082_v13 = vrot.slane %v12841_v28, 4  ;;  %v5273_v21 = vsel %vm483_vm7, 0.0, %v5272_v34 }
 0xfcd   :  { %v5032_v49 = vrot.slane %v5023_v41, 4  ;;  %v5035_v53 = vsel %vm483_vm7, 0.0, %v5034_v58  ;;  %v5096_v51 = vsel %vm483_vm7, %v5095_v32, %v5029_v6  ;;  %v5635_v20 = vpack.c.bf16 %v5329_v22, %v5329_v22 }
 0xfce   :  { %v5299_v26 = vsel %vm483_vm7, %v5298_v9, %v12765_v5  ;;  %v5310_v52 = vrot.slane %v5297_v38, 4  ;;  %v12885_v36 = vperm.slane %v5336_v42, %v11192_v10  ;;  %v5346_v62 = vrot.slane %v12870_v46, 4 }
 0xfcf   :  { %v12889_v54 = vperm.slane %v5090_v63, %v11192_v10  ;;  %v5101_v34 = vsel %vm483_vm7, %v5034_v58, %v5023_v41  ;;  %v5106_v44 = vrot.slane %v5035_v53, 4  ;;  %v5701_v4 = vsel %vm1199_vm8, %v5635_v20, 0 }
 0xfd0   :  { %v5305_v50 = vperm.slane %v5299_v26, %v11200_v24  ;;  %v5311_v59 = vsel %vm483_vm7, %v5310_v52, %v12826_v11  ;;  %v5033_v5 = vsel %vm483_vm7, 0.0, %v5032_v49  ;;  %v5100_v55 = vperm.slane %v5096_v51, %v11192_v10  ;;  %5710 = vmatpush.bf16.xpose.msrb.mxu2 %v5701_v4 }
 0xfd1   :  { %v5317_v2 = vperm.slane %v5311_v59, %v11200_v24  ;;  %v5326_v25 = vrot.slane %v5321_v3, 4  ;;  %v5105_v17 = vperm.slane %v5101_v34, %v11192_v10  ;;  %v5061_v0 = vsel %vm483_vm7, %v12816_v18, %v5060_v7 }
 0xfd2   :  { %v5324_v37 = vrot.slane %v5305_v50, 4  ;;  %v5073_v11 = vsel %vm483_vm7, %v12805_v35, %v5072_v57  ;;  %v5114_v38 = vrot.slane %v12889_v54, 4  ;;  %v5069_v23 = vperm.slane %v5061_v0, %v11200_v24 }
 0xfd3   :  { %v5327_v30 = vsel %vm483_vm7, %v5326_v25, %v5309_v45  ;;  %v5322_v27 = vrot.slane %v5317_v2, 4  ;;  %v5107_v1 = vsel %vm483_vm7, %v5106_v44, %v5033_v5  ;;  %v5081_v15 = vperm.slane %v5073_v11, %v11200_v24 }
 0xfd4   :  { %v5325_v40 = vsel %vm483_vm7, %v5317_v2, %v5324_v37  ;;  %v5634_v19 = vpack.c.bf16 %v5327_v30, %v5327_v30  ;;  %v5088_v7 = vrot.slane %v5069_v23, 4  ;;  %v5065_v35 = vperm.slane %v5059_v56, %v11200_v24 }
 0xfd5   :  { %v5633_v18 = vpack.c.bf16 %v5325_v40, %v5325_v40  ;;  %v5323_v47 = vsel %vm483_vm7, %v5322_v27, %v5305_v50  ;;  %v5086_v45 = vrot.slane %v5081_v15, 4  ;;  %v5345_v41 = vperm.slane %v5341_v39, %v11192_v10 }
 0xfd6   :  { %v5682_v57 = vsel %vm1199_vm8, %v5634_v19, 0  ;;  %v5632_v12 = vpack.c.bf16 %v5323_v47, %v5323_v47  ;;  %v5111_v61 = vperm.slane %v5107_v1, %v11192_v10  ;;  %v5089_v58 = vsel %vm483_vm7, %v5081_v15, %v5088_v7 }
 0xfd7   :  { %v5663_v33 = vsel %vm1199_vm8, %v5633_v18, 0  ;;  %5691 = vmatpush.bf16.xpose.msrb.mxu1 %v5682_v57  ;;  %v5084_v32 = vrot.slane %v5065_v35, 4  ;;  %v5112_v3 = vrot.slane %v5100_v55, 4  ;;  %v5115_v43 = vsel %vm483_vm7, %v5100_v55, %v5114_v38 }
 0xfd8   :  { %5672 = vmatpush.bf16.xpose.msrb.mxu0 %v5663_v33  ;;  %v5644_v9 = vsel %vm1199_vm8, %v5632_v12, 0  ;;  %v5627_v56 = vpack.c.bf16 %v5089_v58, %v5089_v58  ;;  %v5087_v46 = vsel %vm483_vm7, %v5086_v45, %v5069_v23  ;;  %v5347_v6 = vsel %vm483_vm7, %v5346_v62, %v5273_v21 }
 0xfd9   :  { %5653 = vmatpush.bf16.xpose.msra.mxu3 %v5644_v9  ;;  %v5085_v39 = vsel %vm483_vm7, %v12841_v28, %v5084_v32  ;;  %v5355_v42 = vsel %vm483_vm7, %v12885_v36, %v5354_v29  ;;  %v5126_v63 = vrot.slane %v5105_v17, 4  ;;  %v5351_v22 = vperm.slane %v5347_v6, %v11192_v10 }
 0xfda   :  { %9805 = vmatmul.msk.bf16.vlgmr.msrb.gmra.mxu2 %vm1199_vm8, %v5627_v56  ;;  %v5363_v49 = vperm.slane %v5355_v42, %v11200_v24  ;;  %v5366_v53 = vrot.slane %v5345_v41, 4  ;;  %v5124_v51 = vrot.slane %v5111_v61, 4  ;;  %v5083_v20 = vsel %vm483_vm7, %v5082_v13, %v5065_v35  ;;  %v4899_v56 = vpop.f32.mrf.mxu2 }
 0xfdb   :  { %v5625_v26 = vpack.c.bf16 %v5085_v39, %v5085_v39  ;;  %v5352_v52 = vrot.slane %v12885_v36, 4  ;;  %v5626_v21 = vpack.c.bf16 %v5087_v46, %v5087_v46  ;;  %v5364_v34 = vrot.slane %v5351_v22, 4 }
 0xfdc   :  { %v5367_v62 = vsel %vm483_vm7, %v5351_v22, %v5366_v53  ;;  %v5382_v29 = vrot.slane %v5363_v49, 4  ;;  %v5123_v44 = vperm.slane %v5115_v43, %v11200_v24  ;;  %v5624_v28 = vpack.c.bf16 %v5083_v20, %v5083_v20 }
 0xfdd   :  { %v5375_v4 = vperm.slane %v5367_v62, %v11200_v24  ;;  %v5353_v50 = vsel %vm483_vm7, %v5352_v52, %v12845_v48  ;;  %v5365_v59 = vsel %vm483_vm7, %v5364_v34, %v5345_v41  ;;  %v5127_v36 = vsel %vm483_vm7, %v5111_v61, %v5126_v63 }
 0xfde   :  { %9804 = vmatmul.msk.bf16.vlgmr.msrb.gmra.mxu1 %vm1199_vm8, %v5626_v21  ;;  %v5359_v13 = vperm.slane %v5353_v50, %v11200_v24  ;;  %v5113_v5 = vsel %vm483_vm7, %v5112_v3, %v12889_v54  ;;  %v5371_v2 = vperm.slane %v5365_v59, %v11200_v24  ;;  %v5125_v48 = vsel %vm483_vm7, %v5124_v51, %v5105_v17 }
 0xfdf   :  { %9803 = vmatmul.msk.bf16.vlgmr.msrb.gmra.mxu0 %vm1199_vm8, %v5625_v26  ;;  %v5383_v55 = vsel %vm483_vm7, %v5375_v4, %v5382_v29  ;;  %v5380_v25 = vrot.slane %v5375_v4, 4  ;;  %v5135_v30 = vperm.slane %v5127_v36, %v11200_v24  ;;  %v5142_v27 = vrot.slane %v5123_v44, 4 }
 0xfe0   :  { %9802 = vmatmul.msk.bf16.vlgmr.msra.gmra.mxu3 %vm1199_vm8, %v5624_v28  ;;  %v5639_v37 = vpack.c.bf16 %v5383_v55, %v5383_v55  ;;  %v5378_v0 = vrot.slane %v5359_v13, 4  ;;  %v5376_v38 = vrot.slane %v5371_v2, 4  ;;  %v5119_v54 = vperm.slane %v5113_v5, %v11200_v24 }
 0xfe1   :  { %v5381_v11 = vsel %vm483_vm7, %v5380_v25, %v5363_v49  ;;  %v5131_v15 = vperm.slane %v5125_v48, %v11200_v24  ;;  %v5140_v35 = vrot.slane %v5135_v30, 4  ;;  %v5143_v57 = vsel %vm483_vm7, %v5135_v30, %v5142_v27 }
 0xfe2   :  { %v5777_v23 = vsel %vm1199_vm8, %v5639_v37, 0  ;;  %v5379_v1 = vsel %vm483_vm7, %v5371_v2, %v5378_v0  ;;  %v5638_v40 = vpack.c.bf16 %v5381_v11, %v5381_v11  ;;  %v5377_v17 = vsel %vm483_vm7, %v5376_v38, %v5359_v13  ;;  %v4901_v46 = vpop.f32.mrf.mxu2 }
 0xfe3   :  { %5786 = vmatpush.bf16.xpose.msra.mxu2 %v5777_v23  ;;  %v5637_v19 = vpack.c.bf16 %v5379_v1, %v5379_v1  ;;  %v5636_v47 = vpack.c.bf16 %v5377_v17, %v5377_v17  ;;  %v5138_v12 = vrot.slane %v5119_v54, 4  ;;  %v5136_v41 = vrot.slane %v5131_v15, 4 }
 0xfe4   :  { %v5758_v18 = vsel %vm1199_vm8, %v5638_v40, 0  ;;  %v5631_v61 = vpack.c.bf16 %v5143_v57, %v5143_v57  ;;  %v5141_v33 = vsel %vm483_vm7, %v5140_v35, %v5123_v44  ;;  %v4730_v27 = vperm.slane %v12691_v14, 2 }
 0xfe5   :  { %v5739_v7 = vsel %vm1199_vm8, %v5637_v19, 0  ;;  %5767 = vmatpush.bf16.xpose.msra.mxu1 %v5758_v18  ;;  %v5720_v45 = vsel %vm1199_vm8, %v5636_v47, 0  ;;  %v5139_v58 = vsel %vm483_vm7, %v5131_v15, %v5138_v12  ;;  %v5137_v32 = vsel %vm483_vm7, %v5136_v41, %v5119_v54 }
 0xfe6   :  { %5748 = vmatpush.bf16.xpose.msra.mxu0 %v5739_v7  ;;  %5729 = vmatpush.bf16.xpose.msrb.mxu3 %v5720_v45  ;;  %v5630_v3 = vpack.c.bf16 %v5141_v33, %v5141_v33  ;;  %v5629_v43 = vpack.c.bf16 %v5139_v58, %v5139_v58  ;;  %v5628_v9 = vpack.c.bf16 %v5137_v32, %v5137_v32 }
 0xfe7   :  { %v12993_v54 = vadd.f32 %v4901_v46, %v4730_v27  ;;  %v12995_v23 = vadd.f32 %v4899_v56, %v4730_v27 }
 0xfe9   :  { %v10477_v1 = vpack.i.bf16 %v12993_v54, %v12995_v23 }
 0xfea   :  { %9809 = vmatmul.msk.bf16.vlgmr.msra.gmra.mxu2 %vm1199_vm8, %v5631_v61 }
 0xfee   :  { %9808 = vmatmul.msk.bf16.vlgmr.msra.gmra.mxu1 %vm1199_vm8, %v5630_v3 }
 0xfef   :  { %9807 = vmatmul.msk.bf16.vlgmr.msra.gmra.mxu0 %vm1199_vm8, %v5629_v43 }
 0xff0   :  { %9806 = vmatmul.msk.bf16.vlgmr.msrb.gmra.mxu3 %vm1199_vm8, %v5628_v9 }
0x105b   :  { %v5693_v39 = vpop.f32.mrf.mxu1 }
0x105c   :  { %v5694_v6 = vadd.f32 %v5693_v39, %v11461_v60  ;;  %v5674_v42 = vpop.f32.mrf.mxu0 }
0x105d   :  { %v12972_v63 = vadd.f32 %v5674_v42, %v11461_v60  ;;  %v5712_v22 = vpop.f32.mrf.mxu2 }
0x105e   :  { %v5798_v49 = vsel %vm1352_vm10, %v5694_v6, -inf  ;;  %v5713_v53 = vadd.f32 %v5712_v22, %v11461_v60 }
0x105f   :  { %5799 = vmax.xlane.f32.xlu2 %v5798_v49  ;;  %v5795_v51 = vsel %vm1352_vm10, %v12972_v63, -inf }
0x1060   :  { %5796 = vmax.xlane.f32.xlu0 %v5795_v51  ;;  %v5801_v20 = vsel %vm1352_vm10, %v5713_v53, -inf }
0x1061   :  { %5802 = vmax.xlane.f32.xlu1 %v5801_v20 }
0x1063   :  { %v5655_v26 = vpop.f32.mrf.mxu3  ;;  %v5695_v52 = vpop.f32.mrf.mxu1 }
0x1064   :  { %v5656_v21 = vadd.f32 %v5655_v26, %v11461_v60  ;;  %v5676_v62 = vpop.f32.mrf.mxu0 }
0x1065   :  { %v5714_v29 = vpop.f32.mrf.mxu2 }
0x1066   :  { %v5792_v34 = vsel %vm1352_vm10, %v5656_v21, -inf }
0x1068   :  { %5793 = vmax.xlane.f32.xlu0 %v5792_v34 }
0x106b   :  { %v5657_v44 = vpop.f32.mrf.mxu3  ;;  %v5769_v4 = vpop.f32.mrf.mxu1 }
0x106c   :  { %v5770_v50 = vadd.f32 %v5769_v4, %v11461_v60  ;;  %v5750_v28 = vpop.f32.mrf.mxu0 }
0x106d   :  { %v12983_v13 = vadd.f32 %v5750_v28, %v11461_v60  ;;  %v5788_v59 = vpop.f32.mrf.mxu2 }
0x106e   :  { %v5789_v36 = vadd.f32 %v5788_v59, %v11461_v60  ;;  %v5810_v55 = vsel %vm1352_vm10, %v5770_v50, -inf }
0x106f   :  { %v5807_v5 = vsel %vm1352_vm10, %v12983_v13, -inf }
0x1070   :  { %5808 = vmax.xlane.f32.xlu1 %v5807_v5  ;;  %5811 = vmax.xlane.f32.xlu0 %v5810_v55  ;;  %v5813_v2 = vsel %vm1352_vm10, %v5789_v36, -inf }
0x1071   :  { %5814 = vmax.xlane.f32.xlu2 %v5813_v2 }
0x1073   :  { %v5731_v25 = vpop.f32.mrf.mxu3  ;;  %v5771_v48 = vpop.f32.mrf.mxu1 }
0x1074   :  { %v5732_v37 = vadd.f32 %v5731_v25, %v11461_v60  ;;  %v5752_v0 = vpop.f32.mrf.mxu0  ;;  %v5406_v25 = vrot.slane %v12995_v23, 4 }
0x1075   :  { %v5790_v11 = vpop.f32.mrf.mxu2 }
0x1076   :  { %v5804_v38 = vsel %vm1352_vm10, %v5732_v37, -inf }
0x1078   :  { %5805 = vmax.xlane.f32.xlu1 %v5804_v38 }
0x107b   :  { %v5733_v30 = vpop.f32.mrf.mxu3 }
0x1084   :  { %10478 = vrot.lane.b32.xlu0 %v10477_v1, %s10948_s9 }
0x1089   :  { %10473 = vrot.lane.b32.xlu2 %v10477_v1, %s10961_s28 }
0x1091   :  { %10483 = vrot.lane.b32.xlu1 %v10477_v1, %s10960_s27 }
0x10d2   :  { %v5800_v60 = vpop.xlane.xlu2 %5799 }
0x10d3   :  { %v5818_v40 = vsub.f32 %v5694_v6, %v5800_v60  ;;  %v5797_v19 = vpop.xlane.xlu0 %5796 }
0x10d4   :  { %v5803_v17 = vpop.xlane.xlu1 %5802  ;;  %v5817_v57 = vsub.f32 %v12972_v63, %v5797_v19 }
0x10d5   :  { %v5828_v15 = vmul.f32 1.442695, %v5818_v40  ;;  %v5819_v18 = vsub.f32 %v5713_v53, %v5803_v17 }
0x10d6   :  { %v5826_v33 = vmul.f32 1.442695, %v5817_v57 }
0x10d7   :  { %10683 = vpow2.f32 %v5828_v15  ;;  %v5830_v14 = vmul.f32 1.442695, %v5819_v18 }
0x10d9   :  { %10685 = vpow2.f32 %v5830_v14 }
0x10db   :  { %v5794_v47 = vpop.xlane.xlu0 %5793 }
0x10dc   :  { %v5816_v7 = vsub.f32 %v5656_v21, %v5794_v47 }
0x10dd   :  { %v13002_v35 = vpop.eup %10683 }
0x10de   :  { %v5824_v12 = vmul.f32 1.442695, %v5816_v7  ;;  %v5846_v45 = vsel %vm1352_vm10, %v13002_v35, 0.0 }
0x10df   :  { %v13007_v41 = vpop.eup %10685  ;;  %5847 = vadd.xlane.f32.xlu1 %v5846_v45 }
0x10e0   :  { %10687 = vpow2.f32 %v5824_v12  ;;  %v5849_v61 = vsel %vm1352_vm10, %v13007_v41, 0.0 }
0x10e1   :  { %5850 = vadd.xlane.f32.xlu2 %v5849_v61  ;;  %10689 = vpow2.f32 %v5826_v33 }
0x10e3   :  { %v5809_v58 = vpop.xlane.xlu1 %5808  ;;  %v5812_v32 = vpop.xlane.xlu0 %5811 }
0x10e4   :  { %v5822_v3 = vsub.f32 %v5770_v50, %v5812_v32  ;;  %v5815_v43 = vpop.xlane.xlu2 %5814  ;;  %v5821_v49 = vsub.f32 %v12983_v13, %v5809_v58 }
0x10e5   :  { %v5823_v46 = vsub.f32 %v5789_v36, %v5815_v43  ;;  %v5462_v36 = vrot.slane %v12993_v54, 4 }
0x10e6   :  { %v13011_v9 = vpop.eup %10687  ;;  %v5836_v56 = vmul.f32 1.442695, %v5822_v3  ;;  %v5834_v52 = vmul.f32 1.442695, %v5821_v49 }
0x10e7   :  { %v5840_v39 = vsel %vm1352_vm10, %v13011_v9, 0.0  ;;  %v5838_v6 = vmul.f32 1.442695, %v5823_v46  ;;  %v13015_v63 = vpop.eup %10689 }
0x10e8   :  { %5841 = vadd.xlane.f32.xlu0 %v5840_v39  ;;  %10691 = vpow2.f32 %v5836_v56  ;;  %v5843_v20 = vsel %vm1352_vm10, %v13015_v63, 0.0 }
0x10e9   :  { %10693 = vpow2.f32 %v5838_v6 }
0x10eb   :  { %v5806_v42 = vpop.xlane.xlu1 %5805 }
0x10ec   :  { %v5820_v22 = vsub.f32 %v5732_v37, %v5806_v42  ;;  %v10474_v13 = vpop.permute.xlu2 %10473 }
0x10ed   :  { %v10476_v55 = vunpack.i.h.bf16 %v10474_v13  ;;  %v10475_v2 = vunpack.i.l.bf16 %v10474_v13 }
0x10ee   :  { %v5832_v53 = vmul.f32 1.442695, %v5820_v22  ;;  %v13018_v51 = vpop.eup %10691 }
0x10ef   :  { %v5858_v26 = vsel %vm1352_vm10, %v13018_v51, 0.0  ;;  %v13024_v21 = vpop.eup %10693  ;;  %v5474_v30 = vrot.slane %v10476_v55, 4  ;;  %v5418_v27 = vrot.slane %v10475_v2, 4 }
0x10f0   :  { %10695 = vpow2.f32 %v5832_v53  ;;  %5844 = vadd.xlane.f32.xlu0 %v5843_v20  ;;  %5859 = vadd.xlane.f32.xlu1 %v5858_v26  ;;  %v5861_v44 = vsel %vm1352_vm10, %v13024_v21, 0.0 }
0x10f1   :  { %10697 = vpow2.f32 %v5834_v52 }
0x10f6   :  { %v13026_v62 = vpop.eup %10695  ;;  %v10479_v29 = vpop.permute.xlu0 %10478 }
0x10f7   :  { %v5852_v34 = vsel %vm1352_vm10, %v13026_v62, 0.0  ;;  %v10480_v4 = vunpack.i.l.bf16 %v10479_v29  ;;  %v10481_v50 = vunpack.i.h.bf16 %v10479_v29  ;;  %v13032_v28 = vpop.eup %10697 }
0x10f8   :  { %5853 = vadd.xlane.f32.xlu2 %v5852_v34  ;;  %5862 = vadd.xlane.f32.xlu0 %v5861_v44  ;;  %v5855_v48 = vsel %vm1352_vm10, %v13032_v28, 0.0 }
0x10f9   :  { %v5404_v59 = vrot.slane %v10480_v4, 4  ;;  %v5460_v5 = vrot.slane %v10481_v50, 4  ;;  %v5463_v37 = vsel %vm483_vm7, %v10481_v50, %v5462_v36  ;;  %v5407_v11 = vsel %vm483_vm7, %v10480_v4, %v5406_v25 }
0x10fa   :  { %v5471_v1 = vperm.slane %v5463_v37, %v11192_v10  ;;  %v5415_v19 = vperm.slane %v5407_v11, %v11192_v10 }
0x10fb   :  { %v5405_v0 = vsel %vm483_vm7, %v5404_v59, %v12995_v23  ;;  %v5461_v38 = vsel %vm483_vm7, %v5460_v5, %v12993_v54 }
0x10fc   :  { %v5411_v40 = vperm.slane %v5405_v0, %v11192_v10  ;;  %v5467_v18 = vperm.slane %v5461_v38, %v11192_v10  ;;  %v5498_v54 = vrot.slane %v5471_v1, 4  ;;  %v5442_v61 = vrot.slane %v5415_v19, 4 }
0x10fe   :  { %v5430_v45 = vrot.slane %v5411_v40, 4  ;;  %v5486_v46 = vrot.slane %v5467_v18, 4 }
0x1100   :  { %5856 = vadd.xlane.f32.xlu2 %v5855_v48 }
0x1103   :  { %v10484_v60 = vpop.permute.xlu1 %10483 }
0x1104   :  { %v10486_v17 = vunpack.i.h.bf16 %v10484_v60  ;;  %v10485_v15 = vunpack.i.l.bf16 %v10484_v60 }
0x1106   :  { %v5472_v14 = vrot.slane %v10486_v17, 4  ;;  %v5475_v23 = vsel %vm483_vm7, %v10486_v17, %v5474_v30  ;;  %v5416_v47 = vrot.slane %v10485_v15, 4  ;;  %v5419_v7 = vsel %vm483_vm7, %v10485_v15, %v5418_v27 }
0x1107   :  { %v5483_v57 = vperm.slane %v5475_v23, %v11192_v10  ;;  %v5427_v12 = vperm.slane %v5419_v7, %v11192_v10 }
0x1108   :  { %v5473_v33 = vsel %vm483_vm7, %v5472_v14, %v10476_v55  ;;  %v5417_v58 = vsel %vm483_vm7, %v5416_v47, %v10475_v2 }
0x1109   :  { %v5479_v32 = vperm.slane %v5473_v33, %v11192_v10  ;;  %v5496_v3 = vrot.slane %v5483_v57, 4  ;;  %v5423_v43 = vperm.slane %v5417_v58, %v11192_v10  ;;  %v5440_v56 = vrot.slane %v5427_v12, 4 }
0x110a   :  { %v5443_v39 = vsel %vm483_vm7, %v5427_v12, %v5442_v61  ;;  %v5499_v6 = vsel %vm483_vm7, %v5483_v57, %v5498_v54 }
0x110b   :  { %v5484_v42 = vrot.slane %v5479_v32, 4  ;;  %v5428_v22 = vrot.slane %v5423_v43, 4  ;;  %v5431_v49 = vsel %vm483_vm7, %v5423_v43, %v5430_v45  ;;  %v5441_v53 = vsel %vm483_vm7, %v5440_v56, %v5415_v19 }
0x110c   :  { %v5439_v20 = vperm.slane %v5431_v49, %v11200_v24  ;;  %v5447_v26 = vperm.slane %v5441_v53, %v11200_v24  ;;  %v5451_v52 = vperm.slane %v5443_v39, %v11200_v24  ;;  %v5487_v29 = vsel %vm483_vm7, %v5479_v32, %v5486_v46 }
0x110d   :  { %v5429_v34 = vsel %vm483_vm7, %v5428_v22, %v5411_v40  ;;  %v5485_v44 = vsel %vm483_vm7, %v5484_v42, %v5467_v18  ;;  %v5495_v4 = vperm.slane %v5487_v29, %v11200_v24  ;;  %v5497_v50 = vsel %vm483_vm7, %v5496_v3, %v5471_v1 }
0x110e   :  { %v5435_v13 = vperm.slane %v5429_v34, %v11200_v24  ;;  %v5454_v59 = vrot.slane %v5439_v20, 4  ;;  %v5456_v36 = vrot.slane %v5447_v26, 4  ;;  %v5458_v5 = vrot.slane %v5451_v52, 4 }
0x110f   :  { %v5491_v55 = vperm.slane %v5485_v44, %v11200_v24  ;;  %v5503_v2 = vperm.slane %v5497_v50, %v11200_v24  ;;  %v5507_v25 = vperm.slane %v5499_v6, %v11200_v24  ;;  %v5510_v48 = vrot.slane %v5495_v4, 4 }
0x1110   :  { %v5452_v37 = vrot.slane %v5435_v13, 4  ;;  %v5455_v0 = vsel %vm483_vm7, 0.0, %v5454_v59  ;;  %v5457_v11 = vsel %vm483_vm7, 0.0, %v5456_v36  ;;  %v5459_v38 = vsel %vm483_vm7, 0.0, %v5458_v5 }
0x1111   :  { %v5508_v30 = vrot.slane %v5491_v55, 4  ;;  %v5511_v27 = vsel %vm483_vm7, 0.0, %v5510_v48  ;;  %v5512_v1 = vrot.slane %v5503_v2, 4  ;;  %v5514_v60 = vrot.slane %v5507_v25, 4 }
0x1112   :  { %v5521_v40 = vrot.slane %v5455_v0, 4  ;;  %v5527_v19 = vsel %vm483_vm7, %v5458_v5, %v5447_v26  ;;  %v5532_v17 = vrot.slane %v5459_v38, 4  ;;  %v5575_v15 = vrot.slane %v5511_v27, 4 }
0x1113   :  { %v5513_v18 = vsel %vm483_vm7, 0.0, %v5512_v1  ;;  %v5515_v14 = vsel %vm483_vm7, 0.0, %v5514_v60  ;;  %v5531_v23 = vperm.slane %v5527_v19, %v11192_v10  ;;  %v5581_v47 = vsel %vm483_vm7, %v5514_v60, %v5503_v2 }
0x1114   :  { %v5585_v7 = vperm.slane %v5581_v47, %v11192_v10  ;;  %v5586_v54 = vrot.slane %v5515_v14, 4  ;;  %v5453_v57 = vsel %vm483_vm7, 0.0, %v5452_v37  ;;  %v5516_v12 = vsel %vm483_vm7, %v5454_v59, %v5435_v13 }
0x1115   :  { %v5520_v45 = vperm.slane %v5516_v12, %v11192_v10  ;;  %v5522_v61 = vsel %vm483_vm7, %v5521_v40, %v5453_v57  ;;  %v5533_v33 = vsel %vm483_vm7, %v5532_v17, %v5457_v11  ;;  %v5552_v58 = vrot.slane %v5531_v23, 4 }
0x1116   :  { %v5526_v32 = vperm.slane %v5522_v61, %v11192_v10  ;;  %v5537_v3 = vperm.slane %v5533_v33, %v11192_v10  ;;  %v5509_v43 = vsel %vm483_vm7, 0.0, %v5508_v30  ;;  %v5570_v56 = vsel %vm483_vm7, %v5510_v48, %v5491_v55 }
0x1117   :  { %v5540_v46 = vrot.slane %v5520_v45, 4  ;;  %v5574_v39 = vperm.slane %v5570_v56, %v11192_v10  ;;  %v5576_v6 = vsel %vm483_vm7, %v5575_v15, %v5509_v43  ;;  %v5587_v42 = vsel %vm483_vm7, %v5586_v54, %v5513_v18 }
0x1118   :  { %v5553_v22 = vsel %vm483_vm7, %v5537_v3, %v5552_v58  ;;  %v5580_v49 = vperm.slane %v5576_v6, %v11192_v10  ;;  %v5591_v53 = vperm.slane %v5587_v42, %v11192_v10  ;;  %v5606_v20 = vrot.slane %v5585_v7, 4 }
0x1119   :  { %v5541_v26 = vsel %vm483_vm7, %v5526_v32, %v5540_v46  ;;  %v5561_v52 = vperm.slane %v5553_v22, %v11200_v24  ;;  %v5594_v29 = vrot.slane %v5574_v39, 4  ;;  %v5538_v34 = vrot.slane %v5526_v32, 4 }
0x111a   :  { %v5549_v44 = vperm.slane %v5541_v26, %v11200_v24  ;;  %v5607_v4 = vsel %vm483_vm7, %v5591_v53, %v5606_v20  ;;  %v5550_v50 = vrot.slane %v5537_v3, 4  ;;  %v5592_v13 = vrot.slane %v5580_v49, 4 }
0x111b   :  { %v5566_v59 = vrot.slane %v5561_v52, 4  ;;  %v5595_v36 = vsel %vm483_vm7, %v5580_v49, %v5594_v29  ;;  %v5615_v5 = vperm.slane %v5607_v4, %v11200_v24  ;;  %v5539_v55 = vsel %vm483_vm7, %v5538_v34, %v5520_v45 }
0x111c   :  { %v5603_v2 = vperm.slane %v5595_v36, %v11200_v24  ;;  %v5545_v25 = vperm.slane %v5539_v55, %v11200_v24  ;;  %v5551_v48 = vsel %vm483_vm7, %v5550_v50, %v5531_v23  ;;  %v5568_v37 = vrot.slane %v5549_v44, 4 }
0x111d   :  { %v5567_v0 = vsel %vm483_vm7, %v5566_v59, %v5549_v44  ;;  %v5620_v11 = vrot.slane %v5615_v5, 4  ;;  %v5557_v38 = vperm.slane %v5551_v48, %v11200_v24  ;;  %v5593_v30 = vsel %vm483_vm7, %v5592_v13, %v5574_v39 }
0x111e   :  { %v5890_v27 = vpack.c.bf16 %v5567_v0, %v5567_v0  ;;  %v5569_v1 = vsel %vm483_vm7, %v5561_v52, %v5568_v37  ;;  %v5599_v60 = vperm.slane %v5593_v30, %v11200_v24  ;;  %v5604_v40 = vrot.slane %v5591_v53, 4 }
0x111f   :  { %v5621_v19 = vsel %vm483_vm7, %v5620_v11, %v5603_v2  ;;  %v5562_v17 = vrot.slane %v5557_v38, 4  ;;  %v5891_v15 = vpack.c.bf16 %v5569_v1, %v5569_v1  ;;  %v5622_v18 = vrot.slane %v5603_v2, 4 }
0x1120   :  { %v5938_v14 = vsel %vm1460_vm11, %v5890_v27, 0  ;;  %v5894_v23 = vpack.c.bf16 %v5621_v19, %v5621_v19  ;;  %v5605_v47 = vsel %vm483_vm7, %v5604_v40, %v5585_v7  ;;  %v5564_v54 = vrot.slane %v5545_v25, 4 }
0x1121   :  { %5947 = vmatpush.bf16.msrb.mxu1 %v5938_v14  ;;  %v5563_v57 = vsel %vm483_vm7, %v5562_v17, %v5545_v25  ;;  %v5957_v12 = vsel %vm1460_vm11, %v5891_v15, 0  ;;  %v5611_v45 = vperm.slane %v5605_v47, %v11200_v24  ;;  %v5623_v61 = vsel %vm483_vm7, %v5615_v5, %v5622_v18 }
0x1122   :  { %v6014_v33 = vsel %vm1460_vm11, %v5894_v23, 0  ;;  %v5888_v58 = vpack.c.bf16 %v5563_v57, %v5563_v57  ;;  %5966 = vmatpush.bf16.msrb.mxu2 %v5957_v12  ;;  %v5895_v32 = vpack.c.bf16 %v5623_v61, %v5623_v61  ;;  %v5565_v3 = vsel %vm483_vm7, %v5557_v38, %v5564_v54 }
0x1123   :  { %v5616_v43 = vrot.slane %v5611_v45, 4  ;;  %v5889_v7 = vpack.c.bf16 %v5565_v3, %v5565_v3  ;;  %v5618_v56 = vrot.slane %v5599_v60, 4 }
0x1124   :  { %v5900_v46 = vsel %vm1460_vm11, %v5888_v58, 0  ;;  %v6033_v39 = vsel %vm1460_vm11, %v5895_v32, 0 }
0x1125   :  { %6023 = vmatpush.bf16.msra.mxu1 %v6014_v33  ;;  %5909 = vmatpush.bf16.msra.mxu3 %v5900_v46  ;;  %v5617_v6 = vsel %vm483_vm7, %v5616_v43, %v5599_v60  ;;  %v5919_v42 = vsel %vm1460_vm11, %v5889_v7, 0  ;;  %v5619_v22 = vsel %vm483_vm7, %v5611_v45, %v5618_v56 }
0x1126   :  { %6042 = vmatpush.bf16.msra.mxu2 %v6033_v39  ;;  %v5892_v49 = vpack.c.bf16 %v5617_v6, %v5617_v6  ;;  %5928 = vmatpush.bf16.msrb.mxu0 %v5919_v42  ;;  %v5893_v53 = vpack.c.bf16 %v5619_v22, %v5619_v22 }
0x1128   :  { %v5976_v20 = vsel %vm1460_vm11, %v5892_v49, 0  ;;  %v5995_v26 = vsel %vm1460_vm11, %v5893_v53, 0 }
0x1129   :  { %5985 = vmatpush.bf16.msrb.mxu3 %v5976_v20 }
0x112a   :  { %6004 = vmatpush.bf16.msra.mxu0 %v5995_v26 }
0x1152   :  { %v5848_v52 = vpop.xlane.xlu1 %5847 }
0x1153   :  { %10699 = vrcp.f32 %v5848_v52 }
0x1154   :  { %v5851_v29 = vpop.xlane.xlu2 %5850 }
0x1155   :  { %10701 = vrcp.f32 %v5851_v29 }
0x1159   :  { %v10700_v34 = vpop.eup %10699 }
0x115a   :  { %v5874_v44 = vmul.f32 %v10700_v34, %v13002_v35 }
0x115b   :  { %v10702_v4 = vpop.eup %10701  ;;  %v5842_v50 = vpop.xlane.xlu0 %5841 }
0x115c   :  { %v5882_v13 = vpack.c.bf16 %v5874_v44, %v5874_v44  ;;  %v5875_v59 = vmul.f32 %v10702_v4, %v13007_v41  ;;  %10703 = vrcp.f32 %v5842_v50 }
0x115e   :  { %v5883_v36 = vpack.c.bf16 %v5875_v59, %v5875_v59  ;;  %9812 = vmatmul.msk.bf16.vlgmr.msrb.gmra.mxu1 %vm1352_vm10, %v5882_v13 }
0x1160   :  { %9813 = vmatmul.msk.bf16.vlgmr.msrb.gmra.mxu2 %vm1352_vm10, %v5883_v36 }
0x1162   :  { %v10704_v5 = vpop.eup %10703 }
0x1163   :  { %v5872_v55 = vmul.f32 %v10704_v5, %v13011_v9  ;;  %v5845_v2 = vpop.xlane.xlu0 %5844  ;;  %v5860_v25 = vpop.xlane.xlu1 %5859 }
0x1164   :  { %10705 = vrcp.f32 %v5845_v2 }
0x1165   :  { %v5880_v48 = vpack.c.bf16 %v5872_v55, %v5872_v55  ;;  %10707 = vrcp.f32 %v5860_v25 }
0x1167   :  { %9810 = vmatmul.msk.bf16.vlgmr.msra.gmra.mxu3 %vm1352_vm10, %v5880_v48 }
0x116a   :  { %v10706_v35 = vpop.eup %10705 }
0x116b   :  { %v10708_v37 = vpop.eup %10707  ;;  %v5873_v41 = vmul.f32 %v10706_v35, %v13015_v63  ;;  %v5854_v0 = vpop.xlane.xlu2 %5853 }
0x116c   :  { %v5863_v11 = vpop.xlane.xlu0 %5862  ;;  %v5878_v38 = vmul.f32 %v10708_v37, %v13018_v51  ;;  %10709 = vrcp.f32 %v5854_v0 }
0x116d   :  { %v5881_v30 = vpack.c.bf16 %v5873_v41, %v5873_v41  ;;  %10711 = vrcp.f32 %v5863_v11 }
0x116e   :  { %v5886_v27 = vpack.c.bf16 %v5878_v38, %v5878_v38 }
0x116f   :  { %9811 = vmatmul.msk.bf16.vlgmr.msrb.gmra.mxu0 %vm1352_vm10, %v5881_v30 }
0x1170   :  { %9816 = vmatmul.msk.bf16.vlgmr.msra.gmra.mxu1 %vm1352_vm10, %v5886_v27 }
0x1172   :  { %v10710_v9 = vpop.eup %10709 }
0x1173   :  { %v10712_v1 = vpop.eup %10711  ;;  %v5876_v60 = vmul.f32 %v10710_v9, %v13026_v62  ;;  %v5857_v40 = vpop.xlane.xlu2 %5856 }
0x1174   :  { %v5879_v19 = vmul.f32 %v10712_v1, %v13024_v21  ;;  %10713 = vrcp.f32 %v5857_v40 }
0x1175   :  { %v5884_v63 = vpack.c.bf16 %v5876_v60, %v5876_v60 }
0x1176   :  { %v5887_v17 = vpack.c.bf16 %v5879_v19, %v5879_v19 }
0x1177   :  { %9814 = vmatmul.msk.bf16.vlgmr.msrb.gmra.mxu3 %vm1352_vm10, %v5884_v63 }
0x1178   :  { %9817 = vmatmul.msk.bf16.vlgmr.msra.gmra.mxu2 %vm1352_vm10, %v5887_v17 }
0x117a   :  { %v10714_v51 = vpop.eup %10713 }
0x117b   :  { %v5877_v15 = vmul.f32 %v10714_v51, %v13032_v28 }
0x117d   :  { %v5885_v18 = vpack.c.bf16 %v5877_v15, %v5877_v15 }
0x117f   :  { %9815 = vmatmul.msk.bf16.vlgmr.msra.gmra.mxu0 %vm1352_vm10, %v5885_v18 }
0x11db   :  { %v5949_v14 = vpop.f32.mrf.mxu1 }
0x11dc   :  { %v6048_v62 = vrot.slane %v5949_v14, 4 }
0x11e3   :  { %v5951_v23 = vpop.f32.mrf.mxu1  ;;  %v5968_v47 = vpop.f32.mrf.mxu2 }
0x11e4   :  { %v6060_v57 = vrot.slane %v5968_v47, 4 }
0x11ea   :  { %v5911_v54 = vpop.f32.mrf.mxu3 }
0x11eb   :  { %v6049_v21 = vsel %vm483_vm7, %v6048_v62, %v5911_v54  ;;  %v6050_v12 = vrot.slane %v5911_v54, 4  ;;  %v5970_v45 = vpop.f32.mrf.mxu2 }
0x11ec   :  { %v6055_v61 = vperm.slane %v6049_v21, %v11192_v10  ;;  %v5930_v33 = vpop.f32.mrf.mxu0 }
0x11ed   :  { %v6051_v58 = vsel %vm483_vm7, %v5949_v14, %v6050_v12  ;;  %v6061_v28 = vsel %vm483_vm7, %v6060_v57, %v5930_v33  ;;  %v6062_v32 = vrot.slane %v5930_v33, 4  ;;  %v6025_v3 = vpop.f32.mrf.mxu1 }
0x11ee   :  { %v6059_v43 = vperm.slane %v6051_v58, %v11192_v10  ;;  %v6074_v7 = vrot.slane %v6055_v61, 4  ;;  %v6067_v56 = vperm.slane %v6061_v28, %v11192_v10  ;;  %v6104_v38 = vrot.slane %v6025_v3, 4 }
0x11ef   :  { %v6063_v46 = vsel %vm483_vm7, %v5968_v47, %v6062_v32 }
0x11f0   :  { %v6086_v39 = vrot.slane %v6059_v43, 4  ;;  %v6071_v6 = vperm.slane %v6063_v46, %v11192_v10  ;;  %v6072_v42 = vrot.slane %v6067_v56, 4  ;;  %v6075_v22 = vsel %vm483_vm7, %v6067_v56, %v6074_v7 }
0x11f1   :  { %v6083_v49 = vperm.slane %v6075_v22, %v11200_v24 }
0x11f2   :  { %v6073_v53 = vsel %vm483_vm7, %v6072_v42, %v6055_v61  ;;  %v6084_v20 = vrot.slane %v6071_v6, 4  ;;  %v6087_v26 = vsel %vm483_vm7, %v6071_v6, %v6086_v39  ;;  %v5913_v52 = vpop.f32.mrf.mxu3 }
0x11f3   :  { %v6079_v29 = vperm.slane %v6073_v53, %v11200_v24  ;;  %v6095_v34 = vperm.slane %v6087_v26, %v11200_v24  ;;  %v6098_v44 = vrot.slane %v6083_v49, 4 }
0x11f4   :  { %v6085_v4 = vsel %vm483_vm7, %v6084_v20, %v6059_v43  ;;  %v5932_v50 = vpop.f32.mrf.mxu0 }
0x11f5   :  { %v6091_v13 = vperm.slane %v6085_v4, %v11200_v24  ;;  %v6096_v59 = vrot.slane %v6079_v29, 4  ;;  %v6099_v36 = vsel %vm483_vm7, 0.0, %v6098_v44  ;;  %v6102_v5 = vrot.slane %v6095_v34, 4  ;;  %v6027_v55 = vpop.f32.mrf.mxu1 }
0x11f6   :  { %v6160_v2 = vsel %vm483_vm7, %v6098_v44, %v6079_v29  ;;  %v6165_v25 = vrot.slane %v6099_v36, 4 }
0x11f7   :  { %v6097_v48 = vsel %vm483_vm7, 0.0, %v6096_v59  ;;  %v6100_v35 = vrot.slane %v6091_v13, 4  ;;  %v6103_v37 = vsel %vm483_vm7, 0.0, %v6102_v5  ;;  %v6164_v41 = vperm.slane %v6160_v2, %v11192_v10 }
0x11f8   :  { %v6166_v0 = vsel %vm483_vm7, %v6165_v25, %v6097_v48  ;;  %v6176_v11 = vrot.slane %v6103_v37, 4  ;;  %v6171_v27 = vsel %vm483_vm7, %v6102_v5, %v6091_v13 }
0x11f9   :  { %v6101_v30 = vsel %vm483_vm7, 0.0, %v6100_v35  ;;  %v6170_v60 = vperm.slane %v6166_v0, %v11192_v10  ;;  %v6184_v51 = vrot.slane %v6164_v41, 4  ;;  %v6175_v62 = vperm.slane %v6171_v27, %v11192_v10 }
0x11fa   :  { %v5987_v9 = vpop.f32.mrf.mxu3  ;;  %v6177_v1 = vsel %vm483_vm7, %v6176_v11, %v6101_v30 }
0x11fb   :  { %v6105_v40 = vsel %vm483_vm7, %v6104_v38, %v5987_v9  ;;  %v6106_v19 = vrot.slane %v5987_v9, 4  ;;  %v6044_v63 = vpop.f32.mrf.mxu2  ;;  %v6181_v17 = vperm.slane %v6177_v1, %v11192_v10  ;;  %v6182_v33 = vrot.slane %v6170_v60, 4 }
0x11fc   :  { %v6111_v15 = vperm.slane %v6105_v40, %v11192_v10  ;;  %v6116_v18 = vrot.slane %v6044_v63, 4  ;;  %v6006_v14 = vpop.f32.mrf.mxu0  ;;  %v6185_v7 = vsel %vm483_vm7, %v6170_v60, %v6184_v51  ;;  %v6196_v56 = vrot.slane %v6175_v62, 4 }
0x11fd   :  { %v6107_v23 = vsel %vm483_vm7, %v6025_v3, %v6106_v19  ;;  %v6118_v47 = vrot.slane %v6006_v14, 4  ;;  %v6194_v54 = vrot.slane %v6181_v17, 4  ;;  %v6183_v20 = vsel %vm483_vm7, %v6182_v33, %v6164_v41 }
0x11fe   :  { %v6115_v57 = vperm.slane %v6107_v23, %v11192_v10  ;;  %v6130_v21 = vrot.slane %v6111_v15, 4  ;;  %v6117_v12 = vsel %vm483_vm7, %v6116_v18, %v6006_v14  ;;  %v6193_v4 = vperm.slane %v6185_v7, %v11200_v24 }
0x11ff   :  { %v6119_v45 = vsel %vm483_vm7, %v6044_v63, %v6118_v47  ;;  %v6123_v61 = vperm.slane %v6117_v12, %v11192_v10  ;;  %v6195_v32 = vsel %vm483_vm7, %v6194_v54, %v6175_v62  ;;  %v6197_v59 = vsel %vm483_vm7, %v6181_v17, %v6196_v56 }
0x1200   :  { %v6142_v58 = vrot.slane %v6115_v57, 4  ;;  %v6127_v28 = vperm.slane %v6119_v45, %v11192_v10  ;;  %v6201_v26 = vperm.slane %v6195_v32, %v11200_v24  ;;  %v6189_v25 = vperm.slane %v6183_v20, %v11200_v24  ;;  %v10277_v20 = vld [vmem:[%s14220_s21 + $0x78] sm:$0xff] }
0x1201   :  { %v6128_v3 = vrot.slane %v6123_v61, 4  ;;  %v6131_v43 = vsel %vm483_vm7, %v6123_v61, %v6130_v21  ;;  %v6205_v19 = vperm.slane %v6197_v59, %v11200_v24  ;;  %v6212_v14 = vrot.slane %v6193_v4, 4  ;;  %6364 = vmatpush.bf16.msra.mxu3 %v10277_v20 }
0x1202   :  { %v6139_v46 = vperm.slane %v6131_v43, %v11200_v24  ;;  %v6140_v39 = vrot.slane %v6127_v28, 4  ;;  %v6143_v6 = vsel %vm483_vm7, %v6127_v28, %v6142_v58  ;;  %v5989_v42 = vpop.f32.mrf.mxu3  ;;  %v6206_v36 = vrot.slane %v6201_v26, 4 }
0x1203   :  { %v6129_v22 = vsel %vm483_vm7, %v6128_v3, %v6111_v15  ;;  %v6151_v49 = vperm.slane %v6143_v6, %v11200_v24  ;;  %v6046_v53 = vpop.f32.mrf.mxu2  ;;  %v6208_v45 = vrot.slane %v6189_v25, 4  ;;  %v6213_v32 = vsel %vm483_vm7, %v6205_v19, %v6212_v14  ;;  %v10295_v14 = vld [vmem:[#allocation7 + $0xc4] sm:$0xf0] }
0x1204   :  { %v6135_v52 = vperm.slane %v6129_v22, %v11200_v24  ;;  %v6141_v29 = vsel %vm483_vm7, %v6140_v39, %v6115_v57  ;;  %v6154_v34 = vrot.slane %v6139_v46, 4  ;;  %v6008_v44 = vpop.f32.mrf.mxu0  ;;  %v13202_v30 = vsel %vm483_vm7, %v6206_v36, %v6189_v25 }
0x1205   :  { %v6147_v50 = vperm.slane %v6141_v29, %v11200_v24  ;;  %v6158_v13 = vrot.slane %v6151_v49, 4  ;;  %v6210_v57 = vrot.slane %v6205_v19, 4  ;;  %v6209_v42 = vsel %vm483_vm7, %v6201_v26, %v6208_v45  ;;  %v10276_v26 = vld [vmem:[%s14220_s21 + $0x70] sm:$0xff]  ;;  %v10274_v29 = vld [vmem:[%s14220_s21 + $0x60] sm:$0xff] }
0x1206   :  { %v6152_v5 = vrot.slane %v6135_v52, 4  ;;  %v6155_v55 = vsel %vm483_vm7, 0.0, %v6154_v34  ;;  %v6214_v2 = vsel %vm483_vm7, %v6154_v34, %v6135_v52  ;;  %6365 = vmatpush.bf16.msra.mxu3 %v10276_v26  ;;  %v10275_v52 = vld [vmem:[%s14220_s21 + $0x68] sm:$0xff]  ;;  %v10273_v34 = vld [vmem:[%s14220_s21 + $0x58] sm:$0xff]  ;;  %v10272_v44 = vld [vmem:[%s14220_s21 + $0x50] sm:$0xff] }
0x1207   :  { %v6156_v48 = vrot.slane %v6147_v50, 4  ;;  %v6159_v35 = vsel %vm483_vm7, 0.0, %v6158_v13  ;;  %v6218_v37 = vperm.slane %v6214_v2, %v11192_v10  ;;  %v6219_v41 = vrot.slane %v6155_v55, 4 }
0x1208   :  { %v6153_v0 = vsel %vm483_vm7, 0.0, %v6152_v5  ;;  %v6225_v11 = vsel %vm483_vm7, %v6158_v13, %v6147_v50  ;;  %v6230_v38 = vrot.slane %v6159_v35, 4  ;;  %v6211_v56 = vsel %vm483_vm7, %v6210_v57, %v6193_v4  ;;  %v10271_v4 = vld [vmem:[%s14220_s21 + $0x48] sm:$0xff]  ;;  %v10270_v50 = vld [vmem:[%s14220_s21 + $0x40] sm:$0xff] }
0x1209   :  { %v6220_v27 = vsel %vm483_vm7, %v6219_v41, %v6153_v0  ;;  %v6238_v9 = vrot.slane %v6218_v37, 4  ;;  %v6157_v1 = vsel %vm483_vm7, 0.0, %v6156_v48  ;;  %v6229_v60 = vperm.slane %v6225_v11, %v11192_v10  ;;  %v9921_v57 = vld [vmem:[#allocation7 + $0xa0] sm:$0xf] }
0x120a   :  { %v6224_v40 = vperm.slane %v6220_v27, %v11192_v10  ;;  %v6231_v63 = vsel %vm483_vm7, %v6230_v38, %v6157_v1  ;;  %6366 = vmatpush.bf16.msra.mxu3 %v10275_v52  ;;  %v9961_v1 = vld [vmem:[#allocation7 + $0xf0] sm:$0xf] }
0x120b   :  { %v6235_v17 = vperm.slane %v6231_v63, %v11192_v10  ;;  %v6250_v51 = vrot.slane %v6229_v60, 4  ;;  %v10299_v63 = vld [vmem:[#allocation7 + $0xe4] sm:$0xf0] }
0x120c   :  { %v6239_v15 = vsel %vm483_vm7, %v6224_v40, %v6238_v9  ;;  %v6236_v18 = vrot.slane %v6224_v40, 4  ;;  %v9953_v40 = vld [vmem:[#allocation7 + $0xe0] sm:$0xf] }
0x120d   :  { %v6247_v23 = vperm.slane %v6239_v15, %v11200_v24  ;;  %v6251_v47 = vsel %vm483_vm7, %v6235_v17, %v6250_v51  ;;  %v6248_v62 = vrot.slane %v6235_v17, 4  ;;  %v9954_v17 = vor.u32 %v10299_v63, %v9953_v40  ;;  %v10297_v51 = vld [vmem:[#allocation7 + $0xd4] sm:$0xf0] }
0x120e   :  { %v6259_v54 = vperm.slane %v6251_v47, %v11200_v24  ;;  %v6237_v21 = vsel %vm483_vm7, %v6236_v18, %v6218_v37  ;;  %6367 = vmatpush.bf16.msra.mxu3 %v10274_v29  ;;  %v9937_v18 = vld [vmem:[#allocation7 + $0xc0] sm:$0xf]  ;;  %v9929_v47 = vld [vmem:[#allocation7 + $0xb0] sm:$0xf] }
0x120f   :  { %v6266_v12 = vrot.slane %v6247_v23, 4  ;;  %v6243_v61 = vperm.slane %v6237_v21, %v11200_v24  ;;  %v6249_v33 = vsel %vm483_vm7, %v6248_v62, %v6229_v60  ;;  %v10301_v60 = vld [vmem:[#allocation7 + $0xf4] sm:$0xf0]  ;;  %v10291_v21 = vld [vmem:[#allocation7 + $0xa4] sm:$0xf0] }
0x1210   :  { %v6264_v58 = vrot.slane %v6259_v54, 4  ;;  %v6255_v28 = vperm.slane %v6249_v33, %v11200_v24  ;;  %v9962_v19 = vor.u32 %v10301_v60, %v9961_v1  ;;  %v10293_v62 = vld [vmem:[#allocation7 + $0xb4] sm:$0xf0] }
0x1211   :  { %v6267_v3 = vsel %vm483_vm7, %v6259_v54, %v6266_v12  ;;  %v6262_v43 = vrot.slane %v6243_v61, 4  ;;  %v9930_v54 = vor.u32 %v10293_v62, %v9929_v47  ;;  %v10591_v12 = vld [vmem:[%s14221_s13 + $0x1] ss:$0 sm:$0xff] }
0x1212   :  { %v10497_v7 = vpack.i.bf16 %v6267_v3, %v6213_v32  ;;  %v6265_v46 = vsel %vm483_vm7, %v6264_v58, %v6247_v23  ;;  %v6260_v39 = vrot.slane %v6255_v28, 4  ;;  %6368 = vmatpush.bf16.msra.mxu3 %v10273_v34  ;;  %6870 = vmatpush.bf16.msrb.mxu1 %v9962_v19  ;;  %v9938_v23 = vor.u32 %v10295_v14, %v9937_v18  ;;  %v9913_v58 = vld [vmem:[#allocation7 + $0x90] sm:$0xf]  ;;  %v10285_v34 = vld [vmem:[#allocation5 + $0x78] sm:$0xff]  ;;  %v10592_v62 = vld [vmem:[%s14223_s4 + $0x1] ss:$0 sm:$0xff] }
0x1213   :  { %v10492_v6 = vpack.i.bf16 %v6265_v46, %v6211_v56  ;;  %v6263_v22 = vsel %vm483_vm7, %v6255_v28, %v6262_v43  ;;  %v10289_v28 = vld [vmem:[#allocation7 + $0x94] sm:$0xf0]  ;;  %v9905_v46 = vld [vmem:[#allocation7 + $0x80] sm:$0xf]  ;;  %6512 = vmatpush.bf16.msrb.mxu0 %v10285_v34 }
0x1214   :  { %10498 = vrot.lane.b32.xlu2 %v10497_v7, %s10961_s28  ;;  %v10487_v49 = vpack.i.bf16 %v6263_v22, %v6209_v42  ;;  %v6261_v53 = vsel %vm483_vm7, %v6260_v39, %v6243_v61  ;;  %v9922_v61 = vor.u32 %v10291_v21, %v9921_v57  ;;  %v9914_v3 = vor.u32 %v10289_v28, %v9913_v58  ;;  %v10287_v39 = vld [vmem:[#allocation7 + $0x84] sm:$0xf0] }
0x1215   :  { %10493 = vrot.lane.b32.xlu1 %v10492_v6, %s10948_s9  ;;  %v9906_v6 = vor.u32 %v10287_v39, %v9905_v46  ;;  %v13280_v42 = vld [vmem:[%s14222_s2 + $0x8] sm:$0xff] }
0x1216   :  { %10488 = vrot.lane.b32.xlu0 %v10487_v49, %s10960_s27  ;;  %6369 = vmatpush.bf16.msra.mxu3 %v10272_v44 }
0x1217   :  { %6871 = vmatpush.bf16.msrb.mxu1 %v9954_v17 }
0x121a   :  { %6370 = vmatpush.bf16.msra.mxu3 %v10271_v4  ;;  %v10284_v4 = vld [vmem:[#allocation5 + $0x70] sm:$0xff] }
0x121b   :  { %6513 = vmatpush.bf16.msrb.mxu0 %v10284_v4 }
0x121e   :  { %6371 = vmatpush.bf16.msra.mxu3 %v10270_v50  ;;  %v9902_v50 = vld [vmem:[%s14180_s14 + $0x2] sm:$0x3] }
0x126e   :  { %v10499_v59 = vpop.permute.xlu2 %10498 }
0x126f   :  { %v10501_v48 = vunpack.i.h.bf16 %v10499_v59  ;;  %v10500_v35 = vunpack.i.l.bf16 %v10499_v59  ;;  %v13290_v59 = vperm.slane %v9902_v50, 0 }
0x1287   :  { %v10494_v13 = vpop.permute.xlu1 %10493 }
0x1288   :  { %v10496_v36 = vunpack.i.h.bf16 %v10494_v13  ;;  %v10495_v5 = vunpack.i.l.bf16 %v10494_v13  ;;  %v10489_v55 = vpop.permute.xlu0 %10488  ;;  %v10283_v13 = vld [vmem:[#allocation5 + $0x68] sm:$0xff] }
0x1289   :  { %v10491_v2 = vunpack.i.h.bf16 %v10489_v55  ;;  %v10490_v25 = vunpack.i.l.bf16 %v10489_v55  ;;  %6514 = vmatpush.bf16.msrb.mxu0 %v10283_v13 }
0x128b   :  { %v6292_v37 = vsel %vm1199_vm8, %v13202_v30, %v10490_v25  ;;  %v6293_v41 = vsel %vm1199_vm8, %v6261_v53, %v10491_v2  ;;  %v9945_v30 = vld [vmem:[#allocation7 + $0xd0] sm:$0xf]  ;;  %v10282_v2 = vld [vmem:[#allocation5 + $0x60] sm:$0xff] }
0x128c   :  { %v6294_v0 = vsel %vm1856_vm12, %v6292_v37, %v10495_v5  ;;  %v6295_v11 = vsel %vm1856_vm12, %v6293_v41, %v10496_v36  ;;  %v9946_v15 = vor.u32 %v10297_v51, %v9945_v30 }
0x128d   :  { %v6296_v38 = vsel %vm1859_vm13, %v6294_v0, %v10500_v35  ;;  %v6297_v27 = vsel %vm1859_vm13, %v6295_v11, %v10501_v48  ;;  %6515 = vmatpush.bf16.msrb.mxu0 %v10282_v2  ;;  %v10281_v48 = vld [vmem:[#allocation5 + $0x58] sm:$0xff]  ;;  %v10280_v0 = vld [vmem:[#allocation5 + $0x50] sm:$0xff]  ;;  %v10279_v11 = vld [vmem:[#allocation5 + $0x48] sm:$0xff] }
0x128e   :  { %v6298_v9 = vpack.c.bf16 %v6297_v27, %v6296_v38  ;;  %6872 = vmatpush.bf16.msrb.mxu1 %v9946_v15 }
0x1290   :  { %6372 = vmatmul.bf16.vlgmr.msra.gmra.mxu3 %v6298_v9  ;;  %v10278_v9 = vld [vmem:[#allocation5 + $0x40] sm:$0xff] }
0x1291   :  { %6516 = vmatpush.bf16.msrb.mxu0 %v10281_v48 }
0x1292   :  { %6873 = vmatpush.bf16.msrb.mxu1 %v9938_v23 }
0x1295   :  { %6517 = vmatpush.bf16.msrb.mxu0 %v10280_v0 }
0x1296   :  { %6874 = vmatpush.bf16.msrb.mxu1 %v9930_v54 }
0x1299   :  { %6518 = vmatpush.bf16.msrb.mxu0 %v10279_v11 }
0x129a   :  { %6875 = vmatpush.bf16.msrb.mxu1 %v9922_v61 }
0x129d   :  { %6519 = vmatpush.bf16.msrb.mxu0 %v10278_v9 }
0x129e   :  { %6876 = vmatpush.bf16.msrb.mxu1 %v9914_v3 }
0x12a2   :  { %6877 = vmatpush.bf16.msrb.mxu1 %v9906_v6 }
0x1313   :  { %v6373_v45 = vpop.f32.mrf.mxu3 }
0x1314   :  { %v6378_v33 = vadd.f32 %v6373_v45, %v12654_v16  ;;  %v13274_v16 = vld [vmem:[%s14222_s2] sm:$0xff]  ;;  %s9261_s2 = sshll.u32 %s14192_s26, 4  ;;  %s9262_s2 = int_to_ptr.hbm [resolvable:$true] %s9261_s2 }
0x1315   :  { %6878 = vmatmul.bf16.vlgmr.msrb.gmra.mxu1 %v13274_v16 }
0x1316   :  { %v13264_v32 = vadd.f32 %v10591_v12, %v6378_v33 }
0x1318   :  { %6391 = vadd.xlane.f32.xlu0 %v13264_v32 }
0x131b   :  { %v6375_v43 = vpop.f32.mrf.mxu3 }
0x131c   :  { %v6379_v7 = vadd.f32 %v6375_v43, %v12658_v31 }
0x131e   :  { %v13268_v56 = vadd.f32 %v10591_v12, %v6379_v7  ;;  %v10593_v12 = vld [vmem:[%s14224_s7 + $0x1] ss:$0 sm:$0xff] }
0x1320   :  { %6393 = vadd.xlane.f32.xlu2 %v13268_v56 }
0x1325   :  { %6883 = vmatmul.bf16.gmra.mxu1 %v13280_v42 }
0x138b   :  { %v6392_v31 = vpop.xlane.xlu0 %6391 }
0x138c   :  { %v6395_v22 = vmul.f32 %v6392_v31, %v11141_v8 }
0x138e   :  { %v6397_v49 = vsub.f32 %v13264_v32, %v6395_v22 }
0x1390   :  { %v6399_v53 = vmul.f32 %v6397_v49, %v6397_v49 }
0x1392   :  { %6401 = vadd.xlane.f32.xlu1 %v6399_v53  ;;  %v6879_v44 = vpop.f32.mrf.mxu1 }
0x1393   :  { %v6394_v20 = vpop.xlane.xlu2 %6393  ;;  %v13293_v5 = vadd.f32 %v6879_v44, %v13290_v59 }
0x1394   :  { %v6396_v26 = vmul.f32 %v6394_v20, %v11141_v8 }
0x1395   :  { %v6950_v39 = vrot.slane %v13293_v5, 4 }
0x1396   :  { %v6398_v52 = vsub.f32 %v13268_v56, %v6396_v26 }
0x1398   :  { %v6400_v29 = vmul.f32 %v6398_v52, %v6398_v52 }
0x139a   :  { %6403 = vadd.xlane.f32.xlu0 %v6400_v29  ;;  %v6881_v36 = vpop.f32.mrf.mxu1 }
0x139b   :  { %v13296_v55 = vadd.f32 %v6881_v36, %v13290_v59 }
0x139d   :  { %v10507_v25 = vpack.i.bf16 %v13296_v55, %v13293_v5  ;;  %v7006_v6 = vrot.slane %v13296_v55, 4 }
0x139f   :  { %10503 = vrot.lane.b32.xlu2 %v10507_v25, %s10961_s28 }
0x13ab   :  { %10508 = vrot.lane.b32.xlu1 %v10507_v25, %s10948_s9 }
0x13ae   :  { %10513 = vrot.lane.b32.xlu0 %v10507_v25, %s10960_s27 }
0x13f9   :  { %v10504_v43 = vpop.permute.xlu2 %10503 }
0x13fa   :  { %v10506_v7 = vunpack.i.h.bf16 %v10504_v43  ;;  %v10505_v46 = vunpack.i.l.bf16 %v10504_v43 }
0x13fc   :  { %v7018_v53 = vrot.slane %v10506_v7, 4  ;;  %v6962_v20 = vrot.slane %v10505_v46, 4 }
0x1405   :  { %v6402_v35 = vpop.xlane.xlu1 %6401 }
0x1406   :  { %v6405_v37 = vmul.f32 %v6402_v35, %v11141_v8 }
0x1408   :  { %v6407_v41 = vadd.f32 1e-05, %v6405_v37 }
0x140a   :  { %10715 = vrsqrt.f32 %v6407_v41  ;;  %vm6415_vm11 = vweird.f32 %v6407_v41 }
0x140d   :  { %v6404_v38 = vpop.xlane.xlu0 %6403 }
0x140e   :  { %v6406_v27 = vmul.f32 %v6404_v38, %v11141_v8 }
0x1410   :  { %v10716_v1 = vpop.eup %10715  ;;  %v6408_v60 = vadd.f32 1e-05, %v6406_v27 }
0x1411   :  { %v6410_v40 = vmul.f32 %v10716_v1, %v6407_v41  ;;  %vm6416_vm10 = vweird.f32 %v10716_v1 }
0x1412   :  { %10717 = vrsqrt.f32 %v6408_v60  ;;  %vm6417_vm14 = vmor %vm6415_vm11, %vm6416_vm10  ;;  %vm6425_vm0 = vweird.f32 %v6408_v60 }
0x1413   :  { %v6411_v19 = vmul.f32 %v10716_v1, %v6410_v40 }
0x1415   :  { %v6412_v63 = vmul.f32 0.5, %v6411_v19 }
0x1417   :  { %v6413_v17 = vsub.f32 1.5, %v6412_v63 }
0x1418   :  { %v10718_v30 = vpop.eup %10717 }
0x1419   :  { %v6414_v51 = vmul.f32 %v10716_v1, %v6413_v17  ;;  %v6420_v15 = vmul.f32 %v10718_v30, %v6408_v60  ;;  %vm6426_vm15 = vweird.f32 %v10718_v30 }
0x141a   :  { %vm6427_vm1 = vmor %vm6425_vm0, %vm6426_vm15 }
0x141b   :  { %v6421_v18 = vmul.f32 %v10718_v30, %v6420_v15  ;;  %v6418_v14 = vsel %vm6417_vm14, %v10716_v1, %v6414_v51 }
0x141c   :  { %v6429_v54 = vmul.f32 %v6418_v14, %v6397_v49 }
0x141d   :  { %v6422_v23 = vmul.f32 0.5, %v6421_v18  ;;  %v10509_v31 = vpop.permute.xlu1 %10508 }
0x141e   :  { %v6434_v45 = vmul.f32 %v10592_v62, %v6429_v54  ;;  %v10511_v22 = vunpack.i.h.bf16 %v10509_v31  ;;  %v10510_v49 = vunpack.i.l.bf16 %v10509_v31 }
0x141f   :  { %v6423_v47 = vsub.f32 1.5, %v6422_v23 }
0x1420   :  { %v6439_v58 = vadd.f32 %v10593_v12, %v6434_v45  ;;  %v10514_v26 = vpop.permute.xlu0 %10513  ;;  %v7004_v29 = vrot.slane %v10511_v22, 4  ;;  %v6948_v34 = vrot.slane %v10510_v49, 4  ;;  %v6951_v44 = vsel %vm483_vm7, %v10510_v49, %v6950_v39 }
0x1421   :  { %v6424_v57 = vmul.f32 %v10718_v30, %v6423_v47  ;;  %v6959_v50 = vperm.slane %v6951_v44, %v11192_v10  ;;  %v10516_v13 = vunpack.i.h.bf16 %v10514_v26  ;;  %v10515_v36 = vunpack.i.l.bf16 %v10514_v26 }
0x1422   :  { %v7005_v2 = vsel %vm483_vm7, %v7004_v29, %v13296_v55  ;;  %v6949_v25 = vsel %vm483_vm7, %v6948_v34, %v13293_v5 }
0x1423   :  { %v6428_v21 = vsel %vm6427_vm1, %v10718_v30, %v6424_v57  ;;  %v7011_v48 = vperm.slane %v7005_v2, %v11192_v10  ;;  %v6955_v37 = vperm.slane %v6949_v25, %v11192_v10  ;;  %v6986_v41 = vrot.slane %v6959_v50, 4 }
0x1424   :  { %v6430_v61 = vmul.f32 %v6428_v21, %v6398_v52  ;;  %v7007_v52 = vsel %vm483_vm7, %v10511_v22, %v7006_v6  ;;  %v7016_v0 = vrot.slane %v10516_v13, 4  ;;  %v6960_v11 = vrot.slane %v10515_v36, 4 }
0x1425   :  { %v7015_v4 = vperm.slane %v7007_v52, %v11192_v10  ;;  %v6963_v38 = vsel %vm483_vm7, %v10515_v36, %v6962_v20  ;;  %v7019_v27 = vsel %vm483_vm7, %v10516_v13, %v7018_v53  ;;  %v6974_v9 = vrot.slane %v6955_v37, 4 }
0x1426   :  { %v6435_v33 = vmul.f32 %v10592_v62, %v6430_v61  ;;  %v6971_v1 = vperm.slane %v6963_v38, %v11192_v10  ;;  %v7027_v55 = vperm.slane %v7019_v27, %v11192_v10  ;;  %v7030_v60 = vrot.slane %v7011_v48, 4 }
0x1427   :  { %v7042_v35 = vrot.slane %v7015_v4, 4  ;;  %v6961_v5 = vsel %vm483_vm7, %v6960_v11, %v10505_v46  ;;  %v7017_v40 = vsel %vm483_vm7, %v7016_v0, %v10506_v7 }
0x1428   :  { %v6440_v28 = vadd.f32 %v10593_v12, %v6435_v33  ;;  %v6967_v19 = vperm.slane %v6961_v5, %v11192_v10  ;;  %v6984_v63 = vrot.slane %v6971_v1, 4  ;;  %v6987_v17 = vsel %vm483_vm7, %v6971_v1, %v6986_v41 }
0x1429   :  { %v7023_v30 = vperm.slane %v7017_v40, %v11192_v10  ;;  %v6995_v51 = vperm.slane %v6987_v17, %v11200_v24  ;;  %v7040_v15 = vrot.slane %v7027_v55, 4  ;;  %v7043_v18 = vsel %vm483_vm7, %v7027_v55, %v7042_v35 }
0x142a   :  { %v6441_v3 = vpack.c.bf16 %v6440_v28, %v6439_v58  ;;  %v6972_v14 = vrot.slane %v6967_v19, 4  ;;  %v6975_v23 = vsel %vm483_vm7, %v6967_v19, %v6974_v9  ;;  %v6985_v47 = vsel %vm483_vm7, %v6984_v63, %v6959_v50 }
0x142b   :  { %v7028_v62 = vrot.slane %v7023_v30, 4  ;;  %v6983_v54 = vperm.slane %v6975_v23, %v11200_v24  ;;  %v6991_v57 = vperm.slane %v6985_v47, %v11200_v24  ;;  %v7002_v21 = vrot.slane %v6995_v51, 4 }
0x142c   :  { %6520 = vmatmul.bf16.vlgmr.msrb.gmra.mxu0 %v6441_v3  ;;  %v7031_v12 = vsel %vm483_vm7, %v7023_v30, %v7030_v60  ;;  %v6973_v45 = vsel %vm483_vm7, %v6972_v14, %v6955_v37  ;;  %v7041_v58 = vsel %vm483_vm7, %v7040_v15, %v7015_v4  ;;  %v7051_v6 = vperm.slane %v7043_v18, %v11200_v24 }
0x142d   :  { %v7029_v61 = vsel %vm483_vm7, %v7028_v62, %v7011_v48  ;;  %v7039_v33 = vperm.slane %v7031_v12, %v11200_v24  ;;  %v6979_v28 = vperm.slane %v6973_v45, %v11200_v24  ;;  %v6998_v3 = vrot.slane %v6983_v54, 4 }
0x142e   :  { %v7000_v43 = vrot.slane %v6991_v57, 4  ;;  %v7003_v7 = vsel %vm483_vm7, 0.0, %v7002_v21  ;;  %v7035_v46 = vperm.slane %v7029_v61, %v11200_v24  ;;  %v7047_v39 = vperm.slane %v7041_v58, %v11200_v24 }
0x142f   :  { %v7054_v31 = vrot.slane %v7039_v33, 4  ;;  %v6996_v22 = vrot.slane %v6979_v28, 4  ;;  %v6999_v49 = vsel %vm483_vm7, 0.0, %v6998_v3  ;;  %v7183_v20 = vsel %vm483_vm7, %v7002_v21, %v6991_v57 }
0x1430   :  { %v7001_v53 = vsel %vm483_vm7, 0.0, %v7000_v43  ;;  %v7052_v26 = vrot.slane %v7035_v46, 4  ;;  %v7056_v52 = vrot.slane %v7047_v39, 4  ;;  %v7058_v34 = vrot.slane %v7051_v6, 4 }
0x1431   :  { %v7055_v29 = vsel %vm483_vm7, 0.0, %v7054_v31  ;;  %v6997_v44 = vsel %vm483_vm7, 0.0, %v6996_v22  ;;  %v7177_v4 = vrot.slane %v6999_v49, 4  ;;  %v7187_v50 = vperm.slane %v7183_v20, %v11192_v10 }
0x1432   :  { %v7188_v13 = vrot.slane %v7003_v7, 4  ;;  %v7053_v36 = vsel %vm483_vm7, 0.0, %v7052_v26  ;;  %v7057_v2 = vsel %vm483_vm7, 0.0, %v7056_v52  ;;  %v7059_v25 = vsel %vm483_vm7, 0.0, %v7058_v34 }
0x1433   :  { %v7231_v48 = vrot.slane %v7055_v29, 4  ;;  %v7237_v37 = vsel %vm483_vm7, %v7058_v34, %v7047_v39  ;;  %v7242_v41 = vrot.slane %v7059_v25, 4  ;;  %v7172_v0 = vsel %vm483_vm7, %v6998_v3, %v6979_v28 }
0x1434   :  { %v7189_v35 = vsel %vm483_vm7, %v7188_v13, %v7001_v53  ;;  %v7241_v38 = vperm.slane %v7237_v37, %v11192_v10  ;;  %v7176_v27 = vperm.slane %v7172_v0, %v11192_v10  ;;  %v7178_v9 = vsel %vm483_vm7, %v7177_v4, %v6997_v44 }
0x1435   :  { %v7193_v11 = vperm.slane %v7189_v35, %v11192_v10  ;;  %v7243_v1 = vsel %vm483_vm7, %v7242_v41, %v7057_v2  ;;  %v7182_v55 = vperm.slane %v7178_v9, %v11192_v10  ;;  %v7226_v60 = vsel %vm483_vm7, %v7054_v31, %v7035_v46 }
0x1436   :  { %v7232_v5 = vsel %vm483_vm7, %v7231_v48, %v7053_v36  ;;  %v7247_v40 = vperm.slane %v7243_v1, %v11192_v10  ;;  %v7230_v63 = vperm.slane %v7226_v60, %v11192_v10  ;;  %v7196_v51 = vrot.slane %v7176_v27, 4 }
0x1437   :  { %v7206_v19 = vrot.slane %v7193_v11, 4  ;;  %v7236_v17 = vperm.slane %v7232_v5, %v11192_v10  ;;  %v7194_v30 = vrot.slane %v7182_v55, 4  ;;  %v7208_v15 = vrot.slane %v7187_v50, 4 }
0x1438   :  { %v7262_v18 = vrot.slane %v7241_v38, 4  ;;  %v7260_v47 = vrot.slane %v7247_v40, 4  ;;  %v7250_v62 = vrot.slane %v7230_v63, 4  ;;  %v7197_v21 = vsel %vm483_vm7, %v7182_v55, %v7196_v51 }
0x1439   :  { %v7207_v14 = vsel %vm483_vm7, %v7206_v19, %v7187_v50  ;;  %v7248_v23 = vrot.slane %v7236_v17, 4  ;;  %v7195_v54 = vsel %vm483_vm7, %v7194_v30, %v7176_v27  ;;  %v7209_v12 = vsel %vm483_vm7, %v7193_v11, %v7208_v15 }
0x143a   :  { %v7213_v57 = vperm.slane %v7207_v14, %v11200_v24  ;;  %v7201_v45 = vperm.slane %v7195_v54, %v11200_v24  ;;  %v7261_v33 = vsel %vm483_vm7, %v7260_v47, %v7241_v38  ;;  %v7205_v58 = vperm.slane %v7197_v21, %v11200_v24  ;;  %v6884_v47 = vpop.f32.mrf.mxu1  ;;  %v10594_v54 = vld [vmem:[%s14178_s12 + $0x1] ss:$0 sm:$0xff] }
0x143b   :  { %v7249_v61 = vsel %vm483_vm7, %v7248_v23, %v7230_v63  ;;  %v7267_v43 = vperm.slane %v7261_v33, %v11200_v24  ;;  %v7217_v7 = vperm.slane %v7209_v12, %v11200_v24  ;;  %v7251_v39 = vsel %vm483_vm7, %v7236_v17, %v7250_v62 }
0x143c   :  { %v7218_v28 = vrot.slane %v7213_v57, 4  ;;  %v7255_v3 = vperm.slane %v7249_v61, %v11200_v24  ;;  %v7220_v46 = vrot.slane %v7201_v45, 4  ;;  %v7263_v6 = vsel %vm483_vm7, %v7247_v40, %v7262_v18 }
0x143d   :  { %v7224_v31 = vrot.slane %v7205_v58, 4  ;;  %v7272_v49 = vrot.slane %v7267_v43, 4  ;;  %v7222_v20 = vrot.slane %v7217_v7, 4  ;;  %v7259_v52 = vperm.slane %v7251_v39, %v11200_v24 }
0x143e   :  { %v7219_v22 = vsel %vm483_vm7, %v7218_v28, %v7201_v45  ;;  %v7274_v53 = vrot.slane %v7255_v3, 4  ;;  %v7221_v29 = vsel %vm483_vm7, %v7213_v57, %v7220_v46  ;;  %v7271_v34 = vperm.slane %v7263_v6, %v11200_v24  ;;  %v9955_v46 = vld [vmem:[#allocation7 + $0xe8] sm:$0xf0]  ;;  %v10296_v6 = vld [vmem:[#allocation7 + $0xd4] sm:$0xf] }
0x143f   :  { %v7876_v26 = vpack.c.bf16 %v7219_v22, %v7219_v22  ;;  %v7273_v44 = vsel %vm483_vm7, %v7272_v49, %v7255_v3  ;;  %v7878_v50 = vpack.c.bf16 %v7221_v29, %v7221_v29  ;;  %v7223_v13 = vsel %vm483_vm7, %v7222_v20, %v7205_v58  ;;  %v9963_v3 = vld [vmem:[#allocation7 + $0xf8] sm:$0xf0]  ;;  %v10294_v49 = vld [vmem:[#allocation7 + $0xc4] sm:$0xf] }
0x1440   :  { %v7275_v4 = vsel %vm483_vm7, %v7267_v43, %v7274_v53  ;;  %v7877_v36 = vpack.c.bf16 %v7273_v44, %v7273_v44  ;;  %v7276_v48 = vrot.slane %v7271_v34, 4  ;;  %v7880_v37 = vpack.c.bf16 %v7223_v13, %v7223_v13  ;;  %v10298_v43 = vld [vmem:[#allocation7 + $0xe4] sm:$0xf]  ;;  %v9939_v53 = vld [vmem:[#allocation7 + $0xc8] sm:$0xf0] }
0x1441   :  { %v7894_v2 = vunpack.c.l.b16 %v7876_v26  ;;  %v7879_v25 = vpack.c.bf16 %v7275_v4, %v7275_v4  ;;  %v7918_v35 = vunpack.c.l.b16 %v7878_v50  ;;  %v7225_v41 = vsel %vm483_vm7, %v7217_v7, %v7224_v31  ;;  %v9947_v31 = vld [vmem:[#allocation7 + $0xd8] sm:$0xf0]  ;;  %v10292_v26 = vld [vmem:[#allocation7 + $0xb4] sm:$0xf]  ;;  %v9923_v44 = vld [vmem:[#allocation7 + $0xa8] sm:$0xf0] }
0x1442   :  { %v7278_v0 = vrot.slane %v7259_v52, 4  ;;  %v7895_v11 = vunpack.c.l.b16 %v7877_v36  ;;  %v7277_v27 = vsel %vm483_vm7, %v7276_v48, %v7259_v52  ;;  %v7882_v9 = vpack.c.bf16 %v7225_v41, %v7225_v41  ;;  %v6886_v12 = vpop.f32.mrf.mxu1  ;;  %v9931_v29 = vld [vmem:[#allocation7 + $0xb8] sm:$0xf0]  ;;  %v10288_v50 = vld [vmem:[#allocation7 + $0x94] sm:$0xf] }
0x1443   :  { %v7919_v38 = vunpack.c.l.b16 %v7879_v25  ;;  %v7881_v1 = vpack.c.bf16 %v7277_v27, %v7277_v27  ;;  %v7942_v55 = vunpack.c.l.b16 %v7880_v37  ;;  %v13411_v45 = vadd.f32 %v6884_v47, %v13290_v59  ;;  %v9915_v13 = vld [vmem:[#allocation7 + $0x98] sm:$0xf0]  ;;  %v10286_v25 = vld [vmem:[#allocation7 + $0x84] sm:$0xf]  ;;  %v9907_v48 = vld [vmem:[#allocation7 + $0x88] sm:$0xf0] }
0x1444   :  { %v7279_v60 = vsel %vm483_vm7, %v7271_v34, %v7278_v0  ;;  %v7896_v5 = vpack.c.b16 %v7895_v11, %v7894_v2  ;;  %v7966_v63 = vunpack.c.l.b16 %v7882_v9  ;;  %v13414_v61 = vadd.f32 %v6886_v12, %v13290_v59  ;;  %v10300_v59 = vld [vmem:[#allocation7 + $0xf4] sm:$0xf]  ;;  %v10290_v34 = vld [vmem:[#allocation7 + $0xa4] sm:$0xf] }
0x1445   :  { %v7920_v40 = vpack.c.b16 %v7919_v38, %v7918_v35  ;;  %v7883_v19 = vpack.c.bf16 %v7279_v60, %v7279_v60  ;;  %v7943_v17 = vunpack.c.l.b16 %v7881_v1  ;;  %v9966_v7 = vor.u32 %v10300_v59, %v9963_v3 }
0x1446   :  { %v7901_v30 = vsel %vm1199_vm8, %v7896_v5, 0  ;;  %v10527_v33 = vpack.i.bf16 %v13414_v61, %v13411_v45  ;;  %v9958_v39 = vor.u32 %v10298_v43, %v9955_v46  ;;  %v9950_v22 = vor.u32 %v10296_v6, %v9947_v31 }
0x1447   :  { %v7925_v51 = vsel %vm1199_vm8, %v7920_v40, 0  ;;  %v7967_v15 = vunpack.c.l.b16 %v7883_v19  ;;  %7910 = vmatpush.bf16.xpose.msrb.mxu3 %v7901_v30  ;;  %v7944_v18 = vpack.c.b16 %v7943_v17, %v7942_v55  ;;  %6889 = vmatpush.bf16.msrb.mxu2 %v9966_v7  ;;  %v9942_v20 = vor.u32 %v10294_v49, %v9939_v53 }
0x1448   :  { %7934 = vmatpush.bf16.xpose.msra.mxu0 %v7925_v51  ;;  %v9934_v52 = vor.u32 %v10292_v26, %v9931_v29  ;;  %v9926_v4 = vor.u32 %v10290_v34, %v9923_v44  ;;  %v9918_v36 = vor.u32 %v10288_v50, %v9915_v13  ;;  %v9910_v35 = vor.u32 %v10286_v25, %v9907_v48 }
0x1449   :  { %v7968_v14 = vpack.c.b16 %v7967_v15, %v7966_v63  ;;  %v7949_v23 = vsel %vm1199_vm8, %v7944_v18, 0 }
0x144b   :  { %v7973_v62 = vsel %vm1199_vm8, %v7968_v14, 0  ;;  %6890 = vmatpush.bf16.msrb.mxu2 %v9958_v39 }
0x144f   :  { %7958 = vmatpush.bf16.xpose.msra.mxu3 %v7949_v23  ;;  %6891 = vmatpush.bf16.msrb.mxu2 %v9950_v22 }
0x1450   :  { %7982 = vmatpush.bf16.xpose.msrb.mxu0 %v7973_v62 }
0x1453   :  { %6892 = vmatpush.bf16.msrb.mxu2 %v9942_v20 }
0x1457   :  { %6893 = vmatpush.bf16.msrb.mxu2 %v9934_v52 }
0x145b   :  { %6894 = vmatpush.bf16.msrb.mxu2 %v9926_v4 }
0x145f   :  { %6895 = vmatpush.bf16.msrb.mxu2 %v9918_v36 }
0x1463   :  { %6896 = vmatpush.bf16.msrb.mxu2 %v9910_v35 }
0x1466   :  { %6897 = vmatmul.bf16.vlgmr.msrb.gmra.mxu2 %v13274_v16 }
0x1476   :  { %6902 = vmatmul.bf16.gmra.mxu2 %v13280_v42 }
0x14a9   :  { %v6521_v57 = vpop.f32.mrf.mxu0 }
0x14aa   :  { %v13402_v21 = vadd.f32 %v10594_v54, %v6521_v57 }
0x14ac   :  { %6540 = vrot.lane.b32.xlu1 %v13402_v21, %s10960_s27  ;;  %6534 = vrot.lane.b32.xlu0 %v13402_v21, %s10948_s9  ;;  %v6548_v41 = vrot.slane %v13402_v21, 4 }
0x14ad   :  { %6528 = vrot.lane.b32.xlu2 %v13402_v21, %s10961_s28 }
0x14b1   :  { %v6523_v58 = vpop.f32.mrf.mxu0 }
0x14b2   :  { %v13421_v28 = vadd.f32 %v10594_v54, %v6523_v58  ;;  %v7062_v54 = vrot.slane %v13411_v45, 4 }
0x14b4   :  { %10528 = vrot.lane.b32.xlu1 %v10527_v33, %s10960_s27  ;;  %10523 = vrot.lane.b32.xlu0 %v10527_v33, %s10948_s9  ;;  %v6604_v59 = vrot.slane %v13421_v28, 4 }
0x14b5   :  { %10518 = vrot.lane.b32.xlu2 %v10527_v33, %s10961_s28  ;;  %v7118_v33 = vrot.slane %v13414_v61, 4 }
0x14bc   :  { %6542 = vrot.lane.b32.xlu1 %v13421_v28, %s10960_s27  ;;  %6536 = vrot.lane.b32.xlu0 %v13421_v28, %s10948_s9 }
0x14bd   :  { %6530 = vrot.lane.b32.xlu2 %v13421_v28, %s10961_s28 }
0x1507   :  { %v6529_v2 = vpop.permute.xlu2 %6528 }
0x1508   :  { %v6560_v37 = vrot.slane %v6529_v2, 4 }
0x150f   :  { %v10519_v55 = vpop.permute.xlu2 %10518 }
0x1510   :  { %v10520_v51 = vunpack.i.l.bf16 %v10519_v55  ;;  %v10521_v39 = vunpack.i.h.bf16 %v10519_v55 }
0x1512   :  { %v7074_v6 = vrot.slane %v10520_v51, 4 }
0x151e   :  { %v6541_v0 = vpop.permute.xlu1 %6540  ;;  %v6535_v11 = vpop.permute.xlu0 %6534 }
0x151f   :  { %v6558_v38 = vrot.slane %v6541_v0, 4  ;;  %v6561_v27 = vsel %vm483_vm7, %v6541_v0, %v6560_v37  ;;  %v6546_v9 = vrot.slane %v6535_v11, 4  ;;  %v6549_v1 = vsel %vm483_vm7, %v6535_v11, %v6548_v41 }
0x1520   :  { %v6569_v60 = vperm.slane %v6561_v27, %v11192_v10  ;;  %v6557_v5 = vperm.slane %v6549_v1, %v11192_v10  ;;  %v7130_v27 = vrot.slane %v10521_v39, 4 }
0x1521   :  { %v6559_v40 = vsel %vm483_vm7, %v6558_v38, %v6529_v2  ;;  %v6547_v19 = vsel %vm483_vm7, %v6546_v9, %v13402_v21  ;;  %v13457_v2 = vpop.permute.xlu2 %6530 }
0x1522   :  { %v6565_v63 = vperm.slane %v6559_v40, %v11192_v10  ;;  %v6582_v17 = vrot.slane %v6569_v60, 4  ;;  %v6553_v16 = vperm.slane %v6547_v19, %v11192_v10  ;;  %v6584_v30 = vrot.slane %v6557_v5, 4 }
0x1524   :  { %v6570_v15 = vrot.slane %v6565_v63, 4  ;;  %v6572_v18 = vrot.slane %v6553_v16, 4  ;;  %v6583_v14 = vsel %vm483_vm7, %v6582_v17, %v6557_v5  ;;  %v6585_v23 = vsel %vm483_vm7, %v6569_v60, %v6584_v30 }
0x1525   :  { %v6589_v47 = vperm.slane %v6583_v14, %v11200_v24  ;;  %v6593_v62 = vperm.slane %v6585_v23, %v11200_v24  ;;  %v6616_v60 = vrot.slane %v13457_v2, 4 }
0x1526   :  { %v6571_v57 = vsel %vm483_vm7, %v6570_v15, %v6553_v16  ;;  %v6573_v21 = vsel %vm483_vm7, %v6565_v63, %v6572_v18  ;;  %v10529_v12 = vpop.permute.xlu1 %10528  ;;  %v10524_v58 = vpop.permute.xlu0 %10523 }
0x1527   :  { %v6577_v3 = vperm.slane %v6571_v57, %v11200_v24  ;;  %v6581_v43 = vperm.slane %v6573_v21, %v11200_v24  ;;  %v6598_v7 = vrot.slane %v6589_v47, 4  ;;  %v6600_v46 = vrot.slane %v6593_v62, 4 }
0x1528   :  { %v10531_v31 = vunpack.i.h.bf16 %v10529_v12  ;;  %v10530_v22 = vunpack.i.l.bf16 %v10529_v12  ;;  %v10526_v26 = vunpack.i.h.bf16 %v10524_v58  ;;  %v10525_v55 = vunpack.i.l.bf16 %v10524_v58 }
0x1529   :  { %v6594_v49 = vrot.slane %v6577_v3, 4  ;;  %v6596_v53 = vrot.slane %v6581_v43, 4  ;;  %v6601_v20 = vsel %vm483_vm7, 0.0, %v6600_v46  ;;  %v6669_v29 = vsel %vm483_vm7, %v6600_v46, %v6589_v47 }
0x152a   :  { %v6674_v52 = vrot.slane %v6601_v20, 4  ;;  %v7128_v34 = vrot.slane %v10531_v31, 4  ;;  %v7072_v44 = vrot.slane %v10530_v22, 4  ;;  %v6599_v13 = vsel %vm483_vm7, 0.0, %v6598_v7 }
0x152b   :  { %v6595_v4 = vsel %vm483_vm7, 0.0, %v6594_v49  ;;  %v6597_v50 = vsel %vm483_vm7, 0.0, %v6596_v53  ;;  %v6673_v36 = vperm.slane %v6669_v29, %v11192_v10  ;;  %v6658_v25 = vsel %vm483_vm7, %v6596_v53, %v6577_v3 }
0x152c   :  { %v6663_v48 = vrot.slane %v6597_v50, 4  ;;  %v6675_v35 = vsel %vm483_vm7, %v6674_v52, %v6599_v13  ;;  %v7073_v37 = vsel %vm483_vm7, %v7072_v44, %v10520_v51  ;;  %v7075_v11 = vsel %vm483_vm7, %v10530_v22, %v7074_v6 }
0x152d   :  { %v6679_v41 = vperm.slane %v6675_v35, %v11192_v10  ;;  %v6694_v0 = vrot.slane %v6673_v36, 4  ;;  %v7079_v38 = vperm.slane %v7073_v37, %v11192_v10  ;;  %v7129_v1 = vsel %vm483_vm7, %v7128_v34, %v10521_v39 }
0x152e   :  { %v6664_v9 = vsel %vm483_vm7, %v6663_v48, %v6595_v4  ;;  %v7083_v19 = vperm.slane %v7075_v11, %v11192_v10  ;;  %v13474_v63 = vperm.slane %v6658_v25, %v11192_v10  ;;  %v7131_v16 = vsel %vm483_vm7, %v10531_v31, %v7130_v27  ;;  %v6543_v25 = vpop.permute.xlu1 %6542 }
0x152f   :  { %v13470_v5 = vperm.slane %v6664_v9, %v11192_v10  ;;  %v6692_v40 = vrot.slane %v6679_v41, 4  ;;  %v13477_v17 = vsel %vm483_vm7, %v6679_v41, %v6694_v0  ;;  %v7135_v30 = vperm.slane %v7129_v1, %v11192_v10 }
0x1530   :  { %v7084_v51 = vrot.slane %v7079_v38, 4  ;;  %v7139_v15 = vperm.slane %v7131_v16, %v11192_v10  ;;  %v7116_v18 = vrot.slane %v10526_v26, 4  ;;  %v7119_v47 = vsel %vm483_vm7, %v10526_v26, %v7118_v33 }
0x1531   :  { %v6693_v42 = vsel %vm483_vm7, %v6692_v40, %v6673_v36  ;;  %v6680_v14 = vrot.slane %v13470_v5, 4  ;;  %v7140_v23 = vrot.slane %v7135_v30, 4  ;;  %v7060_v62 = vrot.slane %v10525_v55, 4 }
0x1532   :  { %v7096_v57 = vrot.slane %v7083_v19, 4  ;;  %v7152_v21 = vrot.slane %v7139_v15, 4  ;;  %v7117_v12 = vsel %vm483_vm7, %v7116_v18, %v13414_v61  ;;  %v7127_v58 = vperm.slane %v7119_v47, %v11192_v10 }
0x1533   :  { %v13489_v3 = vperm.slane %v6693_v42, %v11200_v24  ;;  %v7123_v43 = vperm.slane %v7117_v12, %v11192_v10  ;;  %v7061_v7 = vsel %vm483_vm7, %v7060_v62, %v13411_v45  ;;  %v7063_v33 = vsel %vm483_vm7, %v10525_v55, %v7062_v54 }
0x1534   :  { %v7154_v46 = vrot.slane %v7127_v58, 4  ;;  %v7067_v39 = vperm.slane %v7061_v7, %v11192_v10  ;;  %v7071_v6 = vperm.slane %v7063_v33, %v11192_v10  ;;  %v7153_v61 = vsel %vm483_vm7, %v7152_v21, %v7127_v58  ;;  %v6537_v7 = vpop.permute.xlu0 %6536 }
0x1535   :  { %v6681_v31 = vsel %vm483_vm7, %v6680_v14, %v13474_v63  ;;  %v7142_v22 = vrot.slane %v7123_v43, 4  ;;  %v7141_v49 = vsel %vm483_vm7, %v7140_v23, %v7123_v43  ;;  %v7159_v53 = vperm.slane %v7153_v61, %v11200_v24 }
0x1536   :  { %v7085_v20 = vsel %vm483_vm7, %v7084_v51, %v7067_v39  ;;  %v7086_v45 = vrot.slane %v7067_v39, 4  ;;  %v7097_v54 = vsel %vm483_vm7, %v7096_v57, %v7071_v6  ;;  %v7098_v26 = vrot.slane %v7071_v6, 4 }
0x1537   :  { %v7091_v29 = vperm.slane %v7085_v20, %v11200_v24  ;;  %v7103_v52 = vperm.slane %v7097_v54, %v11200_v24  ;;  %v7143_v34 = vsel %vm483_vm7, %v7135_v30, %v7142_v22  ;;  %v13510_v44 = vperm.slane %v7141_v49, %v11200_v24 }
0x1538   :  { %v7087_v4 = vsel %vm483_vm7, %v7079_v38, %v7086_v45  ;;  %v7099_v50 = vsel %vm483_vm7, %v7083_v19, %v7098_v26  ;;  %v7151_v13 = vperm.slane %v7143_v34, %v11200_v24  ;;  %v7155_v36 = vsel %vm483_vm7, %v7139_v15, %v7154_v46 }
0x1539   :  { %v7095_v48 = vperm.slane %v7087_v4, %v11200_v24  ;;  %v7107_v35 = vperm.slane %v7099_v50, %v11200_v24  ;;  %v7108_v37 = vrot.slane %v7091_v29, 4  ;;  %v7112_v41 = vrot.slane %v7103_v52, 4 }
0x153a   :  { %v6704_v0 = vrot.slane %v13489_v3, 4  ;;  %v7163_v11 = vperm.slane %v7155_v36, %v11200_v24  ;;  %v7166_v27 = vrot.slane %v7151_v13, 4  ;;  %v7168_v9 = vrot.slane %v7159_v53, 4 }
0x153b   :  { %v7110_v38 = vrot.slane %v7095_v48, 4  ;;  %v7114_v1 = vrot.slane %v7107_v35, 4  ;;  %v7164_v55 = vrot.slane %v13510_v44, 4  ;;  %v6614_v40 = vrot.slane %v6543_v25, 4 }
0x153c   :  { %v7109_v19 = vsel %vm483_vm7, 0.0, %v7108_v37  ;;  %v7113_v16 = vsel %vm483_vm7, 0.0, %v7112_v41  ;;  %v13524_v30 = vsel %vm483_vm7, 0.0, %v7166_v27  ;;  %v7170_v42 = vrot.slane %v7163_v11, 4 }
0x153d   :  { %v7111_v51 = vsel %vm483_vm7, 0.0, %v7110_v38  ;;  %v7115_v15 = vsel %vm483_vm7, 0.0, %v7114_v1  ;;  %v7169_v18 = vsel %vm483_vm7, 0.0, %v7168_v9  ;;  %v7291_v14 = vsel %vm483_vm7, %v7114_v1, %v7103_v52 }
0x153e   :  { %v7171_v23 = vsel %vm483_vm7, 0.0, %v7170_v42  ;;  %v7280_v47 = vsel %vm483_vm7, %v7110_v38, %v7091_v29  ;;  %v7285_v62 = vrot.slane %v7111_v51, 4  ;;  %v7296_v57 = vrot.slane %v7115_v15, 4 }
0x153f   :  { %v13533_v21 = vperm.slane %v7291_v14, %v11192_v10  ;;  %v7334_v12 = vsel %vm483_vm7, %v7166_v27, %v13510_v44  ;;  %v7345_v58 = vsel %vm483_vm7, %v7170_v42, %v7159_v53  ;;  %v7350_v43 = vrot.slane %v7171_v23, 4 }
0x1540   :  { %v7297_v33 = vsel %vm483_vm7, %v7296_v57, %v7113_v16  ;;  %v7339_v46 = vrot.slane %v13524_v30, 4  ;;  %v6615_v39 = vsel %vm483_vm7, %v6614_v40, %v13457_v2  ;;  %v6617_v6 = vsel %vm483_vm7, %v6543_v25, %v6616_v60 }
0x1541   :  { %v13546_v61 = vperm.slane %v7297_v33, %v11192_v10  ;;  %v13549_v22 = vperm.slane %v7345_v58, %v11192_v10  ;;  %v6621_v49 = vperm.slane %v6615_v39, %v11192_v10  ;;  %v6625_v53 = vperm.slane %v6617_v6, %v11192_v10 }
0x1542   :  { %v7351_v20 = vsel %vm483_vm7, %v7350_v43, %v7169_v18  ;;  %v6602_v45 = vrot.slane %v6537_v7, 4  ;;  %v6605_v54 = vsel %vm483_vm7, %v6537_v7, %v6604_v59  ;;  %v6687_v2 = vperm.slane %v6681_v31, %v11200_v24 }
0x1543   :  { %v6626_v60 = vrot.slane %v6621_v49, 4  ;;  %v6638_v26 = vrot.slane %v6625_v53, 4  ;;  %v6613_v29 = vperm.slane %v6605_v54, %v11192_v10  ;;  %v7284_v52 = vperm.slane %v7280_v47, %v11192_v10 }
0x1544   :  { %v6603_v34 = vsel %vm483_vm7, %v6602_v45, %v13421_v28  ;;  %v6705_v44 = vsel %vm483_vm7, %v6704_v0, %v6687_v2  ;;  %v6706_v4 = vrot.slane %v6687_v2, 4  ;;  %v7286_v50 = vsel %vm483_vm7, %v7285_v62, %v7109_v19 }
0x1545   :  { %v6609_v13 = vperm.slane %v6603_v34, %v11192_v10  ;;  %v6639_v59 = vsel %vm483_vm7, %v6638_v26, %v6613_v29  ;;  %v6640_v36 = vrot.slane %v6613_v29, 4  ;;  %v7868_v31 = vpack.c.bf16 %v6705_v44, %v6705_v44 }
0x1546   :  { %v6645_v25 = vperm.slane %v6639_v59, %v11200_v24  ;;  %v6707_v48 = vsel %vm483_vm7, %v13489_v3, %v6706_v4  ;;  %v7290_v35 = vperm.slane %v7286_v50, %v11192_v10  ;;  %v7304_v37 = vrot.slane %v7284_v52, 4 }
0x1547   :  { %v6627_v28 = vsel %vm483_vm7, %v6626_v60, %v6609_v13  ;;  %v6628_v41 = vrot.slane %v6609_v13, 4  ;;  %v6641_v0 = vsel %vm483_vm7, %v6625_v53, %v6640_v36  ;;  %9967 = vmatmul.msk.bf16.vlgmr.msrb.gmra.mxu3 %vm1199_vm8, %v7868_v31  ;;  %v7869_v11 = vpack.c.bf16 %v6707_v48, %v6707_v48 }
0x1548   :  { %v7165_v27 = vsel %vm483_vm7, 0.0, %v7164_v55  ;;  %v6633_v9 = vperm.slane %v6627_v28, %v11200_v24  ;;  %v6649_v38 = vperm.slane %v6641_v0, %v11200_v24  ;;  %v7305_v1 = vsel %vm483_vm7, %v7290_v35, %v7304_v37 }
0x1549   :  { %v6629_v3 = vsel %vm483_vm7, %v6621_v49, %v6628_v41  ;;  %v6654_v40 = vrot.slane %v6645_v25, 4  ;;  %9968 = vmatmul.msk.bf16.vlgmr.msra.gmra.mxu0 %vm1199_vm8, %v7869_v11  ;;  %v7316_v19 = vrot.slane %v13533_v21, 4  ;;  %v7338_v16 = vperm.slane %v7334_v12, %v11192_v10 }
0x154a   :  { %v7355_v30 = vperm.slane %v7351_v20, %v11192_v10  ;;  %v6637_v42 = vperm.slane %v6629_v3, %v11200_v24  ;;  %v6650_v55 = vrot.slane %v6633_v9, 4  ;;  %v6656_v51 = vrot.slane %v6649_v38, 4 }
0x154b   :  { %v13584_v15 = vperm.slane %v7305_v1, %v11200_v24  ;;  %v7317_v18 = vsel %vm483_vm7, %v13546_v61, %v7316_v19  ;;  %v7340_v14 = vsel %vm483_vm7, %v7339_v46, %v7165_v27  ;;  %v7370_v23 = vrot.slane %v13549_v22, 4 }
0x154c   :  { %v6652_v47 = vrot.slane %v6637_v42, 4  ;;  %v6657_v62 = vsel %vm483_vm7, 0.0, %v6656_v51  ;;  %v6723_v57 = vsel %vm483_vm7, %v6656_v51, %v6645_v25  ;;  %v7358_v12 = vrot.slane %v7338_v16, 4 }
0x154d   :  { %v6655_v58 = vsel %vm483_vm7, 0.0, %v6654_v40  ;;  %v6728_v43 = vrot.slane %v6657_v62, 4  ;;  %v7325_v7 = vperm.slane %v7317_v18, %v11200_v24  ;;  %v7344_v33 = vperm.slane %v7340_v14, %v11192_v10 }
0x154e   :  { %v6651_v39 = vsel %vm483_vm7, 0.0, %v6650_v55  ;;  %v6653_v6 = vsel %vm483_vm7, 0.0, %v6652_v47  ;;  %v7371_v46 = vsel %vm483_vm7, %v7355_v30, %v7370_v23  ;;  %v7302_v49 = vrot.slane %v7290_v35, 4 }
0x154f   :  { %v6712_v53 = vsel %vm483_vm7, %v6652_v47, %v6633_v9  ;;  %v6717_v20 = vrot.slane %v6653_v6, 4  ;;  %v13600_v45 = vperm.slane %v6723_v57, %v11192_v10  ;;  %v6729_v54 = vsel %vm483_vm7, %v6728_v43, %v6655_v58 }
0x1550   :  { %v13604_v2 = vperm.slane %v6729_v54, %v11192_v10  ;;  %v7330_v60 = vrot.slane %v7325_v7, 4  ;;  %v7359_v26 = vsel %vm483_vm7, %v7344_v33, %v7358_v12  ;;  %v7379_v29 = vperm.slane %v7371_v46, %v11200_v24 }
0x1551   :  { %v6682_v34 = vrot.slane %v13474_v63, 4  ;;  %v6718_v44 = vsel %vm483_vm7, %v6717_v20, %v6651_v39  ;;  %v7367_v4 = vperm.slane %v7359_v26, %v11200_v24  ;;  %v7303_v36 = vsel %vm483_vm7, %v7302_v49, %v7284_v52 }
0x1552   :  { %v13612_v50 = vperm.slane %v6718_v44, %v11192_v10  ;;  %v6746_v13 = vrot.slane %v13604_v2, 4  ;;  %v7331_v59 = vsel %vm483_vm7, %v7330_v60, %v13584_v15  ;;  %v6703_v31 = vperm.slane %v13477_v17, %v11200_v24 }
0x1553   :  { %v13621_v25 = vperm.slane %v6712_v53, %v11192_v10  ;;  %v7384_v63 = vrot.slane %v7379_v29, 4  ;;  %v7888_v48 = vpack.c.bf16 %v7331_v59, %v7331_v59  ;;  %v6748_v37 = vrot.slane %v13600_v45, 4 }
0x1554   :  { %v6747_v35 = vsel %vm483_vm7, %v6746_v13, %v13600_v45  ;;  %v7314_v28 = vrot.slane %v13546_v61, 4  ;;  %v7356_v41 = vrot.slane %v7344_v33, 4  ;;  %v6734_v0 = vrot.slane %v13612_v50, 4 }
0x1555   :  { %v7385_v52 = vsel %vm483_vm7, %v7384_v63, %v7367_v4  ;;  %v7309_v11 = vperm.slane %v7303_v36, %v11200_v24  ;;  %v7368_v17 = vrot.slane %v7355_v30, 4  ;;  %v8038_v9 = vunpack.c.l.b16 %v7888_v48 }
0x1556   :  { %v7889_v27 = vpack.c.bf16 %v7385_v52, %v7385_v52  ;;  %v7315_v38 = vsel %vm483_vm7, %v7314_v28, %v13533_v21  ;;  %v7357_v1 = vsel %vm483_vm7, %v7356_v41, %v7338_v16  ;;  %v13634_v3 = vperm.slane %v6747_v35, %v11200_v24 }
0x1557   :  { %v7321_v61 = vperm.slane %v7315_v38, %v11200_v24  ;;  %v7363_v40 = vperm.slane %v7357_v1, %v11200_v24  ;;  %v7369_v19 = vsel %vm483_vm7, %v7368_v17, %v13549_v22  ;;  %v7332_v55 = vrot.slane %v13584_v15, 4 }
0x1558   :  { %v8039_v42 = vunpack.c.l.b16 %v7889_v27  ;;  %v7375_v30 = vperm.slane %v7369_v19, %v11200_v24  ;;  %v7386_v51 = vrot.slane %v7367_v4, 4  ;;  %v6683_v21 = vsel %vm483_vm7, %v13470_v5, %v6682_v34 }
0x1559   :  { %v7326_v18 = vrot.slane %v7321_v61, 4  ;;  %v6708_v16 = vrot.slane %v6703_v31, 4  ;;  %v7328_v14 = vrot.slane %v7309_v11, 4  ;;  %v7333_v62 = vsel %vm483_vm7, %v7325_v7, %v7332_v55 }
0x155a   :  { %v8040_v23 = vpack.c.b16 %v8039_v42, %v8038_v9  ;;  %v7380_v47 = vrot.slane %v7375_v30, 4  ;;  %v7387_v57 = vsel %vm483_vm7, %v7379_v29, %v7386_v51  ;;  %v7890_v12 = vpack.c.bf16 %v7333_v62, %v7333_v62 }
0x155b   :  { %v7327_v22 = vsel %vm483_vm7, %v7326_v18, %v7309_v11  ;;  %v7891_v58 = vpack.c.bf16 %v7387_v57, %v7387_v57  ;;  %v6691_v43 = vperm.slane %v6683_v21, %v11200_v24  ;;  %v7329_v5 = vsel %vm483_vm7, %v7321_v61, %v7328_v14  ;;  %v10767_v57 = vld [vmem:[%s14180_s14 + $0x2] sm:$0x3] }
0x155c   :  { %v8045_v15 = vsel %vm1199_vm8, %v8040_v23, 0  ;;  %v7381_v33 = vsel %vm483_vm7, %v7380_v47, %v7363_v40  ;;  %v7884_v39 = vpack.c.bf16 %v7327_v22, %v7327_v22  ;;  %v8062_v46 = vunpack.c.l.b16 %v7890_v12 }
0x155d   :  { %8054 = vmatpush.bf16.xpose.msrb.mxu3 %v8045_v15  ;;  %v7885_v6 = vpack.c.bf16 %v7381_v33, %v7381_v33  ;;  %v8063_v49 = vunpack.c.l.b16 %v7891_v58  ;;  %v6709_v7 = vsel %vm483_vm7, %v6708_v16, %v6691_v43  ;;  %v7382_v45 = vrot.slane %v7363_v40, 4  ;;  %v6898_v16 = vpop.f32.mrf.mxu2 }
0x155e   :  { %v7990_v53 = vunpack.c.l.b16 %v7884_v39  ;;  %v7870_v20 = vpack.c.bf16 %v6709_v7, %v6709_v7  ;;  %v7886_v54 = vpack.c.bf16 %v7329_v5, %v7329_v5  ;;  %v6735_v60 = vsel %vm483_vm7, %v6734_v0, %v13621_v25  ;;  %v10768_v7 = vld [vmem:[%s14225_s30 + $0x1] ss:$0 sm:$0xff] }
0x155f   :  { %v7991_v26 = vunpack.c.l.b16 %v7885_v6  ;;  %v8064_v29 = vpack.c.b16 %v8063_v49, %v8062_v46  ;;  %v6710_v34 = vrot.slane %v6691_v43, 4  ;;  %v6736_v44 = vrot.slane %v13621_v25, 4 }
0x1560   :  { %v6749_v4 = vsel %vm483_vm7, %v13604_v2, %v6748_v37  ;;  %9969 = vmatmul.msk.bf16.vlgmr.msra.gmra.mxu3 %vm1199_vm8, %v7870_v20  ;;  %v7383_v13 = vsel %vm483_vm7, %v7375_v30, %v7382_v45  ;;  %v8014_v59 = vunpack.c.l.b16 %v7886_v54  ;;  %v6758_v28 = vrot.slane %v13634_v3, 4 }
0x1561   :  { %v7992_v36 = vpack.c.b16 %v7991_v26, %v7990_v53  ;;  %v8069_v63 = vsel %vm1199_vm8, %v8064_v29, 0  ;;  %v7887_v48 = vpack.c.bf16 %v7383_v13, %v7383_v13  ;;  %v6711_v35 = vsel %vm483_vm7, %v6703_v31, %v6710_v34 }
0x1562   :  { %8078 = vmatpush.bf16.xpose.msra.mxu0 %v8069_v63  ;;  %v7871_v41 = vpack.c.bf16 %v6711_v35, %v6711_v35  ;;  %v6741_v25 = vperm.slane %v6735_v60, %v11200_v24  ;;  %v6757_v0 = vperm.slane %v6749_v4, %v11200_v24  ;;  %v6737_v52 = vsel %vm483_vm7, %v13612_v50, %v6736_v44 }
0x1563   :  { %v7997_v2 = vsel %vm1199_vm8, %v7992_v36, 0  ;;  %v8015_v37 = vunpack.c.l.b16 %v7887_v48  ;;  %v6745_v9 = vperm.slane %v6737_v52, %v11200_v24  ;;  %v6787_v22 = vperm.slane %v10767_v57, 1 }
0x1564   :  { %8006 = vmatpush.bf16.xpose.msra.mxu1 %v7997_v2  ;;  %9970 = vmatmul.msk.bf16.vlgmr.msrb.gmra.mxu0 %vm1199_vm8, %v7871_v41  ;;  %v6759_v31 = vsel %vm483_vm7, %v6758_v28, %v6741_v25  ;;  %v6760_v17 = vrot.slane %v6741_v25, 4  ;;  %v6762_v38 = vrot.slane %v6757_v0, 4 }
0x1565   :  { %v8016_v11 = vpack.c.b16 %v8015_v37, %v8014_v59  ;;  %v7872_v1 = vpack.c.bf16 %v6759_v31, %v6759_v31  ;;  %v6764_v19 = vrot.slane %v6745_v9, 4  ;;  %v6900_v58 = vpop.f32.mrf.mxu2  ;;  %v13690_v43 = vadd.f32 %v6898_v16, %v6787_v22 }
0x1566   :  { %v6761_v61 = vsel %vm483_vm7, %v13634_v3, %v6760_v17  ;;  %v6763_v40 = vsel %vm483_vm7, %v6762_v38, %v6745_v9  ;;  %v10766_v3 = vld [vmem:[%s14225_s30] ss:$0 sm:$0xff]  ;;  %v13692_v15 = vadd.f32 %v6900_v58, %v6787_v22 }
0x1567   :  { %v8021_v27 = vsel %vm1199_vm8, %v8016_v11, 0  ;;  %v7873_v50 = vpack.c.bf16 %v6761_v61, %v6761_v61  ;;  %v7874_v42 = vpack.c.bf16 %v6763_v40, %v6763_v40  ;;  %v6765_v30 = vsel %vm483_vm7, %v6757_v0, %v6764_v19 }
0x1568   :  { %8030 = vmatpush.bf16.xpose.msra.mxu2 %v8021_v27  ;;  %v7875_v55 = vpack.c.bf16 %v6765_v30, %v6765_v30  ;;  %v10542_v33 = vpack.i.bf16 %v13692_v15, %v13690_v43 }
0x156b   :  { %9971 = vmatmul.msk.bf16.vlgmr.msra.gmra.mxu1 %vm1199_vm8, %v7872_v1 }
0x156d   :  { %v6903_v39 = vpop.f32.mrf.mxu2 }
0x156e   :  { %v13708_v48 = vadd.f32 %v6903_v39, %v6787_v22 }
0x156f   :  { %9972 = vmatmul.msk.bf16.vlgmr.msra.gmra.mxu2 %vm1199_vm8, %v7873_v50 }
0x1570   :  { %9973 = vmatmul.msk.bf16.vlgmr.msrb.gmra.mxu3 %vm1199_vm8, %v7874_v42 }
0x1574   :  { %9974 = vmatmul.msk.bf16.vlgmr.msra.gmra.mxu0 %vm1199_vm8, %v7875_v55 }
0x1575   :  { %v6905_v46 = vpop.f32.mrf.mxu2 }
0x1576   :  { %v13710_v35 = vadd.f32 %v6905_v46, %v6787_v22 }
0x1578   :  { %v10547_v41 = vpack.i.bf16 %v13710_v35, %v13708_v48 }
0x15c6   :  { %v7936_v51 = vpop.f32.mrf.mxu0 }
0x15c7   :  { %v7937_v18 = vadd.f32 %v10766_v3, %v7936_v51 }
0x15c9   :  { %v8087_v21 = vsel %vm3658_vm4, %v7937_v18, -inf }
0x15ca   :  { %8088 = vmax.xlane.f32.xlu0 %v8087_v21  ;;  %v7912_v14 = vpop.f32.mrf.mxu3 }
0x15cb   :  { %v13683_v23 = vadd.f32 %v10766_v3, %v7912_v14 }
0x15cd   :  { %v8084_v47 = vsel %vm3658_vm4, %v13683_v23, -inf }
0x15ce   :  { %v7938_v62 = vpop.f32.mrf.mxu0  ;;  %8085 = vmax.xlane.f32.xlu1 %v8084_v47  ;;  %v7486_v47 = vrot.slane %v13692_v15, 4 }
0x15d2   :  { %v7914_v12 = vpop.f32.mrf.mxu3 }
0x15de   :  { %10543 = vrot.lane.b32.xlu0 %v10542_v33, %s10960_s27 }
0x15e1   :  { %v7984_v5 = vpop.f32.mrf.mxu0 }
0x15e2   :  { %v13722_v2 = vadd.f32 %v10766_v3, %v7984_v5 }
0x15e3   :  { %v7960_v6 = vpop.f32.mrf.mxu3 }
0x15e4   :  { %v8093_v37 = vsel %vm3658_vm4, %v13722_v2, -inf  ;;  %v13726_v52 = vadd.f32 %v10766_v3, %v7960_v6 }
0x15e6   :  { %v8090_v11 = vsel %vm3658_vm4, %v13726_v52, -inf }
0x15e8   :  { %v8008_v49 = vpop.f32.mrf.mxu1 }
0x15e9   :  { %v8009_v53 = vadd.f32 %v10768_v7, %v8008_v49  ;;  %v7986_v20 = vpop.f32.mrf.mxu0 }
0x15eb   :  { %v8096_v45 = vsel %vm3658_vm4, %v8009_v53, -inf  ;;  %v7962_v54 = vpop.f32.mrf.mxu3 }
0x15ec   :  { %8097 = vmax.xlane.f32.xlu2 %v8096_v45 }
0x15f0   :  { %v8010_v60 = vpop.f32.mrf.mxu1 }
0x15f1   :  { %v8080_v26 = vpop.f32.mrf.mxu0 }
0x15f2   :  { %v8032_v29 = vpop.f32.mrf.mxu2  ;;  %v13705_v63 = vadd.f32 %v10768_v7, %v8080_v26 }
0x15f3   :  { %v13701_v34 = vadd.f32 %v10768_v7, %v8032_v29  ;;  %v8056_v44 = vpop.f32.mrf.mxu3 }
0x15f4   :  { %v8105_v28 = vsel %vm3658_vm4, %v13705_v63, -inf  ;;  %v13716_v25 = vadd.f32 %v10768_v7, %v8056_v44 }
0x15f5   :  { %v8099_v4 = vsel %vm3658_vm4, %v13701_v34, -inf }
0x15f6   :  { %8100 = vmax.xlane.f32.xlu1 %v8099_v4  ;;  %v8102_v0 = vsel %vm3658_vm4, %v13716_v25, -inf }
0x15f9   :  { %v8082_v13 = vpop.f32.mrf.mxu0 }
0x15fa   :  { %v8034_v59 = vpop.f32.mrf.mxu2 }
0x15fb   :  { %v8058_v36 = vpop.f32.mrf.mxu3 }
0x1604   :  { %10538 = vrot.lane.b32.xlu2 %v10542_v33, %s10948_s9 }
0x1608   :  { %8106 = vmax.xlane.f32.xlu0 %v8105_v28 }
0x160c   :  { %10548 = vrot.lane.b32.xlu2 %v10547_v41, %s10961_s28 }
0x160f   :  { %10533 = vrot.lane.b32.xlu1 %v10542_v33, %s10961_s28 }
0x1610   :  { %8103 = vmax.xlane.f32.xlu0 %v8102_v0 }
0x1635   :  { %8094 = vmax.xlane.f32.xlu2 %v8093_v37 }
0x163d   :  { %8091 = vmax.xlane.f32.xlu2 %v8090_v11  ;;  %v8089_v31 = vpop.xlane.xlu0 %8088 }
0x163e   :  { %v8109_v17 = vsub.f32 %v7937_v18, %v8089_v31 }
0x1640   :  { %v8118_v27 = vmul.f32 1.442695, %v8109_v17 }
0x1641   :  { %v8086_v1 = vpop.xlane.xlu1 %8085 }
0x1642   :  { %10719 = vpow2.f32 %v8118_v27  ;;  %v8108_v40 = vsub.f32 %v13683_v23, %v8086_v1  ;;  %v7430_v23 = vrot.slane %v13690_v43, 4 }
0x1644   :  { %v8116_v19 = vmul.f32 1.442695, %v8108_v40 }
0x1646   :  { %10721 = vpow2.f32 %v8116_v19 }
0x1648   :  { %v13730_v9 = vpop.eup %10719 }
0x1649   :  { %v8135_v38 = vsel %vm3658_vm4, %v13730_v9, 0.0 }
0x164a   :  { %8136 = vadd.xlane.f32.xlu0 %v8135_v38 }
0x164c   :  { %v13739_v21 = vpop.eup %10721 }
0x164d   :  { %v8132_v12 = vsel %vm3658_vm4, %v13739_v21, 0.0 }
0x1650   :  { %v10544_v30 = vpop.permute.xlu0 %10543 }
0x1651   :  { %v10546_v57 = vunpack.i.h.bf16 %v10544_v30  ;;  %v10545_v22 = vunpack.i.l.bf16 %v10544_v30 }
0x1653   :  { %v7440_v20 = vrot.slane %v10545_v22, 4 }
0x1655   :  { %10553 = vrot.lane.b32.xlu2 %v10547_v41, %s10948_s9 }
0x165e   :  { %10558 = vrot.lane.b32.xlu0 %v10547_v41, %s10960_s27 }
0x165f   :  { %v8098_v61 = vpop.xlane.xlu2 %8097 }
0x1660   :  { %v8112_v50 = vsub.f32 %v8009_v53, %v8098_v61  ;;  %v7496_v53 = vrot.slane %v10546_v57, 4 }
0x1662   :  { %v8124_v55 = vmul.f32 1.442695, %v8112_v50 }
0x1664   :  { %10723 = vpow2.f32 %v8124_v55 }
0x1667   :  { %v10539_v42 = vpop.permute.xlu2 %10538 }
0x1668   :  { %v10541_v51 = vunpack.i.h.bf16 %v10539_v42  ;;  %v10540_v3 = vunpack.i.l.bf16 %v10539_v42 }
0x1669   :  { %v13737_v18 = vpop.xlane.xlu1 %8100 }
0x166a   :  { %v7484_v16 = vrot.slane %v10541_v51, 4  ;;  %v7428_v14 = vrot.slane %v10540_v3, 4  ;;  %v7487_v33 = vsel %vm483_vm7, %v10541_v51, %v7486_v47  ;;  %v7431_v5 = vsel %vm483_vm7, %v10540_v3, %v7430_v23  ;;  %v13752_v46 = vpop.eup %10723 }
0x166b   :  { %v7495_v7 = vperm.slane %v7487_v33, %v11192_v10  ;;  %v7439_v54 = vperm.slane %v7431_v5, %v11192_v10 }
0x166c   :  { %v7485_v58 = vsel %vm483_vm7, %v7484_v16, %v13692_v15  ;;  %v7429_v39 = vsel %vm483_vm7, %v7428_v14, %v13690_v43  ;;  %v8144_v43 = vsel %vm3658_vm4, %v13752_v46, 0.0 }
0x166d   :  { %v7491_v49 = vperm.slane %v7485_v58, %v11192_v10  ;;  %v7435_v15 = vperm.slane %v7429_v39, %v11192_v10  ;;  %v7466_v37 = vrot.slane %v7439_v54, 4 }
0x166f   :  { %v7510_v36 = vrot.slane %v7491_v49, 4  ;;  %v7454_v0 = vrot.slane %v7435_v15, 4 }
0x167b   :  { %v8107_v62 = vpop.xlane.xlu0 %8106 }
0x167c   :  { %v8115_v6 = vsub.f32 %v13705_v63, %v8107_v62  ;;  %v7522_v63 = vrot.slane %v7495_v7, 4 }
0x167e   :  { %8133 = vadd.xlane.f32.xlu2 %v8132_v12  ;;  %v8130_v29 = vmul.f32 1.442695, %v8115_v6 }
0x1680   :  { %10725 = vpow2.f32 %v8130_v29 }
0x1681   :  { %v10534_v45 = vpop.permute.xlu1 %10533 }
0x1682   :  { %v10536_v60 = vunpack.i.h.bf16 %v10534_v45  ;;  %v10535_v26 = vunpack.i.l.bf16 %v10534_v45 }
0x1684   :  { %v7497_v44 = vsel %vm483_vm7, %v7496_v53, %v10536_v60  ;;  %v7498_v4 = vrot.slane %v10536_v60, 4  ;;  %v7441_v13 = vsel %vm483_vm7, %v7440_v20, %v10535_v26  ;;  %v7442_v59 = vrot.slane %v10535_v26, 4 }
0x1685   :  { %v7503_v28 = vperm.slane %v7497_v44, %v11192_v10  ;;  %v7447_v41 = vperm.slane %v7441_v13, %v11192_v10 }
0x1686   :  { %v7499_v11 = vsel %vm483_vm7, %v10546_v57, %v7498_v4  ;;  %v7443_v31 = vsel %vm483_vm7, %v10545_v22, %v7442_v59  ;;  %8145 = vadd.xlane.f32.xlu2 %v8144_v43  ;;  %v13785_v53 = vpop.eup %10725 }
0x1687   :  { %v7507_v17 = vperm.slane %v7499_v11, %v11192_v10  ;;  %v7508_v27 = vrot.slane %v7503_v28, 4  ;;  %v7511_v38 = vsel %vm483_vm7, %v7503_v28, %v7510_v36  ;;  %v7451_v1 = vperm.slane %v7443_v31, %v11192_v10 }
0x1688   :  { %v7519_v61 = vperm.slane %v7511_v38, %v11200_v24  ;;  %v7452_v40 = vrot.slane %v7447_v41, 4  ;;  %v7455_v19 = vsel %vm483_vm7, %v7447_v41, %v7454_v0  ;;  %v8153_v41 = vsel %vm3658_vm4, %v13785_v53, 0.0 }
0x1689   :  { %v7509_v50 = vsel %vm483_vm7, %v7508_v27, %v7491_v49  ;;  %v7520_v42 = vrot.slane %v7507_v17, 4  ;;  %v7523_v30 = vsel %vm483_vm7, %v7507_v17, %v7522_v63  ;;  %v7463_v55 = vperm.slane %v7455_v19, %v11200_v24  ;;  %8154 = vadd.xlane.f32.xlu0 %v8153_v41 }
0x168a   :  { %v7515_v51 = vperm.slane %v7509_v50, %v11200_v24  ;;  %v7531_v3 = vperm.slane %v7523_v30, %v11200_v24  ;;  %v7534_v16 = vrot.slane %v7519_v61, 4  ;;  %v7453_v14 = vsel %vm483_vm7, %v7452_v40, %v7435_v15 }
0x168b   :  { %v7521_v47 = vsel %vm483_vm7, %v7520_v42, %v7495_v7  ;;  %v7459_v62 = vperm.slane %v7453_v14, %v11200_v24  ;;  %v7464_v23 = vrot.slane %v7451_v1, 4  ;;  %v7467_v57 = vsel %vm483_vm7, %v7451_v1, %v7466_v37 }
0x168c   :  { %v7527_v22 = vperm.slane %v7521_v47, %v11200_v24  ;;  %v7532_v12 = vrot.slane %v7515_v51, 4  ;;  %v7535_v58 = vsel %vm483_vm7, 0.0, %v7534_v16  ;;  %v7538_v33 = vrot.slane %v7531_v3, 4 }
0x168d   :  { %v7706_v39 = vsel %vm483_vm7, %v7534_v16, %v7515_v51  ;;  %v7711_v5 = vrot.slane %v7535_v58, 4  ;;  %v7465_v6 = vsel %vm483_vm7, %v7464_v23, %v7439_v54  ;;  %v7475_v49 = vperm.slane %v7467_v57, %v11200_v24 }
0x168e   :  { %v7533_v7 = vsel %vm483_vm7, 0.0, %v7532_v12  ;;  %v7536_v20 = vrot.slane %v7527_v22, 4  ;;  %v7539_v45 = vsel %vm483_vm7, 0.0, %v7538_v33  ;;  %v7710_v15 = vperm.slane %v7706_v39, %v11192_v10 }
0x168f   :  { %v7712_v60 = vsel %vm483_vm7, %v7711_v5, %v7533_v7  ;;  %v7717_v26 = vsel %vm483_vm7, %v7538_v33, %v7527_v22  ;;  %v7722_v43 = vrot.slane %v7539_v45, 4  ;;  %v7471_v29 = vperm.slane %v7465_v6, %v11200_v24 }
0x1690   :  { %v7537_v54 = vsel %vm483_vm7, 0.0, %v7536_v20  ;;  %v7716_v44 = vperm.slane %v7712_v60, %v11192_v10  ;;  %v7730_v4 = vrot.slane %v7710_v15, 4  ;;  %v7476_v13 = vrot.slane %v7459_v62, 4 }
0x1691   :  { %v7478_v59 = vrot.slane %v7463_v55, 4  ;;  %v7480_v36 = vrot.slane %v7471_v29, 4  ;;  %v7482_v63 = vrot.slane %v7475_v49, 4  ;;  %v7721_v28 = vperm.slane %v7717_v26, %v11192_v10 }
0x1692   :  { %v7723_v0 = vsel %vm483_vm7, %v7722_v43, %v7537_v54  ;;  %v7731_v37 = vsel %vm483_vm7, %v7716_v44, %v7730_v4  ;;  %v7477_v11 = vsel %vm483_vm7, 0.0, %v7476_v13  ;;  %v7728_v16 = vrot.slane %v7716_v44, 4 }
0x1693   :  { %v7479_v31 = vsel %vm483_vm7, 0.0, %v7478_v59  ;;  %v7481_v17 = vsel %vm483_vm7, 0.0, %v7480_v36  ;;  %v7483_v27 = vsel %vm483_vm7, 0.0, %v7482_v63  ;;  %v7652_v38 = vsel %vm483_vm7, %v7478_v59, %v7459_v62 }
0x1694   :  { %v7657_v1 = vrot.slane %v7479_v31, 4  ;;  %v7663_v61 = vsel %vm483_vm7, %v7482_v63, %v7471_v29  ;;  %v7668_v40 = vrot.slane %v7483_v27, 4  ;;  %v7656_v19 = vperm.slane %v7652_v38, %v11192_v10  ;;  %v13833_v38 = vpop.permute.xlu2 %10548 }
0x1695   :  { %v7667_v50 = vperm.slane %v7663_v61, %v11192_v10  ;;  %v7727_v42 = vperm.slane %v7723_v0, %v11192_v10  ;;  %v7739_v30 = vperm.slane %v7731_v37, %v11200_v24  ;;  %v7742_v3 = vrot.slane %v7721_v28, 4 }
0x1696   :  { %v7658_v55 = vsel %vm483_vm7, %v7657_v1, %v7477_v11  ;;  %v7669_v51 = vsel %vm483_vm7, %v7668_v40, %v7481_v17  ;;  %v7676_v47 = vrot.slane %v7656_v19, 4  ;;  %v7729_v12 = vsel %vm483_vm7, %v7728_v16, %v7710_v15 }
0x1697   :  { %v7662_v14 = vperm.slane %v7658_v55, %v11192_v10  ;;  %v7673_v62 = vperm.slane %v7669_v51, %v11192_v10  ;;  %v7688_v23 = vrot.slane %v7667_v50, 4  ;;  %v7743_v57 = vsel %vm483_vm7, %v7727_v42, %v7742_v3 }
0x1698   :  { %v7758_v22 = vrot.slane %v7739_v30, 4  ;;  %v7740_v58 = vrot.slane %v7727_v42, 4  ;;  %v7751_v5 = vperm.slane %v7743_v57, %v11200_v24  ;;  %v7735_v45 = vperm.slane %v7729_v12, %v11200_v24 }
0x1699   :  { %v7677_v33 = vsel %vm483_vm7, %v7662_v14, %v7676_v47  ;;  %v7689_v39 = vsel %vm483_vm7, %v7673_v62, %v7688_v23  ;;  %v7674_v6 = vrot.slane %v7662_v14, 4  ;;  %v7686_v20 = vrot.slane %v7673_v62, 4 }
0x169a   :  { %v7685_v49 = vperm.slane %v7677_v33, %v11200_v24  ;;  %v7697_v7 = vperm.slane %v7689_v39, %v11200_v24  ;;  %v7759_v60 = vsel %vm483_vm7, %v7751_v5, %v7758_v22  ;;  %v7741_v15 = vsel %vm483_vm7, %v7740_v58, %v7721_v28 }
0x169b   :  { %v7675_v26 = vsel %vm483_vm7, %v7674_v6, %v7656_v19  ;;  %v7756_v43 = vrot.slane %v7751_v5, 4  ;;  %v8291_v54 = vpack.c.bf16 %v7759_v60, %v7759_v60  ;;  %v7687_v4 = vsel %vm483_vm7, %v7686_v20, %v7667_v50  ;;  %v8104_v60 = vpop.xlane.xlu0 %8103 }
0x169c   :  { %v7704_v29 = vrot.slane %v7685_v49, 4  ;;  %v7681_v44 = vperm.slane %v7675_v26, %v11200_v24  ;;  %v7693_v13 = vperm.slane %v7687_v4, %v11200_v24  ;;  %v7747_v59 = vperm.slane %v7741_v15, %v11200_v24 }
0x169d   :  { %v7754_v36 = vrot.slane %v7735_v45, 4  ;;  %v7702_v63 = vrot.slane %v7697_v7, 4  ;;  %v8369_v0 = vunpack.c.l.b16 %v8291_v54  ;;  %v7757_v11 = vsel %vm483_vm7, %v7756_v43, %v7739_v30 }
0x169e   :  { %v7705_v41 = vsel %vm483_vm7, %v7697_v7, %v7704_v29  ;;  %v7700_v37 = vrot.slane %v7681_v44, 4  ;;  %v8289_v27 = vpack.c.bf16 %v7757_v11, %v7757_v11  ;;  %v7698_v19 = vrot.slane %v7693_v13, 4 }
0x169f   :  { %v8290_v28 = vpack.c.bf16 %v7705_v41, %v7705_v41  ;;  %v7755_v31 = vsel %vm483_vm7, %v7747_v59, %v7754_v36  ;;  %v7703_v17 = vsel %vm483_vm7, %v7702_v63, %v7685_v49  ;;  %v7752_v51 = vrot.slane %v7747_v59, 4 }
0x16a0   :  { %v7701_v1 = vsel %vm483_vm7, %v7693_v13, %v7700_v37  ;;  %v8287_v61 = vpack.c.bf16 %v7755_v31, %v7755_v31  ;;  %v8288_v40 = vpack.c.bf16 %v7703_v17, %v7703_v17  ;;  %v8347_v55 = vunpack.c.l.b16 %v8289_v27 }
0x16a1   :  { %v8368_v50 = vunpack.c.l.b16 %v8290_v28  ;;  %v8286_v42 = vpack.c.bf16 %v7701_v1, %v7701_v1  ;;  %v7699_v30 = vsel %vm483_vm7, %v7698_v19, %v7681_v44  ;;  %v7753_v62 = vsel %vm483_vm7, %v7752_v51, %v7735_v45 }
0x16a2   :  { %v8325_v3 = vunpack.c.l.b16 %v8287_v61  ;;  %v8346_v16 = vunpack.c.l.b16 %v8288_v40  ;;  %v8284_v23 = vpack.c.bf16 %v7699_v30, %v7699_v30  ;;  %v8285_v22 = vpack.c.bf16 %v7753_v62, %v7753_v62 }
0x16a3   :  { %v8370_v14 = vpack.c.b16 %v8369_v0, %v8368_v50  ;;  %v8324_v47 = vunpack.c.l.b16 %v8286_v42  ;;  %v8114_v15 = vsub.f32 %v13716_v25, %v8104_v60  ;;  %v7542_v37 = vrot.slane %v13708_v48, 4 }
0x16a4   :  { %v8348_v57 = vpack.c.b16 %v8347_v55, %v8346_v16  ;;  %v8302_v58 = vunpack.c.l.b16 %v8284_v23  ;;  %v8303_v33 = vunpack.c.l.b16 %v8285_v22  ;;  %v7598_v17 = vrot.slane %v13710_v35, 4 }
0x16a5   :  { %8382 = vmatpush.bf16.msrb.mxu0 %v8370_v14  ;;  %v8326_v12 = vpack.c.b16 %v8325_v3, %v8324_v47  ;;  %v8128_v54 = vmul.f32 1.442695, %v8114_v15  ;;  %v10550_v1 = vunpack.i.l.bf16 %v13833_v38 }
0x16a6   :  { %8360 = vmatpush.bf16.msra.mxu3 %v8348_v57  ;;  %v8304_v39 = vpack.c.b16 %v8303_v33, %v8302_v58 }
0x16a7   :  { %8338 = vmatpush.bf16.msrb.mxu2 %v8326_v12  ;;  %v7554_v30 = vrot.slane %v10550_v1, 4 }
0x16a8   :  { %v8095_v5 = vpop.xlane.xlu2 %8094  ;;  %8316 = vmatpush.bf16.msrb.mxu1 %v8304_v39 }
0x16a9   :  { %v8111_v7 = vsub.f32 %v13722_v2, %v8095_v5  ;;  %v8113_v2 = vsub.f32 %v13701_v34, %v13737_v18  ;;  %v10551_v18 = vunpack.i.h.bf16 %v13833_v38 }
0x16ab   :  { %v8122_v45 = vmul.f32 1.442695, %v8111_v7  ;;  %v8126_v36 = vmul.f32 1.442695, %v8113_v2  ;;  %v7610_v16 = vrot.slane %v10551_v18, 4 }
0x16b0   :  { %v8092_v6 = vpop.xlane.xlu2 %8091 }
0x16b1   :  { %v8110_v49 = vsub.f32 %v13726_v52, %v8092_v6 }
0x16b3   :  { %v8120_v20 = vmul.f32 1.442695, %v8110_v49 }
0x16b5   :  { %10727 = vpow2.f32 %v8120_v20 }
0x16b6   :  { %10729 = vpow2.f32 %v8122_v45 }
0x16b8   :  { %v10554_v52 = vpop.permute.xlu2 %10553 }
0x16b9   :  { %v10555_v25 = vunpack.i.l.bf16 %v10554_v52  ;;  %v10556_v63 = vunpack.i.h.bf16 %v10554_v52 }
0x16bb   :  { %v13840_v26 = vpop.eup %10727  ;;  %v7540_v28 = vrot.slane %v10555_v25, 4  ;;  %v7596_v27 = vrot.slane %v10556_v63, 4  ;;  %v7599_v19 = vsel %vm483_vm7, %v10556_v63, %v7598_v17  ;;  %v7543_v55 = vsel %vm483_vm7, %v10555_v25, %v7542_v37 }
0x16bc   :  { %v8138_v43 = vsel %vm3658_vm4, %v13840_v26, 0.0  ;;  %v13845_v44 = vpop.eup %10729  ;;  %v7607_v14 = vperm.slane %v7599_v19, %v11192_v10  ;;  %v7551_v57 = vperm.slane %v7543_v55, %v11192_v10 }
0x16bd   :  { %8139 = vadd.xlane.f32.xlu1 %v8138_v43  ;;  %v8137_v29 = vpop.xlane.xlu0 %8136  ;;  %v8141_v4 = vsel %vm3658_vm4, %v13845_v44, 0.0  ;;  %v7541_v42 = vsel %vm483_vm7, %v7540_v28, %v13708_v48  ;;  %v7597_v38 = vsel %vm483_vm7, %v7596_v27, %v13710_v35 }
0x16be   :  { %10731 = vrcp.f32 %v8137_v29  ;;  %v8182_v11 = vand.u32 2147483648, %v8137_v29  ;;  %v8180_v34 = vand.u32 2147483647, %v8137_v29  ;;  %vm8176_vm3 = vweird.f32 %v8137_v29 }
0x16bf   :  { %10733 = vpow2.f32 %v8128_v54  ;;  %v7547_v48 = vperm.slane %v7541_v42, %v11192_v10  ;;  %v7603_v58 = vperm.slane %v7597_v38, %v11192_v10  ;;  %v7634_v6 = vrot.slane %v7607_v14, 4 }
0x16c0   :  { %10735 = vpow2.f32 %v8126_v36  ;;  %v8183_v50 = vor.u32 1.1754944e-38, %v8182_v11  ;;  %vm8181_vm6 = vcmp.eq.f32.partialorder %v8180_v34, 8.507059e+37  ;;  %v7578_v45 = vrot.slane %v7551_v57, 4 }
0x16c1   :  { %v7566_v60 = vrot.slane %v7547_v48, 4 }
0x16c4   :  { %v10732_v13 = vpop.eup %10731 }
0x16c5   :  { %8142 = vadd.xlane.f32.xlu1 %v8141_v4  ;;  %v8172_v59 = vmul.f32 %v10732_v13, %v8137_v29  ;;  %v13851_v0 = vpop.eup %10733  ;;  %vm8177_vm2 = vweird.f32 %v10732_v13  ;;  %v7622_v4 = vrot.slane %v7603_v58, 4 }
0x16c6   :  { %v8150_v40 = vsel %vm3658_vm4, %v13851_v0, 0.0  ;;  %vm8178_vm5 = vmor %vm8176_vm3, %vm8177_vm2  ;;  %v13869_v23 = vpop.eup %10735 }
0x16c7   :  { %v8173_v41 = vsub.f32 1.0, %v8172_v59  ;;  %v8147_v49 = vsel %vm3658_vm4, %v13869_v23, 0.0 }
0x16c9   :  { %v8174_v31 = vmul.f32 %v10732_v13, %v8173_v41 }
0x16cb   :  { %v8175_v61 = vadd.f32 %v10732_v13, %v8174_v31 }
0x16cd   :  { %8151 = vadd.xlane.f32.xlu1 %v8150_v40  ;;  %v8179_v51 = vsel %vm8178_vm5, %v10732_v13, %v8175_v61 }
0x16ce   :  { %v8184_v3 = vsel %vm8181_vm6, %v8183_v50, %v8179_v51 }
0x16cf   :  { %v13867_v47 = vmul.f32 %v13730_v9, %v8184_v3 }
0x16d0   :  { %v10559_v62 = vpop.permute.xlu0 %10558 }
0x16d1   :  { %v10561_v22 = vunpack.i.h.bf16 %v10559_v62  ;;  %v10560_v12 = vunpack.i.l.bf16 %v10559_v62  ;;  %v8277_v35 = vpack.c.bf16 %v13867_v47, %v13867_v47 }
0x16d3   :  { %v7608_v33 = vrot.slane %v10561_v22, 4  ;;  %v7611_v39 = vsel %vm483_vm7, %v10561_v22, %v7610_v16  ;;  %v7552_v5 = vrot.slane %v10560_v12, 4  ;;  %v7555_v9 = vsel %vm483_vm7, %v10560_v12, %v7554_v30  ;;  %9976 = vmatmul.msk.bf16.vlgmr.msrb.gmra.mxu2 %vm3658_vm4, %v8277_v35 }
0x16d4   :  { %v7619_v7 = vperm.slane %v7611_v39, %v11192_v10  ;;  %v7563_v20 = vperm.slane %v7555_v9, %v11192_v10 }
0x16d5   :  { %8148 = vadd.xlane.f32.xlu1 %v8147_v49  ;;  %v7609_v15 = vsel %vm483_vm7, %v7608_v33, %v10551_v18  ;;  %v7553_v43 = vsel %vm483_vm7, %v7552_v5, %v10550_v1 }
0x16d6   :  { %v7615_v29 = vperm.slane %v7609_v15, %v11192_v10  ;;  %v7632_v54 = vrot.slane %v7619_v7, 4  ;;  %v7559_v2 = vperm.slane %v7553_v43, %v11192_v10  ;;  %v7576_v52 = vrot.slane %v7563_v20, 4 }
0x16d7   :  { %v7579_v13 = vsel %vm483_vm7, %v7563_v20, %v7578_v45  ;;  %v7635_v25 = vsel %vm483_vm7, %v7619_v7, %v7634_v6 }
0x16d8   :  { %v7620_v59 = vrot.slane %v7615_v29, 4  ;;  %v7564_v36 = vrot.slane %v7559_v2, 4  ;;  %v7567_v63 = vsel %vm483_vm7, %v7559_v2, %v7566_v60  ;;  %v7577_v41 = vsel %vm483_vm7, %v7576_v52, %v7551_v57 }
0x16d9   :  { %v7575_v37 = vperm.slane %v7567_v63, %v11200_v24  ;;  %v7583_v11 = vperm.slane %v7577_v41, %v11200_v24  ;;  %v7587_v28 = vperm.slane %v7579_v13, %v11200_v24  ;;  %v7623_v31 = vsel %vm483_vm7, %v7615_v29, %v7622_v4 }
0x16da   :  { %v7565_v34 = vsel %vm483_vm7, %v7564_v36, %v7547_v48  ;;  %v7621_v18 = vsel %vm483_vm7, %v7620_v59, %v7603_v58  ;;  %v7631_v17 = vperm.slane %v7623_v31, %v11200_v24  ;;  %v7633_v27 = vsel %vm483_vm7, %v7632_v54, %v7607_v14 }
0x16db   :  { %v7571_v1 = vperm.slane %v7565_v34, %v11200_v24  ;;  %v7590_v61 = vrot.slane %v7575_v37, 4  ;;  %v7592_v40 = vrot.slane %v7583_v11, 4  ;;  %v7594_v19 = vrot.slane %v7587_v28, 4 }
0x16dc   :  { %v7627_v50 = vperm.slane %v7621_v18, %v11200_v24  ;;  %v7639_v42 = vperm.slane %v7633_v27, %v11200_v24  ;;  %v7643_v55 = vperm.slane %v7635_v25, %v11200_v24  ;;  %v7646_v51 = vrot.slane %v7631_v17, 4 }
0x16dd   :  { %v7588_v38 = vrot.slane %v7571_v1, 4  ;;  %v7591_v3 = vsel %vm483_vm7, 0.0, %v7590_v61  ;;  %v7593_v16 = vsel %vm483_vm7, 0.0, %v7592_v40  ;;  %v7595_v30 = vsel %vm483_vm7, 0.0, %v7594_v19 }
0x16de   :  { %v7644_v14 = vrot.slane %v7627_v50, 4  ;;  %v7647_v62 = vsel %vm483_vm7, 0.0, %v7646_v51  ;;  %v7648_v48 = vrot.slane %v7639_v42, 4  ;;  %v7650_v57 = vrot.slane %v7643_v55, 4 }
0x16df   :  { %v7589_v22 = vsel %vm483_vm7, 0.0, %v7588_v38  ;;  %v7760_v12 = vsel %vm483_vm7, %v7590_v61, %v7571_v1  ;;  %v7765_v58 = vrot.slane %v7591_v3, 4  ;;  %v7771_v35 = vsel %vm483_vm7, %v7594_v19, %v7583_v11 }
0x16e0   :  { %v7645_v33 = vsel %vm483_vm7, 0.0, %v7644_v14  ;;  %v7649_v39 = vsel %vm483_vm7, 0.0, %v7648_v48  ;;  %v7651_v5 = vsel %vm483_vm7, 0.0, %v7650_v57  ;;  %v7764_v9 = vperm.slane %v7760_v12, %v11192_v10 }
0x16e1   :  { %v7775_v6 = vperm.slane %v7771_v35, %v11192_v10  ;;  %v7776_v49 = vrot.slane %v7595_v30, 4  ;;  %v7814_v7 = vsel %vm483_vm7, %v7646_v51, %v7627_v50  ;;  %v7819_v20 = vrot.slane %v7647_v62, 4 }
0x16e2   :  { %v7818_v60 = vperm.slane %v7814_v7, %v11192_v10  ;;  %v7825_v45 = vsel %vm483_vm7, %v7650_v57, %v7639_v42  ;;  %v7830_v15 = vrot.slane %v7651_v5, 4  ;;  %v7766_v43 = vsel %vm483_vm7, %v7765_v58, %v7589_v22 }
0x16e3   :  { %v7777_v29 = vsel %vm483_vm7, %v7776_v49, %v7593_v16  ;;  %v7796_v54 = vrot.slane %v7775_v6, 4  ;;  %v7829_v2 = vperm.slane %v7825_v45, %v11192_v10  ;;  %v7770_v52 = vperm.slane %v7766_v43, %v11192_v10 }
0x16e4   :  { %v7781_v4 = vperm.slane %v7777_v29, %v11192_v10  ;;  %v7831_v13 = vsel %vm483_vm7, %v7830_v15, %v7649_v39  ;;  %v7784_v25 = vrot.slane %v7764_v9, 4  ;;  %v7820_v59 = vsel %vm483_vm7, %v7819_v20, %v7645_v33 }
0x16e5   :  { %v7835_v36 = vperm.slane %v7831_v13, %v11192_v10  ;;  %v7850_v63 = vrot.slane %v7829_v2, 4  ;;  %v7824_v41 = vperm.slane %v7820_v59, %v11192_v10  ;;  %v7838_v37 = vrot.slane %v7818_v60, 4 }
0x16e6   :  { %v7785_v11 = vsel %vm483_vm7, %v7770_v52, %v7784_v25  ;;  %v7797_v28 = vsel %vm483_vm7, %v7781_v4, %v7796_v54  ;;  %v7782_v31 = vrot.slane %v7770_v52, 4  ;;  %v7794_v34 = vrot.slane %v7781_v4, 4 }
0x16e7   :  { %v7793_v18 = vperm.slane %v7785_v11, %v11200_v24  ;;  %v7805_v17 = vperm.slane %v7797_v28, %v11200_v24  ;;  %v7839_v27 = vsel %vm483_vm7, %v7824_v41, %v7838_v37  ;;  %v7851_v1 = vsel %vm483_vm7, %v7835_v36, %v7850_v63 }
0x16e8   :  { %v7847_v61 = vperm.slane %v7839_v27, %v11200_v24  ;;  %v7859_v40 = vperm.slane %v7851_v1, %v11200_v24  ;;  %v7783_v19 = vsel %vm483_vm7, %v7782_v31, %v7764_v9  ;;  %v7795_v50 = vsel %vm483_vm7, %v7794_v34, %v7775_v6 }
0x16e9   :  { %v7810_v42 = vrot.slane %v7805_v17, 4  ;;  %v7789_v55 = vperm.slane %v7783_v19, %v11200_v24  ;;  %v7801_v51 = vperm.slane %v7795_v50, %v11200_v24  ;;  %v7836_v38 = vrot.slane %v7824_v41, 4 }
0x16ea   :  { %v7864_v3 = vrot.slane %v7859_v40, 4  ;;  %v7848_v16 = vrot.slane %v7835_v36, 4  ;;  %v7812_v30 = vrot.slane %v7793_v18, 4  ;;  %v7866_v14 = vrot.slane %v7847_v61, 4 }
0x16eb   :  { %v7811_v62 = vsel %vm483_vm7, %v7810_v42, %v7793_v18  ;;  %v7806_v48 = vrot.slane %v7801_v51, 4  ;;  %v7837_v57 = vsel %vm483_vm7, %v7836_v38, %v7818_v60  ;;  %v7808_v22 = vrot.slane %v7789_v55, 4 }
0x16ec   :  { %v7865_v12 = vsel %vm483_vm7, %v7864_v3, %v7847_v61  ;;  %v8296_v58 = vpack.c.bf16 %v7811_v62, %v7811_v62  ;;  %v7843_v35 = vperm.slane %v7837_v57, %v11200_v24  ;;  %v7849_v33 = vsel %vm483_vm7, %v7848_v16, %v7829_v2 }
0x16ed   :  { %v8297_v39 = vpack.c.bf16 %v7865_v12, %v7865_v12  ;;  %v7807_v5 = vsel %vm483_vm7, %v7806_v48, %v7789_v55  ;;  %v7855_v9 = vperm.slane %v7849_v33, %v11200_v24  ;;  %v7813_v6 = vsel %vm483_vm7, %v7805_v17, %v7812_v30 }
0x16ee   :  { %v8434_v49 = vunpack.c.l.b16 %v8296_v58  ;;  %v8292_v7 = vpack.c.bf16 %v7807_v5, %v7807_v5  ;;  %v7867_v20 = vsel %vm483_vm7, %v7859_v40, %v7866_v14  ;;  %v8298_v60 = vpack.c.bf16 %v7813_v6, %v7813_v6 }
0x16ef   :  { %v8435_v45 = vunpack.c.l.b16 %v8297_v39  ;;  %v7860_v15 = vrot.slane %v7855_v9, 4  ;;  %v8299_v43 = vpack.c.bf16 %v7867_v20, %v7867_v20  ;;  %v7809_v29 = vsel %vm483_vm7, %v7801_v51, %v7808_v22 }
0x16f0   :  { %v8456_v54 = vunpack.c.l.b16 %v8298_v60  ;;  %v7862_v52 = vrot.slane %v7843_v35, 4  ;;  %v8294_v2 = vpack.c.bf16 %v7809_v29, %v7809_v29  ;;  %v8390_v63 = vunpack.c.l.b16 %v8292_v7 }
0x16f1   :  { %v8134_v4 = vpop.xlane.xlu2 %8133  ;;  %v8436_v13 = vpack.c.b16 %v8435_v45, %v8434_v49  ;;  %v7861_v25 = vsel %vm483_vm7, %v7860_v15, %v7843_v35  ;;  %v8457_v59 = vunpack.c.l.b16 %v8299_v43  ;;  %v8816_v48 = vsel %vm3658_vm4, %v13867_v47, 0.0 }
0x16f2   :  { %10737 = vrcp.f32 %v8134_v4  ;;  %v8293_v36 = vpack.c.bf16 %v7861_v25, %v7861_v25  ;;  %v7863_v37 = vsel %vm483_vm7, %v7855_v9, %v7862_v52  ;;  %v8412_v28 = vunpack.c.l.b16 %v8294_v2 }
0x16f3   :  { %8448 = vmatpush.bf16.msrb.mxu3 %v8436_v13  ;;  %v8458_v41 = vpack.c.b16 %v8457_v59, %v8456_v54  ;;  %v8295_v11 = vpack.c.bf16 %v7863_v37, %v7863_v37  ;;  %v8167_v19 = vand.u32 2147483648, %v8134_v4  ;;  %v8165_v42 = vand.u32 2147483647, %v8134_v4 }
0x16f4   :  { %v8391_v31 = vunpack.c.l.b16 %v8293_v36  ;;  %vm8161_vm10 = vweird.f32 %v8134_v4  ;;  %v10965_v7 = vmov 4.0  }
0x16f5   :  { %8470 = vmatpush.bf16.msra.mxu0 %v8458_v41  ;;  %v8413_v34 = vunpack.c.l.b16 %v8295_v11  ;;  %v8168_v38 = vor.u32 1.1754944e-38, %v8167_v19  ;;  %vm8166_vm14 = vcmp.eq.f32.partialorder %v8165_v42, 8.507059e+37 }
0x16f6   :  { %v8392_v18 = vpack.c.b16 %v8391_v31, %v8390_v63 }
0x16f7   :  { %v8414_v27 = vpack.c.b16 %v8413_v34, %v8412_v28 }
0x16f8   :  { %v10738_v17 = vpop.eup %10737  ;;  %8404 = vmatpush.bf16.msra.mxu1 %v8392_v18 }
0x16f9   :  { %v8157_v1 = vmul.f32 %v10738_v17, %v8134_v4  ;;  %v8146_v61 = vpop.xlane.xlu2 %8145  ;;  %8426 = vmatpush.bf16.msra.mxu2 %v8414_v27  ;;  %vm8162_vm9 = vweird.f32 %v10738_v17 }
0x16fa   :  { %10739 = vrcp.f32 %v8146_v61  ;;  %vm8163_vm11 = vmor %vm8161_vm10, %vm8162_vm9  ;;  %v8227_v33 = vand.u32 2147483648, %v8146_v61  ;;  %vm8221_vm0 = vweird.f32 %v8146_v61  ;;  %v8225_v39 = vand.u32 2147483647, %v8146_v61 }
0x16fb   :  { %v8158_v40 = vsub.f32 1.0, %v8157_v1 }
0x16fc   :  { %vm8226_vm2 = vcmp.eq.f32.partialorder %v8225_v39, 8.507059e+37  ;;  %v13964_v20 = vpop.xlane.xlu0 %8154 }
0x16fd   :  { %v8159_v50 = vmul.f32 %v10738_v17, %v8158_v40 }
0x16ff   :  { %v8160_v55 = vadd.f32 %v10738_v17, %v8159_v50 }
0x1700   :  { %v10740_v51 = vpop.eup %10739 }
0x1701   :  { %v8164_v3 = vsel %vm8163_vm11, %v10738_v17, %v8160_v55  ;;  %v8217_v16 = vmul.f32 %v10740_v51, %v8146_v61  ;;  %vm8222_vm15 = vweird.f32 %v10740_v51 }
0x1702   :  { %v8169_v30 = vsel %vm8166_vm14, %v8168_v38, %v8164_v3  ;;  %vm8223_vm1 = vmor %vm8221_vm0, %vm8222_vm15 }
0x1703   :  { %v8170_v14 = vmul.f32 %v13739_v21, %v8169_v30  ;;  %v8218_v62 = vsub.f32 1.0, %v8217_v16  ;;  %v8228_v21 = vor.u32 1.1754944e-38, %v8227_v33 }
0x1705   :  { %v8276_v57 = vpack.c.bf16 %v8170_v14, %v8170_v14  ;;  %v8815_v22 = vsel %vm3658_vm4, %v8170_v14, 0.0  ;;  %v8219_v12 = vmul.f32 %v10740_v51, %v8218_v62 }
0x1706   :  { %v13955_v58 = vadd.f32 %v8816_v48, %v8815_v22 }
0x1707   :  { %v8220_v35 = vadd.f32 %v10740_v51, %v8219_v12  ;;  %9975 = vmatmul.msk.bf16.vlgmr.msrb.gmra.mxu1 %vm3658_vm4, %v8276_v57 }
0x1709   :  { %v8224_v5 = vsel %vm8223_vm1, %v10740_v51, %v8220_v35 }
0x170a   :  { %v8229_v9 = vsel %vm8226_vm2, %v8228_v21, %v8224_v5 }
0x170b   :  { %v13959_v47 = vmul.f32 %v13752_v46, %v8229_v9 }
0x170d   :  { %v8280_v6 = vpack.c.bf16 %v13959_v47, %v13959_v47 }
0x1717   :  { %9979 = vmatmul.msk.bf16.vlgmr.msra.gmra.mxu1 %vm3658_vm4, %v8280_v6  ;;  %v8270_v6 = vand.u32 2147483647, %v13964_v20 }
0x1730   :  { %v8140_v49 = vpop.xlane.xlu1 %8139 }
0x1731   :  { %10741 = vrcp.f32 %v8140_v49  ;;  %v8197_v29 = vand.u32 2147483648, %v8140_v49  ;;  %v8195_v2 = vand.u32 2147483647, %v8140_v49  ;;  %vm8191_vm5 = vweird.f32 %v8140_v49 }
0x1732   :  { %10743 = vrcp.f32 %v10965_v7 }
0x1733   :  { %10745 = vrcp.f32 %v13964_v20  ;;  %v8198_v59 = vor.u32 1.1754944e-38, %v8197_v29  ;;  %vm8196_vm9 = vcmp.eq.f32.partialorder %v8195_v2, 8.507059e+37 }
0x1737   :  { %v10742_v60 = vpop.eup %10741 }
0x1738   :  { %v10744_v45 = vpop.eup %10743  ;;  %v8187_v15 = vmul.f32 %v10742_v60, %v8140_v49  ;;  %v8143_v43 = vpop.xlane.xlu1 %8142  ;;  %vm8192_vm3 = vweird.f32 %v10742_v60 }
0x1739   :  { %10747 = vrcp.f32 %v8143_v43  ;;  %v8830_v54 = vmul.f32 4.0, %v10744_v45  ;;  %v13967_v4 = vpop.eup %10745  ;;  %vm8193_vm6 = vmor %vm8191_vm5, %vm8192_vm3  ;;  %v8210_v18 = vand.u32 2147483647, %v8143_v43  ;;  %v8212_v17 = vand.u32 2147483648, %v8143_v43 }
0x173a   :  { %v8188_v46 = vsub.f32 1.0, %v8187_v15  ;;  %v8262_v28 = vmul.f32 %v13967_v4, %v13964_v20  ;;  %vm8206_vm11 = vweird.f32 %v8143_v43  ;;  %vm8834_vm0 = vweird.f32 %v10744_v45 }
0x173b   :  { %v8831_v36 = vsub.f32 1.0, %v8830_v54  ;;  %vm8211_vm15 = vcmp.eq.f32.partialorder %v8210_v18, 8.507059e+37  ;;  %v8213_v42 = vor.u32 1.1754944e-38, %v8212_v17  ;;  %vm8267_vm2 = vweird.f32 %v13967_v4 }
0x173c   :  { %v8189_v52 = vmul.f32 %v10742_v60, %v8188_v46  ;;  %v8263_v40 = vsub.f32 1.0, %v8262_v28 }
0x173d   :  { %v8832_v27 = vmul.f32 %v10744_v45, %v8831_v36 }
0x173e   :  { %v8190_v13 = vadd.f32 %v10742_v60, %v8189_v52  ;;  %v8264_v30 = vmul.f32 %v13967_v4, %v8263_v40 }
0x173f   :  { %v10748_v25 = vpop.eup %10747  ;;  %v8833_v55 = vadd.f32 %v10744_v45, %v8832_v27 }
0x1740   :  { %v8194_v63 = vsel %vm8193_vm6, %v10742_v60, %v8190_v13  ;;  %v8202_v41 = vmul.f32 %v10748_v25, %v8143_v43  ;;  %v8152_v37 = vpop.xlane.xlu1 %8151  ;;  %vm8207_vm10 = vweird.f32 %v10748_v25  ;;  %v8265_v21 = vadd.f32 %v13967_v4, %v8264_v30 }
0x1741   :  { %v8199_v11 = vsel %vm8196_vm9, %v8198_v59, %v8194_v63  ;;  %10749 = vrcp.f32 %v8152_v37  ;;  %vm8208_vm14 = vmor %vm8206_vm11, %vm8207_vm10  ;;  %v8255_v48 = vand.u32 2147483647, %v8152_v37  ;;  %v8257_v57 = vand.u32 2147483648, %v8152_v37 }
0x1742   :  { %v8200_v31 = vmul.f32 %v13840_v26, %v8199_v11  ;;  %v8203_v34 = vsub.f32 1.0, %v8202_v41  ;;  %v8835_v12 = vsel %vm8834_vm0, %v10744_v45, %v8833_v55  ;;  %vm8251_vm3 = vweird.f32 %v8152_v37 }
0x1743   :  { %v8258_v49 = vor.u32 1.1754944e-38, %v8257_v57  ;;  %vm8266_vm6 = vweird.f32 %v13964_v20  ;;  %vm8256_vm9 = vcmp.eq.f32.partialorder %v8255_v48, 8.507059e+37  ;;  %vm8271_vm11 = vcmp.eq.f32.partialorder %v8270_v6, 8.507059e+37 }
0x1744   :  { %v8278_v1 = vpack.c.bf16 %v8200_v31, %v8200_v31  ;;  %v8204_v61 = vmul.f32 %v10748_v25, %v8203_v34  ;;  %v8818_v51 = vsel %vm3658_vm4, %v8200_v31, 0.0  ;;  %vm8268_vm10 = vmor %vm8266_vm6, %vm8267_vm2  ;;  %v8822_v11 = vsel %vm3658_vm4, %v13959_v47, 0.0 }
0x1745   :  { %v8819_v22 = vadd.f32 %v8818_v51, %v13955_v58  ;;  %v8272_v58 = vand.u32 2147483648, %v13964_v20  ;;  %v8269_v43 = vsel %vm8268_vm10, %v13967_v4, %v8265_v21 }
0x1746   :  { %v8205_v19 = vadd.f32 %v10748_v25, %v8204_v61  ;;  %9977 = vmatmul.msk.bf16.vlgmr.msra.gmra.mxu3 %vm3658_vm4, %v8278_v1 }
0x1747   :  { %v10750_v50 = vpop.eup %10749  ;;  %v8273_v54 = vor.u32 1.1754944e-38, %v8272_v58 }
0x1748   :  { %v8209_v26 = vsel %vm8208_vm14, %v10748_v25, %v8205_v19  ;;  %v8247_v38 = vmul.f32 %v10750_v50, %v8152_v37  ;;  %v8149_v3 = vpop.xlane.xlu1 %8148  ;;  %vm8252_vm1 = vweird.f32 %v10750_v50 }
0x1749   :  { %v8214_v16 = vsel %vm8211_vm15, %v8213_v42, %v8209_v26  ;;  %10751 = vrcp.f32 %v8149_v3  ;;  %vm8253_vm5 = vmor %vm8251_vm3, %vm8252_vm1  ;;  %v8242_v52 = vand.u32 2147483648, %v8149_v3  ;;  %v8240_v25 = vand.u32 2147483647, %v8149_v3 }
0x174a   :  { %v8215_v14 = vmul.f32 %v13845_v44, %v8214_v16  ;;  %v8248_v62 = vsub.f32 1.0, %v8247_v38  ;;  %v8274_v20 = vsel %vm8271_vm11, %v8273_v54, %v8269_v43  ;;  %vm8236_vm15 = vweird.f32 %v8149_v3 }
0x174b   :  { %v8243_v36 = vor.u32 1.1754944e-38, %v8242_v52  ;;  %v8275_v4 = vmul.f32 %v13785_v53, %v8274_v20  ;;  %vm8241_vm1 = vcmp.eq.f32.partialorder %v8240_v25, 8.507059e+37 }
0x174c   :  { %v8279_v35 = vpack.c.bf16 %v8215_v14, %v8215_v14  ;;  %v8249_v33 = vmul.f32 %v10750_v50, %v8248_v62  ;;  %v8820_v39 = vsel %vm3658_vm4, %v8215_v14, 0.0 }
0x174d   :  { %v8821_v5 = vadd.f32 %v8820_v39, %v8819_v22  ;;  %v8283_v28 = vpack.c.bf16 %v8275_v4, %v8275_v4  ;;  %v8827_v1 = vsel %vm3658_vm4, %v8275_v4, 0.0 }
0x174e   :  { %v8250_v9 = vadd.f32 %v10750_v50, %v8249_v33  ;;  %9978 = vmatmul.msk.bf16.vlgmr.msrb.gmra.mxu0 %vm3658_vm4, %v8279_v35 }
0x174f   :  { %v10752_v44 = vpop.eup %10751  ;;  %v8836_v7 = vmul.f32 %v8835_v12, %v8821_v5 }
0x1750   :  { %v8254_v60 = vsel %vm8253_vm5, %v10750_v50, %v8250_v9  ;;  %v8232_v45 = vmul.f32 %v10752_v44, %v8149_v3  ;;  %vm8237_vm14 = vweird.f32 %v10752_v44 }
0x1751   :  { %v8259_v15 = vsel %vm8256_vm9, %v8258_v49, %v8254_v60  ;;  %9251 = vst.msk [vmem:[#allocation13] sm:$0xff] %vm3658_vm4, %v8836_v7  ;;  %vm8238_vm0 = vmor %vm8236_vm15, %vm8237_vm14 }
0x1752   :  { %v8260_v46 = vmul.f32 %v13851_v0, %v8259_v15  ;;  %v8233_v29 = vsub.f32 1.0, %v8232_v45 }
0x1754   :  { %v8282_v2 = vpack.c.bf16 %v8260_v46, %v8260_v46  ;;  %v8234_v13 = vmul.f32 %v10752_v44, %v8233_v29  ;;  %v8825_v17 = vsel %vm3658_vm4, %v8260_v46, 0.0 }
0x1756   :  { %v8235_v59 = vadd.f32 %v10752_v44, %v8234_v13  ;;  %9981 = vmatmul.msk.bf16.vlgmr.msrb.gmra.mxu3 %vm3658_vm4, %v8282_v2  ;;  %v8340_v63 = vpop.f32.mrf.mxu2 }
0x1757   :  { %v8490_v51 = vrot.slane %v8340_v63, 4 }
0x1758   :  { %v8239_v41 = vsel %vm8238_vm0, %v10752_v44, %v8235_v59 }
0x1759   :  { %v8244_v0 = vsel %vm8241_vm1, %v8243_v36, %v8239_v41 }
0x175a   :  { %v8245_v37 = vmul.f32 %v13869_v23, %v8244_v0 }
0x175c   :  { %v8281_v31 = vpack.c.bf16 %v8245_v37, %v8245_v37  ;;  %v8823_v34 = vsel %vm3658_vm4, %v8245_v37, 0.0 }
0x175d   :  { %v8824_v18 = vadd.f32 %v8823_v34, %v8822_v11 }
0x175e   :  { %9980 = vmatmul.msk.bf16.vlgmr.msra.gmra.mxu2 %vm3658_vm4, %v8281_v31  ;;  %9982 = vmatmul.msk.bf16.vlgmr.msra.gmra.mxu0 %vm3658_vm4, %v8283_v28  ;;  %v8342_v53 = vpop.f32.mrf.mxu2 }
0x175f   :  { %v8826_v27 = vadd.f32 %v8825_v17, %v8824_v18 }
0x1761   :  { %v8828_v61 = vadd.f32 %v8827_v1, %v8826_v27 }
0x1763   :  { %v8837_v23 = vmul.f32 %v8835_v12, %v8828_v61 }
0x1765   :  { %9252 = vst.msk [vmem:[#allocation13 + $0x8] sm:$0xff] %vm3658_vm4, %v8837_v23 }
0x1766   :  { %9267 = dma.vmem_to_hbm [thread:$0]  %s9260_s1, 256, %s9262_s2, [#allocation4], %s14226_s29, %s14226_s29, %s10956_s11  }
0x1784   :  { %v8318_v47 = vpop.f32.mrf.mxu1 }
0x1785   :  { %v8478_v42 = vrot.slane %v8318_v47, 4 }
0x178c   :  { %v8320_v40 = vpop.f32.mrf.mxu1 }
0x1794   :  { %v8406_v19 = vpop.f32.mrf.mxu1 }
0x1795   :  { %v8534_v34 = vrot.slane %v8406_v19, 4 }
0x179c   :  { %v8408_v50 = vpop.f32.mrf.mxu1 }
0x17c9   :  { %v8362_v55 = vpop.f32.mrf.mxu3 }
0x17ca   :  { %v8476_v26 = vrot.slane %v8362_v55, 4  ;;  %v8479_v38 = vsel %vm483_vm7, %v8362_v55, %v8478_v42 }
0x17cb   :  { %v8487_v3 = vperm.slane %v8479_v38, %v11192_v10  ;;  %v8384_v16 = vpop.f32.mrf.mxu0 }
0x17cc   :  { %v8477_v30 = vsel %vm483_vm7, %v8476_v26, %v8318_v47  ;;  %v8488_v14 = vrot.slane %v8384_v16, 4  ;;  %v8491_v62 = vsel %vm483_vm7, %v8384_v16, %v8490_v51 }
0x17cd   :  { %v8483_v48 = vperm.slane %v8477_v30, %v11192_v10  ;;  %v8514_v57 = vrot.slane %v8487_v3, 4  ;;  %v8499_v22 = vperm.slane %v8491_v62, %v11192_v10 }
0x17ce   :  { %v8489_v12 = vsel %vm483_vm7, %v8488_v14, %v8340_v63 }
0x17cf   :  { %v8502_v35 = vrot.slane %v8483_v48, 4  ;;  %v8495_v33 = vperm.slane %v8489_v12, %v11192_v10  ;;  %v8512_v39 = vrot.slane %v8499_v22, 4  ;;  %v8515_v5 = vsel %vm483_vm7, %v8499_v22, %v8514_v57 }
0x17d0   :  { %v8523_v21 = vperm.slane %v8515_v5, %v11200_v24 }
0x17d1   :  { %v8500_v9 = vrot.slane %v8495_v33, 4  ;;  %v8503_v44 = vsel %vm483_vm7, %v8495_v33, %v8502_v35  ;;  %v8513_v6 = vsel %vm483_vm7, %v8512_v39, %v8487_v3  ;;  %v8364_v58 = vpop.f32.mrf.mxu3 }
0x17d2   :  { %v8511_v49 = vperm.slane %v8503_v44, %v11200_v24  ;;  %v8519_v7 = vperm.slane %v8513_v6, %v11200_v24  ;;  %v8530_v60 = vrot.slane %v8523_v21, 4 }
0x17d3   :  { %v8501_v45 = vsel %vm483_vm7, %v8500_v9, %v8483_v48  ;;  %v8386_v15 = vpop.f32.mrf.mxu0 }
0x17d4   :  { %v8507_v43 = vperm.slane %v8501_v45, %v11200_v24  ;;  %v8526_v46 = vrot.slane %v8511_v49, 4  ;;  %v8528_v29 = vrot.slane %v8519_v7, 4  ;;  %v8531_v54 = vsel %vm483_vm7, 0.0, %v8530_v60 }
0x17d5   :  { %v8604_v52 = vrot.slane %v8531_v54, 4  ;;  %v8599_v41 = vsel %vm483_vm7, %v8530_v60, %v8519_v7 }
0x17d6   :  { %v8524_v2 = vrot.slane %v8507_v43, 4  ;;  %v8527_v13 = vsel %vm483_vm7, 0.0, %v8526_v46  ;;  %v8529_v25 = vsel %vm483_vm7, 0.0, %v8528_v29  ;;  %v8588_v4 = vsel %vm483_vm7, %v8526_v46, %v8507_v43 }
0x17d7   :  { %v8593_v20 = vrot.slane %v8527_v13, 4  ;;  %v8605_v59 = vsel %vm483_vm7, %v8604_v52, %v8529_v25  ;;  %v8603_v17 = vperm.slane %v8599_v41, %v11192_v10  ;;  %v8592_v27 = vperm.slane %v8588_v4, %v11192_v10 }
0x17d8   :  { %v8609_v36 = vperm.slane %v8605_v59, %v11192_v10  ;;  %v8525_v63 = vsel %vm483_vm7, 0.0, %v8524_v2 }
0x17d9   :  { %v8450_v0 = vpop.f32.mrf.mxu3  ;;  %v8594_v37 = vsel %vm483_vm7, %v8593_v20, %v8525_v63  ;;  %v8624_v48 = vrot.slane %v8603_v17, 4  ;;  %v8612_v6 = vrot.slane %v8592_v27, 4 }
0x17da   :  { %v8532_v11 = vrot.slane %v8450_v0, 4  ;;  %v8598_v28 = vperm.slane %v8594_v37, %v11192_v10  ;;  %v8622_v31 = vrot.slane %v8609_v36, 4  ;;  %v8535_v61 = vsel %vm483_vm7, %v8450_v0, %v8534_v34 }
0x17db   :  { %v8472_v18 = vpop.f32.mrf.mxu0  ;;  %v8625_v15 = vsel %vm483_vm7, %v8609_v36, %v8624_v48 }
0x17dc   :  { %v8533_v53 = vsel %vm483_vm7, %v8532_v11, %v8406_v19  ;;  %v8610_v1 = vrot.slane %v8598_v28, 4  ;;  %v8623_v47 = vsel %vm483_vm7, %v8622_v31, %v8603_v17  ;;  %v8544_v50 = vrot.slane %v8472_v18, 4 }
0x17dd   :  { %v8539_v40 = vperm.slane %v8533_v53, %v11192_v10  ;;  %v14035_v55 = vperm.slane %v8623_v47, %v11200_v24  ;;  %v8543_v19 = vperm.slane %v8535_v61, %v11192_v10  ;;  %v8613_v13 = vsel %vm483_vm7, %v8598_v28, %v8612_v6  ;;  %v10306_v6 = vld [vmem:[#allocation8 + $0x60] sm:$0xff] }
0x17de   :  { %v8611_v23 = vsel %vm483_vm7, %v8610_v1, %v8592_v27  ;;  %v8633_v0 = vperm.slane %v8625_v15, %v11200_v24  ;;  %v8621_v27 = vperm.slane %v8613_v13, %v11200_v24 }
0x17df   :  { %v14032_v42 = vperm.slane %v8611_v23, %v11200_v24  ;;  %v8634_v16 = vrot.slane %v14035_v55, 4  ;;  %v8558_v30 = vrot.slane %v8539_v40, 4  ;;  %v8570_v12 = vrot.slane %v8543_v19, 4 }
0x17e0   :  { %v8638_v1 = vrot.slane %v8633_v0, 4 }
0x17e1   :  { %v8428_v51 = vpop.f32.mrf.mxu2  ;;  %v8452_v26 = vpop.f32.mrf.mxu3  ;;  %v14044_v22 = vsel %vm483_vm7, %v8634_v16, %v14032_v42 }
0x17e2   :  { %v8545_v38 = vsel %vm483_vm7, %v8544_v50, %v8428_v51  ;;  %v8546_v3 = vrot.slane %v8428_v51, 4 }
0x17e3   :  { %v8551_v14 = vperm.slane %v8545_v38, %v11192_v10  ;;  %v8474_v62 = vpop.f32.mrf.mxu0 }
0x17e4   :  { %v8547_v57 = vsel %vm483_vm7, %v8472_v18, %v8546_v3 }
0x17e5   :  { %v8555_v35 = vperm.slane %v8547_v57, %v11192_v10  ;;  %v8556_v33 = vrot.slane %v8551_v14, 4  ;;  %v8559_v39 = vsel %vm483_vm7, %v8551_v14, %v8558_v30  ;;  %v8639_v30 = vsel %vm483_vm7, %v8638_v1, %v8621_v27 }
0x17e6   :  { %v8567_v5 = vperm.slane %v8559_v39, %v11200_v24 }
0x17e7   :  { %v8557_v21 = vsel %vm483_vm7, %v8556_v33, %v8539_v40  ;;  %v8568_v9 = vrot.slane %v8555_v35, 4  ;;  %v8571_v44 = vsel %vm483_vm7, %v8555_v35, %v8570_v12 }
0x17e8   :  { %v8563_v58 = vperm.slane %v8557_v21, %v11200_v24  ;;  %v8579_v49 = vperm.slane %v8571_v44, %v11200_v24  ;;  %v8582_v7 = vrot.slane %v8567_v5, 4  ;;  %v10307_v44 = vld [vmem:[#allocation8 + $0x68] sm:$0xff] }
0x17e9   :  { %v8569_v60 = vsel %vm483_vm7, %v8568_v9, %v8543_v19  ;;  %v8430_v45 = vpop.f32.mrf.mxu2  ;;  %v8636_v19 = vrot.slane %v14032_v42, 4  ;;  %v10308_v9 = vld [vmem:[#allocation8 + $0x70] sm:$0xff] }
0x17ea   :  { %v8575_v43 = vperm.slane %v8569_v60, %v11200_v24  ;;  %v8580_v46 = vrot.slane %v8563_v58, 4  ;;  %v8583_v29 = vsel %vm483_vm7, 0.0, %v8582_v7  ;;  %v8586_v54 = vrot.slane %v8579_v49, 4  ;;  %v10304_v49 = vld [vmem:[#allocation8 + $0x50] sm:$0xff]  ;;  %v10302_v60 = vld [vmem:[#allocation8 + $0x40] sm:$0xff] }
0x17eb   :  { %v8642_v52 = vsel %vm483_vm7, %v8582_v7, %v8563_v58  ;;  %v8647_v2 = vrot.slane %v8583_v29, 4  ;;  %v8637_v62 = vsel %vm483_vm7, %v14035_v55, %v8636_v19  ;;  %v10309_v55 = vld [vmem:[#allocation8 + $0x78] sm:$0xff]  ;;  %v10303_v7 = vld [vmem:[#allocation8 + $0x48] sm:$0xff] }
0x17ec   :  { %v8581_v25 = vsel %vm483_vm7, 0.0, %v8580_v46  ;;  %v8584_v20 = vrot.slane %v8575_v43, 4  ;;  %v8587_v59 = vsel %vm483_vm7, 0.0, %v8586_v54  ;;  %v8646_v63 = vperm.slane %v8642_v52, %v11192_v10  ;;  %8792 = vmatpush.bf16.msrb.mxu1 %v10309_v55  ;;  %v10305_v58 = vld [vmem:[#allocation8 + $0x58] sm:$0xff]  ;;  %v10055_v55 = vld [vmem:[#allocation10 + $0xc8] sm:$0xf0] }
0x17ed   :  { %v8648_v36 = vsel %vm483_vm7, %v8647_v2, %v8581_v25  ;;  %v8653_v4 = vsel %vm483_vm7, %v8586_v54, %v8575_v43  ;;  %v8658_v41 = vrot.slane %v8587_v59, 4  ;;  %v10079_v19 = vld [vmem:[#allocation10 + $0xf8] sm:$0xf0] }
0x17ee   :  { %v8585_v37 = vsel %vm483_vm7, 0.0, %v8584_v20  ;;  %v8657_v11 = vperm.slane %v8653_v4, %v11192_v10  ;;  %v8652_v28 = vperm.slane %v8648_v36, %v11192_v10  ;;  %v8666_v31 = vrot.slane %v8646_v63, 4 }
0x17ef   :  { %v8659_v34 = vsel %vm483_vm7, %v8658_v41, %v8585_v37 }
0x17f0   :  { %v8663_v18 = vperm.slane %v8659_v34, %v11192_v10  ;;  %v8678_v17 = vrot.slane %v8657_v11, 4  ;;  %v8664_v53 = vrot.slane %v8652_v28, 4  ;;  %v8667_v61 = vsel %vm483_vm7, %v8652_v28, %v8666_v31  ;;  %8793 = vmatpush.bf16.msrb.mxu1 %v10308_v9 }
0x17f1   :  { %v8675_v26 = vperm.slane %v8667_v61, %v11200_v24 }
0x17f2   :  { %v8679_v23 = vsel %vm483_vm7, %v8663_v18, %v8678_v17  ;;  %v8665_v47 = vsel %vm483_vm7, %v8664_v53, %v8646_v63  ;;  %v8676_v40 = vrot.slane %v8663_v18, 4 }
0x17f3   :  { %v8687_v50 = vperm.slane %v8679_v23, %v11200_v24  ;;  %v8671_v51 = vperm.slane %v8665_v47, %v11200_v24  ;;  %v8694_v35 = vrot.slane %v8675_v26, 4  ;;  %v10077_v23 = vld [vmem:[#allocation10 + $0xf0] sm:$0xf]  ;;  %v10325_v47 = vld [vmem:[#allocation10 + $0xf4] sm:$0xf0] }
0x17f4   :  { %v8677_v10 = vsel %vm483_vm7, %v8676_v40, %v8657_v11  ;;  %8794 = vmatpush.bf16.msrb.mxu1 %v10307_v44  ;;  %v10324_v40 = vld [vmem:[#allocation10 + $0xf4] sm:$0xf] }
0x17f5   :  { %v8692_v38 = vrot.slane %v8687_v50, 4  ;;  %v8683_v3 = vperm.slane %v8677_v10, %v11200_v24  ;;  %v8690_v16 = vrot.slane %v8671_v51, 4  ;;  %v8640_v24 = vrot.slane %v8621_v27, 4  ;;  %v10069_v10 = vld [vmem:[#allocation10 + $0xe0] sm:$0xf] }
0x17f6   :  { %v8695_v39 = vsel %vm483_vm7, %v8687_v50, %v8694_v35  ;;  %v10078_v50 = vor.u32 %v10325_v47, %v10077_v23  ;;  %v10331_v23 = vld [vmem:[#allocation11 + $0xa8] sm:$0xff] }
0x17f7   :  { %v8693_v14 = vsel %vm483_vm7, %v8692_v38, %v8675_v26  ;;  %v8691_v48 = vsel %vm483_vm7, %v8683_v3, %v8690_v16  ;;  %v8688_v42 = vrot.slane %v8683_v3, 4  ;;  %v8641_v5 = vsel %vm483_vm7, %v8633_v0, %v8640_v24  ;;  %v10323_v26 = vld [vmem:[#allocation10 + $0xe4] sm:$0xf0]  ;;  %v10322_v38 = vld [vmem:[#allocation10 + $0xe4] sm:$0xf] }
0x17f8   :  { %v10562_v57 = vpack.i.bf16 %v8693_v14, %v8639_v30  ;;  %v10567_v12 = vpack.i.bf16 %v8691_v48, %v8637_v62  ;;  %v10572_v21 = vpack.i.bf16 %v8695_v39, %v8641_v5  ;;  %8795 = vmatpush.bf16.msrb.mxu1 %v10306_v6  ;;  %8997 = vmatpush.bf16.msrb.mxu2 %v10078_v50  ;;  %v10071_v16 = vld [vmem:[#allocation10 + $0xe8] sm:$0xf0]  ;;  %v10061_v14 = vld [vmem:[#allocation10 + $0xd0] sm:$0xf]  ;;  %v10321_v62 = vld [vmem:[#allocation10 + $0xd4] sm:$0xf0] }
0x17f9   :  { %v8689_v33 = vsel %vm483_vm7, %v8688_v42, %v8671_v51  ;;  %v10082_v51 = vor.u32 %v10324_v40, %v10079_v19  ;;  %v10070_v3 = vor.u32 %v10323_v26, %v10069_v10  ;;  %v10074_v30 = vor.u32 %v10322_v38, %v10071_v16  ;;  %v10320_v48 = vld [vmem:[#allocation10 + $0xd4] sm:$0xf]  ;;  %v10319_v24 = vld [vmem:[#allocation10 + $0xc4] sm:$0xf0]  ;;  %v10318_v39 = vld [vmem:[#allocation10 + $0xc4] sm:$0xf] }
0x17fa   :  { %10563 = vrot.lane.b32.xlu2 %v10562_v57, %s10948_s9  ;;  %10568 = vrot.lane.b32.xlu1 %v10567_v12, %s10960_s27  ;;  %v10062_v42 = vor.u32 %v10321_v62, %v10061_v14  ;;  %v10063_v57 = vld [vmem:[#allocation10 + $0xd8] sm:$0xf0]  ;;  %v10058_v9 = vor.u32 %v10318_v39, %v10055_v55  ;;  %v10045_v6 = vld [vmem:[#allocation10 + $0xb0] sm:$0xf]  ;;  %v10339_v40 = vld [vmem:[#allocation11 + $0xe8] sm:$0xff] }
0x17fb   :  { %9011 = vmatpush.bf16.msra.mxu3 %v10082_v51  ;;  %v10066_v12 = vor.u32 %v10320_v48, %v10063_v57  ;;  %v10330_v10 = vld [vmem:[#allocation11 + $0xa0] sm:$0xff] }
0x17fc   :  { %8796 = vmatpush.bf16.msrb.mxu1 %v10305_v58  ;;  %8998 = vmatpush.bf16.msrb.mxu2 %v10070_v3  ;;  %v10317_v58 = vld [vmem:[#allocation10 + $0xb4] sm:$0xf0]  ;;  %v10338_v38 = vld [vmem:[#allocation11 + $0xe0] sm:$0xff] }
0x17ff   :  { %9012 = vmatpush.bf16.msra.mxu3 %v10074_v30 }
0x1800   :  { %8797 = vmatpush.bf16.msrb.mxu1 %v10304_v49  ;;  %8999 = vmatpush.bf16.msrb.mxu2 %v10062_v42  ;;  %v10046_v49 = vor.u32 %v10317_v58, %v10045_v6  ;;  %v10596_v42 = vld [vmem:[%s14183_s17 + $0x1] ss:$0 sm:$0xff]  ;;  %v10337_v6 = vld [vmem:[#allocation11 + $0xd8] sm:$0xff]  ;;  %v10336_v58 = vld [vmem:[#allocation11 + $0xd0] sm:$0xff] }
0x1802   :  { %10573 = vrot.lane.b32.xlu1 %v10572_v21, %s10961_s28 }
0x1803   :  { %9013 = vmatpush.bf16.msra.mxu3 %v10066_v12 }
0x1804   :  { %8798 = vmatpush.bf16.msrb.mxu1 %v10303_v7  ;;  %v10316_v7 = vld [vmem:[#allocation10 + $0xb4] sm:$0xf] }
0x1807   :  { %9014 = vmatpush.bf16.msra.mxu3 %v10058_v9 }
0x1808   :  { %8799 = vmatpush.bf16.msrb.mxu1 %v10302_v60  ;;  %v10047_v60 = vld [vmem:[#allocation10 + $0xb8] sm:$0xf0] }
0x1854   :  { %v10564_v46 = vpop.permute.xlu2 %10563 }
0x1855   :  { %v10566_v52 = vunpack.i.h.bf16 %v10564_v46  ;;  %v10565_v2 = vunpack.i.l.bf16 %v10564_v46  ;;  %v10314_v46 = vld [vmem:[#allocation10 + $0xa4] sm:$0xf] }
0x186c   :  { %v10569_v45 = vpop.permute.xlu1 %10568 }
0x186d   :  { %v10571_v15 = vunpack.i.h.bf16 %v10569_v45  ;;  %v10570_v43 = vunpack.i.l.bf16 %v10569_v45  ;;  %v10037_v45 = vld [vmem:[#allocation10 + $0xa0] sm:$0xf] }
0x186f   :  { %v8720_v29 = vsel %vm1199_vm8, %v14044_v22, %v10570_v43  ;;  %v8721_v54 = vsel %vm1199_vm8, %v8689_v33, %v10571_v15  ;;  %v10595_v22 = vld [vmem:[%s14182_s16 + $0x1] ss:$0 sm:$0xff]  ;;  %v10050_v15 = vor.u32 %v10316_v7, %v10047_v60  ;;  %v10315_v43 = vld [vmem:[#allocation10 + $0xa4] sm:$0xf0] }
0x1870   :  { %v8722_v59 = vsel %vm1856_vm12, %v8720_v29, %v10565_v2  ;;  %v8723_v63 = vsel %vm1856_vm12, %v8721_v54, %v10566_v52  ;;  %v10053_v33 = vld [vmem:[#allocation10 + $0xc0] sm:$0xf]  ;;  %v10039_v29 = vld [vmem:[#allocation10 + $0xa8] sm:$0xf0]  ;;  %v10038_v54 = vor.u32 %v10315_v43, %v10037_v45 }
0x1871   :  { %v10054_v21 = vor.u32 %v10319_v24, %v10053_v33  ;;  %9015 = vmatpush.bf16.msra.mxu3 %v10050_v15  ;;  %v10042_v2 = vor.u32 %v10314_v46, %v10039_v29  ;;  %v10597_v33 = vld [vmem:[%s14184_s18 + $0x1] ss:$0 sm:$0xff]  ;;  %v10335_v7 = vld [vmem:[#allocation11 + $0xc8] sm:$0xff]  ;;  %v10018_v45 = vld [vmem:[%s14186_s20 + $0x2] sm:$0x3] }
0x1872   :  { %v10326_v60 = vld [vmem:[#allocation11 + $0x80] sm:$0xff]  ;;  %v8913_v46 = vperm.slane %v10018_v45, 0  ;;  %v8914_v29 = vperm.slane %v10018_v45, 1 }
0x1873   :  { %9000 = vmatpush.bf16.msrb.mxu2 %v10054_v21 }
0x1874   :  { %v10574_v13 = vpop.permute.xlu1 %10573 }
0x1875   :  { %v10576_v25 = vunpack.i.h.bf16 %v10574_v13  ;;  %v10575_v20 = vunpack.i.l.bf16 %v10574_v13  ;;  %v10029_v13 = vld [vmem:[#allocation10 + $0x90] sm:$0xf]  ;;  %9016 = vmatpush.bf16.msra.mxu3 %v10042_v2 }
0x1877   :  { %v8724_v36 = vsel %vm1859_vm13, %v8722_v59, %v10575_v20  ;;  %v8725_v4 = vsel %vm1859_vm13, %v8723_v63, %v10576_v25  ;;  %9001 = vmatpush.bf16.msrb.mxu2 %v10046_v49  ;;  %v10313_v25 = vld [vmem:[#allocation10 + $0x94] sm:$0xf0]  ;;  %v10312_v63 = vld [vmem:[#allocation10 + $0x94] sm:$0xf]  ;;  %v10327_v49 = vld [vmem:[#allocation11 + $0x88] sm:$0xff] }
0x1878   :  { %v8726_v41 = vpack.c.bf16 %v8725_v4, %v8724_v36  ;;  %v10333_v20 = vld [vmem:[#allocation11 + $0xb8] sm:$0xff] }
0x1879   :  { %v10031_v36 = vld [vmem:[#allocation10 + $0x98] sm:$0xf0]  ;;  %9160 = vmatpush.bf16.msrb.mxu0 %v10333_v20 }
0x187a   :  { %8800 = vmatmul.bf16.vlgmr.msrb.gmra.mxu1 %v8726_v41  ;;  %v10341_v4 = vld [vmem:[#allocation11 + $0xf8] sm:$0xff]  ;;  %v10332_v41 = vld [vmem:[#allocation11 + $0xb0] sm:$0xff] }
0x187b   :  { %9002 = vmatpush.bf16.msrb.mxu2 %v10038_v54  ;;  %9174 = vmatpush.bf16.msra.mxu1 %v10341_v4 }
0x187d   :  { %9161 = vmatpush.bf16.msrb.mxu0 %v10332_v41 }
0x1881   :  { %9162 = vmatpush.bf16.msrb.mxu0 %v10331_v23 }
0x1885   :  { %9163 = vmatpush.bf16.msrb.mxu0 %v10330_v10 }
0x18f7   :  { %v8801_v0 = vpop.f32.mrf.mxu1 }
0x18f8   :  { %v8806_v37 = vadd.f32 %v8801_v0, %v13264_v32 }
0x18fa   :  { %v14102_v11 = vadd.f32 %v10595_v22, %v8806_v37  ;;  %v10030_v37 = vor.u32 %v10313_v25, %v10029_v13 }
0x18fc   :  { %8842 = vadd.xlane.f32.xlu2 %v14102_v11  ;;  %9003 = vmatpush.bf16.msrb.mxu2 %v10030_v37 }
0x18ff   :  { %v8803_v28 = vpop.f32.mrf.mxu1 }
0x1900   :  { %v8807_v31 = vadd.f32 %v8803_v28, %v13268_v56  ;;  %v10340_v28 = vld [vmem:[#allocation11 + $0xf0] sm:$0xff] }
0x1901   :  { %9175 = vmatpush.bf16.msra.mxu1 %v10340_v28 }
0x1902   :  { %v14106_v34 = vadd.f32 %v10595_v22, %v8807_v31 }
0x1904   :  { %8844 = vadd.xlane.f32.xlu1 %v14106_v34 }
0x1905   :  { %9176 = vmatpush.bf16.msra.mxu1 %v10339_v40 }
0x1909   :  { %9177 = vmatpush.bf16.msra.mxu1 %v10338_v38 }
0x190d   :  { %9178 = vmatpush.bf16.msra.mxu1 %v10337_v6 }
0x1911   :  { %9179 = vmatpush.bf16.msra.mxu1 %v10336_v58 }
0x1915   :  { %9180 = vmatpush.bf16.msra.mxu1 %v10335_v7 }
0x196f   :  { %v8843_v18 = vpop.xlane.xlu2 %8842 }
0x1970   :  { %v8846_v17 = vmul.f32 %v8843_v18, %v11141_v8  ;;  %v10034_v18 = vor.u32 %v10312_v63, %v10031_v36 }
0x1972   :  { %v14111_v53 = vsub.f32 %v14102_v11, %v8846_v17  ;;  %v10021_v17 = vld [vmem:[#allocation10 + $0x80] sm:$0xf]  ;;  %9017 = vmatpush.bf16.msra.mxu3 %v10034_v18 }
0x1974   :  { %v8850_v32 = vmul.f32 %v14111_v53, %v14111_v53 }
0x1976   :  { %8852 = vadd.xlane.f32.xlu0 %v8850_v32  ;;  %v10311_v32 = vld [vmem:[#allocation10 + $0x84] sm:$0xf0] }
0x1977   :  { %v8845_v27 = vpop.xlane.xlu1 %8844  ;;  %v10022_v47 = vor.u32 %v10311_v32, %v10021_v17 }
0x1978   :  { %v8847_v1 = vmul.f32 %v8845_v27, %v11141_v8  ;;  %v10310_v27 = vld [vmem:[#allocation10 + $0x84] sm:$0xf] }
0x1979   :  { %9004 = vmatpush.bf16.msrb.mxu2 %v10022_v47 }
0x197a   :  { %v14117_v61 = vsub.f32 %v14106_v34, %v8847_v1  ;;  %v10023_v1 = vld [vmem:[#allocation10 + $0x88] sm:$0xf0] }
0x197b   :  { %v10026_v19 = vor.u32 %v10310_v27, %v10023_v1 }
0x197c   :  { %v8851_v56 = vmul.f32 %v14117_v61, %v14117_v61 }
0x197d   :  { %9018 = vmatpush.bf16.msra.mxu3 %v10026_v19 }
0x197e   :  { %8854 = vadd.xlane.f32.xlu0 %v8851_v56 }
0x19e9   :  { %v8853_v35 = vpop.xlane.xlu0 %8852 }
0x19ea   :  { %v8856_v5 = vmul.f32 %v8853_v35, %v11141_v8 }
0x19ec   :  { %v14122_v44 = vadd.f32 1e-05, %v8856_v5 }
0x19ee   :  { %10753 = vrsqrt.f32 %v14122_v44  ;;  %vm8866_vm8 = vweird.f32 %v14122_v44 }
0x19f1   :  { %v8855_v52 = vpop.xlane.xlu0 %8854 }
0x19f2   :  { %v8857_v59 = vmul.f32 %v8855_v52, %v11141_v8 }
0x19f4   :  { %v10754_v22 = vpop.eup %10753  ;;  %v8859_v0 = vadd.f32 1e-05, %v8857_v59 }
0x19f5   :  { %v8861_v31 = vmul.f32 %v10754_v22, %v14122_v44  ;;  %vm8867_vm7 = vweird.f32 %v10754_v22  ;;  %v10329_v44 = vld [vmem:[#allocation11 + $0x98] sm:$0xff] }
0x19f6   :  { %10755 = vrsqrt.f32 %v8859_v0  ;;  %vm8868_vm12 = vmor %vm8866_vm8, %vm8867_vm7  ;;  %vm8876_vm4 = vweird.f32 %v8859_v0  ;;  %9164 = vmatpush.bf16.msrb.mxu0 %v10329_v44 }
0x19f7   :  { %v8862_v56 = vmul.f32 %v10754_v22, %v8861_v31  ;;  %v10598_v31 = vld [vmem:[%s14188_s22 + $0x1] ss:$0 sm:$0xff] }
0x19f9   :  { %v8863_v50 = vmul.f32 0.5, %v8862_v56 }
0x19fb   :  { %v8864_v51 = vsub.f32 1.5, %v8863_v50 }
0x19fc   :  { %v10756_v26 = vpop.eup %10755 }
0x19fd   :  { %v8865_v3 = vmul.f32 %v10754_v22, %v8864_v51  ;;  %v8871_v16 = vmul.f32 %v10756_v26, %v8859_v0  ;;  %vm8877_vm13 = vweird.f32 %v10756_v26 }
0x19fe   :  { %vm8878_vm2 = vmor %vm8876_vm4, %vm8877_vm13 }
0x19ff   :  { %v8872_v30 = vmul.f32 %v10756_v26, %v8871_v16  ;;  %v8869_v14 = vsel %vm8868_vm12, %v10754_v22, %v8865_v3 }
0x1a00   :  { %v8880_v57 = vmul.f32 %v8869_v14, %v14111_v53  ;;  %v10328_v53 = vld [vmem:[#allocation11 + $0x90] sm:$0xff] }
0x1a01   :  { %v8873_v62 = vmul.f32 0.5, %v8872_v30  ;;  %9165 = vmatpush.bf16.msrb.mxu0 %v10328_v53 }
0x1a02   :  { %v8885_v24 = vmul.f32 %v10596_v42, %v8880_v57 }
0x1a03   :  { %v8874_v48 = vsub.f32 1.5, %v8873_v62 }
0x1a04   :  { %v8890_v21 = vadd.f32 %v10597_v33, %v8885_v24 }
0x1a05   :  { %v8875_v12 = vmul.f32 %v10756_v26, %v8874_v48  ;;  %9166 = vmatpush.bf16.msrb.mxu0 %v10327_v49 }
0x1a07   :  { %v8879_v35 = vsel %vm8878_vm2, %v10756_v26, %v8875_v12 }
0x1a08   :  { %v8881_v39 = vmul.f32 %v8879_v35, %v14117_v61  ;;  %v10334_v61 = vld [vmem:[#allocation11 + $0xc0] sm:$0xff] }
0x1a09   :  { %9167 = vmatpush.bf16.msrb.mxu0 %v10326_v60  ;;  %9181 = vmatpush.bf16.msra.mxu1 %v10334_v61 }
0x1a0a   :  { %v8886_v5 = vmul.f32 %v10596_v42, %v8881_v39  ;;  %v10599_v39 = vld [vmem:[%s14189_s23] ss:$0 sm:$0xff] }
0x1a0c   :  { %v8891_v55 = vadd.f32 %v10597_v33, %v8886_v5 }
0x1a0e   :  { %v8892_v9 = vpack.c.bf16 %v8891_v55, %v8890_v21 }
0x1a10   :  { %9005 = vmatmul.bf16.vlgmr.msrb.gmra.mxu2 %v8892_v9  ;;  %9019 = vmatmul.bf16.vlgmr.msra.gmra.mxu3 %v8892_v9 }
0x1a93   :  { %v9006_v15 = vpop.f32.mrf.mxu2  ;;  %v9020_v43 = vpop.f32.mrf.mxu3 }
0x1a94   :  { %v9007_v54 = vadd.f32 %v9006_v15, %v8913_v46  ;;  %v9021_v52 = vadd.f32 %v9020_v43, %v8914_v29 }
0x1a96   :  { %v9025_v59 = vmax.f32 %v9007_v54, 0.0  ;;  %v9026_v63 = vmax.f32 %v9021_v52, 0.0 }
0x1a9b   :  { %v9008_v2 = vpop.f32.mrf.mxu2  ;;  %v9022_v13 = vpop.f32.mrf.mxu3 }
0x1a9c   :  { %v9009_v25 = vadd.f32 %v9008_v2, %v8913_v46  ;;  %v9023_v20 = vadd.f32 %v9022_v13, %v8914_v29 }
0x1a9e   :  { %v9027_v36 = vmax.f32 %v9009_v25, 0.0  ;;  %v9028_v4 = vmax.f32 %v9023_v20, 0.0 }
0x1aa0   :  { %v9029_v41 = vpack.c.bf16 %v9027_v36, %v9025_v59  ;;  %v9030_v22 = vpack.c.bf16 %v9028_v4, %v9026_v63 }
0x1aa2   :  { %9168 = vmatmul.bf16.vlgmr.msrb.gmra.mxu0 %v9029_v41  ;;  %9182 = vmatmul.bf16.vlgmr.msra.gmra.mxu1 %v9030_v22 }
0x1b1f   :  { %v9169_v0 = vpop.f32.mrf.mxu0  ;;  %v9183_v37 = vpop.f32.mrf.mxu1 }
0x1b20   :  { %v9184_v28 = vadd.f32 %v9183_v37, %v9169_v0 }
0x1b22   :  { %v9188_v18 = vadd.f32 %v9184_v28, %v14102_v11 }
0x1b24   :  { %v9195_v17 = vadd.f32 %v10598_v31, %v9188_v18 }
0x1b26   :  { %9199 = vadd.xlane.f32.xlu0 %v9195_v17 }
0x1b27   :  { %v9171_v32 = vpop.f32.mrf.mxu0  ;;  %v9185_v27 = vpop.f32.mrf.mxu1 }
0x1b28   :  { %v9186_v1 = vadd.f32 %v9185_v27, %v9171_v32 }
0x1b2a   :  { %v9189_v56 = vadd.f32 %v9186_v1, %v14106_v34 }
0x1b2c   :  { %v9196_v23 = vadd.f32 %v10598_v31, %v9189_v56 }
0x1b2e   :  { %9201 = vadd.xlane.f32.xlu0 %v9196_v23 }
0x1b99   :  { %v9200_v47 = vpop.xlane.xlu0 %9199 }
0x1b9a   :  { %v9203_v40 = vmul.f32 %v9200_v47, %v11141_v8 }
0x1b9c   :  { %v9205_v50 = vsub.f32 %v9195_v17, %v9203_v40 }
0x1b9e   :  { %v9207_v19 = vmul.f32 %v9205_v50, %v9205_v50 }
0x1ba0   :  { %9209 = vadd.xlane.f32.xlu2 %v9207_v19 }
0x1ba1   :  { %v9202_v51 = vpop.xlane.xlu0 %9201 }
0x1ba2   :  { %v9204_v10 = vmul.f32 %v9202_v51, %v11141_v8 }
0x1ba4   :  { %v9206_v26 = vsub.f32 %v9196_v23, %v9204_v10 }
0x1ba6   :  { %v9208_v11 = vmul.f32 %v9206_v26, %v9206_v26 }
0x1ba8   :  { %9211 = vadd.xlane.f32.xlu0 %v9208_v11 }
0x1c13   :  { %v9210_v34 = vpop.xlane.xlu2 %9209 }
0x1c14   :  { %v9213_v38 = vmul.f32 %v9210_v34, %v11141_v8 }
0x1c16   :  { %v9215_v3 = vadd.f32 1e-05, %v9213_v38 }
0x1c18   :  { %10757 = vrsqrt.f32 %v9215_v3  ;;  %vm9223_vm5 = vweird.f32 %v9215_v3 }
0x1c1b   :  { %v9212_v16 = vpop.xlane.xlu0 %9211 }
0x1c1c   :  { %v9214_v30 = vmul.f32 %v9212_v16, %v11141_v8  ;;  %v10600_v8 = vld [vmem:[%s14190_s24] ss:$0 sm:$0xff] }
0x1c1e   :  { %v10758_v14 = vpop.eup %10757  ;;  %v9216_v62 = vadd.f32 1e-05, %v9214_v30 }
0x1c1f   :  { %v9218_v48 = vmul.f32 %v10758_v14, %v9215_v3  ;;  %vm9224_vm3 = vweird.f32 %v10758_v14 }
0x1c20   :  { %10759 = vrsqrt.f32 %v9216_v62  ;;  %vm9225_vm6 = vmor %vm9223_vm5, %vm9224_vm3  ;;  %vm9233_vm10 = vweird.f32 %v9216_v62 }
0x1c21   :  { %v9219_v42 = vmul.f32 %v10758_v14, %v9218_v48 }
0x1c23   :  { %v9220_v57 = vmul.f32 0.5, %v9219_v42 }
0x1c25   :  { %v9221_v12 = vsub.f32 1.5, %v9220_v57 }
0x1c26   :  { %v10760_v35 = vpop.eup %10759 }
0x1c27   :  { %v9222_v33 = vmul.f32 %v10758_v14, %v9221_v12  ;;  %v9228_v24 = vmul.f32 %v10760_v35, %v9216_v62  ;;  %vm9234_vm9 = vweird.f32 %v10760_v35 }
0x1c28   :  { %vm9235_vm11 = vmor %vm9233_vm10, %vm9234_vm9 }
0x1c29   :  { %v9226_v5 = vsel %vm9225_vm6, %v10758_v14, %v9222_v33  ;;  %v9229_v21 = vmul.f32 %v10760_v35, %v9228_v24 }
0x1c2a   :  { %v9237_v55 = vmul.f32 %v9226_v5, %v9205_v50 }
0x1c2b   :  { %v9230_v9 = vmul.f32 0.5, %v9229_v21 }
0x1c2c   :  { %v9242_v44 = vmul.f32 %v10599_v39, %v9237_v55 }
0x1c2d   :  { %v9231_v6 = vsub.f32 1.5, %v9230_v9 }
0x1c2e   :  { %v9247_v53 = vadd.f32 %v10600_v8, %v9242_v44 }
0x1c2f   :  { %v9232_v58 = vmul.f32 %v10760_v35, %v9231_v6 }
0x1c30   :  { %9249 = vst [vmem:[%s14191_s25] sm:$0xff] %v9247_v53 }
0x1c31   :  { %v9236_v49 = vsel %vm9235_vm11, %v10760_v35, %v9232_v58 }
0x1c32   :  { %v9238_v7 = vmul.f32 %v9236_v49, %v9206_v26 }
0x1c34   :  { %v9243_v60 = vmul.f32 %v10599_v39, %v9238_v7 }
0x1c36   :  { %v9248_v61 = vadd.f32 %v10600_v8, %v9243_v60 }
0x1c38   :  { %9250 = vst [vmem:[%s14191_s25 + $0x8] sm:$0xff] %v9248_v61 }
0x1c39   :  { %10945 = dma.done.wait [#allocation4], 256  }
0x1c3a   :  { %10946 = vsyncadd [#allocation4], 4294967040 }
0x1c3b   :  { %9274 = vsyncpa [#allocation3], 1 }
0x1c3c   :  { %9275 = vsyncpa [#allocation6], 1 }
0x1c3d   :  { %9276 = vsyncpa [#allocation9], 1 }
0x1c3e   :  { %9277 = vsyncpa [#allocation12], 1 }
0x1c3f   :  { %9278 = vsyncpa [#allocation4], 1 }

</bundles_post_ra>
